<compile_context>
chip_gen: v6e
topology: v6e:2x2x1
jax: 0.10.0
libtpu: 0.0.40
codegen_flags: <defaults>
</compile_context>

<pallas_src>
import jax
import jax.numpy as jnp
from jax.experimental import pallas as pl
from jax.experimental.pallas import tpu as pltpu


BN_EPS = 1e-5
# Activations live in HBM as bf16 (halves DMA bytes on v6e/v7x); accumulation
# and the affine/LeakyReLU epilogue stay f32, so this is v5e-safe as well.
ACT_DTYPE = jnp.bfloat16


def _round_up(x, m):
    return (x + m - 1) // m * m


def _spatial_tiles(s, max_tile=6400):
    """Lane-dense spatial tiling: tile is a multiple of 128, tile*n_tiles >= s."""
    n_tiles = (s + max_tile - 1) // max_tile
    tile = _round_up((s + n_tiles - 1) // n_tiles, 128)
    return tile, n_tiles


# -----------------------------------------------------------------------------
# Pallas kernel: conv-as-GEMM tile + per-channel affine (bias / folded BN)
#                + LeakyReLU(0.2).   Lanes carry spatial; sublanes carry K/Cout.
# -----------------------------------------------------------------------------
def _conv_gemm_kernel(col_ref, w_ref, scale_ref, shift_ref, o_ref):
    """col_ref: (1, K, S_tile) bf16;  w_ref: (Cout, K) bf16;
    scale/shift: (Cout, 1) f32;       o_ref: (1, Cout, S_tile) bf16."""
    acc = jnp.dot(w_ref[...], col_ref[0],
                  preferred_element_type=jnp.float32)        # (Cout, S_tile) f32
    y = acc * scale_ref[...] + shift_ref[...]                 # lane-broadcast
    y = jnp.maximum(y, 0.2 * y)                               # LeakyReLU(0.2)
    o_ref[0] = y.astype(o_ref.dtype)


def _im2col(x_nchw, k, stride):
    """Pad=1 im2col in channels-first orientation: (N, k*k*C, Ho*Wo).

    Row index is (kh, kw, c)-ordered; lanes (minor axis) carry flattened
    output spatial positions, so every Pallas block is lane-dense.
    """
    n, c, h, w = x_nchw.shape
    xp = jnp.pad(x_nchw, ((0, 0), (0, 0), (1, 1), (1, 1)))
    ho = (h + 2 - k) // stride + 1
    wo = (w + 2 - k) // stride + 1
    slabs = []
    for kh in range(k):
        for kw in range(k):
            slabs.append(xp[:, :,
                            kh: kh + stride * (ho - 1) + 1: stride,
                            kw: kw + stride * (wo - 1) + 1: stride])
    col = jnp.stack(slabs, axis=1)                 # (N, k*k, C, Ho, Wo)
    return col.reshape(n, k * k * c, ho * wo), ho, wo


def conv_affine_lrelu(x_nchw, w_oihw, scale, shift, *, ksize, stride):
    """Conv2d(pad=1) + folded bias/BN + LeakyReLU(0.2); NCHW in / NCHW out."""
    n, cin, h, w = x_nchw.shape
    cout = w_oihw.shape[0]

    col, ho, wo = _im2col(x_nchw, ksize, stride)   # (N, K, S) bf16
    k2c = col.shape[1]
    s = ho * wo
    tile, n_tiles = _spatial_tiles(s)
    s_pad = tile * n_tiles
    if s_pad != s:                                 # zero-pad garbage columns
        col = jnp.pad(col, ((0, 0), (0, 0), (0, s_pad - s)))

    # Weight rows ordered (kh, kw, cin) to match the im2col row order.
    w2d = jnp.transpose(w_oihw, (0, 2, 3, 1)).reshape(cout, k2c)

    out = pl.pallas_call(
        _conv_gemm_kernel,
        out_shape=jax.ShapeDtypeStruct((n, cout, s_pad), ACT_DTYPE),
        grid=(n, n_tiles),
        in_specs=[
            pl.BlockSpec((1, k2c, tile), lambda b, t: (b, 0, t)),
            # Constant-index operands (weights/scale/shift) are tiny at this
            # config; pl.Buffered(1) would halve their VMEM at nf=64 widths.
            pl.BlockSpec((cout, k2c), lambda b, t: (0, 0)),
            pl.BlockSpec((cout, 1), lambda b, t: (0, 0)),
            pl.BlockSpec((cout, 1), lambda b, t: (0, 0)),
        ],
        out_specs=pl.BlockSpec((1, cout, tile), lambda b, t: (b, 0, t)),
        compiler_params=pltpu.CompilerParams(
            dimension_semantics=("parallel", "parallel")),   # v7x: 2 TCs
    )(col.astype(ACT_DTYPE),
      w2d.astype(jnp.bfloat16),
      scale.reshape(cout, 1).astype(jnp.float32),
      shift.reshape(cout, 1).astype(jnp.float32))

    return out[:, :, :s].reshape(n, cout, ho, wo)


# -----------------------------------------------------------------------------
# Pallas kernel: fused head  out = linear2( lrelu( linear1(x) + b1 ) ) + b2
# -----------------------------------------------------------------------------
def _head_kernel(x_ref, w1_ref, b1_ref, w2_ref, b2_ref, o_ref):
    h = jnp.dot(x_ref[...], w1_ref[...], preferred_element_type=jnp.float32)
    h = h + b1_ref[...]
    h = jnp.maximum(h, 0.2 * h)                                 # LeakyReLU(0.2)
    out = jnp.dot(h.astype(jnp.bfloat16), w2_ref[...],
                  preferred_element_type=jnp.float32)
    o_ref[...] = out + b2_ref[...]


def head(feat, w1, b1, w2, b2):
    n, k = feat.shape
    h1 = w1.shape[1]
    return pl.pallas_call(
        _head_kernel,
        out_shape=jax.ShapeDtypeStruct((n, 1), jnp.float32),
        grid=(1,),
        in_specs=[
            pl.BlockSpec((n, k), lambda i: (0, 0)),
            pl.BlockSpec((k, h1), lambda i: (0, 0)),
            pl.BlockSpec((1, h1), lambda i: (0, 0)),
            pl.BlockSpec((h1, 1), lambda i: (0, 0)),
            pl.BlockSpec((1, 1), lambda i: (0, 0)),
        ],
        out_specs=pl.BlockSpec((n, 1), lambda i: (0, 0)),
        compiler_params=pltpu.CompilerParams(
            dimension_semantics=("arbitrary",)),
    )(feat.astype(jnp.bfloat16), w1.astype(jnp.bfloat16),
      b1.reshape(1, h1).astype(jnp.float32),
      w2.astype(jnp.bfloat16), b2.reshape(1, 1).astype(jnp.float32))


# -----------------------------------------------------------------------------
# Model definition (shapes follow VGGStyleDiscriminator160.__init__)
# -----------------------------------------------------------------------------
def layer_configs(num_in_ch, num_feat):
    nf = num_feat
    # (name, cin, cout, ksize, stride, has_bias, has_bn)
    return [
        ("conv0_0", num_in_ch, nf,     3, 1, True,  False),
        ("conv0_1", nf,        nf,     4, 2, False, True),
        ("conv1_0", nf,        2 * nf, 3, 1, False, True),
        ("conv1_1", 2 * nf,    2 * nf, 4, 2, False, True),
        ("conv2_0", 2 * nf,    4 * nf, 3, 1, False, True),
        ("conv2_1", 4 * nf,    4 * nf, 4, 2, False, True),
        ("conv3_0", 4 * nf,    8 * nf, 3, 1, False, True),
        ("conv3_1", 8 * nf,    8 * nf, 4, 2, False, True),
        ("conv4_0", 8 * nf,    8 * nf, 3, 1, False, True),
        ("conv4_1", 8 * nf,    8 * nf, 4, 2, False, True),
    ]


def init_params(key, num_in_ch=3, num_feat=4):
    params = {}
    cfgs = layer_configs(num_in_ch, num_feat)
    keys = jax.random.split(key, len(cfgs) + 2)

    for (name, cin, cout, k, _s, has_bias, has_bn), lk in zip(cfgs, keys[:-2]):
        wk, bk, gk, bek = jax.random.split(lk, 4)
        fan_in = cin * k * k
        w = (0.5 / jnp.sqrt(fan_in)) * jax.random.normal(
            wk, (cout, cin, k, k), jnp.float32)           # OIHW, like PyTorch
        params[name + "_w"] = w
        if has_bn:
            gamma = 1.0 + 0.1 * jax.random.normal(gk, (cout,), jnp.float32)
            beta = 0.05 * jax.random.normal(bek, (cout,), jnp.float32)
            running_mean = jnp.zeros((cout,), jnp.float32)
            running_var = jnp.ones((cout,), jnp.float32)
            scale = gamma / jnp.sqrt(running_var + BN_EPS)
            shift = beta - running_mean * scale
        else:
            bias = 0.01 * jax.random.normal(bk, (cout,), jnp.float32)
            scale = jnp.ones((cout,), jnp.float32)
            shift = bias if has_bias else jnp.zeros((cout,), jnp.float32)
        params[name + "_scale"] = scale
        params[name + "_shift"] = shift

    nf = num_feat
    in_feats = nf * 8 * 5 * 5
    k1, k2 = keys[-2], keys[-1]
    k1w, k1b = jax.random.split(k1)
    k2w, k2b = jax.random.split(k2)
    # stored already transposed: (in_features, out_features)
    params["linear1_w"] = (0.5 / jnp.sqrt(in_feats)) * jax.random.normal(
        k1w, (in_feats, 100), jnp.float32)
    params["linear1_b"] = 0.01 * jax.random.normal(k1b, (100,), jnp.float32)
    params["linear2_w"] = (0.5 / jnp.sqrt(100)) * jax.random.normal(
        k2w, (100, 1), jnp.float32)
    params["linear2_b"] = 0.01 * jax.random.normal(k2b, (1,), jnp.float32)
    return params


def make_forward(num_in_ch=3, num_feat=4):
    cfgs = layer_configs(num_in_ch, num_feat)

    def forward(params, x_nchw):
        assert x_nchw.shape[2] == 160 and x_nchw.shape[3] == 160, (
            f"Input spatial size must be 160x160, but received {x_nchw.shape}.")
        x = x_nchw.astype(ACT_DTYPE)          # keep NCHW (PyTorch flatten order)
        for name, _cin, _cout, k, s, _b, _bn in cfgs:
            x = conv_affine_lrelu(
                x, params[name + "_w"],
                params[name + "_scale"], params[name + "_shift"],
                ksize=k, stride=s)
        n = x.shape[0]
        feat = x.reshape(n, -1)               # == PyTorch feat.view(N, -1)
        out = head(feat, params["linear1_w"], params["linear1_b"],
                   params["linear2_w"], params["linear2_b"])
        return out  # (N, 1) f32

    return forward


if __name__ == "__main__":
    key = jax.random.PRNGKey(0)
    pkey, xkey = jax.random.split(key)

    num_in_ch, num_feat, batch = 3, 4, 2   # small num_feat; spatial fixed at 160
    params = init_params(pkey, num_in_ch=num_in_ch, num_feat=num_feat)
    x = jax.random.normal(xkey, (batch, num_in_ch, 160, 160), jnp.float32)

    forward = jax.jit(make_forward(num_in_ch=num_in_ch, num_feat=num_feat))
    out = forward(params, x)
    jax.block_until_ready(out)
    assert out.shape == (batch, 1) and out.dtype == jnp.float32
    print("KERNEL_OK")
</pallas_src>

<mosaic_0001>
module attributes {stable_mosaic.version = 11 : i64} {
  func.func @_conv_gemm_kernel(%arg0: i32, %arg1: i32, %arg2: memref<1x27x6400xbf16, #tpu.memory_space<vmem>>, %arg3: memref<4x27xbf16, #tpu.memory_space<vmem>>, %arg4: memref<4x1xf32, #tpu.memory_space<vmem>>, %arg5: memref<4x1xf32, #tpu.memory_space<vmem>>, %arg6: memref<1x4x6400xbf16, #tpu.memory_space<vmem>>) attributes {dimension_semantics = [#tpu.dimension_semantics<parallel>, #tpu.dimension_semantics<parallel>], iteration_bounds = array<i64: 2, 4>, scalar_prefetch = 0 : i64, scratch_operands = 0 : i64, tpu.core_type = #tpu.core_type<tc>, window_params = [{transform_indices = @transform_0, window_bounds = array<i64: 1, 27, 6400>}, {pipeline_mode = #tpu.pipeline_mode<synchronous>, transform_indices = @transform_1, window_bounds = array<i64: 4, 27>}, {pipeline_mode = #tpu.pipeline_mode<synchronous>, transform_indices = @transform_2, window_bounds = array<i64: 4, 1>}, {pipeline_mode = #tpu.pipeline_mode<synchronous>, transform_indices = @transform_3, window_bounds = array<i64: 4, 1>}, {transform_indices = @transform_4, window_bounds = array<i64: 1, 4, 6400>}]} {
    %c0 = arith.constant 0 : index
    %c0_0 = arith.constant 0 : index
    %0 = vector.load %arg3[%c0, %c0_0] : memref<4x27xbf16, #tpu.memory_space<vmem>>, vector<4x27xbf16>
    %c0_1 = arith.constant 0 : index
    %c0_2 = arith.constant 0 : index
    %c0_3 = arith.constant 0 : index
    %1 = vector.load %arg2[%c0_1, %c0_2, %c0_3] : memref<1x27x6400xbf16, #tpu.memory_space<vmem>>, vector<1x27x6400xbf16>
    %2 = vector.shape_cast %1 : vector<1x27x6400xbf16> to vector<27x6400xbf16>
    %cst = arith.constant dense<0.000000e+00> : vector<4x6400xf32>
    %3 = tpu.matmul %0, %2, %cst {dimension_numbers = #tpu.dot_dimension_numbers<[1], [0], [0], [1], [0, 0, 1, 1], [], []>} : vector<4x27xbf16>, vector<27x6400xbf16>, vector<4x6400xf32> -> vector<4x6400xf32>
    %c0_4 = arith.constant 0 : index
    %c0_5 = arith.constant 0 : index
    %4 = vector.load %arg4[%c0_4, %c0_5] : memref<4x1xf32, #tpu.memory_space<vmem>>, vector<4x1xf32>
    %5 = vector.broadcast %4 : vector<4x1xf32> to vector<4x6400xf32>
    %6 = arith.mulf %3, %5 : vector<4x6400xf32>
    %c0_6 = arith.constant 0 : index
    %c0_7 = arith.constant 0 : index
    %7 = vector.load %arg5[%c0_6, %c0_7] : memref<4x1xf32, #tpu.memory_space<vmem>>, vector<4x1xf32>
    %8 = vector.broadcast %7 : vector<4x1xf32> to vector<4x6400xf32>
    %9 = arith.addf %6, %8 : vector<4x6400xf32>
    %cst_8 = arith.constant 2.000000e-01 : f32
    %10 = vector.broadcast %cst_8 : f32 to vector<4x6400xf32>
    %11 = arith.mulf %10, %9 : vector<4x6400xf32>
    %12 = arith.maximumf %9, %11 : vector<4x6400xf32>
    %13 = arith.truncf %12 : vector<4x6400xf32> to vector<4x6400xbf16>
    %c0_9 = arith.constant 0 : index
    %c0_10 = arith.constant 0 : index
    %c0_11 = arith.constant 0 : index
    %14 = vector.load %arg6[%c0_9, %c0_10, %c0_11] : memref<1x4x6400xbf16, #tpu.memory_space<vmem>>, vector<1x4x6400xbf16>
    %15 = vector.shape_cast %14 : vector<1x4x6400xbf16> to vector<4x6400xbf16>
    %16 = vector.shape_cast %13 : vector<4x6400xbf16> to vector<1x4x6400xbf16>
    tpu.vector_store %arg6[%c0_9, %c0_10, %c0_11], %16 {strides = array<i32>} : memref<1x4x6400xbf16, #tpu.memory_space<vmem>>, vector<1x4x6400xbf16>,
    return
  }
  func.func @transform_0(%arg0: i32, %arg1: i32) -> (i32, i32, i32) {
    %c0_i32 = arith.constant 0 : i32
    %c0_i32_0 = arith.constant 0 : i32
    return %arg0, %c0_i32, %arg1 : i32, i32, i32
  }
  func.func @transform_1(%arg0: i32, %arg1: i32) -> (i32, i32) {
    %c0_i32 = arith.constant 0 : i32
    %c0_i32_0 = arith.constant 0 : i32
    %c0_i32_1 = arith.constant 0 : i32
    return %c0_i32, %c0_i32_0 : i32, i32
  }
  func.func @transform_2(%arg0: i32, %arg1: i32) -> (i32, i32) {
    %c0_i32 = arith.constant 0 : i32
    %c0_i32_0 = arith.constant 0 : i32
    %c0_i32_1 = arith.constant 0 : i32
    return %c0_i32, %c0_i32_0 : i32, i32
  }
  func.func @transform_3(%arg0: i32, %arg1: i32) -> (i32, i32) {
    %c0_i32 = arith.constant 0 : i32
    %c0_i32_0 = arith.constant 0 : i32
    %c0_i32_1 = arith.constant 0 : i32
    return %c0_i32, %c0_i32_0 : i32, i32
  }
  func.func @transform_4(%arg0: i32, %arg1: i32) -> (i32, i32, i32) {
    %c0_i32 = arith.constant 0 : i32
    %c0_i32_0 = arith.constant 0 : i32
    return %arg0, %c0_i32, %arg1 : i32, i32, i32
  }
}

module attributes {stable_mosaic.version = 11 : i64} {
  func.func @_conv_gemm_kernel(%arg0: i32, %arg1: i32, %arg2: memref<1x64x6400xbf16, #tpu.memory_space<vmem>>, %arg3: memref<4x64xbf16, #tpu.memory_space<vmem>>, %arg4: memref<4x1xf32, #tpu.memory_space<vmem>>, %arg5: memref<4x1xf32, #tpu.memory_space<vmem>>, %arg6: memref<1x4x6400xbf16, #tpu.memory_space<vmem>>) attributes {dimension_semantics = [#tpu.dimension_semantics<parallel>, #tpu.dimension_semantics<parallel>], iteration_bounds = array<i64: 2, 1>, scalar_prefetch = 0 : i64, scratch_operands = 0 : i64, tpu.core_type = #tpu.core_type<tc>, window_params = [{transform_indices = @transform_0, window_bounds = array<i64: 1, 64, 6400>}, {pipeline_mode = #tpu.pipeline_mode<synchronous>, transform_indices = @transform_1, window_bounds = array<i64: 4, 64>}, {pipeline_mode = #tpu.pipeline_mode<synchronous>, transform_indices = @transform_2, window_bounds = array<i64: 4, 1>}, {pipeline_mode = #tpu.pipeline_mode<synchronous>, transform_indices = @transform_3, window_bounds = array<i64: 4, 1>}, {transform_indices = @transform_4, window_bounds = array<i64: 1, 4, 6400>}]} {
    %c0 = arith.constant 0 : index
    %c0_0 = arith.constant 0 : index
    %0 = vector.load %arg3[%c0, %c0_0] : memref<4x64xbf16, #tpu.memory_space<vmem>>, vector<4x64xbf16>
    %c0_1 = arith.constant 0 : index
    %c0_2 = arith.constant 0 : index
    %c0_3 = arith.constant 0 : index
    %1 = vector.load %arg2[%c0_1, %c0_2, %c0_3] : memref<1x64x6400xbf16, #tpu.memory_space<vmem>>, vector<1x64x6400xbf16>
    %2 = vector.shape_cast %1 : vector<1x64x6400xbf16> to vector<64x6400xbf16>
    %cst = arith.constant dense<0.000000e+00> : vector<4x6400xf32>
    %3 = tpu.matmul %0, %2, %cst {dimension_numbers = #tpu.dot_dimension_numbers<[1], [0], [0], [1], [0, 0, 1, 1], [], []>} : vector<4x64xbf16>, vector<64x6400xbf16>, vector<4x6400xf32> -> vector<4x6400xf32>
    %c0_4 = arith.constant 0 : index
    %c0_5 = arith.constant 0 : index
    %4 = vector.load %arg4[%c0_4, %c0_5] : memref<4x1xf32, #tpu.memory_space<vmem>>, vector<4x1xf32>
    %5 = vector.broadcast %4 : vector<4x1xf32> to vector<4x6400xf32>
    %6 = arith.mulf %3, %5 : vector<4x6400xf32>
    %c0_6 = arith.constant 0 : index
    %c0_7 = arith.constant 0 : index
    %7 = vector.load %arg5[%c0_6, %c0_7] : memref<4x1xf32, #tpu.memory_space<vmem>>, vector<4x1xf32>
    %8 = vector.broadcast %7 : vector<4x1xf32> to vector<4x6400xf32>
    %9 = arith.addf %6, %8 : vector<4x6400xf32>
    %cst_8 = arith.constant 2.000000e-01 : f32
    %10 = vector.broadcast %cst_8 : f32 to vector<4x6400xf32>
    %11 = arith.mulf %10, %9 : vector<4x6400xf32>
    %12 = arith.maximumf %9, %11 : vector<4x6400xf32>
    %13 = arith.truncf %12 : vector<4x6400xf32> to vector<4x6400xbf16>
    %c0_9 = arith.constant 0 : index
    %c0_10 = arith.constant 0 : index
    %c0_11 = arith.constant 0 : index
    %14 = vector.load %arg6[%c0_9, %c0_10, %c0_11] : memref<1x4x6400xbf16, #tpu.memory_space<vmem>>, vector<1x4x6400xbf16>
    %15 = vector.shape_cast %14 : vector<1x4x6400xbf16> to vector<4x6400xbf16>
    %16 = vector.shape_cast %13 : vector<4x6400xbf16> to vector<1x4x6400xbf16>
    tpu.vector_store %arg6[%c0_9, %c0_10, %c0_11], %16 {strides = array<i32>} : memref<1x4x6400xbf16, #tpu.memory_space<vmem>>, vector<1x4x6400xbf16>,
    return
  }
  func.func @transform_0(%arg0: i32, %arg1: i32) -> (i32, i32, i32) {
    %c0_i32 = arith.constant 0 : i32
    %c0_i32_0 = arith.constant 0 : i32
    return %arg0, %c0_i32, %arg1 : i32, i32, i32
  }
  func.func @transform_1(%arg0: i32, %arg1: i32) -> (i32, i32) {
    %c0_i32 = arith.constant 0 : i32
    %c0_i32_0 = arith.constant 0 : i32
    %c0_i32_1 = arith.constant 0 : i32
    return %c0_i32, %c0_i32_0 : i32, i32
  }
  func.func @transform_2(%arg0: i32, %arg1: i32) -> (i32, i32) {
    %c0_i32 = arith.constant 0 : i32
    %c0_i32_0 = arith.constant 0 : i32
    %c0_i32_1 = arith.constant 0 : i32
    return %c0_i32, %c0_i32_0 : i32, i32
  }
  func.func @transform_3(%arg0: i32, %arg1: i32) -> (i32, i32) {
    %c0_i32 = arith.constant 0 : i32
    %c0_i32_0 = arith.constant 0 : i32
    %c0_i32_1 = arith.constant 0 : i32
    return %c0_i32, %c0_i32_0 : i32, i32
  }
  func.func @transform_4(%arg0: i32, %arg1: i32) -> (i32, i32, i32) {
    %c0_i32 = arith.constant 0 : i32
    %c0_i32_0 = arith.constant 0 : i32
    return %arg0, %c0_i32, %arg1 : i32, i32, i32
  }
}

module attributes {stable_mosaic.version = 11 : i64} {
  func.func @_conv_gemm_kernel(%arg0: i32, %arg1: i32, %arg2: memref<1x36x6400xbf16, #tpu.memory_space<vmem>>, %arg3: memref<8x36xbf16, #tpu.memory_space<vmem>>, %arg4: memref<8x1xf32, #tpu.memory_space<vmem>>, %arg5: memref<8x1xf32, #tpu.memory_space<vmem>>, %arg6: memref<1x8x6400xbf16, #tpu.memory_space<vmem>>) attributes {dimension_semantics = [#tpu.dimension_semantics<parallel>, #tpu.dimension_semantics<parallel>], iteration_bounds = array<i64: 2, 1>, scalar_prefetch = 0 : i64, scratch_operands = 0 : i64, tpu.core_type = #tpu.core_type<tc>, window_params = [{transform_indices = @transform_0, window_bounds = array<i64: 1, 36, 6400>}, {pipeline_mode = #tpu.pipeline_mode<synchronous>, transform_indices = @transform_1, window_bounds = array<i64: 8, 36>}, {pipeline_mode = #tpu.pipeline_mode<synchronous>, transform_indices = @transform_2, window_bounds = array<i64: 8, 1>}, {pipeline_mode = #tpu.pipeline_mode<synchronous>, transform_indices = @transform_3, window_bounds = array<i64: 8, 1>}, {transform_indices = @transform_4, window_bounds = array<i64: 1, 8, 6400>}]} {
    %c0 = arith.constant 0 : index
    %c0_0 = arith.constant 0 : index
    %0 = vector.load %arg3[%c0, %c0_0] : memref<8x36xbf16, #tpu.memory_space<vmem>>, vector<8x36xbf16>
    %c0_1 = arith.constant 0 : index
    %c0_2 = arith.constant 0 : index
    %c0_3 = arith.constant 0 : index
    %1 = vector.load %arg2[%c0_1, %c0_2, %c0_3] : memref<1x36x6400xbf16, #tpu.memory_space<vmem>>, vector<1x36x6400xbf16>
    %2 = vector.shape_cast %1 : vector<1x36x6400xbf16> to vector<36x6400xbf16>
    %cst = arith.constant dense<0.000000e+00> : vector<8x6400xf32>
    %3 = tpu.matmul %0, %2, %cst {dimension_numbers = #tpu.dot_dimension_numbers<[1], [0], [0], [1], [0, 0, 1, 1], [], []>} : vector<8x36xbf16>, vector<36x6400xbf16>, vector<8x6400xf32> -> vector<8x6400xf32>
    %c0_4 = arith.constant 0 : index
    %c0_5 = arith.constant 0 : index
    %4 = vector.load %arg4[%c0_4, %c0_5] : memref<8x1xf32, #tpu.memory_space<vmem>>, vector<8x1xf32>
    %5 = vector.broadcast %4 : vector<8x1xf32> to vector<8x6400xf32>
    %6 = arith.mulf %3, %5 : vector<8x6400xf32>
    %c0_6 = arith.constant 0 : index
    %c0_7 = arith.constant 0 : index
    %7 = vector.load %arg5[%c0_6, %c0_7] : memref<8x1xf32, #tpu.memory_space<vmem>>, vector<8x1xf32>
    %8 = vector.broadcast %7 : vector<8x1xf32> to vector<8x6400xf32>
    %9 = arith.addf %6, %8 : vector<8x6400xf32>
    %cst_8 = arith.constant 2.000000e-01 : f32
    %10 = vector.broadcast %cst_8 : f32 to vector<8x6400xf32>
    %11 = arith.mulf %10, %9 : vector<8x6400xf32>
    %12 = arith.maximumf %9, %11 : vector<8x6400xf32>
    %13 = arith.truncf %12 : vector<8x6400xf32> to vector<8x6400xbf16>
    %c0_9 = arith.constant 0 : index
    %c0_10 = arith.constant 0 : index
    %c0_11 = arith.constant 0 : index
    %14 = vector.load %arg6[%c0_9, %c0_10, %c0_11] : memref<1x8x6400xbf16, #tpu.memory_space<vmem>>, vector<1x8x6400xbf16>
    %15 = vector.shape_cast %14 : vector<1x8x6400xbf16> to vector<8x6400xbf16>
    %16 = vector.shape_cast %13 : vector<8x6400xbf16> to vector<1x8x6400xbf16>
    tpu.vector_store %arg6[%c0_9, %c0_10, %c0_11], %16 {strides = array<i32>} : memref<1x8x6400xbf16, #tpu.memory_space<vmem>>, vector<1x8x6400xbf16>,
    return
  }
  func.func @transform_0(%arg0: i32, %arg1: i32) -> (i32, i32, i32) {
    %c0_i32 = arith.constant 0 : i32
    %c0_i32_0 = arith.constant 0 : i32
    return %arg0, %c0_i32, %arg1 : i32, i32, i32
  }
  func.func @transform_1(%arg0: i32, %arg1: i32) -> (i32, i32) {
    %c0_i32 = arith.constant 0 : i32
    %c0_i32_0 = arith.constant 0 : i32
    %c0_i32_1 = arith.constant 0 : i32
    return %c0_i32, %c0_i32_0 : i32, i32
  }
  func.func @transform_2(%arg0: i32, %arg1: i32) -> (i32, i32) {
    %c0_i32 = arith.constant 0 : i32
    %c0_i32_0 = arith.constant 0 : i32
    %c0_i32_1 = arith.constant 0 : i32
    return %c0_i32, %c0_i32_0 : i32, i32
  }
  func.func @transform_3(%arg0: i32, %arg1: i32) -> (i32, i32) {
    %c0_i32 = arith.constant 0 : i32
    %c0_i32_0 = arith.constant 0 : i32
    %c0_i32_1 = arith.constant 0 : i32
    return %c0_i32, %c0_i32_0 : i32, i32
  }
  func.func @transform_4(%arg0: i32, %arg1: i32) -> (i32, i32, i32) {
    %c0_i32 = arith.constant 0 : i32
    %c0_i32_0 = arith.constant 0 : i32
    return %arg0, %c0_i32, %arg1 : i32, i32, i32
  }
}

module attributes {stable_mosaic.version = 11 : i64} {
  func.func @_conv_gemm_kernel(%arg0: i32, %arg1: i32, %arg2: memref<1x128x1664xbf16, #tpu.memory_space<vmem>>, %arg3: memref<8x128xbf16, #tpu.memory_space<vmem>>, %arg4: memref<8x1xf32, #tpu.memory_space<vmem>>, %arg5: memref<8x1xf32, #tpu.memory_space<vmem>>, %arg6: memref<1x8x1664xbf16, #tpu.memory_space<vmem>>) attributes {dimension_semantics = [#tpu.dimension_semantics<parallel>, #tpu.dimension_semantics<parallel>], iteration_bounds = array<i64: 2, 1>, scalar_prefetch = 0 : i64, scratch_operands = 0 : i64, tpu.core_type = #tpu.core_type<tc>, window_params = [{transform_indices = @transform_0, window_bounds = array<i64: 1, 128, 1664>}, {pipeline_mode = #tpu.pipeline_mode<synchronous>, transform_indices = @transform_1, window_bounds = array<i64: 8, 128>}, {pipeline_mode = #tpu.pipeline_mode<synchronous>, transform_indices = @transform_2, window_bounds = array<i64: 8, 1>}, {pipeline_mode = #tpu.pipeline_mode<synchronous>, transform_indices = @transform_3, window_bounds = array<i64: 8, 1>}, {transform_indices = @transform_4, window_bounds = array<i64: 1, 8, 1664>}]} {
    %c0 = arith.constant 0 : index
    %c0_0 = arith.constant 0 : index
    %0 = vector.load %arg3[%c0, %c0_0] : memref<8x128xbf16, #tpu.memory_space<vmem>>, vector<8x128xbf16>
    %c0_1 = arith.constant 0 : index
    %c0_2 = arith.constant 0 : index
    %c0_3 = arith.constant 0 : index
    %1 = vector.load %arg2[%c0_1, %c0_2, %c0_3] : memref<1x128x1664xbf16, #tpu.memory_space<vmem>>, vector<1x128x1664xbf16>
    %2 = vector.shape_cast %1 : vector<1x128x1664xbf16> to vector<128x1664xbf16>
    %cst = arith.constant dense<0.000000e+00> : vector<8x1664xf32>
    %3 = tpu.matmul %0, %2, %cst {dimension_numbers = #tpu.dot_dimension_numbers<[1], [0], [0], [1], [0, 0, 1, 1], [], []>} : vector<8x128xbf16>, vector<128x1664xbf16>, vector<8x1664xf32> -> vector<8x1664xf32>
    %c0_4 = arith.constant 0 : index
    %c0_5 = arith.constant 0 : index
    %4 = vector.load %arg4[%c0_4, %c0_5] : memref<8x1xf32, #tpu.memory_space<vmem>>, vector<8x1xf32>
    %5 = vector.broadcast %4 : vector<8x1xf32> to vector<8x1664xf32>
    %6 = arith.mulf %3, %5 : vector<8x1664xf32>
    %c0_6 = arith.constant 0 : index
    %c0_7 = arith.constant 0 : index
    %7 = vector.load %arg5[%c0_6, %c0_7] : memref<8x1xf32, #tpu.memory_space<vmem>>, vector<8x1xf32>
    %8 = vector.broadcast %7 : vector<8x1xf32> to vector<8x1664xf32>
    %9 = arith.addf %6, %8 : vector<8x1664xf32>
    %cst_8 = arith.constant 2.000000e-01 : f32
    %10 = vector.broadcast %cst_8 : f32 to vector<8x1664xf32>
    %11 = arith.mulf %10, %9 : vector<8x1664xf32>
    %12 = arith.maximumf %9, %11 : vector<8x1664xf32>
    %13 = arith.truncf %12 : vector<8x1664xf32> to vector<8x1664xbf16>
    %c0_9 = arith.constant 0 : index
    %c0_10 = arith.constant 0 : index
    %c0_11 = arith.constant 0 : index
    %14 = vector.load %arg6[%c0_9, %c0_10, %c0_11] : memref<1x8x1664xbf16, #tpu.memory_space<vmem>>, vector<1x8x1664xbf16>
    %15 = vector.shape_cast %14 : vector<1x8x1664xbf16> to vector<8x1664xbf16>
    %16 = vector.shape_cast %13 : vector<8x1664xbf16> to vector<1x8x1664xbf16>
    tpu.vector_store %arg6[%c0_9, %c0_10, %c0_11], %16 {strides = array<i32>} : memref<1x8x1664xbf16, #tpu.memory_space<vmem>>, vector<1x8x1664xbf16>,
    return
  }
  func.func @transform_0(%arg0: i32, %arg1: i32) -> (i32, i32, i32) {
    %c0_i32 = arith.constant 0 : i32
    %c0_i32_0 = arith.constant 0 : i32
    return %arg0, %c0_i32, %arg1 : i32, i32, i32
  }
  func.func @transform_1(%arg0: i32, %arg1: i32) -> (i32, i32) {
    %c0_i32 = arith.constant 0 : i32
    %c0_i32_0 = arith.constant 0 : i32
    %c0_i32_1 = arith.constant 0 : i32
    return %c0_i32, %c0_i32_0 : i32, i32
  }
  func.func @transform_2(%arg0: i32, %arg1: i32) -> (i32, i32) {
    %c0_i32 = arith.constant 0 : i32
    %c0_i32_0 = arith.constant 0 : i32
    %c0_i32_1 = arith.constant 0 : i32
    return %c0_i32, %c0_i32_0 : i32, i32
  }
  func.func @transform_3(%arg0: i32, %arg1: i32) -> (i32, i32) {
    %c0_i32 = arith.constant 0 : i32
    %c0_i32_0 = arith.constant 0 : i32
    %c0_i32_1 = arith.constant 0 : i32
    return %c0_i32, %c0_i32_0 : i32, i32
  }
  func.func @transform_4(%arg0: i32, %arg1: i32) -> (i32, i32, i32) {
    %c0_i32 = arith.constant 0 : i32
    %c0_i32_0 = arith.constant 0 : i32
    return %arg0, %c0_i32, %arg1 : i32, i32, i32
  }
}

module attributes {stable_mosaic.version = 11 : i64} {
  func.func @_conv_gemm_kernel(%arg0: i32, %arg1: i32, %arg2: memref<1x72x1664xbf16, #tpu.memory_space<vmem>>, %arg3: memref<16x72xbf16, #tpu.memory_space<vmem>>, %arg4: memref<16x1xf32, #tpu.memory_space<vmem>>, %arg5: memref<16x1xf32, #tpu.memory_space<vmem>>, %arg6: memref<1x16x1664xbf16, #tpu.memory_space<vmem>>) attributes {dimension_semantics = [#tpu.dimension_semantics<parallel>, #tpu.dimension_semantics<parallel>], iteration_bounds = array<i64: 2, 1>, scalar_prefetch = 0 : i64, scratch_operands = 0 : i64, tpu.core_type = #tpu.core_type<tc>, window_params = [{transform_indices = @transform_0, window_bounds = array<i64: 1, 72, 1664>}, {pipeline_mode = #tpu.pipeline_mode<synchronous>, transform_indices = @transform_1, window_bounds = array<i64: 16, 72>}, {pipeline_mode = #tpu.pipeline_mode<synchronous>, transform_indices = @transform_2, window_bounds = array<i64: 16, 1>}, {pipeline_mode = #tpu.pipeline_mode<synchronous>, transform_indices = @transform_3, window_bounds = array<i64: 16, 1>}, {transform_indices = @transform_4, window_bounds = array<i64: 1, 16, 1664>}]} {
    %c0 = arith.constant 0 : index
    %c0_0 = arith.constant 0 : index
    %0 = vector.load %arg3[%c0, %c0_0] : memref<16x72xbf16, #tpu.memory_space<vmem>>, vector<16x72xbf16>
    %c0_1 = arith.constant 0 : index
    %c0_2 = arith.constant 0 : index
    %c0_3 = arith.constant 0 : index
    %1 = vector.load %arg2[%c0_1, %c0_2, %c0_3] : memref<1x72x1664xbf16, #tpu.memory_space<vmem>>, vector<1x72x1664xbf16>
    %2 = vector.shape_cast %1 : vector<1x72x1664xbf16> to vector<72x1664xbf16>
    %cst = arith.constant dense<0.000000e+00> : vector<16x1664xf32>
    %3 = tpu.matmul %0, %2, %cst {dimension_numbers = #tpu.dot_dimension_numbers<[1], [0], [0], [1], [0, 0, 1, 1], [], []>} : vector<16x72xbf16>, vector<72x1664xbf16>, vector<16x1664xf32> -> vector<16x1664xf32>
    %c0_4 = arith.constant 0 : index
    %c0_5 = arith.constant 0 : index
    %4 = vector.load %arg4[%c0_4, %c0_5] : memref<16x1xf32, #tpu.memory_space<vmem>>, vector<16x1xf32>
    %5 = vector.broadcast %4 : vector<16x1xf32> to vector<16x1664xf32>
    %6 = arith.mulf %3, %5 : vector<16x1664xf32>
    %c0_6 = arith.constant 0 : index
    %c0_7 = arith.constant 0 : index
    %7 = vector.load %arg5[%c0_6, %c0_7] : memref<16x1xf32, #tpu.memory_space<vmem>>, vector<16x1xf32>
    %8 = vector.broadcast %7 : vector<16x1xf32> to vector<16x1664xf32>
    %9 = arith.addf %6, %8 : vector<16x1664xf32>
    %cst_8 = arith.constant 2.000000e-01 : f32
    %10 = vector.broadcast %cst_8 : f32 to vector<16x1664xf32>
    %11 = arith.mulf %10, %9 : vector<16x1664xf32>
    %12 = arith.maximumf %9, %11 : vector<16x1664xf32>
    %13 = arith.truncf %12 : vector<16x1664xf32> to vector<16x1664xbf16>
    %c0_9 = arith.constant 0 : index
    %c0_10 = arith.constant 0 : index
    %c0_11 = arith.constant 0 : index
    %14 = vector.load %arg6[%c0_9, %c0_10, %c0_11] : memref<1x16x1664xbf16, #tpu.memory_space<vmem>>, vector<1x16x1664xbf16>
    %15 = vector.shape_cast %14 : vector<1x16x1664xbf16> to vector<16x1664xbf16>
    %16 = vector.shape_cast %13 : vector<16x1664xbf16> to vector<1x16x1664xbf16>
    tpu.vector_store %arg6[%c0_9, %c0_10, %c0_11], %16 {strides = array<i32>} : memref<1x16x1664xbf16, #tpu.memory_space<vmem>>, vector<1x16x1664xbf16>,
    return
  }
  func.func @transform_0(%arg0: i32, %arg1: i32) -> (i32, i32, i32) {
    %c0_i32 = arith.constant 0 : i32
    %c0_i32_0 = arith.constant 0 : i32
    return %arg0, %c0_i32, %arg1 : i32, i32, i32
  }
  func.func @transform_1(%arg0: i32, %arg1: i32) -> (i32, i32) {
    %c0_i32 = arith.constant 0 : i32
    %c0_i32_0 = arith.constant 0 : i32
    %c0_i32_1 = arith.constant 0 : i32
    return %c0_i32, %c0_i32_0 : i32, i32
  }
  func.func @transform_2(%arg0: i32, %arg1: i32) -> (i32, i32) {
    %c0_i32 = arith.constant 0 : i32
    %c0_i32_0 = arith.constant 0 : i32
    %c0_i32_1 = arith.constant 0 : i32
    return %c0_i32, %c0_i32_0 : i32, i32
  }
  func.func @transform_3(%arg0: i32, %arg1: i32) -> (i32, i32) {
    %c0_i32 = arith.constant 0 : i32
    %c0_i32_0 = arith.constant 0 : i32
    %c0_i32_1 = arith.constant 0 : i32
    return %c0_i32, %c0_i32_0 : i32, i32
  }
  func.func @transform_4(%arg0: i32, %arg1: i32) -> (i32, i32, i32) {
    %c0_i32 = arith.constant 0 : i32
    %c0_i32_0 = arith.constant 0 : i32
    return %arg0, %c0_i32, %arg1 : i32, i32, i32
  }
}

module attributes {stable_mosaic.version = 11 : i64} {
  func.func @_conv_gemm_kernel(%arg0: i32, %arg1: i32, %arg2: memref<1x256x512xbf16, #tpu.memory_space<vmem>>, %arg3: memref<16x256xbf16, #tpu.memory_space<vmem>>, %arg4: memref<16x1xf32, #tpu.memory_space<vmem>>, %arg5: memref<16x1xf32, #tpu.memory_space<vmem>>, %arg6: memref<1x16x512xbf16, #tpu.memory_space<vmem>>) attributes {dimension_semantics = [#tpu.dimension_semantics<parallel>, #tpu.dimension_semantics<parallel>], iteration_bounds = array<i64: 2, 1>, scalar_prefetch = 0 : i64, scratch_operands = 0 : i64, tpu.core_type = #tpu.core_type<tc>, window_params = [{transform_indices = @transform_0, window_bounds = array<i64: 1, 256, 512>}, {pipeline_mode = #tpu.pipeline_mode<synchronous>, transform_indices = @transform_1, window_bounds = array<i64: 16, 256>}, {pipeline_mode = #tpu.pipeline_mode<synchronous>, transform_indices = @transform_2, window_bounds = array<i64: 16, 1>}, {pipeline_mode = #tpu.pipeline_mode<synchronous>, transform_indices = @transform_3, window_bounds = array<i64: 16, 1>}, {transform_indices = @transform_4, window_bounds = array<i64: 1, 16, 512>}]} {
    %c0 = arith.constant 0 : index
    %c0_0 = arith.constant 0 : index
    %0 = vector.load %arg3[%c0, %c0_0] : memref<16x256xbf16, #tpu.memory_space<vmem>>, vector<16x256xbf16>
    %c0_1 = arith.constant 0 : index
    %c0_2 = arith.constant 0 : index
    %c0_3 = arith.constant 0 : index
    %1 = vector.load %arg2[%c0_1, %c0_2, %c0_3] : memref<1x256x512xbf16, #tpu.memory_space<vmem>>, vector<1x256x512xbf16>
    %2 = vector.shape_cast %1 : vector<1x256x512xbf16> to vector<256x512xbf16>
    %cst = arith.constant dense<0.000000e+00> : vector<16x512xf32>
    %3 = tpu.matmul %0, %2, %cst {dimension_numbers = #tpu.dot_dimension_numbers<[1], [0], [0], [1], [0, 0, 1, 1], [], []>} : vector<16x256xbf16>, vector<256x512xbf16>, vector<16x512xf32> -> vector<16x512xf32>
    %c0_4 = arith.constant 0 : index
    %c0_5 = arith.constant 0 : index
    %4 = vector.load %arg4[%c0_4, %c0_5] : memref<16x1xf32, #tpu.memory_space<vmem>>, vector<16x1xf32>
    %5 = vector.broadcast %4 : vector<16x1xf32> to vector<16x512xf32>
    %6 = arith.mulf %3, %5 : vector<16x512xf32>
    %c0_6 = arith.constant 0 : index
    %c0_7 = arith.constant 0 : index
    %7 = vector.load %arg5[%c0_6, %c0_7] : memref<16x1xf32, #tpu.memory_space<vmem>>, vector<16x1xf32>
    %8 = vector.broadcast %7 : vector<16x1xf32> to vector<16x512xf32>
    %9 = arith.addf %6, %8 : vector<16x512xf32>
    %cst_8 = arith.constant 2.000000e-01 : f32
    %10 = vector.broadcast %cst_8 : f32 to vector<16x512xf32>
    %11 = arith.mulf %10, %9 : vector<16x512xf32>
    %12 = arith.maximumf %9, %11 : vector<16x512xf32>
    %13 = arith.truncf %12 : vector<16x512xf32> to vector<16x512xbf16>
    %c0_9 = arith.constant 0 : index
    %c0_10 = arith.constant 0 : index
    %c0_11 = arith.constant 0 : index
    %14 = vector.load %arg6[%c0_9, %c0_10, %c0_11] : memref<1x16x512xbf16, #tpu.memory_space<vmem>>, vector<1x16x512xbf16>
    %15 = vector.shape_cast %14 : vector<1x16x512xbf16> to vector<16x512xbf16>
    %16 = vector.shape_cast %13 : vector<16x512xbf16> to vector<1x16x512xbf16>
    tpu.vector_store %arg6[%c0_9, %c0_10, %c0_11], %16 {strides = array<i32>} : memref<1x16x512xbf16, #tpu.memory_space<vmem>>, vector<1x16x512xbf16>,
    return
  }
  func.func @transform_0(%arg0: i32, %arg1: i32) -> (i32, i32, i32) {
    %c0_i32 = arith.constant 0 : i32
    %c0_i32_0 = arith.constant 0 : i32
    return %arg0, %c0_i32, %arg1 : i32, i32, i32
  }
  func.func @transform_1(%arg0: i32, %arg1: i32) -> (i32, i32) {
    %c0_i32 = arith.constant 0 : i32
    %c0_i32_0 = arith.constant 0 : i32
    %c0_i32_1 = arith.constant 0 : i32
    return %c0_i32, %c0_i32_0 : i32, i32
  }
  func.func @transform_2(%arg0: i32, %arg1: i32) -> (i32, i32) {
    %c0_i32 = arith.constant 0 : i32
    %c0_i32_0 = arith.constant 0 : i32
    %c0_i32_1 = arith.constant 0 : i32
    return %c0_i32, %c0_i32_0 : i32, i32
  }
  func.func @transform_3(%arg0: i32, %arg1: i32) -> (i32, i32) {
    %c0_i32 = arith.constant 0 : i32
    %c0_i32_0 = arith.constant 0 : i32
    %c0_i32_1 = arith.constant 0 : i32
    return %c0_i32, %c0_i32_0 : i32, i32
  }
  func.func @transform_4(%arg0: i32, %arg1: i32) -> (i32, i32, i32) {
    %c0_i32 = arith.constant 0 : i32
    %c0_i32_0 = arith.constant 0 : i32
    return %arg0, %c0_i32, %arg1 : i32, i32, i32
  }
}

module attributes {stable_mosaic.version = 11 : i64} {
  func.func @_conv_gemm_kernel(%arg0: i32, %arg1: i32, %arg2: memref<1x144x512xbf16, #tpu.memory_space<vmem>>, %arg3: memref<32x144xbf16, #tpu.memory_space<vmem>>, %arg4: memref<32x1xf32, #tpu.memory_space<vmem>>, %arg5: memref<32x1xf32, #tpu.memory_space<vmem>>, %arg6: memref<1x32x512xbf16, #tpu.memory_space<vmem>>) attributes {dimension_semantics = [#tpu.dimension_semantics<parallel>, #tpu.dimension_semantics<parallel>], iteration_bounds = array<i64: 2, 1>, scalar_prefetch = 0 : i64, scratch_operands = 0 : i64, tpu.core_type = #tpu.core_type<tc>, window_params = [{transform_indices = @transform_0, window_bounds = array<i64: 1, 144, 512>}, {pipeline_mode = #tpu.pipeline_mode<synchronous>, transform_indices = @transform_1, window_bounds = array<i64: 32, 144>}, {pipeline_mode = #tpu.pipeline_mode<synchronous>, transform_indices = @transform_2, window_bounds = array<i64: 32, 1>}, {pipeline_mode = #tpu.pipeline_mode<synchronous>, transform_indices = @transform_3, window_bounds = array<i64: 32, 1>}, {transform_indices = @transform_4, window_bounds = array<i64: 1, 32, 512>}]} {
    %c0 = arith.constant 0 : index
    %c0_0 = arith.constant 0 : index
    %0 = vector.load %arg3[%c0, %c0_0] : memref<32x144xbf16, #tpu.memory_space<vmem>>, vector<32x144xbf16>
    %c0_1 = arith.constant 0 : index
    %c0_2 = arith.constant 0 : index
    %c0_3 = arith.constant 0 : index
    %1 = vector.load %arg2[%c0_1, %c0_2, %c0_3] : memref<1x144x512xbf16, #tpu.memory_space<vmem>>, vector<1x144x512xbf16>
    %2 = vector.shape_cast %1 : vector<1x144x512xbf16> to vector<144x512xbf16>
    %cst = arith.constant dense<0.000000e+00> : vector<32x512xf32>
    %3 = tpu.matmul %0, %2, %cst {dimension_numbers = #tpu.dot_dimension_numbers<[1], [0], [0], [1], [0, 0, 1, 1], [], []>} : vector<32x144xbf16>, vector<144x512xbf16>, vector<32x512xf32> -> vector<32x512xf32>
    %c0_4 = arith.constant 0 : index
    %c0_5 = arith.constant 0 : index
    %4 = vector.load %arg4[%c0_4, %c0_5] : memref<32x1xf32, #tpu.memory_space<vmem>>, vector<32x1xf32>
    %5 = vector.broadcast %4 : vector<32x1xf32> to vector<32x512xf32>
    %6 = arith.mulf %3, %5 : vector<32x512xf32>
    %c0_6 = arith.constant 0 : index
    %c0_7 = arith.constant 0 : index
    %7 = vector.load %arg5[%c0_6, %c0_7] : memref<32x1xf32, #tpu.memory_space<vmem>>, vector<32x1xf32>
    %8 = vector.broadcast %7 : vector<32x1xf32> to vector<32x512xf32>
    %9 = arith.addf %6, %8 : vector<32x512xf32>
    %cst_8 = arith.constant 2.000000e-01 : f32
    %10 = vector.broadcast %cst_8 : f32 to vector<32x512xf32>
    %11 = arith.mulf %10, %9 : vector<32x512xf32>
    %12 = arith.maximumf %9, %11 : vector<32x512xf32>
    %13 = arith.truncf %12 : vector<32x512xf32> to vector<32x512xbf16>
    %c0_9 = arith.constant 0 : index
    %c0_10 = arith.constant 0 : index
    %c0_11 = arith.constant 0 : index
    %14 = vector.load %arg6[%c0_9, %c0_10, %c0_11] : memref<1x32x512xbf16, #tpu.memory_space<vmem>>, vector<1x32x512xbf16>
    %15 = vector.shape_cast %14 : vector<1x32x512xbf16> to vector<32x512xbf16>
    %16 = vector.shape_cast %13 : vector<32x512xbf16> to vector<1x32x512xbf16>
    tpu.vector_store %arg6[%c0_9, %c0_10, %c0_11], %16 {strides = array<i32>} : memref<1x32x512xbf16, #tpu.memory_space<vmem>>, vector<1x32x512xbf16>,
    return
  }
  func.func @transform_0(%arg0: i32, %arg1: i32) -> (i32, i32, i32) {
    %c0_i32 = arith.constant 0 : i32
    %c0_i32_0 = arith.constant 0 : i32
    return %arg0, %c0_i32, %arg1 : i32, i32, i32
  }
  func.func @transform_1(%arg0: i32, %arg1: i32) -> (i32, i32) {
    %c0_i32 = arith.constant 0 : i32
    %c0_i32_0 = arith.constant 0 : i32
    %c0_i32_1 = arith.constant 0 : i32
    return %c0_i32, %c0_i32_0 : i32, i32
  }
  func.func @transform_2(%arg0: i32, %arg1: i32) -> (i32, i32) {
    %c0_i32 = arith.constant 0 : i32
    %c0_i32_0 = arith.constant 0 : i32
    %c0_i32_1 = arith.constant 0 : i32
    return %c0_i32, %c0_i32_0 : i32, i32
  }
  func.func @transform_3(%arg0: i32, %arg1: i32) -> (i32, i32) {
    %c0_i32 = arith.constant 0 : i32
    %c0_i32_0 = arith.constant 0 : i32
    %c0_i32_1 = arith.constant 0 : i32
    return %c0_i32, %c0_i32_0 : i32, i32
  }
  func.func @transform_4(%arg0: i32, %arg1: i32) -> (i32, i32, i32) {
    %c0_i32 = arith.constant 0 : i32
    %c0_i32_0 = arith.constant 0 : i32
    return %arg0, %c0_i32, %arg1 : i32, i32, i32
  }
}

module attributes {stable_mosaic.version = 11 : i64} {
  func.func @_conv_gemm_kernel(%arg0: i32, %arg1: i32, %arg2: memref<1x512x128xbf16, #tpu.memory_space<vmem>>, %arg3: memref<32x512xbf16, #tpu.memory_space<vmem>>, %arg4: memref<32x1xf32, #tpu.memory_space<vmem>>, %arg5: memref<32x1xf32, #tpu.memory_space<vmem>>, %arg6: memref<1x32x128xbf16, #tpu.memory_space<vmem>>) attributes {dimension_semantics = [#tpu.dimension_semantics<parallel>, #tpu.dimension_semantics<parallel>], iteration_bounds = array<i64: 2, 1>, scalar_prefetch = 0 : i64, scratch_operands = 0 : i64, tpu.core_type = #tpu.core_type<tc>, window_params = [{transform_indices = @transform_0, window_bounds = array<i64: 1, 512, 128>}, {pipeline_mode = #tpu.pipeline_mode<synchronous>, transform_indices = @transform_1, window_bounds = array<i64: 32, 512>}, {pipeline_mode = #tpu.pipeline_mode<synchronous>, transform_indices = @transform_2, window_bounds = array<i64: 32, 1>}, {pipeline_mode = #tpu.pipeline_mode<synchronous>, transform_indices = @transform_3, window_bounds = array<i64: 32, 1>}, {transform_indices = @transform_4, window_bounds = array<i64: 1, 32, 128>}]} {
    %c0 = arith.constant 0 : index
    %c0_0 = arith.constant 0 : index
    %0 = vector.load %arg3[%c0, %c0_0] : memref<32x512xbf16, #tpu.memory_space<vmem>>, vector<32x512xbf16>
    %c0_1 = arith.constant 0 : index
    %c0_2 = arith.constant 0 : index
    %c0_3 = arith.constant 0 : index
    %1 = vector.load %arg2[%c0_1, %c0_2, %c0_3] : memref<1x512x128xbf16, #tpu.memory_space<vmem>>, vector<1x512x128xbf16>
    %2 = vector.shape_cast %1 : vector<1x512x128xbf16> to vector<512x128xbf16>
    %cst = arith.constant dense<0.000000e+00> : vector<32x128xf32>
    %3 = tpu.matmul %0, %2, %cst {dimension_numbers = #tpu.dot_dimension_numbers<[1], [0], [0], [1], [0, 0, 1, 1], [], []>} : vector<32x512xbf16>, vector<512x128xbf16>, vector<32x128xf32> -> vector<32x128xf32>
    %c0_4 = arith.constant 0 : index
    %c0_5 = arith.constant 0 : index
    %4 = vector.load %arg4[%c0_4, %c0_5] : memref<32x1xf32, #tpu.memory_space<vmem>>, vector<32x1xf32>
    %5 = vector.broadcast %4 : vector<32x1xf32> to vector<32x128xf32>
    %6 = arith.mulf %3, %5 : vector<32x128xf32>
    %c0_6 = arith.constant 0 : index
    %c0_7 = arith.constant 0 : index
    %7 = vector.load %arg5[%c0_6, %c0_7] : memref<32x1xf32, #tpu.memory_space<vmem>>, vector<32x1xf32>
    %8 = vector.broadcast %7 : vector<32x1xf32> to vector<32x128xf32>
    %9 = arith.addf %6, %8 : vector<32x128xf32>
    %cst_8 = arith.constant 2.000000e-01 : f32
    %10 = vector.broadcast %cst_8 : f32 to vector<32x128xf32>
    %11 = arith.mulf %10, %9 : vector<32x128xf32>
    %12 = arith.maximumf %9, %11 : vector<32x128xf32>
    %13 = arith.truncf %12 : vector<32x128xf32> to vector<32x128xbf16>
    %c0_9 = arith.constant 0 : index
    %c0_10 = arith.constant 0 : index
    %c0_11 = arith.constant 0 : index
    %14 = vector.load %arg6[%c0_9, %c0_10, %c0_11] : memref<1x32x128xbf16, #tpu.memory_space<vmem>>, vector<1x32x128xbf16>
    %15 = vector.shape_cast %14 : vector<1x32x128xbf16> to vector<32x128xbf16>
    %16 = vector.shape_cast %13 : vector<32x128xbf16> to vector<1x32x128xbf16>
    tpu.vector_store %arg6[%c0_9, %c0_10, %c0_11], %16 {strides = array<i32>} : memref<1x32x128xbf16, #tpu.memory_space<vmem>>, vector<1x32x128xbf16>,
    return
  }
  func.func @transform_0(%arg0: i32, %arg1: i32) -> (i32, i32, i32) {
    %c0_i32 = arith.constant 0 : i32
    %c0_i32_0 = arith.constant 0 : i32
    return %arg0, %c0_i32, %arg1 : i32, i32, i32
  }
  func.func @transform_1(%arg0: i32, %arg1: i32) -> (i32, i32) {
    %c0_i32 = arith.constant 0 : i32
    %c0_i32_0 = arith.constant 0 : i32
    %c0_i32_1 = arith.constant 0 : i32
    return %c0_i32, %c0_i32_0 : i32, i32
  }
  func.func @transform_2(%arg0: i32, %arg1: i32) -> (i32, i32) {
    %c0_i32 = arith.constant 0 : i32
    %c0_i32_0 = arith.constant 0 : i32
    %c0_i32_1 = arith.constant 0 : i32
    return %c0_i32, %c0_i32_0 : i32, i32
  }
  func.func @transform_3(%arg0: i32, %arg1: i32) -> (i32, i32) {
    %c0_i32 = arith.constant 0 : i32
    %c0_i32_0 = arith.constant 0 : i32
    %c0_i32_1 = arith.constant 0 : i32
    return %c0_i32, %c0_i32_0 : i32, i32
  }
  func.func @transform_4(%arg0: i32, %arg1: i32) -> (i32, i32, i32) {
    %c0_i32 = arith.constant 0 : i32
    %c0_i32_0 = arith.constant 0 : i32
    return %arg0, %c0_i32, %arg1 : i32, i32, i32
  }
}

module attributes {stable_mosaic.version = 11 : i64} {
  func.func @_conv_gemm_kernel(%arg0: i32, %arg1: i32, %arg2: memref<1x288x128xbf16, #tpu.memory_space<vmem>>, %arg3: memref<32x288xbf16, #tpu.memory_space<vmem>>, %arg4: memref<32x1xf32, #tpu.memory_space<vmem>>, %arg5: memref<32x1xf32, #tpu.memory_space<vmem>>, %arg6: memref<1x32x128xbf16, #tpu.memory_space<vmem>>) attributes {dimension_semantics = [#tpu.dimension_semantics<parallel>, #tpu.dimension_semantics<parallel>], iteration_bounds = array<i64: 2, 1>, scalar_prefetch = 0 : i64, scratch_operands = 0 : i64, tpu.core_type = #tpu.core_type<tc>, window_params = [{transform_indices = @transform_0, window_bounds = array<i64: 1, 288, 128>}, {pipeline_mode = #tpu.pipeline_mode<synchronous>, transform_indices = @transform_1, window_bounds = array<i64: 32, 288>}, {pipeline_mode = #tpu.pipeline_mode<synchronous>, transform_indices = @transform_2, window_bounds = array<i64: 32, 1>}, {pipeline_mode = #tpu.pipeline_mode<synchronous>, transform_indices = @transform_3, window_bounds = array<i64: 32, 1>}, {transform_indices = @transform_4, window_bounds = array<i64: 1, 32, 128>}]} {
    %c0 = arith.constant 0 : index
    %c0_0 = arith.constant 0 : index
    %0 = vector.load %arg3[%c0, %c0_0] : memref<32x288xbf16, #tpu.memory_space<vmem>>, vector<32x288xbf16>
    %c0_1 = arith.constant 0 : index
    %c0_2 = arith.constant 0 : index
    %c0_3 = arith.constant 0 : index
    %1 = vector.load %arg2[%c0_1, %c0_2, %c0_3] : memref<1x288x128xbf16, #tpu.memory_space<vmem>>, vector<1x288x128xbf16>
    %2 = vector.shape_cast %1 : vector<1x288x128xbf16> to vector<288x128xbf16>
    %cst = arith.constant dense<0.000000e+00> : vector<32x128xf32>
    %3 = tpu.matmul %0, %2, %cst {dimension_numbers = #tpu.dot_dimension_numbers<[1], [0], [0], [1], [0, 0, 1, 1], [], []>} : vector<32x288xbf16>, vector<288x128xbf16>, vector<32x128xf32> -> vector<32x128xf32>
    %c0_4 = arith.constant 0 : index
    %c0_5 = arith.constant 0 : index
    %4 = vector.load %arg4[%c0_4, %c0_5] : memref<32x1xf32, #tpu.memory_space<vmem>>, vector<32x1xf32>
    %5 = vector.broadcast %4 : vector<32x1xf32> to vector<32x128xf32>
    %6 = arith.mulf %3, %5 : vector<32x128xf32>
    %c0_6 = arith.constant 0 : index
    %c0_7 = arith.constant 0 : index
    %7 = vector.load %arg5[%c0_6, %c0_7] : memref<32x1xf32, #tpu.memory_space<vmem>>, vector<32x1xf32>
    %8 = vector.broadcast %7 : vector<32x1xf32> to vector<32x128xf32>
    %9 = arith.addf %6, %8 : vector<32x128xf32>
    %cst_8 = arith.constant 2.000000e-01 : f32
    %10 = vector.broadcast %cst_8 : f32 to vector<32x128xf32>
    %11 = arith.mulf %10, %9 : vector<32x128xf32>
    %12 = arith.maximumf %9, %11 : vector<32x128xf32>
    %13 = arith.truncf %12 : vector<32x128xf32> to vector<32x128xbf16>
    %c0_9 = arith.constant 0 : index
    %c0_10 = arith.constant 0 : index
    %c0_11 = arith.constant 0 : index
    %14 = vector.load %arg6[%c0_9, %c0_10, %c0_11] : memref<1x32x128xbf16, #tpu.memory_space<vmem>>, vector<1x32x128xbf16>
    %15 = vector.shape_cast %14 : vector<1x32x128xbf16> to vector<32x128xbf16>
    %16 = vector.shape_cast %13 : vector<32x128xbf16> to vector<1x32x128xbf16>
    tpu.vector_store %arg6[%c0_9, %c0_10, %c0_11], %16 {strides = array<i32>} : memref<1x32x128xbf16, #tpu.memory_space<vmem>>, vector<1x32x128xbf16>,
    return
  }
  func.func @transform_0(%arg0: i32, %arg1: i32) -> (i32, i32, i32) {
    %c0_i32 = arith.constant 0 : i32
    %c0_i32_0 = arith.constant 0 : i32
    return %arg0, %c0_i32, %arg1 : i32, i32, i32
  }
  func.func @transform_1(%arg0: i32, %arg1: i32) -> (i32, i32) {
    %c0_i32 = arith.constant 0 : i32
    %c0_i32_0 = arith.constant 0 : i32
    %c0_i32_1 = arith.constant 0 : i32
    return %c0_i32, %c0_i32_0 : i32, i32
  }
  func.func @transform_2(%arg0: i32, %arg1: i32) -> (i32, i32) {
    %c0_i32 = arith.constant 0 : i32
    %c0_i32_0 = arith.constant 0 : i32
    %c0_i32_1 = arith.constant 0 : i32
    return %c0_i32, %c0_i32_0 : i32, i32
  }
  func.func @transform_3(%arg0: i32, %arg1: i32) -> (i32, i32) {
    %c0_i32 = arith.constant 0 : i32
    %c0_i32_0 = arith.constant 0 : i32
    %c0_i32_1 = arith.constant 0 : i32
    return %c0_i32, %c0_i32_0 : i32, i32
  }
  func.func @transform_4(%arg0: i32, %arg1: i32) -> (i32, i32, i32) {
    %c0_i32 = arith.constant 0 : i32
    %c0_i32_0 = arith.constant 0 : i32
    return %arg0, %c0_i32, %arg1 : i32, i32, i32
  }
}

module attributes {stable_mosaic.version = 11 : i64} {
  func.func @_head_kernel(%arg0: i32, %arg1: memref<2x800xbf16, #tpu.memory_space<vmem>>, %arg2: memref<800x100xbf16, #tpu.memory_space<vmem>>, %arg3: memref<1x100xf32, #tpu.memory_space<vmem>>, %arg4: memref<100x1xbf16, #tpu.memory_space<vmem>>, %arg5: memref<1x1xf32, #tpu.memory_space<vmem>>, %arg6: memref<2x1xf32, #tpu.memory_space<vmem>>) attributes {dimension_semantics = [#tpu.dimension_semantics<arbitrary>], iteration_bounds = array<i64: 1>, scalar_prefetch = 0 : i64, scratch_operands = 0 : i64, tpu.core_type = #tpu.core_type<tc>, window_params = [{pipeline_mode = #tpu.pipeline_mode<synchronous>, transform_indices = @transform_0, window_bounds = array<i64: 2, 800>}, {pipeline_mode = #tpu.pipeline_mode<synchronous>, transform_indices = @transform_1, window_bounds = array<i64: 800, 100>}, {pipeline_mode = #tpu.pipeline_mode<synchronous>, transform_indices = @transform_2, window_bounds = array<i64: 1, 100>}, {pipeline_mode = #tpu.pipeline_mode<synchronous>, transform_indices = @transform_3, window_bounds = array<i64: 100, 1>}, {pipeline_mode = #tpu.pipeline_mode<synchronous>, transform_indices = @transform_4, window_bounds = array<i64: 1, 1>}, {pipeline_mode = #tpu.pipeline_mode<synchronous>, transform_indices = @transform_5, window_bounds = array<i64: 2, 1>}]} {
    %c0 = arith.constant 0 : index
    %c0_0 = arith.constant 0 : index
    %0 = vector.load %arg1[%c0, %c0_0] : memref<2x800xbf16, #tpu.memory_space<vmem>>, vector<2x800xbf16>
    %c0_1 = arith.constant 0 : index
    %c0_2 = arith.constant 0 : index
    %1 = vector.load %arg2[%c0_1, %c0_2] : memref<800x100xbf16, #tpu.memory_space<vmem>>, vector<800x100xbf16>
    %cst = arith.constant dense<0.000000e+00> : vector<2x100xf32>
    %2 = tpu.matmul %0, %1, %cst {dimension_numbers = #tpu.dot_dimension_numbers<[1], [0], [0], [1], [0, 0, 1, 1], [], []>} : vector<2x800xbf16>, vector<800x100xbf16>, vector<2x100xf32> -> vector<2x100xf32>
    %c0_3 = arith.constant 0 : index
    %c0_4 = arith.constant 0 : index
    %3 = vector.load %arg3[%c0_3, %c0_4] : memref<1x100xf32, #tpu.memory_space<vmem>>, vector<1x100xf32>
    %4 = vector.broadcast %3 : vector<1x100xf32> to vector<2x100xf32>
    %5 = arith.addf %2, %4 : vector<2x100xf32>
    %cst_5 = arith.constant 2.000000e-01 : f32
    %6 = vector.broadcast %cst_5 : f32 to vector<2x100xf32>
    %7 = arith.mulf %6, %5 : vector<2x100xf32>
    %8 = arith.maximumf %5, %7 : vector<2x100xf32>
    %9 = arith.truncf %8 : vector<2x100xf32> to vector<2x100xbf16>
    %c0_6 = arith.constant 0 : index
    %c0_7 = arith.constant 0 : index
    %10 = vector.load %arg4[%c0_6, %c0_7] : memref<100x1xbf16, #tpu.memory_space<vmem>>, vector<100x1xbf16>
    %cst_8 = arith.constant dense<0.000000e+00> : vector<2x1xf32>
    %11 = tpu.matmul %9, %10, %cst_8 {dimension_numbers = #tpu.dot_dimension_numbers<[1], [0], [0], [1], [0, 0, 1, 1], [], []>} : vector<2x100xbf16>, vector<100x1xbf16>, vector<2x1xf32> -> vector<2x1xf32>
    %c0_9 = arith.constant 0 : index
    %c0_10 = arith.constant 0 : index
    %12 = vector.load %arg5[%c0_9, %c0_10] : memref<1x1xf32, #tpu.memory_space<vmem>>, vector<1x1xf32>
    %13 = vector.broadcast %12 : vector<1x1xf32> to vector<2x1xf32>
    %14 = arith.addf %11, %13 : vector<2x1xf32>
    %c0_11 = arith.constant 0 : index
    %c0_12 = arith.constant 0 : index
    %15 = vector.load %arg6[%c0_11, %c0_12] : memref<2x1xf32, #tpu.memory_space<vmem>>, vector<2x1xf32>
    tpu.vector_store %arg6[%c0_11, %c0_12], %14 {strides = array<i32>} : memref<2x1xf32, #tpu.memory_space<vmem>>, vector<2x1xf32>,
    return
  }
  func.func @transform_0(%arg0: i32) -> (i32, i32) {
    %c0_i32 = arith.constant 0 : i32
    %c0_i32_0 = arith.constant 0 : i32
    %c0_i32_1 = arith.constant 0 : i32
    return %c0_i32, %c0_i32_0 : i32, i32
  }
  func.func @transform_1(%arg0: i32) -> (i32, i32) {
    %c0_i32 = arith.constant 0 : i32
    %c0_i32_0 = arith.constant 0 : i32
    %c0_i32_1 = arith.constant 0 : i32
    return %c0_i32, %c0_i32_0 : i32, i32
  }
  func.func @transform_2(%arg0: i32) -> (i32, i32) {
    %c0_i32 = arith.constant 0 : i32
    %c0_i32_0 = arith.constant 0 : i32
    %c0_i32_1 = arith.constant 0 : i32
    return %c0_i32, %c0_i32_0 : i32, i32
  }
  func.func @transform_3(%arg0: i32) -> (i32, i32) {
    %c0_i32 = arith.constant 0 : i32
    %c0_i32_0 = arith.constant 0 : i32
    %c0_i32_1 = arith.constant 0 : i32
    return %c0_i32, %c0_i32_0 : i32, i32
  }
  func.func @transform_4(%arg0: i32) -> (i32, i32) {
    %c0_i32 = arith.constant 0 : i32
    %c0_i32_0 = arith.constant 0 : i32
    %c0_i32_1 = arith.constant 0 : i32
    return %c0_i32, %c0_i32_0 : i32, i32
  }
  func.func @transform_5(%arg0: i32) -> (i32, i32) {
    %c0_i32 = arith.constant 0 : i32
    %c0_i32_0 = arith.constant 0 : i32
    %c0_i32_1 = arith.constant 0 : i32
    return %c0_i32, %c0_i32_0 : i32, i32
  }
}

</mosaic_0001>

<bundles_post_ra>
// kernel: forward.11
= control target key start
LH: loop header
LB: loop body
LE: loop exit
PB: predicated region body
PF: predicated region fallthrough
CT: control target
= control target key end

     0   :  { %s3280_s15 = smov 0   ;;  %s3282_s16 = smov 0   ;;  %s3963_s0 = inlined_call_operand.vmem [shape: bf16[2,27,25600], index: 0, kind: input, shape index: {}]   ;;  %s3964_s1 = inlined_call_operand.vmem [shape: bf16[4,27], index: 1, kind: input, shape index: {}]   ;;  %s3965_s2 = inlined_call_operand.vmem [shape: f32[4,1], index: 2, kind: input, shape index: {}]   ;;  %s3966_s3 = inlined_call_operand.vmem [shape: f32[4,1], index: 3, kind: input, shape index: {}]   ;;  %s3967_s4 = inlined_call_operand.vmem [shape: bf16[2,4,25600], index: 4, kind: output, shape index: {}]  }
   0x1   :  { %s3284_s17 = smov 0   ;;  %s3286_s18 = smov 0  }
   0x2   :  { %s3288_s19 = smov 0   ;;  %s3290_s20 = smov 0  }
   0x3   :  { %s3292_s21 = smov 0  }
   0x4 LB: > { %s23_s22 = sadd.s32 1, %s3242_s19  ;;  %s26_s23 = sadd.s32 1, %s3246_s20  ;;  %s3250_s21 = sphi %s3292_s21, %s14_s21   ;;  %s3246_s20 = sphi %s3290_s20, %s3973_s20   ;;  %s3242_s19 = sphi %s3288_s19, %s3972_s19   ;;  %s3238_s18 = sphi %s3286_s18, %s3971_s18   ;;  %s3234_s17 = sphi %s3284_s17, %s3970_s17   ;;  %s3230_s16 = sphi %s3282_s16, %s3969_s16   ;;  %s3226_s15 = sphi %s3280_s15, %s3968_s15  }
   0x5   : > { %p24_p0 = scmp.ge.s32.totalorder %s23_s22, 4  ;;  %p42_p1 = scmp.ne.s32.totalorder %s3230_s16, %s3226_s15 }
   0x6   : > { %p43_p2 = scmp.eq.s32.totalorder %s3250_s21, 0  ;;  %s35_s27 = sadd.s32 1, %s3230_s16 }
   0x7   : > { %s3975_s22 = smov (%p24_p0, %s23_s22), 0  ;;  %s3977_s23 = smov (!%p24_p0, %s26_s23), %s3246_s20 }
   0x8   : > { %p44_p3 = por %p43_p2, %p42_p1  ;;  %p28_p4 = scmp.ge.s32.totalorder %s3977_s23, 2 }
   0x9   : > { %s31_s24 = ssub.s32 %s3242_s19, %s3975_s22  ;;  %p2825_p6 = scmp.ge.s32.totalorder %s3250_s21, 8 }
   0xa   : > { %s3979_s23 = smov (%p28_p4, %s3977_s23), 0 }
   0xb   : > { %s30_s25 = ssub.s32 %s3246_s20, %s3979_s23  ;;  %168 = sbr.rel (%p2825_p6) target bundleno = 75 (0x4b), region = 28 }
   0xc   : > { %s32_s26 = sor.u32 %s31_s24, %s30_s25 }
   0xd   : > { %p33_p5 = scmp.eq.s32.totalorder %s32_s26, 0 }
   0xf   : > { %s3331_s28 = scalar_select %p33_p5, %s3230_s16, %s35_s27  }
  0x10   : > { %171 = sbr.rel (!%p44_p3) target bundleno = 75 (0x4b), region = 32  ;;  %s173_s29 = sand.u32 (%p44_p3), 1, %s3230_s16  }
  0x11   : > { %s176_s30 = smul.u32 (%p44_p3), 50, %s3242_s19 }
  0x12   : > { %s2982_s5 = smul.u32 (%p44_p3), 800, %s173_s29 }
  0x13   : > { %s2983_s6 = smul.u32 (%p44_p3), 800, %s3246_s20 }
  0x14   : > { %s3345_s12 = scalar_lea.vmem (%p44_p3), [#allocation2], %s2982_s5 }
  0x15   : > { %s178_s7 = sadd.s32 %s2983_s6, %s176_s30 }
  0x16   : > { %s2826_s8 = sshll.u32 %s178_s7, 2 }
  0x17   : > { %s3340_s11 = scalar_lea.vmem %s3963_s0, %s2826_s8 }
  0x18   : > { %v193_v0 = vld [vmem:[%s3340_s11] sm:$0xff]  ;;  %v195_v1 = vld [vmem:[%s3340_s11 + $0x8] sm:$0xff]  ;;  %v197_v2 = vld [vmem:[%s3340_s11 + $0x10] sm:$0xff] }
  0x19   : > { %194 = vst [vmem:[%s3345_s12] sm:$0xff] %v193_v0  ;;  %196 = vst [vmem:[%s3345_s12 + $0x8] sm:$0xff] %v195_v1  ;;  %v199_v3 = vld [vmem:[%s3340_s11 + $0x18] sm:$0xff]  ;;  %v201_v4 = vld [vmem:[%s3340_s11 + $0x20] sm:$0xff] }
  0x1a   : > { %198 = vst [vmem:[%s3345_s12 + $0x10] sm:$0xff] %v197_v2  ;;  %v203_v5 = vld [vmem:[%s3340_s11 + $0x28] sm:$0xff]  ;;  %200 = vst [vmem:[%s3345_s12 + $0x18] sm:$0xff] %v199_v3  ;;  %v205_v6 = vld [vmem:[%s3340_s11 + $0x30] sm:$0xff] }
  0x1b   : > { %202 = vst [vmem:[%s3345_s12 + $0x20] sm:$0xff] %v201_v4  ;;  %204 = vst [vmem:[%s3345_s12 + $0x28] sm:$0xff] %v203_v5  ;;  %v207_v7 = vld [vmem:[%s3340_s11 + $0x38] sm:$0xff]  ;;  %v209_v8 = vld [vmem:[%s3340_s11 + $0x40] sm:$0xff] }
  0x1c   : > { %206 = vst [vmem:[%s3345_s12 + $0x30] sm:$0xff] %v205_v6  ;;  %208 = vst [vmem:[%s3345_s12 + $0x38] sm:$0xff] %v207_v7  ;;  %v211_v9 = vld [vmem:[%s3340_s11 + $0x48] sm:$0xff]  ;;  %v213_v10 = vld [vmem:[%s3340_s11 + $0x50] sm:$0xff] }
  0x1d   : > { %210 = vst [vmem:[%s3345_s12 + $0x40] sm:$0xff] %v209_v8  ;;  %v215_v11 = vld [vmem:[%s3340_s11 + $0x58] sm:$0xff]  ;;  %212 = vst [vmem:[%s3345_s12 + $0x48] sm:$0xff] %v211_v9  ;;  %v217_v12 = vld [vmem:[%s3340_s11 + $0x60] sm:$0xff] }
  0x1e   : > { %214 = vst [vmem:[%s3345_s12 + $0x50] sm:$0xff] %v213_v10  ;;  %216 = vst [vmem:[%s3345_s12 + $0x58] sm:$0xff] %v215_v11  ;;  %v219_v13 = vld [vmem:[%s3340_s11 + $0x68] sm:$0xff]  ;;  %v221_v14 = vld [vmem:[%s3340_s11 + $0x70] sm:$0xff] }
  0x1f   : > { %218 = vst [vmem:[%s3345_s12 + $0x60] sm:$0xff] %v217_v12  ;;  %220 = vst [vmem:[%s3345_s12 + $0x68] sm:$0xff] %v219_v13  ;;  %v223_v15 = vld [vmem:[%s3340_s11 + $0x78] sm:$0xff]  ;;  %v225_v16 = vld [vmem:[%s3340_s11 + $0x80] sm:$0xff] }
  0x20   : > { %222 = vst [vmem:[%s3345_s12 + $0x70] sm:$0xff] %v221_v14  ;;  %v227_v17 = vld [vmem:[%s3340_s11 + $0x88] sm:$0xff]  ;;  %224 = vst [vmem:[%s3345_s12 + $0x78] sm:$0xff] %v223_v15  ;;  %v229_v18 = vld [vmem:[%s3340_s11 + $0x90] sm:$0xff] }
  0x21   : > { %226 = vst [vmem:[%s3345_s12 + $0x80] sm:$0xff] %v225_v16  ;;  %228 = vst [vmem:[%s3345_s12 + $0x88] sm:$0xff] %v227_v17  ;;  %v231_v19 = vld [vmem:[%s3340_s11 + $0x98] sm:$0xff]  ;;  %v233_v20 = vld [vmem:[%s3340_s11 + $0xa0] sm:$0xff] }
  0x22   : > { %230 = vst [vmem:[%s3345_s12 + $0x90] sm:$0xff] %v229_v18  ;;  %232 = vst [vmem:[%s3345_s12 + $0x98] sm:$0xff] %v231_v19  ;;  %v235_v21 = vld [vmem:[%s3340_s11 + $0xa8] sm:$0xff]  ;;  %v237_v22 = vld [vmem:[%s3340_s11 + $0xb0] sm:$0xff] }
  0x23   : > { %234 = vst [vmem:[%s3345_s12 + $0xa0] sm:$0xff] %v233_v20  ;;  %v239_v23 = vld [vmem:[%s3340_s11 + $0xb8] sm:$0xff]  ;;  %236 = vst [vmem:[%s3345_s12 + $0xa8] sm:$0xff] %v235_v21  ;;  %v241_v24 = vld [vmem:[%s3340_s11 + $0xc0] sm:$0xff] }
  0x24   : > { %238 = vst [vmem:[%s3345_s12 + $0xb0] sm:$0xff] %v237_v22  ;;  %240 = vst [vmem:[%s3345_s12 + $0xb8] sm:$0xff] %v239_v23  ;;  %v243_v25 = vld [vmem:[%s3340_s11 + $0x320] sm:$0xff]  ;;  %v245_v26 = vld [vmem:[%s3340_s11 + $0x328] sm:$0xff] }
  0x25   : > { %242 = vst [vmem:[%s3345_s12 + $0xc0] sm:$0xff] %v241_v24  ;;  %244 = vst [vmem:[%s3345_s12 + $0xc8] sm:$0xff] %v243_v25  ;;  %v247_v27 = vld [vmem:[%s3340_s11 + $0x330] sm:$0xff]  ;;  %v249_v28 = vld [vmem:[%s3340_s11 + $0x338] sm:$0xff] }
  0x26   : > { %246 = vst [vmem:[%s3345_s12 + $0xd0] sm:$0xff] %v245_v26  ;;  %v251_v29 = vld [vmem:[%s3340_s11 + $0x340] sm:$0xff]  ;;  %248 = vst [vmem:[%s3345_s12 + $0xd8] sm:$0xff] %v247_v27  ;;  %v253_v30 = vld [vmem:[%s3340_s11 + $0x348] sm:$0xff] }
  0x27   : > { %250 = vst [vmem:[%s3345_s12 + $0xe0] sm:$0xff] %v249_v28  ;;  %252 = vst [vmem:[%s3345_s12 + $0xe8] sm:$0xff] %v251_v29  ;;  %v255_v31 = vld [vmem:[%s3340_s11 + $0x350] sm:$0xff]  ;;  %v257_v32 = vld [vmem:[%s3340_s11 + $0x358] sm:$0xff] }
  0x28   : > { %254 = vst [vmem:[%s3345_s12 + $0xf0] sm:$0xff] %v253_v30  ;;  %256 = vst [vmem:[%s3345_s12 + $0xf8] sm:$0xff] %v255_v31  ;;  %v259_v33 = vld [vmem:[%s3340_s11 + $0x360] sm:$0xff]  ;;  %v261_v34 = vld [vmem:[%s3340_s11 + $0x368] sm:$0xff] }
  0x29   : > { %258 = vst [vmem:[%s3345_s12 + $0x100] sm:$0xff] %v257_v32  ;;  %v263_v35 = vld [vmem:[%s3340_s11 + $0x370] sm:$0xff]  ;;  %260 = vst [vmem:[%s3345_s12 + $0x108] sm:$0xff] %v259_v33  ;;  %v265_v36 = vld [vmem:[%s3340_s11 + $0x378] sm:$0xff] }
  0x2a   : > { %262 = vst [vmem:[%s3345_s12 + $0x110] sm:$0xff] %v261_v34  ;;  %264 = vst [vmem:[%s3345_s12 + $0x118] sm:$0xff] %v263_v35  ;;  %v267_v37 = vld [vmem:[%s3340_s11 + $0x380] sm:$0xff]  ;;  %v269_v38 = vld [vmem:[%s3340_s11 + $0x388] sm:$0xff] }
  0x2b   : > { %266 = vst [vmem:[%s3345_s12 + $0x120] sm:$0xff] %v265_v36  ;;  %268 = vst [vmem:[%s3345_s12 + $0x128] sm:$0xff] %v267_v37  ;;  %v271_v39 = vld [vmem:[%s3340_s11 + $0x390] sm:$0xff]  ;;  %v273_v40 = vld [vmem:[%s3340_s11 + $0x398] sm:$0xff] }
  0x2c   : > { %270 = vst [vmem:[%s3345_s12 + $0x130] sm:$0xff] %v269_v38  ;;  %v275_v41 = vld [vmem:[%s3340_s11 + $0x3a0] sm:$0xff]  ;;  %272 = vst [vmem:[%s3345_s12 + $0x138] sm:$0xff] %v271_v39  ;;  %v277_v42 = vld [vmem:[%s3340_s11 + $0x3a8] sm:$0xff] }
  0x2d   : > { %274 = vst [vmem:[%s3345_s12 + $0x140] sm:$0xff] %v273_v40  ;;  %276 = vst [vmem:[%s3345_s12 + $0x148] sm:$0xff] %v275_v41  ;;  %v279_v43 = vld [vmem:[%s3340_s11 + $0x3b0] sm:$0xff]  ;;  %v281_v44 = vld [vmem:[%s3340_s11 + $0x3b8] sm:$0xff] }
  0x2e   : > { %278 = vst [vmem:[%s3345_s12 + $0x150] sm:$0xff] %v277_v42  ;;  %280 = vst [vmem:[%s3345_s12 + $0x158] sm:$0xff] %v279_v43  ;;  %v283_v45 = vld [vmem:[%s3340_s11 + $0x3c0] sm:$0xff]  ;;  %v285_v46 = vld [vmem:[%s3340_s11 + $0x3c8] sm:$0xff] }
  0x2f   : > { %282 = vst [vmem:[%s3345_s12 + $0x160] sm:$0xff] %v281_v44  ;;  %v287_v47 = vld [vmem:[%s3340_s11 + $0x3d0] sm:$0xff]  ;;  %284 = vst [vmem:[%s3345_s12 + $0x168] sm:$0xff] %v283_v45  ;;  %v289_v48 = vld [vmem:[%s3340_s11 + $0x3d8] sm:$0xff] }
  0x30   : > { %286 = vst [vmem:[%s3345_s12 + $0x170] sm:$0xff] %v285_v46  ;;  %288 = vst [vmem:[%s3345_s12 + $0x178] sm:$0xff] %v287_v47  ;;  %v291_v49 = vld [vmem:[%s3340_s11 + $0x3e0] sm:$0xff]  ;;  %v295_v51 = vld [vmem:[%s3340_s11 + $0x648] sm:$0xff] }
  0x31   : > { %v293_v50 = vld [vmem:[%s3340_s11 + $0x640] sm:$0xff]  ;;  %290 = vst [vmem:[%s3345_s12 + $0x180] sm:$0xff] %v289_v48  ;;  %292 = vst [vmem:[%s3345_s12 + $0x188] sm:$0xff] %v291_v49  ;;  %v297_v52 = vld [vmem:[%s3340_s11 + $0x650] sm:$0xff] }
  0x32   : > { %294 = vst [vmem:[%s3345_s12 + $0x190] sm:$0xff] %v293_v50  ;;  %v299_v53 = vld [vmem:[%s3340_s11 + $0x658] sm:$0xff]  ;;  %296 = vst [vmem:[%s3345_s12 + $0x198] sm:$0xff] %v295_v51  ;;  %v301_v54 = vld [vmem:[%s3340_s11 + $0x660] sm:$0xff] }
  0x33   : > { %298 = vst [vmem:[%s3345_s12 + $0x1a0] sm:$0xff] %v297_v52  ;;  %300 = vst [vmem:[%s3345_s12 + $0x1a8] sm:$0xff] %v299_v53  ;;  %v303_v55 = vld [vmem:[%s3340_s11 + $0x668] sm:$0xff]  ;;  %v305_v56 = vld [vmem:[%s3340_s11 + $0x670] sm:$0xff] }
  0x34   : > { %302 = vst [vmem:[%s3345_s12 + $0x1b0] sm:$0xff] %v301_v54  ;;  %304 = vst [vmem:[%s3345_s12 + $0x1b8] sm:$0xff] %v303_v55  ;;  %v307_v57 = vld [vmem:[%s3340_s11 + $0x678] sm:$0xff]  ;;  %v309_v58 = vld [vmem:[%s3340_s11 + $0x680] sm:$0xff] }
  0x35   : > { %306 = vst [vmem:[%s3345_s12 + $0x1c0] sm:$0xff] %v305_v56  ;;  %v311_v59 = vld [vmem:[%s3340_s11 + $0x688] sm:$0xff]  ;;  %308 = vst [vmem:[%s3345_s12 + $0x1c8] sm:$0xff] %v307_v57  ;;  %v313_v60 = vld [vmem:[%s3340_s11 + $0x690] sm:$0xff] }
  0x36   : > { %310 = vst [vmem:[%s3345_s12 + $0x1d0] sm:$0xff] %v309_v58  ;;  %312 = vst [vmem:[%s3345_s12 + $0x1d8] sm:$0xff] %v311_v59  ;;  %v315_v61 = vld [vmem:[%s3340_s11 + $0x698] sm:$0xff]  ;;  %v317_v62 = vld [vmem:[%s3340_s11 + $0x6a0] sm:$0xff] }
  0x37   : > { %314 = vst [vmem:[%s3345_s12 + $0x1e0] sm:$0xff] %v313_v60  ;;  %316 = vst [vmem:[%s3345_s12 + $0x1e8] sm:$0xff] %v315_v61  ;;  %v319_v63 = vld [vmem:[%s3340_s11 + $0x6a8] sm:$0xff]  ;;  %v321_v0 = vld [vmem:[%s3340_s11 + $0x6b0] sm:$0xff] }
  0x38   : > { %318 = vst [vmem:[%s3345_s12 + $0x1f0] sm:$0xff] %v317_v62  ;;  %v323_v1 = vld [vmem:[%s3340_s11 + $0x6b8] sm:$0xff]  ;;  %320 = vst [vmem:[%s3345_s12 + $0x1f8] sm:$0xff] %v319_v63  ;;  %v325_v2 = vld [vmem:[%s3340_s11 + $0x6c0] sm:$0xff] }
  0x39   : > { %322 = vst [vmem:[%s3345_s12 + $0x200] sm:$0xff] %v321_v0  ;;  %324 = vst [vmem:[%s3345_s12 + $0x208] sm:$0xff] %v323_v1  ;;  %v327_v3 = vld [vmem:[%s3340_s11 + $0x6c8] sm:$0xff]  ;;  %v329_v4 = vld [vmem:[%s3340_s11 + $0x6d0] sm:$0xff] }
  0x3a   : > { %326 = vst [vmem:[%s3345_s12 + $0x210] sm:$0xff] %v325_v2  ;;  %328 = vst [vmem:[%s3345_s12 + $0x218] sm:$0xff] %v327_v3  ;;  %v331_v5 = vld [vmem:[%s3340_s11 + $0x6d8] sm:$0xff]  ;;  %v333_v6 = vld [vmem:[%s3340_s11 + $0x6e0] sm:$0xff] }
  0x3b   : > { %330 = vst [vmem:[%s3345_s12 + $0x220] sm:$0xff] %v329_v4  ;;  %v335_v7 = vld [vmem:[%s3340_s11 + $0x6e8] sm:$0xff]  ;;  %332 = vst [vmem:[%s3345_s12 + $0x228] sm:$0xff] %v331_v5  ;;  %v337_v8 = vld [vmem:[%s3340_s11 + $0x6f0] sm:$0xff] }
  0x3c   : > { %334 = vst [vmem:[%s3345_s12 + $0x230] sm:$0xff] %v333_v6  ;;  %336 = vst [vmem:[%s3345_s12 + $0x238] sm:$0xff] %v335_v7  ;;  %v339_v9 = vld [vmem:[%s3340_s11 + $0x6f8] sm:$0xff]  ;;  %v341_v10 = vld [vmem:[%s3340_s11 + $0x700] sm:$0xff] }
  0x3d   : > { %338 = vst [vmem:[%s3345_s12 + $0x240] sm:$0xff] %v337_v8  ;;  %340 = vst [vmem:[%s3345_s12 + $0x248] sm:$0xff] %v339_v9  ;;  %v343_v11 = vld [vmem:[%s3340_s11 + $0x960] sm:$0xff]  ;;  %v345_v12 = vld [vmem:[%s3340_s11 + $0x968] sm:$0xff] }
  0x3e   : > { %342 = vst [vmem:[%s3345_s12 + $0x250] sm:$0xff] %v341_v10  ;;  %v347_v13 = vld [vmem:[%s3340_s11 + $0x970] sm:$0xff]  ;;  %344 = vst [vmem:[%s3345_s12 + $0x258] sm:$0xff] %v343_v11  ;;  %v349_v14 = vld [vmem:[%s3340_s11 + $0x978] sm:$0xff] }
  0x3f   : > { %346 = vst [vmem:[%s3345_s12 + $0x260] sm:$0xff] %v345_v12  ;;  %348 = vst [vmem:[%s3345_s12 + $0x268] sm:$0xff] %v347_v13  ;;  %v351_v15 = vld [vmem:[%s3340_s11 + $0x980] sm:$0xff]  ;;  %v353_v16 = vld [vmem:[%s3340_s11 + $0x988] sm:$0xff] }
  0x40   : > { %350 = vst [vmem:[%s3345_s12 + $0x270] sm:$0xff] %v349_v14  ;;  %352 = vst [vmem:[%s3345_s12 + $0x278] sm:$0xff] %v351_v15  ;;  %v355_v17 = vld [vmem:[%s3340_s11 + $0x990] sm:$0xff]  ;;  %v357_v18 = vld [vmem:[%s3340_s11 + $0x998] sm:$0xff] }
  0x41   : > { %354 = vst [vmem:[%s3345_s12 + $0x280] sm:$0xff] %v353_v16  ;;  %v359_v19 = vld [vmem:[%s3340_s11 + $0x9a0] sm:$0xff]  ;;  %356 = vst [vmem:[%s3345_s12 + $0x288] sm:$0xff] %v355_v17  ;;  %v361_v20 = vld [vmem:[%s3340_s11 + $0x9a8] sm:$0xff] }
  0x42   : > { %358 = vst [vmem:[%s3345_s12 + $0x290] sm:$0xff] %v357_v18  ;;  %360 = vst [vmem:[%s3345_s12 + $0x298] sm:$0xff] %v359_v19  ;;  %v363_v21 = vld [vmem:[%s3340_s11 + $0x9b0] sm:$0xff]  ;;  %v365_v22 = vld [vmem:[%s3340_s11 + $0x9b8] sm:$0xff] }
  0x43   : > { %362 = vst [vmem:[%s3345_s12 + $0x2a0] sm:$0xff] %v361_v20  ;;  %364 = vst [vmem:[%s3345_s12 + $0x2a8] sm:$0xff] %v363_v21  ;;  %v367_v23 = vld [vmem:[%s3340_s11 + $0x9c0] sm:$0xff]  ;;  %v369_v24 = vld [vmem:[%s3340_s11 + $0x9c8] sm:$0xff] }
  0x44   : > { %366 = vst [vmem:[%s3345_s12 + $0x2b0] sm:$0xff] %v365_v22  ;;  %v371_v25 = vld [vmem:[%s3340_s11 + $0x9d0] sm:$0xff]  ;;  %368 = vst [vmem:[%s3345_s12 + $0x2b8] sm:$0xff] %v367_v23  ;;  %v373_v26 = vld [vmem:[%s3340_s11 + $0x9d8] sm:$0xff] }
  0x45   : > { %370 = vst [vmem:[%s3345_s12 + $0x2c0] sm:$0xff] %v369_v24  ;;  %372 = vst [vmem:[%s3345_s12 + $0x2c8] sm:$0xff] %v371_v25  ;;  %v375_v27 = vld [vmem:[%s3340_s11 + $0x9e0] sm:$0xff]  ;;  %v377_v28 = vld [vmem:[%s3340_s11 + $0x9e8] sm:$0xff] }
  0x46   : > { %374 = vst [vmem:[%s3345_s12 + $0x2d0] sm:$0xff] %v373_v26  ;;  %376 = vst [vmem:[%s3345_s12 + $0x2d8] sm:$0xff] %v375_v27  ;;  %v379_v29 = vld [vmem:[%s3340_s11 + $0x9f0] sm:$0xff]  ;;  %v381_v30 = vld [vmem:[%s3340_s11 + $0x9f8] sm:$0xff] }
  0x47   : > { %378 = vst [vmem:[%s3345_s12 + $0x2e0] sm:$0xff] %v377_v28  ;;  %v383_v31 = vld [vmem:[%s3340_s11 + $0xa00] sm:$0xff]  ;;  %380 = vst [vmem:[%s3345_s12 + $0x2e8] sm:$0xff] %v379_v29  ;;  %v385_v32 = vld [vmem:[%s3340_s11 + $0xa08] sm:$0xff] }
  0x48   : > { %382 = vst [vmem:[%s3345_s12 + $0x2f0] sm:$0xff] %v381_v30  ;;  %384 = vst [vmem:[%s3345_s12 + $0x2f8] sm:$0xff] %v383_v31  ;;  %v387_v33 = vld [vmem:[%s3340_s11 + $0xa10] sm:$0xff]  ;;  %v389_v34 = vld [vmem:[%s3340_s11 + $0xa18] sm:$0xff] }
  0x49   : > { %386 = vst [vmem:[%s3345_s12 + $0x300] sm:$0xff] %v385_v32  ;;  %388 = vst [vmem:[%s3345_s12 + $0x308] sm:$0xff] %v387_v33  ;;  %v391_v35 = vld [vmem:[%s3340_s11 + $0xa20] sm:$0xff] }
  0x4a   : > { %390 = vst [vmem:[%s3345_s12 + $0x310] sm:$0xff] %v389_v34  ;;  %392 = vst [vmem:[%s3345_s12 + $0x318] sm:$0xff] %v391_v35 }
  0x4b PF: > { %p2827_p7 = scmp.ge.s32.totalorder %s3250_s21, 1  ;;  %p397_p8 = scmp.lt.s32.totalorder %s3250_s21, 9 }
  0x4d   : > { %p398_p9 = pnand %p2827_p7, %p397_p8 }
  0x4e   : > { %s404_s13 = sand.u32 (!%p398_p9), 1, %s3226_s15   ;;  %p435_p10 = scmp.lt.s32.totalorder (!%p398_p9), %s3238_s18, 1 }
  0x4f   : > { %401 = sbr.rel (%p398_p9) target bundleno = 399 (0x18f), region = 55 }
  0x50   : > { %s2984_s14 = smul.u32 (!%p398_p9), 800, %s404_s13 }
  0x51   : > { %s434_s5 = smul.u32 (!%p398_p9), 50, %s3234_s17 }
  0x52   : > { %s3558_s27 = scalar_lea.vmem (!%p398_p9), [#allocation2], %s2984_s14 }
  0x53   : > { %p437_p11 = scmp.lt.s32.totalorder (!%p398_p9), %s434_s5, 199 }
  0x54   : > { %vm1000_vm0 = vcmask 1044480   ;;  %vm1001_vm1 = vcmask 1045504   ;;  %v3252_v36 = vmov 65535   ;;  %v3253_v38 = vmov 0   ;;  %v2179_v39 = vld [vmem:[%s3965_s2] sm:$0xf] }
  0x55   : > { %v1002_v37 = vsel %vm1000_vm0, 4294967295, %v3252_v36  ;;  %1186 = vmatprep.mubr.bf16.mxu0 %v3253_v38  ;;  %1227 = vmatprep.mubr.bf16.mxu1 %v3253_v38  ;;  %v2235_v41 = vld [vmem:[%s3966_s3] sm:$0xf]  ;;  %v3046_v42 = vld [vmem:[%s3558_s27 + $0x194] ss:$200 sps:$4 sm:$0x3f]  }
  0x56   : > { %3045 = vset.pattern.permute.xlu0 %v3253_v38  ;;  %v3553_v40 = vsel %vm1001_vm1, %v1002_v37, 0  ;;  %v3048_v43 = vld [vmem:[%s3558_s27 + $0x19c] ss:$200 sps:$4 sm:$0x3f]   ;;  %v3054_v51 = vld [vmem:[%s3558_s27 + $0xc] ss:$200 sps:$4 sm:$0xff]  }
  0x57   : > { %2182 = vperm.xlu0 %3045, %v2179_v39   ;;  %v1008_v44 = vand.u32 %v3046_v42, %v3553_v40  ;;  %v3050_v45 = vld [vmem:[%s3558_s27 + $0x190] ss:$200 sps:$4 sm:$0x3f]   ;;  %v1014_v47 = vand.u32 %v3048_v43, %v3553_v40  ;;  %v3052_v48 = vld [vmem:[%s3558_s27 + $0x4] ss:$200 sps:$4 sm:$0xff]   ;;  %vm996_vm2 = vcmask 220160  }
  0x58   : > { %v3051_v46 = vld [vmem:[%s3558_s27 + $0x198] ss:$200 sps:$4 sm:$0x3f]   ;;  %v1005_v49 = vand.u32 %v3050_v45, %v3553_v40  ;;  %v3057_v53 = vld [vmem:[%s3558_s27 + $0x8] ss:$200 sps:$4 sm:$0xff]   ;;  %s3981_s18 = smov (!%p435_p10, %s3238_s18), 1 }
  0x59   : > { %1166 = vmatprep.subr.bf16.mxu0 %v1008_v44  ;;  %v1011_v50 = vand.u32 %v3051_v46, %v3553_v40  ;;  %1207 = vmatprep.subr.bf16.mxu1 %v1014_v47  ;;  %v3056_v52 = vld [vmem:[%s3558_s27] ss:$200 sps:$4 sm:$0xff]   ;;  %v3060_v55 = vld [vmem:[%s3558_s27 + $0x1a4] ss:$200 sps:$4 sm:$0x3f]   ;;  %s2985_s17 = smul.u32 200, %s3981_s18 }
  0x5a   : > { %1167 = vmatpush1.bf16.msra.mxu0 %v1005_v49  ;;  %v3058_v54 = vld [vmem:[%s3558_s27 + $0x1a0] ss:$200 sps:$4 sm:$0x3f]   ;;  %v3063_v57 = vld [vmem:[%s3558_s27 + $0x1ac] ss:$200 sps:$4 sm:$0x3f]   ;;  %v1020_v59 = vand.u32 %v3060_v55, %v3553_v40 }
  0x5b   : > { %2238 = vperm.xlu0 %3045, %v2235_v41   ;;  %1208 = vmatpush1.bf16.msra.mxu1 %v1011_v50  ;;  %v3061_v56 = vld [vmem:[%s3558_s27 + $0x1a8] ss:$200 sps:$4 sm:$0x3f]   ;;  %v3579_v58 = vld [vmem:[%s3964_s1] sm:$0x3]  ;;  %v1026_v60 = vand.u32 %v3063_v57, %v3553_v40  ;;  %v1017_v61 = vand.u32 %v3058_v54, %v3553_v40  ;;  %s3983_s5 = smov (!%p437_p11, %s434_s5), 199 }
  0x5c   : > { %1168 = vmatprep.subr.bf16.mxu0 %v3052_v48  ;;  %1209 = vmatprep.subr.bf16.mxu1 %v3054_v51  ;;  %v1023_v62 = vand.u32 %v3061_v56, %v3553_v40  ;;  %v3066_v63 = vld [vmem:[%s3558_s27 + $0x14] ss:$200 sps:$4 sm:$0xff]   ;;  %v3064_v1 = vld [vmem:[%s3558_s27 + $0x10] ss:$200 sps:$4 sm:$0xff]   ;;  %v3078_v9 = vld [vmem:[%s3558_s27 + $0x24] ss:$200 sps:$4 sm:$0xff]   ;;  %s440_s18 = sadd.s32 %s2985_s17, %s3983_s5 }
  0x5d   : > { %v3069_v0 = vld [vmem:[%s3558_s27 + $0x1c] ss:$200 sps:$4 sm:$0xff]   ;;  %v3067_v2 = vld [vmem:[%s3558_s27 + $0x18] ss:$200 sps:$4 sm:$0xff]   ;;  %v3081_v12 = vld [vmem:[%s3558_s27 + $0x2c] ss:$200 sps:$4 sm:$0xff]  }
  0x5e   : > { %1169 = vmatpush1.bf16.msra.mxu0 %v3056_v52  ;;  %v3070_v3 = vld [vmem:[%s3558_s27 + $0x1b0] ss:$200 sps:$4 sm:$0x3f]   ;;  %v3072_v4 = vld [vmem:[%s3558_s27 + $0x1b4] ss:$200 sps:$4 sm:$0x3f]  }
  0x5f   : > { %1210 = vmatpush1.bf16.msra.mxu1 %v3057_v53  ;;  %1248 = vmatprep.subr.bf16.mxu0 %v1020_v59  ;;  %v3073_v5 = vld [vmem:[%s3558_s27 + $0x1b8] ss:$200 sps:$4 sm:$0x3f]   ;;  %v3075_v6 = vld [vmem:[%s3558_s27 + $0x1bc] ss:$200 sps:$4 sm:$0x3f]   ;;  %v1032_v7 = vand.u32 %v3072_v4, %v3553_v40  ;;  %v1029_v10 = vand.u32 %v3070_v3, %v3553_v40 }
  0x60   : > { %1289 = vmatprep.subr.bf16.mxu1 %v1026_v60  ;;  %v1038_v8 = vand.u32 %v3075_v6, %v3553_v40  ;;  %v1035_v11 = vand.u32 %v3073_v5, %v3553_v40  ;;  %v3084_v13 = vld [vmem:[%s3558_s27 + $0x1c4] ss:$200 sps:$4 sm:$0x3f]   ;;  %v3076_v15 = vld [vmem:[%s3558_s27 + $0x20] ss:$200 sps:$4 sm:$0xff]   ;;  %s2828_s6 = sshll.u32 %s440_s18, 1 }
  0x61   : > { %2929 = vmatmul.mubr.msk.bf16.vlgmr.msra.gmra.mxu0 %vm996_vm2, %v3579_v58  ;;  %v3087_v14 = vld [vmem:[%s3558_s27 + $0x1cc] ss:$200 sps:$4 sm:$0x3f]   ;;  %v3082_v16 = vld [vmem:[%s3558_s27 + $0x1c0] ss:$200 sps:$4 sm:$0x3f]   ;;  %v1044_v19 = vand.u32 %v3084_v13, %v3553_v40  ;;  %s3819_s9 = scalar_lea.vmem %s3967_s4, %s2828_s6 }
  0x62   : > { %2930 = vmatmul.mubr.msk.bf16.vlgmr.msra.gmra.mxu1 %vm996_vm2, %v3579_v58  ;;  %1249 = vmatpush1.bf16.msra.mxu0 %v1017_v61  ;;  %v3079_v17 = vld [vmem:[%s3558_s27 + $0x28] ss:$200 sps:$4 sm:$0xff]   ;;  %v1050_v20 = vand.u32 %v3087_v14, %v3553_v40  ;;  %v3090_v21 = vld [vmem:[%s3558_s27 + $0x34] ss:$200 sps:$4 sm:$0xff]   ;;  %v1041_v22 = vand.u32 %v3082_v16, %v3553_v40  ;;  %v3091_v28 = vld [vmem:[%s3558_s27 + $0x38] ss:$200 sps:$4 sm:$0xff]  }
  0x63   : > { %1290 = vmatpush1.bf16.msra.mxu1 %v1023_v62  ;;  %1250 = vmatprep.subr.bf16.mxu0 %v3066_v63  ;;  %v3085_v18 = vld [vmem:[%s3558_s27 + $0x1c8] ss:$200 sps:$4 sm:$0x3f]   ;;  %v3093_v24 = vld [vmem:[%s3558_s27 + $0x3c] ss:$200 sps:$4 sm:$0xff]  }
  0x64   : > { %1291 = vmatprep.subr.bf16.mxu1 %v3069_v0  ;;  %1268 = vmatprep.mubr.bf16.mxu0 %v3253_v38  ;;  %v1047_v23 = vand.u32 %v3085_v18, %v3553_v40  ;;  %v3096_v25 = vld [vmem:[%s3558_s27 + $0x1d4] ss:$200 sps:$4 sm:$0x3f]   ;;  %v3088_v27 = vld [vmem:[%s3558_s27 + $0x30] ss:$200 sps:$4 sm:$0xff]  }
  0x65   : > { %1309 = vmatprep.mubr.bf16.mxu1 %v3253_v38  ;;  %v3099_v26 = vld [vmem:[%s3558_s27 + $0x1dc] ss:$200 sps:$4 sm:$0x3f]   ;;  %v3094_v29 = vld [vmem:[%s3558_s27 + $0x1d0] ss:$200 sps:$4 sm:$0x3f]   ;;  %v1056_v31 = vand.u32 %v3096_v25, %v3553_v40 }
  0x66   : > { %1251 = vmatpush1.bf16.msra.mxu0 %v3064_v1  ;;  %v3097_v30 = vld [vmem:[%s3558_s27 + $0x1d8] ss:$200 sps:$4 sm:$0x3f]   ;;  %v1062_v32 = vand.u32 %v3099_v26, %v3553_v40  ;;  %v3102_v33 = vld [vmem:[%s3558_s27 + $0x44] ss:$200 sps:$4 sm:$0xff]   ;;  %v1053_v35 = vand.u32 %v3094_v29, %v3553_v40 }
  0x67   : > { %1292 = vmatpush1.bf16.msra.mxu1 %v3067_v2  ;;  %1330 = vmatprep.subr.bf16.mxu0 %v1032_v7  ;;  %v3105_v34 = vld [vmem:[%s3558_s27 + $0x4c] ss:$200 sps:$4 sm:$0xff]   ;;  %v1059_v36 = vand.u32 %v3097_v30, %v3553_v40  ;;  %v3100_v41 = vld [vmem:[%s3558_s27 + $0x40] ss:$200 sps:$4 sm:$0xff]   ;;  %v3117_v51 = vld [vmem:[%s3558_s27 + $0x5c] ss:$200 sps:$4 sm:$0xff]  }
  0x68   : > { %1371 = vmatprep.subr.bf16.mxu1 %v1038_v8  ;;  %v3108_v37 = vld [vmem:[%s3558_s27 + $0x1e4] ss:$200 sps:$4 sm:$0x3f]   ;;  %v3103_v42 = vld [vmem:[%s3558_s27 + $0x48] ss:$200 sps:$4 sm:$0xff]  }
  0x69   : > { %2931 = vmatmul.mubr.msk.bf16.vlgmr.msra.gmra.mxu0 %vm996_vm2, %v3579_v58  ;;  %v3111_v39 = vld [vmem:[%s3558_s27 + $0x1ec] ss:$200 sps:$4 sm:$0x3f]   ;;  %v3106_v43 = vld [vmem:[%s3558_s27 + $0x1e0] ss:$200 sps:$4 sm:$0x3f]   ;;  %v1068_v45 = vand.u32 %v3108_v37, %v3553_v40 }
  0x6a   : > { %2932 = vmatmul.mubr.msk.bf16.vlgmr.msra.gmra.mxu1 %vm996_vm2, %v3579_v58  ;;  %1331 = vmatpush1.bf16.msra.mxu0 %v1029_v10  ;;  %v3109_v44 = vld [vmem:[%s3558_s27 + $0x1e8] ss:$200 sps:$4 sm:$0x3f]   ;;  %v1074_v46 = vand.u32 %v3111_v39, %v3553_v40  ;;  %v1065_v47 = vand.u32 %v3106_v43, %v3553_v40  ;;  %v3114_v49 = vld [vmem:[%s3558_s27 + $0x54] ss:$200 sps:$4 sm:$0xff]  }
  0x6b   : > { %1372 = vmatpush1.bf16.msra.mxu1 %v1035_v11  ;;  %1332 = vmatprep.subr.bf16.mxu0 %v3078_v9  ;;  %v1071_v48 = vand.u32 %v3109_v44, %v3553_v40  ;;  %v3120_v50 = vld [vmem:[%s3558_s27 + $0x1f4] ss:$200 sps:$4 sm:$0x3f]   ;;  %v3112_v53 = vld [vmem:[%s3558_s27 + $0x50] ss:$200 sps:$4 sm:$0xff]  }
  0x6c   : > { %1373 = vmatprep.subr.bf16.mxu1 %v3081_v12  ;;  %1350 = vmatprep.mubr.bf16.mxu0 %v3253_v38  ;;  %v3123_v52 = vld [vmem:[%s3558_s27 + $0x1fc] ss:$200 sps:$4 sm:$0x3f]   ;;  %v3115_v54 = vld [vmem:[%s3558_s27 + $0x58] ss:$200 sps:$4 sm:$0xff]   ;;  %v1080_v57 = vand.u32 %v3120_v50, %v3553_v40 }
  0x6d   : > { %1391 = vmatprep.mubr.bf16.mxu1 %v3253_v38  ;;  %v3118_v55 = vld [vmem:[%s3558_s27 + $0x1f0] ss:$200 sps:$4 sm:$0x3f]   ;;  %v1086_v59 = vand.u32 %v3123_v52, %v3553_v40  ;;  %v3126_v60 = vld [vmem:[%s3558_s27 + $0x64] ss:$200 sps:$4 sm:$0xff]  }
  0x6e   : > { %1333 = vmatpush1.bf16.msra.mxu0 %v3076_v15  ;;  %v3121_v56 = vld [vmem:[%s3558_s27 + $0x1f8] ss:$200 sps:$4 sm:$0x3f]   ;;  %v1077_v61 = vand.u32 %v3118_v55, %v3553_v40  ;;  %v3129_v63 = vld [vmem:[%s3558_s27 + $0x6c] ss:$200 sps:$4 sm:$0xff]  }
  0x6f   : > { %1374 = vmatpush1.bf16.msra.mxu1 %v3079_v17  ;;  %1412 = vmatprep.subr.bf16.mxu0 %v1044_v19  ;;  %v1083_v62 = vand.u32 %v3121_v56, %v3553_v40  ;;  %v3132_v0 = vld [vmem:[%s3558_s27 + $0x204] ss:$200 sps:$4 sm:$0x3f]   ;;  %v3124_v2 = vld [vmem:[%s3558_s27 + $0x60] ss:$200 sps:$4 sm:$0xff]  }
  0x70   : > { %1453 = vmatprep.subr.bf16.mxu1 %v1050_v20  ;;  %v3135_v1 = vld [vmem:[%s3558_s27 + $0x20c] ss:$200 sps:$4 sm:$0x3f]   ;;  %v3127_v3 = vld [vmem:[%s3558_s27 + $0x68] ss:$200 sps:$4 sm:$0xff]   ;;  %v1092_v6 = vand.u32 %v3132_v0, %v3553_v40 }
  0x71   : > { %2933 = vmatmul.mubr.msk.bf16.vlgmr.msra.gmra.mxu0 %vm996_vm2, %v3579_v58  ;;  %v3130_v4 = vld [vmem:[%s3558_s27 + $0x200] ss:$200 sps:$4 sm:$0x3f]   ;;  %v1098_v7 = vand.u32 %v3135_v1, %v3553_v40  ;;  %v3138_v8 = vld [vmem:[%s3558_s27 + $0x74] ss:$200 sps:$4 sm:$0xff]  }
  0x72   : > { %2934 = vmatmul.mubr.msk.bf16.vlgmr.msra.gmra.mxu1 %vm996_vm2, %v3579_v58  ;;  %1413 = vmatpush1.bf16.msra.mxu0 %v1041_v22  ;;  %v3133_v5 = vld [vmem:[%s3558_s27 + $0x208] ss:$200 sps:$4 sm:$0x3f]   ;;  %v1089_v9 = vand.u32 %v3130_v4, %v3553_v40  ;;  %v3141_v11 = vld [vmem:[%s3558_s27 + $0x7c] ss:$200 sps:$4 sm:$0xff]  }
  0x73   : > { %1454 = vmatpush1.bf16.msra.mxu1 %v1047_v23  ;;  %1414 = vmatprep.subr.bf16.mxu0 %v3090_v21  ;;  %v1095_v10 = vand.u32 %v3133_v5, %v3553_v40  ;;  %v3144_v12 = vld [vmem:[%s3558_s27 + $0x214] ss:$200 sps:$4 sm:$0x3f]   ;;  %v3136_v14 = vld [vmem:[%s3558_s27 + $0x70] ss:$200 sps:$4 sm:$0xff]  }
  0x74   : > { %1455 = vmatprep.subr.bf16.mxu1 %v3093_v24  ;;  %1432 = vmatprep.mubr.bf16.mxu0 %v3253_v38  ;;  %v3147_v13 = vld [vmem:[%s3558_s27 + $0x21c] ss:$200 sps:$4 sm:$0x3f]   ;;  %v3139_v15 = vld [vmem:[%s3558_s27 + $0x78] ss:$200 sps:$4 sm:$0xff]   ;;  %v1104_v18 = vand.u32 %v3144_v12, %v3553_v40  ;;  %v2496_v12 = vlaneseq }
  0x75   : > { %1473 = vmatprep.mubr.bf16.mxu1 %v3253_v38  ;;  %v3142_v16 = vld [vmem:[%s3558_s27 + $0x210] ss:$200 sps:$4 sm:$0x3f]   ;;  %v1110_v19 = vand.u32 %v3147_v13, %v3553_v40  ;;  %v3150_v22 = vld [vmem:[%s3558_s27 + $0x84] ss:$200 sps:$4 sm:$0xff]  }
  0x76   : > { %1415 = vmatpush1.bf16.msra.mxu0 %v3088_v27  ;;  %v3145_v17 = vld [vmem:[%s3558_s27 + $0x218] ss:$200 sps:$4 sm:$0x3f]   ;;  %v1101_v20 = vand.u32 %v3142_v16, %v3553_v40  ;;  %v3156_v23 = vld [vmem:[%s3558_s27 + $0x224] ss:$200 sps:$4 sm:$0x3f]  }
  0x77   : > { %1456 = vmatpush1.bf16.msra.mxu1 %v3091_v28  ;;  %1494 = vmatprep.subr.bf16.mxu0 %v1056_v31  ;;  %v1107_v21 = vand.u32 %v3145_v17, %v3553_v40  ;;  %v3153_v24 = vld [vmem:[%s3558_s27 + $0x8c] ss:$200 sps:$4 sm:$0xff]   ;;  %v3148_v26 = vld [vmem:[%s3558_s27 + $0x80] ss:$200 sps:$4 sm:$0xff]   ;;  %v1116_v30 = vand.u32 %v3156_v23, %v3553_v40  ;;  %v3160_v39 = vld [vmem:[%s3558_s27 + $0x90] ss:$200 sps:$4 sm:$0xff]  }
  0x78   : > { %1535 = vmatprep.subr.bf16.mxu1 %v1062_v32  ;;  %v3159_v25 = vld [vmem:[%s3558_s27 + $0x22c] ss:$200 sps:$4 sm:$0x3f]   ;;  %v3151_v27 = vld [vmem:[%s3558_s27 + $0x88] ss:$200 sps:$4 sm:$0xff]  }
  0x79   : > { %2935 = vmatmul.mubr.msk.bf16.vlgmr.msra.gmra.mxu0 %vm996_vm2, %v3579_v58  ;;  %v3154_v28 = vld [vmem:[%s3558_s27 + $0x220] ss:$200 sps:$4 sm:$0x3f]   ;;  %v1122_v31 = vand.u32 %v3159_v25, %v3553_v40  ;;  %v3171_v37 = vld [vmem:[%s3558_s27 + $0x23c] ss:$200 sps:$4 sm:$0x3f]  }
  0x7a   : > { %2936 = vmatmul.mubr.msk.bf16.vlgmr.msra.gmra.mxu1 %vm996_vm2, %v3579_v58  ;;  %1495 = vmatpush1.bf16.msra.mxu0 %v1053_v35  ;;  %v3157_v29 = vld [vmem:[%s3558_s27 + $0x228] ss:$200 sps:$4 sm:$0x3f]   ;;  %v1113_v32 = vand.u32 %v3154_v28, %v3553_v40  ;;  %v3165_v35 = vld [vmem:[%s3558_s27 + $0x9c] ss:$200 sps:$4 sm:$0xff]  }
  0x7b   : > { %1536 = vmatpush1.bf16.msra.mxu1 %v1059_v36  ;;  %1496 = vmatprep.subr.bf16.mxu0 %v3102_v33  ;;  %v1119_v33 = vand.u32 %v3157_v29, %v3553_v40  ;;  %v3168_v36 = vld [vmem:[%s3558_s27 + $0x234] ss:$200 sps:$4 sm:$0x3f]   ;;  %v3169_v43 = vld [vmem:[%s3558_s27 + $0x238] ss:$200 sps:$4 sm:$0x3f]  }
  0x7c   : > { %1537 = vmatprep.subr.bf16.mxu1 %v3105_v34  ;;  %1514 = vmatprep.mubr.bf16.mxu0 %v3253_v38  ;;  %v3162_v34 = vld [vmem:[%s3558_s27 + $0x94] ss:$200 sps:$4 sm:$0xff]   ;;  %v1128_v44 = vand.u32 %v3168_v36, %v3553_v40  ;;  %v3180_v50 = vld [vmem:[%s3558_s27 + $0x244] ss:$200 sps:$4 sm:$0x3f]  }
  0x7d   : > { %1555 = vmatprep.mubr.bf16.mxu1 %v3253_v38  ;;  %v3172_v52 = vld [vmem:[%s3558_s27 + $0xa0] ss:$200 sps:$4 sm:$0xff]   ;;  %v1140_v56 = vand.u32 %v3180_v50, %v3553_v40  ;;  %v3184_v0 = vld [vmem:[%s3558_s27 + $0xb0] ss:$200 sps:$4 sm:$0xff]   ;;  %v3195_v5 = vld [vmem:[%s3558_s27 + $0xc4] ss:$200 sps:$4 sm:$0xff]  }
  0x7e   : > { %1497 = vmatpush1.bf16.msra.mxu0 %v3100_v41  ;;  %v3163_v41 = vld [vmem:[%s3558_s27 + $0x98] ss:$200 sps:$4 sm:$0xff]   ;;  %v3181_v55 = vld [vmem:[%s3558_s27 + $0x248] ss:$200 sps:$4 sm:$0x3f]  }
  0x7f   : > { %1538 = vmatpush1.bf16.msra.mxu1 %v3103_v42  ;;  %1576 = vmatprep.subr.bf16.mxu0 %v1068_v45  ;;  %v3166_v42 = vld [vmem:[%s3558_s27 + $0x230] ss:$200 sps:$4 sm:$0x3f]   ;;  %v1134_v45 = vand.u32 %v3171_v37, %v3553_v40 }
  0x80   : > { %1617 = vmatprep.subr.bf16.mxu1 %v1074_v46  ;;  %v1125_v46 = vand.u32 %v3166_v42, %v3553_v40  ;;  %v3187_v1 = vld [vmem:[%s3558_s27 + $0xb8] ss:$200 sps:$4 sm:$0xff]  }
  0x81   : > { %2937 = vmatmul.mubr.msk.bf16.vlgmr.msra.gmra.mxu0 %vm996_vm2, %v3579_v58 }
  0x82   : > { %2938 = vmatmul.mubr.msk.bf16.vlgmr.msra.gmra.mxu1 %vm996_vm2, %v3579_v58  ;;  %1577 = vmatpush1.bf16.msra.mxu0 %v1065_v47  ;;  %v1131_v47 = vand.u32 %v3169_v43, %v3553_v40 }
  0x83   : > { %1618 = vmatpush1.bf16.msra.mxu1 %v1071_v48  ;;  %1578 = vmatprep.subr.bf16.mxu0 %v3114_v49  ;;  %v3174_v48 = vld [vmem:[%s3558_s27 + $0xa4] ss:$200 sps:$4 sm:$0xff]  }
  0x84   : > { %1619 = vmatprep.subr.bf16.mxu1 %v3117_v51  ;;  %1596 = vmatprep.mubr.bf16.mxu0 %v3253_v38  ;;  %v3177_v49 = vld [vmem:[%s3558_s27 + $0xac] ss:$200 sps:$4 sm:$0xff]  }
  0x85   : > { %1637 = vmatprep.mubr.bf16.mxu1 %v3253_v38  ;;  %v3183_v51 = vld [vmem:[%s3558_s27 + $0x24c] ss:$200 sps:$4 sm:$0x3f]  }
  0x86   : > { %1579 = vmatpush1.bf16.msra.mxu0 %v3112_v53  ;;  %v3175_v53 = vld [vmem:[%s3558_s27 + $0xa8] ss:$200 sps:$4 sm:$0xff]  }
  0x87   : > { %1620 = vmatpush1.bf16.msra.mxu1 %v3115_v54  ;;  %1658 = vmatprep.subr.bf16.mxu0 %v1080_v57  ;;  %v3178_v54 = vld [vmem:[%s3558_s27 + $0x240] ss:$200 sps:$4 sm:$0x3f]   ;;  %v1146_v57 = vand.u32 %v3183_v51, %v3553_v40 }
  0x88   : > { %1699 = vmatprep.subr.bf16.mxu1 %v1086_v59  ;;  %v1137_v59 = vand.u32 %v3178_v54, %v3553_v40 }
  0x89   : > { %2939 = vmatmul.mubr.msk.bf16.vlgmr.msra.gmra.mxu0 %vm996_vm2, %v3579_v58 }
  0x8a   : > { %2940 = vmatmul.mubr.msk.bf16.vlgmr.msra.gmra.mxu1 %vm996_vm2, %v3579_v58  ;;  %1659 = vmatpush1.bf16.msra.mxu0 %v1077_v61  ;;  %v3186_v61 = vld [vmem:[%s3558_s27 + $0xb4] ss:$200 sps:$4 sm:$0xff]  }
  0x8b   : > { %1700 = vmatpush1.bf16.msra.mxu1 %v1083_v62  ;;  %1660 = vmatprep.subr.bf16.mxu0 %v3126_v60  ;;  %v1143_v60 = vand.u32 %v3181_v55, %v3553_v40  ;;  %v3189_v62 = vld [vmem:[%s3558_s27 + $0xbc] ss:$200 sps:$4 sm:$0xff]  }
  0x8c   : > { %1701 = vmatprep.subr.bf16.mxu1 %v3129_v63  ;;  %1678 = vmatprep.mubr.bf16.mxu0 %v3253_v38  ;;  %v3192_v63 = vld [vmem:[%s3558_s27 + $0x254] ss:$200 sps:$4 sm:$0x3f]  }
  0x8d   : > { %1719 = vmatprep.mubr.bf16.mxu1 %v3253_v38 }
  0x8e   : > { %1661 = vmatpush1.bf16.msra.mxu0 %v3124_v2  ;;  %v3190_v2 = vld [vmem:[%s3558_s27 + $0x250] ss:$200 sps:$4 sm:$0x3f]  }
  0x8f   : > { %1702 = vmatpush1.bf16.msra.mxu1 %v3127_v3  ;;  %1740 = vmatprep.subr.bf16.mxu0 %v1092_v6  ;;  %v1152_v3 = vand.u32 %v3192_v63, %v3553_v40  ;;  %v1149_v4 = vand.u32 %v3190_v2, %v3553_v40  ;;  %v3193_v6 = vld [vmem:[%s3558_s27 + $0xc0] ss:$200 sps:$4 sm:$0xff]  }
  0x90   : > { %1781 = vmatprep.subr.bf16.mxu1 %v1098_v7 }
  0x91   : > { %2941 = vmatmul.mubr.msk.bf16.vlgmr.msra.gmra.mxu0 %vm996_vm2, %v3579_v58 }
  0x92   : > { %2942 = vmatmul.mubr.msk.bf16.vlgmr.msra.gmra.mxu1 %vm996_vm2, %v3579_v58  ;;  %1741 = vmatpush1.bf16.msra.mxu0 %v1089_v9 }
  0x93   : > { %1782 = vmatpush1.bf16.msra.mxu1 %v1095_v10  ;;  %1742 = vmatprep.subr.bf16.mxu0 %v3138_v8  ;;  %v3254_v10 = vmov 1983009808  }
  0x94   : > { %1783 = vmatprep.subr.bf16.mxu1 %v3141_v11  ;;  %1760 = vmatprep.mubr.bf16.mxu0 %v3253_v38  ;;  %v2494_v11 = vunpack.c.l.s4 %v3254_v10 }
  0x95   : > { %1801 = vmatprep.mubr.bf16.mxu1 %v3253_v38 }
  0x96   : > { %1743 = vmatpush1.bf16.msra.mxu0 %v3136_v14 }
  0x97   : > { %1784 = vmatpush1.bf16.msra.mxu1 %v3139_v15  ;;  %1822 = vmatprep.subr.bf16.mxu0 %v1104_v18 }
  0x98   : > { %1863 = vmatprep.subr.bf16.mxu1 %v1110_v19  ;;  %v2495_v19 = vunpack.c.0.s8 %v2494_v11 }
  0x99   : > { %2943 = vmatmul.mubr.msk.bf16.vlgmr.msra.gmra.mxu0 %vm996_vm2, %v3579_v58 }
  0x9a   : > { %2944 = vmatmul.mubr.msk.bf16.vlgmr.msra.gmra.mxu1 %vm996_vm2, %v3579_v58  ;;  %1823 = vmatpush1.bf16.msra.mxu0 %v1101_v20  ;;  %v2497_v20 = vshrl.u32 %v2496_v12, 7 }
  0x9b   : > { %1864 = vmatpush1.bf16.msra.mxu1 %v1107_v21  ;;  %1824 = vmatprep.subr.bf16.mxu0 %v3150_v22 }
  0x9c   : > { %1865 = vmatprep.subr.bf16.mxu1 %v3153_v24  ;;  %1842 = vmatprep.mubr.bf16.mxu0 %v3253_v38 }
  0x9d   : > { %1883 = vmatprep.mubr.bf16.mxu1 %v3253_v38 }
  0x9e   : > { %1825 = vmatpush1.bf16.msra.mxu0 %v3148_v26 }
  0x9f   : > { %1866 = vmatpush1.bf16.msra.mxu1 %v3151_v27  ;;  %1904 = vmatprep.subr.bf16.mxu0 %v1116_v30 }
  0xa0   : > { %1945 = vmatprep.subr.bf16.mxu1 %v1122_v31 }
  0xa1   : > { %2945 = vmatmul.mubr.msk.bf16.vlgmr.msra.gmra.mxu0 %vm996_vm2, %v3579_v58 }
  0xa2   : > { %2946 = vmatmul.mubr.msk.bf16.vlgmr.msra.gmra.mxu1 %vm996_vm2, %v3579_v58  ;;  %1905 = vmatpush1.bf16.msra.mxu0 %v1113_v32 }
  0xa3   : > { %1946 = vmatpush1.bf16.msra.mxu1 %v1119_v33  ;;  %1906 = vmatprep.subr.bf16.mxu0 %v3162_v34  ;;  %v3806_v33 = vsub.s32 %v2495_v19, %v2497_v20 }
  0xa4   : > { %1947 = vmatprep.subr.bf16.mxu1 %v3165_v35  ;;  %1924 = vmatprep.mubr.bf16.mxu0 %v3253_v38 }
  0xa5   : > { %1965 = vmatprep.mubr.bf16.mxu1 %v3253_v38 }
  0xa6   : > { %1907 = vmatpush1.bf16.msra.mxu0 %v3160_v39 }
  0xa7   : > { %1948 = vmatpush1.bf16.msra.mxu1 %v3163_v41  ;;  %1986 = vmatprep.subr.bf16.mxu0 %v1128_v44 }
  0xa8   : > { %2027 = vmatprep.subr.bf16.mxu1 %v1134_v45 }
  0xa9   : > { %2947 = vmatmul.mubr.msk.bf16.vlgmr.msra.gmra.mxu0 %vm996_vm2, %v3579_v58 }
  0xaa   : > { %2948 = vmatmul.mubr.msk.bf16.vlgmr.msra.gmra.mxu1 %vm996_vm2, %v3579_v58  ;;  %1987 = vmatpush1.bf16.msra.mxu0 %v1125_v46 }
  0xab   : > { %2028 = vmatpush1.bf16.msra.mxu1 %v1131_v47  ;;  %1988 = vmatprep.subr.bf16.mxu0 %v3174_v48 }
  0xac   : > { %2029 = vmatprep.subr.bf16.mxu1 %v3177_v49  ;;  %2006 = vmatprep.mubr.bf16.mxu0 %v3253_v38 }
  0xad   : > { %2047 = vmatprep.mubr.bf16.mxu1 %v3253_v38 }
  0xae   : > { %1989 = vmatpush1.bf16.msra.mxu0 %v3172_v52 }
  0xaf   : > { %2030 = vmatpush1.bf16.msra.mxu1 %v3175_v53  ;;  %2068 = vmatprep.subr.bf16.mxu0 %v1140_v56 }
  0xb0   : > { %2109 = vmatprep.subr.bf16.mxu1 %v1146_v57 }
  0xb1   : > { %2949 = vmatmul.mubr.msk.bf16.vlgmr.msra.gmra.mxu0 %vm996_vm2, %v3579_v58 }
  0xb2   : > { %2950 = vmatmul.mubr.msk.bf16.vlgmr.msra.gmra.mxu1 %vm996_vm2, %v3579_v58  ;;  %2069 = vmatpush1.bf16.msra.mxu0 %v1137_v59 }
  0xb3   : > { %2110 = vmatpush1.bf16.msra.mxu1 %v1143_v60  ;;  %2070 = vmatprep.subr.bf16.mxu0 %v3186_v61 }
  0xb4   : > { %2111 = vmatprep.subr.bf16.mxu1 %v3189_v62  ;;  %2088 = vmatprep.mubr.bf16.mxu0 %v3253_v38 }
  0xb5   : > { %2129 = vmatprep.mubr.bf16.mxu1 %v3253_v38 }
  0xb6   : > { %2071 = vmatpush1.bf16.msra.mxu0 %v3184_v0 }
  0xb7   : > { %2112 = vmatpush1.bf16.msra.mxu1 %v3187_v1  ;;  %2150 = vmatprep.subr.bf16.mxu0 %v1152_v3 }
  0xb9   : > { %2951 = vmatmul.mubr.msk.bf16.vlgmr.msra.gmra.mxu0 %vm996_vm2, %v3579_v58 }
  0xba   : > { %2952 = vmatmul.mubr.msk.bf16.vlgmr.msra.gmra.mxu1 %vm996_vm2, %v3579_v58  ;;  %2151 = vmatpush1.bf16.msra.mxu0 %v1149_v4 }
  0xbb   : > { %2170 = vmatprep.mubr.bf16.mxu0 %v3253_v38  ;;  %2152 = vmatprep.subr.bf16.mxu0 %v3195_v5 }
  0xbe   : > { %2153 = vmatpush1.bf16.msra.mxu0 %v3193_v6 }
  0xc1   : > { %2953 = vmatmul.mubr.msk.bf16.vlgmr.msra.gmra.mxu0 %vm996_vm2, %v3579_v58 }
  0xd2   : > { %v3788_v7 = vpop.permute.xlu0 %2182 }
  0xd6   : > { %v3792_v40 = vpop.permute.xlu0 %2238 }
 0x121   : > { %v1188_v8 = vpop.f32.mrf.mxu0 }
 0x122   : > { %v1229_v9 = vpop.f32.mrf.mxu1  ;;  %v2185_v38 = vmul.f32 %v3788_v7, %v1188_v8 }
 0x123   : > { %v2187_v13 = vmul.f32 %v3788_v7, %v1229_v9  ;;  %v1190_v58 = vpop.f32.mrf.mxu0 }
 0x124   : > { %v1231_v14 = vpop.f32.mrf.mxu1  ;;  %v2186_v15 = vmul.f32 %v3788_v7, %v1190_v58  ;;  %v2241_v16 = vadd.f32 %v3792_v40, %v2185_v38 }
 0x125   : > { %v2188_v17 = vmul.f32 %v3788_v7, %v1231_v14  ;;  %v2243_v18 = vadd.f32 %v3792_v40, %v2187_v13  ;;  %v1192_v21 = vpop.f32.mrf.mxu0 }
 0x126   : > { %v1233_v22 = vpop.f32.mrf.mxu1  ;;  %v2242_v23 = vadd.f32 %v3792_v40, %v2186_v15  ;;  %v2291_v24 = vmul.f32 0.2, %v2241_v16 }
 0x127   : > { %v2244_v25 = vadd.f32 %v3792_v40, %v2188_v17  ;;  %v2293_v26 = vmul.f32 0.2, %v2243_v18  ;;  %v1193_v27 = vpop.f32.mrf.mxu0 }
 0x128   : > { %v1234_v28 = vpop.f32.mrf.mxu1  ;;  %v2292_v29 = vmul.f32 0.2, %v2242_v23  ;;  %v2341_v32 = vmax.f32 %v2241_v16, %v2291_v24 }
 0x129   : > { %v2294_v30 = vmul.f32 0.2, %v2244_v25  ;;  %v2343_v31 = vmax.f32 %v2243_v18, %v2293_v26  ;;  %v1270_v34 = vpop.f32.mrf.mxu0 }
 0x12a   : > { %v1311_v35 = vpop.f32.mrf.mxu1  ;;  %v2342_v36 = vmax.f32 %v2242_v23, %v2292_v29  ;;  %v2189_v39 = vmul.f32 %v3788_v7, %v1270_v34 }
 0x12b   : > { %v2344_v37 = vmax.f32 %v2244_v25, %v2294_v30  ;;  %v2191_v41 = vmul.f32 %v3788_v7, %v1311_v35  ;;  %v1272_v42 = vpop.f32.mrf.mxu0 }
 0x12c   : > { %v1313_v43 = vpop.f32.mrf.mxu1  ;;  %v2954_v44 = vpack.c.bf16 %v2342_v36, %v2341_v32  ;;  %v2245_v46 = vadd.f32 %v3792_v40, %v2189_v39  ;;  %v2190_v48 = vmul.f32 %v3788_v7, %v1272_v42 }
 0x12d   : > { %v2955_v45 = vpack.c.bf16 %v2344_v37, %v2343_v31  ;;  %v2247_v47 = vadd.f32 %v3792_v40, %v2191_v41  ;;  %v2192_v49 = vmul.f32 %v3788_v7, %v1313_v43  ;;  %v1274_v50 = vpop.f32.mrf.mxu0 }
 0x12e   : > { %v1315_v51 = vpop.f32.mrf.mxu1  ;;  %v2499_v52 = vrot.slane %v2954_v44, %v3806_v33  ;;  %v2295_v55 = vmul.f32 0.2, %v2245_v46  ;;  %v2246_v56 = vadd.f32 %v3792_v40, %v2190_v48 }
 0x12f   : > { %v2506_v53 = vrot.slane %v2955_v45, %v3806_v33  ;;  %v2297_v54 = vmul.f32 0.2, %v2247_v47  ;;  %v2248_v57 = vadd.f32 %v3792_v40, %v2192_v49  ;;  %v1275_v59 = vpop.f32.mrf.mxu0 }
 0x130   : > { %v1316_v60 = vpop.f32.mrf.mxu1  ;;  %v2296_v63 = vmul.f32 0.2, %v2246_v56  ;;  %v2345_v5 = vmax.f32 %v2245_v46, %v2295_v55 }
 0x131   : > { %v2507_v61 = vcombine.low %v2499_v52, %v2506_v53  ;;  %v2347_v62 = vmax.f32 %v2247_v47, %v2297_v54  ;;  %v2298_v0 = vmul.f32 0.2, %v2248_v57  ;;  %v1352_v1 = vpop.f32.mrf.mxu0 }
 0x132   : > { %v1393_v2 = vpop.f32.mrf.mxu1  ;;  %v2193_v3 = vmul.f32 %v3788_v7, %v1352_v1  ;;  %v2346_v6 = vmax.f32 %v2246_v56, %v2296_v63 }
 0x133   : > { %2716 = vst [vmem:[%s3819_s9] sm:$0xff] %v2507_v61  ;;  %v2195_v4 = vmul.f32 %v3788_v7, %v1393_v2  ;;  %v2348_v8 = vmax.f32 %v2248_v57, %v2298_v0  ;;  %v1354_v9 = vpop.f32.mrf.mxu0 }
 0x134   : > { %v1395_v10 = vpop.f32.mrf.mxu1  ;;  %v2249_v11 = vadd.f32 %v3792_v40, %v2193_v3  ;;  %v2194_v38 = vmul.f32 %v3788_v7, %v1354_v9  ;;  %v2956_v58 = vpack.c.bf16 %v2346_v6, %v2345_v5 }
 0x135   : > { %v2251_v12 = vadd.f32 %v3792_v40, %v2195_v4  ;;  %v2196_v13 = vmul.f32 %v3788_v7, %v1395_v10  ;;  %v2957_v14 = vpack.c.bf16 %v2348_v8, %v2347_v62  ;;  %v1356_v15 = vpop.f32.mrf.mxu0 }
 0x136   : > { %v1397_v16 = vpop.f32.mrf.mxu1  ;;  %v2299_v17 = vmul.f32 0.2, %v2249_v11  ;;  %v2250_v19 = vadd.f32 %v3792_v40, %v2194_v38  ;;  %v2516_v21 = vrot.slane %v2956_v58, %v3806_v33 }
 0x137   : > { %v2301_v18 = vmul.f32 0.2, %v2251_v12  ;;  %v2252_v20 = vadd.f32 %v3792_v40, %v2196_v13  ;;  %v2523_v22 = vrot.slane %v2957_v14, %v3806_v33  ;;  %v1357_v23 = vpop.f32.mrf.mxu0 }
 0x138   : > { %v1398_v24 = vpop.f32.mrf.mxu1  ;;  %v2300_v26 = vmul.f32 0.2, %v2250_v19  ;;  %v2349_v29 = vmax.f32 %v2249_v11, %v2299_v17 }
 0x139   : > { %v2351_v25 = vmax.f32 %v2251_v12, %v2301_v18  ;;  %v2302_v27 = vmul.f32 0.2, %v2252_v20  ;;  %v2524_v28 = vcombine.low %v2516_v21, %v2523_v22  ;;  %v1434_v30 = vpop.f32.mrf.mxu0 }
 0x13a   : > { %v1475_v31 = vpop.f32.mrf.mxu1  ;;  %v2350_v32 = vmax.f32 %v2250_v19, %v2300_v26  ;;  %v2197_v35 = vmul.f32 %v3788_v7, %v1434_v30 }
 0x13b   : > { %v2352_v34 = vmax.f32 %v2252_v20, %v2302_v27  ;;  %v2199_v36 = vmul.f32 %v3788_v7, %v1475_v31  ;;  %2717 = vst [vmem:[%s3819_s9 + $0x8] sm:$0xff] %v2524_v28  ;;  %v1436_v37 = vpop.f32.mrf.mxu0 }
 0x13c   : > { %v1477_v39 = vpop.f32.mrf.mxu1  ;;  %v2958_v41 = vpack.c.bf16 %v2350_v32, %v2349_v29  ;;  %v2253_v43 = vadd.f32 %v3792_v40, %v2197_v35  ;;  %v2198_v45 = vmul.f32 %v3788_v7, %v1436_v37 }
 0x13d   : > { %v2959_v42 = vpack.c.bf16 %v2352_v34, %v2351_v25  ;;  %v2255_v44 = vadd.f32 %v3792_v40, %v2199_v36  ;;  %v2200_v46 = vmul.f32 %v3788_v7, %v1477_v39  ;;  %v1438_v47 = vpop.f32.mrf.mxu0 }
 0x13e   : > { %v1479_v48 = vpop.f32.mrf.mxu1  ;;  %v2533_v49 = vrot.slane %v2958_v41, %v3806_v33  ;;  %v2303_v52 = vmul.f32 0.2, %v2253_v43  ;;  %v2254_v53 = vadd.f32 %v3792_v40, %v2198_v45 }
 0x13f   : > { %v2540_v50 = vrot.slane %v2959_v42, %v3806_v33  ;;  %v2305_v51 = vmul.f32 0.2, %v2255_v44  ;;  %v2256_v54 = vadd.f32 %v3792_v40, %v2200_v46  ;;  %v1439_v55 = vpop.f32.mrf.mxu0 }
 0x140   : > { %v1480_v56 = vpop.f32.mrf.mxu1  ;;  %v2304_v60 = vmul.f32 0.2, %v2254_v53  ;;  %v2353_v2 = vmax.f32 %v2253_v43, %v2303_v52 }
 0x141   : > { %v2541_v57 = vcombine.low %v2533_v49, %v2540_v50  ;;  %v2355_v59 = vmax.f32 %v2255_v44, %v2305_v51  ;;  %v2306_v61 = vmul.f32 0.2, %v2256_v54  ;;  %v1516_v62 = vpop.f32.mrf.mxu0 }
 0x142   : > { %v1557_v63 = vpop.f32.mrf.mxu1  ;;  %v2201_v0 = vmul.f32 %v3788_v7, %v1516_v62  ;;  %v2354_v3 = vmax.f32 %v2254_v53, %v2304_v60 }
 0x143   : > { %2718 = vst [vmem:[%s3819_s9 + $0x10] sm:$0xff] %v2541_v57  ;;  %v2203_v1 = vmul.f32 %v3788_v7, %v1557_v63  ;;  %v2356_v4 = vmax.f32 %v2256_v54, %v2306_v61  ;;  %v1518_v5 = vpop.f32.mrf.mxu0 }
 0x144   : > { %v1559_v6 = vpop.f32.mrf.mxu1  ;;  %v2257_v8 = vadd.f32 %v3792_v40, %v2201_v0  ;;  %v2202_v10 = vmul.f32 %v3788_v7, %v1518_v5  ;;  %v2960_v12 = vpack.c.bf16 %v2354_v3, %v2353_v2 }
 0x145   : > { %v2259_v9 = vadd.f32 %v3792_v40, %v2203_v1  ;;  %v2204_v11 = vmul.f32 %v3788_v7, %v1559_v6  ;;  %v2961_v38 = vpack.c.bf16 %v2356_v4, %v2355_v59  ;;  %v1520_v13 = vpop.f32.mrf.mxu0 }
 0x146   : > { %v1561_v58 = vpop.f32.mrf.mxu1  ;;  %v2307_v14 = vmul.f32 0.2, %v2257_v8  ;;  %v2258_v16 = vadd.f32 %v3792_v40, %v2202_v10  ;;  %v2550_v18 = vrot.slane %v2960_v12, %v3806_v33 }
 0x147   : > { %v2309_v15 = vmul.f32 0.2, %v2259_v9  ;;  %v2260_v17 = vadd.f32 %v3792_v40, %v2204_v11  ;;  %v2557_v19 = vrot.slane %v2961_v38, %v3806_v33  ;;  %v1521_v20 = vpop.f32.mrf.mxu0 }
 0x148   : > { %v1562_v21 = vpop.f32.mrf.mxu1  ;;  %v2308_v23 = vmul.f32 0.2, %v2258_v16  ;;  %v2357_v26 = vmax.f32 %v2257_v8, %v2307_v14 }
 0x149   : > { %v2359_v22 = vmax.f32 %v2259_v9, %v2309_v15  ;;  %v2310_v24 = vmul.f32 0.2, %v2260_v17  ;;  %v2558_v25 = vcombine.low %v2550_v18, %v2557_v19  ;;  %v1598_v27 = vpop.f32.mrf.mxu0 }
 0x14a   : > { %v1639_v28 = vpop.f32.mrf.mxu1  ;;  %v2358_v29 = vmax.f32 %v2258_v16, %v2308_v23  ;;  %v2205_v31 = vmul.f32 %v3788_v7, %v1598_v27 }
 0x14b   : > { %v2360_v30 = vmax.f32 %v2260_v17, %v2310_v24  ;;  %v2207_v32 = vmul.f32 %v3788_v7, %v1639_v28  ;;  %2719 = vst [vmem:[%s3819_s9 + $0x18] sm:$0xff] %v2558_v25  ;;  %v1600_v34 = vpop.f32.mrf.mxu0 }
 0x14c   : > { %v1641_v35 = vpop.f32.mrf.mxu1  ;;  %v2962_v36 = vpack.c.bf16 %v2358_v29, %v2357_v26  ;;  %v2261_v39 = vadd.f32 %v3792_v40, %v2205_v31  ;;  %v2206_v42 = vmul.f32 %v3788_v7, %v1600_v34 }
 0x14d   : > { %v2963_v37 = vpack.c.bf16 %v2360_v30, %v2359_v22  ;;  %v2263_v41 = vadd.f32 %v3792_v40, %v2207_v32  ;;  %v2208_v43 = vmul.f32 %v3788_v7, %v1641_v35  ;;  %v1602_v44 = vpop.f32.mrf.mxu0 }
 0x14e   : > { %v1643_v45 = vpop.f32.mrf.mxu1  ;;  %v2567_v46 = vrot.slane %v2962_v36, %v3806_v33  ;;  %v2311_v49 = vmul.f32 0.2, %v2261_v39  ;;  %v2262_v50 = vadd.f32 %v3792_v40, %v2206_v42 }
 0x14f   : > { %v2574_v47 = vrot.slane %v2963_v37, %v3806_v33  ;;  %v2313_v48 = vmul.f32 0.2, %v2263_v41  ;;  %v2264_v51 = vadd.f32 %v3792_v40, %v2208_v43  ;;  %v1603_v52 = vpop.f32.mrf.mxu0 }
 0x150   : > { %v1644_v53 = vpop.f32.mrf.mxu1  ;;  %v2312_v56 = vmul.f32 0.2, %v2262_v50  ;;  %v2361_v63 = vmax.f32 %v2261_v39, %v2311_v49 }
 0x151   : > { %v2575_v54 = vcombine.low %v2567_v46, %v2574_v47  ;;  %v2363_v55 = vmax.f32 %v2263_v41, %v2313_v48  ;;  %v2314_v57 = vmul.f32 0.2, %v2264_v51  ;;  %v1680_v59 = vpop.f32.mrf.mxu0 }
 0x152   : > { %v1721_v60 = vpop.f32.mrf.mxu1  ;;  %v2209_v61 = vmul.f32 %v3788_v7, %v1680_v59  ;;  %v2362_v0 = vmax.f32 %v2262_v50, %v2312_v56 }
 0x153   : > { %2720 = vst [vmem:[%s3819_s9 + $0x20] sm:$0xff] %v2575_v54  ;;  %v2211_v62 = vmul.f32 %v3788_v7, %v1721_v60  ;;  %v2364_v1 = vmax.f32 %v2264_v51, %v2314_v57  ;;  %v1682_v2 = vpop.f32.mrf.mxu0 }
 0x154   : > { %v1723_v3 = vpop.f32.mrf.mxu1  ;;  %v2265_v4 = vadd.f32 %v3792_v40, %v2209_v61  ;;  %v2210_v6 = vmul.f32 %v3788_v7, %v1682_v2  ;;  %v2964_v9 = vpack.c.bf16 %v2362_v0, %v2361_v63 }
 0x155   : > { %v2267_v5 = vadd.f32 %v3792_v40, %v2211_v62  ;;  %v2212_v8 = vmul.f32 %v3788_v7, %v1723_v3  ;;  %v2965_v10 = vpack.c.bf16 %v2364_v1, %v2363_v55  ;;  %v1684_v11 = vpop.f32.mrf.mxu0 }
 0x156   : > { %v1725_v12 = vpop.f32.mrf.mxu1  ;;  %v2315_v38 = vmul.f32 0.2, %v2265_v4  ;;  %v2266_v58 = vadd.f32 %v3792_v40, %v2210_v6  ;;  %v2584_v15 = vrot.slane %v2964_v9, %v3806_v33 }
 0x157   : > { %v2317_v13 = vmul.f32 0.2, %v2267_v5  ;;  %v2268_v14 = vadd.f32 %v3792_v40, %v2212_v8  ;;  %v2591_v16 = vrot.slane %v2965_v10, %v3806_v33  ;;  %v1685_v17 = vpop.f32.mrf.mxu0 }
 0x158   : > { %v1726_v18 = vpop.f32.mrf.mxu1  ;;  %v2316_v20 = vmul.f32 0.2, %v2266_v58  ;;  %v2365_v23 = vmax.f32 %v2265_v4, %v2315_v38 }
 0x159   : > { %v2367_v19 = vmax.f32 %v2267_v5, %v2317_v13  ;;  %v2318_v21 = vmul.f32 0.2, %v2268_v14  ;;  %v2592_v22 = vcombine.low %v2584_v15, %v2591_v16  ;;  %v1762_v24 = vpop.f32.mrf.mxu0 }
 0x15a   : > { %v1803_v25 = vpop.f32.mrf.mxu1  ;;  %v2366_v26 = vmax.f32 %v2266_v58, %v2316_v20  ;;  %v2213_v28 = vmul.f32 %v3788_v7, %v1762_v24 }
 0x15b   : > { %v2368_v27 = vmax.f32 %v2268_v14, %v2318_v21  ;;  %v2215_v29 = vmul.f32 %v3788_v7, %v1803_v25  ;;  %2721 = vst [vmem:[%s3819_s9 + $0x28] sm:$0xff] %v2592_v22  ;;  %v1764_v30 = vpop.f32.mrf.mxu0 }
 0x15c   : > { %v1805_v31 = vpop.f32.mrf.mxu1  ;;  %v2966_v32 = vpack.c.bf16 %v2366_v26, %v2365_v23  ;;  %v2269_v35 = vadd.f32 %v3792_v40, %v2213_v28  ;;  %v2214_v37 = vmul.f32 %v3788_v7, %v1764_v30 }
 0x15d   : > { %v2967_v34 = vpack.c.bf16 %v2368_v27, %v2367_v19  ;;  %v2271_v36 = vadd.f32 %v3792_v40, %v2215_v29  ;;  %v2216_v39 = vmul.f32 %v3788_v7, %v1805_v31  ;;  %v1766_v41 = vpop.f32.mrf.mxu0 }
 0x15e   : > { %v1807_v42 = vpop.f32.mrf.mxu1  ;;  %v2601_v43 = vrot.slane %v2966_v32, %v3806_v33  ;;  %v2319_v46 = vmul.f32 0.2, %v2269_v35  ;;  %v2270_v47 = vadd.f32 %v3792_v40, %v2214_v37 }
 0x15f   : > { %v2608_v44 = vrot.slane %v2967_v34, %v3806_v33  ;;  %v2321_v45 = vmul.f32 0.2, %v2271_v36  ;;  %v2272_v48 = vadd.f32 %v3792_v40, %v2216_v39  ;;  %v1767_v49 = vpop.f32.mrf.mxu0 }
 0x160   : > { %v1808_v50 = vpop.f32.mrf.mxu1  ;;  %v2320_v53 = vmul.f32 0.2, %v2270_v47  ;;  %v2369_v60 = vmax.f32 %v2269_v35, %v2319_v46 }
 0x161   : > { %v2609_v51 = vcombine.low %v2601_v43, %v2608_v44  ;;  %v2371_v52 = vmax.f32 %v2271_v36, %v2321_v45  ;;  %v2322_v54 = vmul.f32 0.2, %v2272_v48  ;;  %v1844_v55 = vpop.f32.mrf.mxu0 }
 0x162   : > { %v1885_v56 = vpop.f32.mrf.mxu1  ;;  %v2217_v57 = vmul.f32 %v3788_v7, %v1844_v55  ;;  %v2370_v61 = vmax.f32 %v2270_v47, %v2320_v53 }
 0x163   : > { %2722 = vst [vmem:[%s3819_s9 + $0x30] sm:$0xff] %v2609_v51  ;;  %v2219_v59 = vmul.f32 %v3788_v7, %v1885_v56  ;;  %v2372_v62 = vmax.f32 %v2272_v48, %v2322_v54  ;;  %v1846_v63 = vpop.f32.mrf.mxu0 }
 0x164   : > { %v1887_v0 = vpop.f32.mrf.mxu1  ;;  %v2273_v1 = vadd.f32 %v3792_v40, %v2217_v57  ;;  %v2218_v3 = vmul.f32 %v3788_v7, %v1846_v63  ;;  %v2968_v5 = vpack.c.bf16 %v2370_v61, %v2369_v60 }
 0x165   : > { %v2275_v2 = vadd.f32 %v3792_v40, %v2219_v59  ;;  %v2220_v4 = vmul.f32 %v3788_v7, %v1887_v0  ;;  %v2969_v6 = vpack.c.bf16 %v2372_v62, %v2371_v52  ;;  %v1848_v8 = vpop.f32.mrf.mxu0 }
 0x166   : > { %v1889_v9 = vpop.f32.mrf.mxu1  ;;  %v2323_v10 = vmul.f32 0.2, %v2273_v1  ;;  %v2274_v12 = vadd.f32 %v3792_v40, %v2218_v3  ;;  %v2618_v13 = vrot.slane %v2968_v5, %v3806_v33 }
 0x167   : > { %v2325_v11 = vmul.f32 0.2, %v2275_v2  ;;  %v2276_v38 = vadd.f32 %v3792_v40, %v2220_v4  ;;  %v2625_v58 = vrot.slane %v2969_v6, %v3806_v33  ;;  %v1849_v14 = vpop.f32.mrf.mxu0 }
 0x168   : > { %v1890_v15 = vpop.f32.mrf.mxu1  ;;  %v2324_v17 = vmul.f32 0.2, %v2274_v12  ;;  %v2373_v20 = vmax.f32 %v2273_v1, %v2323_v10 }
 0x169   : > { %v2375_v16 = vmax.f32 %v2275_v2, %v2325_v11  ;;  %v2326_v18 = vmul.f32 0.2, %v2276_v38  ;;  %v2626_v19 = vcombine.low %v2618_v13, %v2625_v58  ;;  %v1926_v21 = vpop.f32.mrf.mxu0 }
 0x16a   : > { %v1967_v22 = vpop.f32.mrf.mxu1  ;;  %v2374_v23 = vmax.f32 %v2274_v12, %v2324_v17  ;;  %v2221_v25 = vmul.f32 %v3788_v7, %v1926_v21 }
 0x16b   : > { %v2376_v24 = vmax.f32 %v2276_v38, %v2326_v18  ;;  %v2223_v26 = vmul.f32 %v3788_v7, %v1967_v22  ;;  %2723 = vst [vmem:[%s3819_s9 + $0x38] sm:$0xff] %v2626_v19  ;;  %v1928_v27 = vpop.f32.mrf.mxu0 }
 0x16c   : > { %v1969_v28 = vpop.f32.mrf.mxu1  ;;  %v2970_v29 = vpack.c.bf16 %v2374_v23, %v2373_v20  ;;  %v2277_v31 = vadd.f32 %v3792_v40, %v2221_v25  ;;  %v2222_v34 = vmul.f32 %v3788_v7, %v1928_v27 }
 0x16d   : > { %v2971_v30 = vpack.c.bf16 %v2376_v24, %v2375_v16  ;;  %v2279_v32 = vadd.f32 %v3792_v40, %v2223_v26  ;;  %v2224_v35 = vmul.f32 %v3788_v7, %v1969_v28  ;;  %v1930_v36 = vpop.f32.mrf.mxu0 }
 0x16e   : > { %v1971_v37 = vpop.f32.mrf.mxu1  ;;  %v2635_v39 = vrot.slane %v2970_v29, %v3806_v33  ;;  %v2327_v43 = vmul.f32 0.2, %v2277_v31  ;;  %v2278_v44 = vadd.f32 %v3792_v40, %v2222_v34 }
 0x16f   : > { %v2642_v41 = vrot.slane %v2971_v30, %v3806_v33  ;;  %v2329_v42 = vmul.f32 0.2, %v2279_v32  ;;  %v2280_v45 = vadd.f32 %v3792_v40, %v2224_v35  ;;  %v1931_v46 = vpop.f32.mrf.mxu0 }
 0x170   : > { %v1972_v47 = vpop.f32.mrf.mxu1  ;;  %v2328_v50 = vmul.f32 0.2, %v2278_v44  ;;  %v2377_v56 = vmax.f32 %v2277_v31, %v2327_v43 }
 0x171   : > { %v2643_v48 = vcombine.low %v2635_v39, %v2642_v41  ;;  %v2379_v49 = vmax.f32 %v2279_v32, %v2329_v42  ;;  %v2330_v51 = vmul.f32 0.2, %v2280_v45  ;;  %v2008_v52 = vpop.f32.mrf.mxu0 }
 0x172   : > { %v2049_v53 = vpop.f32.mrf.mxu1  ;;  %v2225_v54 = vmul.f32 %v3788_v7, %v2008_v52  ;;  %v2378_v57 = vmax.f32 %v2278_v44, %v2328_v50 }
 0x173   : > { %2724 = vst [vmem:[%s3819_s9 + $0x40] sm:$0xff] %v2643_v48  ;;  %v2227_v55 = vmul.f32 %v3788_v7, %v2049_v53  ;;  %v2380_v59 = vmax.f32 %v2280_v45, %v2330_v51  ;;  %v2010_v60 = vpop.f32.mrf.mxu0 }
 0x174   : > { %v2051_v61 = vpop.f32.mrf.mxu1  ;;  %v2281_v62 = vadd.f32 %v3792_v40, %v2225_v54  ;;  %v2226_v0 = vmul.f32 %v3788_v7, %v2010_v60  ;;  %v2972_v2 = vpack.c.bf16 %v2378_v57, %v2377_v56 }
 0x175   : > { %v2283_v63 = vadd.f32 %v3792_v40, %v2227_v55  ;;  %v2228_v1 = vmul.f32 %v3788_v7, %v2051_v61  ;;  %v2973_v3 = vpack.c.bf16 %v2380_v59, %v2379_v49  ;;  %v2012_v4 = vpop.f32.mrf.mxu0 }
 0x176   : > { %v2053_v5 = vpop.f32.mrf.mxu1  ;;  %v2331_v6 = vmul.f32 0.2, %v2281_v62  ;;  %v2282_v9 = vadd.f32 %v3792_v40, %v2226_v0  ;;  %v2652_v11 = vrot.slane %v2972_v2, %v3806_v33 }
 0x177   : > { %v2333_v8 = vmul.f32 0.2, %v2283_v63  ;;  %v2284_v10 = vadd.f32 %v3792_v40, %v2228_v1  ;;  %v2659_v12 = vrot.slane %v2973_v3, %v3806_v33  ;;  %v2013_v38 = vpop.f32.mrf.mxu0 }
 0x178   : > { %v2054_v13 = vpop.f32.mrf.mxu1  ;;  %v2332_v14 = vmul.f32 0.2, %v2282_v9  ;;  %v2381_v17 = vmax.f32 %v2281_v62, %v2331_v6 }
 0x179   : > { %v2383_v58 = vmax.f32 %v2283_v63, %v2333_v8  ;;  %v2334_v15 = vmul.f32 0.2, %v2284_v10  ;;  %v2660_v16 = vcombine.low %v2652_v11, %v2659_v12  ;;  %v2090_v18 = vpop.f32.mrf.mxu0 }
 0x17a   : > { %v2131_v19 = vpop.f32.mrf.mxu1  ;;  %v2382_v20 = vmax.f32 %v2282_v9, %v2332_v14  ;;  %v2229_v22 = vmul.f32 %v3788_v7, %v2090_v18 }
 0x17b   : > { %v2384_v21 = vmax.f32 %v2284_v10, %v2334_v15  ;;  %v2231_v23 = vmul.f32 %v3788_v7, %v2131_v19  ;;  %2725 = vst [vmem:[%s3819_s9 + $0x48] sm:$0xff] %v2660_v16  ;;  %v2092_v24 = vpop.f32.mrf.mxu0 }
 0x17c   : > { %v2133_v25 = vpop.f32.mrf.mxu1  ;;  %v2974_v26 = vpack.c.bf16 %v2382_v20, %v2381_v17  ;;  %v2285_v28 = vadd.f32 %v3792_v40, %v2229_v22  ;;  %v2230_v30 = vmul.f32 %v3788_v7, %v2092_v24 }
 0x17d   : > { %v2975_v27 = vpack.c.bf16 %v2384_v21, %v2383_v58  ;;  %v2287_v29 = vadd.f32 %v3792_v40, %v2231_v23  ;;  %v2232_v31 = vmul.f32 %v3788_v7, %v2133_v25  ;;  %v2094_v32 = vpop.f32.mrf.mxu0 }
 0x17e   : > { %v2135_v34 = vpop.f32.mrf.mxu1  ;;  %v2669_v35 = vrot.slane %v2974_v26, %v3806_v33  ;;  %v2335_v37 = vmul.f32 0.2, %v2285_v28  ;;  %v2286_v41 = vadd.f32 %v3792_v40, %v2230_v30 }
 0x17f   : > { %v2676_v36 = vrot.slane %v2975_v27, %v3806_v33  ;;  %v2337_v39 = vmul.f32 0.2, %v2287_v29  ;;  %v2288_v42 = vadd.f32 %v3792_v40, %v2232_v31  ;;  %v2095_v43 = vpop.f32.mrf.mxu0 }
 0x180   : > { %v2136_v44 = vpop.f32.mrf.mxu1  ;;  %v2336_v46 = vmul.f32 0.2, %v2286_v41  ;;  %v2385_v50 = vmax.f32 %v2285_v28, %v2335_v37 }
 0x181   : > { %v2677_v45 = vcombine.low %v2669_v35, %v2676_v36  ;;  %v2338_v47 = vmul.f32 0.2, %v2288_v42  ;;  %v2172_v48 = vpop.f32.mrf.mxu0  ;;  %v2387_v51 = vmax.f32 %v2287_v29, %v2337_v39 }
 0x182   : > { %v2233_v49 = vmul.f32 %v3788_v7, %v2172_v48  ;;  %v2386_v52 = vmax.f32 %v2286_v41, %v2336_v46 }
 0x183   : > { %2726 = vst [vmem:[%s3819_s9 + $0x50] sm:$0xff] %v2677_v45  ;;  %v2388_v53 = vmax.f32 %v2288_v42, %v2338_v47  ;;  %v2174_v54 = vpop.f32.mrf.mxu0 }
 0x184   : > { %v2289_v55 = vadd.f32 %v3792_v40, %v2233_v49  ;;  %v2234_v56 = vmul.f32 %v3788_v7, %v2174_v54  ;;  %v2976_v57 = vpack.c.bf16 %v2386_v52, %v2385_v50 }
 0x185   : > { %v2977_v59 = vpack.c.bf16 %v2388_v53, %v2387_v51  ;;  %v2176_v60 = vpop.f32.mrf.mxu0 }
 0x186   : > { %v2339_v61 = vmul.f32 0.2, %v2289_v55  ;;  %v2290_v62 = vadd.f32 %v3792_v40, %v2234_v56  ;;  %v2686_v63 = vrot.slane %v2976_v57, %v3806_v33 }
 0x187   : > { %v2693_v0 = vrot.slane %v2977_v59, %v3806_v33  ;;  %v2177_v1 = vpop.f32.mrf.mxu0 }
 0x188   : > { %v2340_v2 = vmul.f32 0.2, %v2290_v62  ;;  %v2389_v4 = vmax.f32 %v2289_v55, %v2339_v61 }
 0x189   : > { %v2694_v3 = vcombine.low %v2686_v63, %v2693_v0 }
 0x18a   : > { %v2390_v5 = vmax.f32 %v2290_v62, %v2340_v2 }
 0x18b   : > { %2727 = vst [vmem:[%s3819_s9 + $0x58] sm:$0xff] %v2694_v3 }
 0x18c   : > { %v2978_v6 = vpack.c.bf16 %v2390_v5, %v2389_v4 }
 0x18e   : > { %2979 = vst.sshfl [vmem:[%s3819_s9 + $0x60] sm:$0x33 pattern:$0x76325410] %v2978_v6 }
 0x18f PF: > { %s14_s21 = sadd.s32 1, %s3250_s21   ;;  %s3968_s15 = smov %s3230_s16 }
 0x190   : > { %p11_p12 = scmp.ge.s32.totalorder %s14_s21, 10   ;;  %s3969_s16 = smov %s3331_s28 }
 0x191   : > { %s3970_s17 = smov %s3242_s19  ;;  %s3971_s18 = smov %s3246_s20 }
 0x192   : > { %s3972_s19 = smov %s3975_s22  ;;  %s3973_s20 = smov %s3979_s23 }
 0x193   :  { %13 = sbr.rel (!%p11_p12) target bundleno = 4 (0x4), region = 94 }

// kernel: forward.12
= control target key start
LH: loop header
LB: loop body
LE: loop exit
PB: predicated region body
PF: predicated region fallthrough
CT: control target
= control target key end

     0   :  { %s3746_s15 = smov 0   ;;  %s3748_s16 = smov 0   ;;  %s4222_s0 = inlined_call_operand.vmem [shape: bf16[2,64,6400], index: 0, kind: input, shape index: {}]   ;;  %s4223_s1 = inlined_call_operand.vmem [shape: bf16[4,64], index: 1, kind: input, shape index: {}]   ;;  %s4224_s2 = inlined_call_operand.vmem [shape: f32[4,1], index: 2, kind: input, shape index: {}]   ;;  %s4225_s3 = inlined_call_operand.vmem [shape: f32[4,1], index: 3, kind: input, shape index: {}]   ;;  %s4226_s4 = inlined_call_operand.vmem [shape: bf16[2,4,6400], index: 4, kind: output, shape index: {}]  }
   0x1   :  { %s3750_s17 = smov 0  }
   0x2 LB: > { %s26_s18 = sadd.s32 1, %s3713_s16  ;;  %p3109_p0 = scmp.ge.s32.totalorder %s3717_s17, 1  ;;  %s3717_s17 = sphi %s3750_s17, %s14_s17   ;;  %s3713_s16 = sphi %s3748_s16, %s4228_s16   ;;  %s3709_s15 = sphi %s3746_s15, %s4227_s15  }
   0x3   : > { %p28_p1 = scmp.ge.s32.totalorder %s26_s18, 2  ;;  %p183_p2 = scmp.lt.s32.totalorder %s3717_s17, 3 }
   0x5   : > { %s4230_s18 = smov (%p28_p1, %s26_s18), 0  ;;  %p184_p3 = pnand %p3109_p0, %p183_p2 }
   0x6   : > { %p218_p4 = scmp.lt.s32.totalorder (!%p184_p3), %s3709_s15, 1 }
   0x7   : > { %187 = sbr.rel (%p184_p3) target bundleno = 431 (0x1af), region = 36 }
   0xc   : > { %v3719_v0 = vmov 0   ;;  %v2468_v1 = vld [vmem:[%s4224_s2] sm:$0xf]  ;;  %s4232_s15 = smov (!%p218_p4, %s3709_s15), 1  ;;  %vm1439_vm0 = vcmask 523264  }
   0xd   : > { %1475 = vmatprep.mubr.bf16.mxu0 %v3719_v0  ;;  %1516 = vmatprep.mubr.bf16.mxu1 %v3719_v0  ;;  %s3365_s21 = smul.u32 1600, %s4232_s15  ;;  %v2524_v2 = vld [vmem:[%s4225_s3] sm:$0xf] }
   0xe   : > { %3393 = vset.pattern.permute.xlu0 %v3719_v0  ;;  %v3802_v21 = vld [vmem:[%s4223_s1] sm:$0x3]  ;;  %s3366_s5 = smul.u32 100, %s4232_s15 }
   0xf   : > { %2471 = vperm.xlu0 %3393, %v2468_v1   ;;  %s3779_s26 = scalar_lea.vmem %s4222_s0, %s3365_s21 }
  0x10   : > { %v3394_v3 = vld [vmem:[%s3779_s26 + $0x4b4] ss:$200 sps:$4 sm:$0xff]   ;;  %v3398_v5 = vld [vmem:[%s3779_s26 + $0x4b0] ss:$200 sps:$4 sm:$0xff]   ;;  %v3400_v7 = vld [vmem:[%s3779_s26 + $0x324] ss:$200 sps:$4 sm:$0xff]   ;;  %s4084_s8 = scalar_lea.vmem %s4226_s4, %s3366_s5 }
  0x11   : > { %v3396_v4 = vld [vmem:[%s3779_s26 + $0x4bc] ss:$200 sps:$4 sm:$0xff]   ;;  %1451 = vmatprep.subr.bf16.mxu0 %v3394_v3  ;;  %v3399_v6 = vld [vmem:[%s3779_s26 + $0x4b8] ss:$200 sps:$4 sm:$0xff]   ;;  %v3402_v8 = vld [vmem:[%s3779_s26 + $0x32c] ss:$200 sps:$4 sm:$0xff]  }
  0x12   : > { %1492 = vmatprep.subr.bf16.mxu1 %v3396_v4  ;;  %1452 = vmatpush1.bf16.msra.mxu0 %v3398_v5  ;;  %v3404_v9 = vld [vmem:[%s3779_s26 + $0x320] ss:$200 sps:$4 sm:$0xff]   ;;  %v3406_v11 = vld [vmem:[%s3779_s26 + $0x194] ss:$200 sps:$4 sm:$0xff]   ;;  %v3410_v13 = vld [vmem:[%s3779_s26 + $0x190] ss:$200 sps:$4 sm:$0xff]  }
  0x13   : > { %2527 = vperm.xlu0 %3393, %v2524_v2   ;;  %1493 = vmatpush1.bf16.msra.mxu1 %v3399_v6  ;;  %v3405_v10 = vld [vmem:[%s3779_s26 + $0x328] ss:$200 sps:$4 sm:$0xff]   ;;  %v3408_v12 = vld [vmem:[%s3779_s26 + $0x19c] ss:$200 sps:$4 sm:$0xff]   ;;  %v3411_v14 = vld [vmem:[%s3779_s26 + $0x198] ss:$200 sps:$4 sm:$0xff]  }
  0x14   : > { %1453 = vmatprep.subr.bf16.mxu0 %v3400_v7  ;;  %1494 = vmatprep.subr.bf16.mxu1 %v3402_v8  ;;  %v3412_v15 = vld [vmem:[%s3779_s26 + $0x4] ss:$200 sps:$4 sm:$0xff]   ;;  %v3416_v17 = vld [vmem:[%s3779_s26] ss:$200 sps:$4 sm:$0xff]   ;;  %v3426_v24 = vld [vmem:[%s3779_s26 + $0x334] ss:$200 sps:$4 sm:$0xff]  }
  0x15   : > { %v3414_v16 = vld [vmem:[%s3779_s26 + $0xc] ss:$200 sps:$4 sm:$0xff]   ;;  %v3417_v18 = vld [vmem:[%s3779_s26 + $0x8] ss:$200 sps:$4 sm:$0xff]   ;;  %v3429_v25 = vld [vmem:[%s3779_s26 + $0x33c] ss:$200 sps:$4 sm:$0xff]  }
  0x16   : > { %1454 = vmatpush1.bf16.msra.mxu0 %v3404_v9  ;;  %v3420_v19 = vld [vmem:[%s3779_s26 + $0x4c4] ss:$200 sps:$4 sm:$0xff]   ;;  %v3418_v22 = vld [vmem:[%s3779_s26 + $0x4c0] ss:$200 sps:$4 sm:$0xff]   ;;  %v3424_v26 = vld [vmem:[%s3779_s26 + $0x330] ss:$200 sps:$4 sm:$0xff]  }
  0x17   : > { %1495 = vmatpush1.bf16.msra.mxu1 %v3405_v10  ;;  %1455 = vmatprep.subr.bf16.mxu0 %v3406_v11  ;;  %v3423_v20 = vld [vmem:[%s3779_s26 + $0x4cc] ss:$200 sps:$4 sm:$0xff]   ;;  %v3421_v23 = vld [vmem:[%s3779_s26 + $0x4c8] ss:$200 sps:$4 sm:$0xff]   ;;  %v3427_v27 = vld [vmem:[%s3779_s26 + $0x338] ss:$200 sps:$4 sm:$0xff]  }
  0x18   : > { %1496 = vmatprep.subr.bf16.mxu1 %v3408_v12  ;;  %v3432_v28 = vld [vmem:[%s3779_s26 + $0x1a4] ss:$200 sps:$4 sm:$0xff]   ;;  %v3430_v30 = vld [vmem:[%s3779_s26 + $0x1a0] ss:$200 sps:$4 sm:$0xff]   ;;  %v3438_v32 = vld [vmem:[%s3779_s26 + $0x14] ss:$200 sps:$4 sm:$0xff]  }
  0x19   : > { %v3435_v29 = vld [vmem:[%s3779_s26 + $0x1ac] ss:$200 sps:$4 sm:$0xff]   ;;  %v3433_v31 = vld [vmem:[%s3779_s26 + $0x1a8] ss:$200 sps:$4 sm:$0xff]   ;;  %v3441_v33 = vld [vmem:[%s3779_s26 + $0x1c] ss:$200 sps:$4 sm:$0xff]  }
  0x1a   : > { %1456 = vmatpush1.bf16.msra.mxu0 %v3410_v13  ;;  %v3436_v34 = vld [vmem:[%s3779_s26 + $0x10] ss:$200 sps:$4 sm:$0xff]   ;;  %v3444_v36 = vld [vmem:[%s3779_s26 + $0x4d4] ss:$200 sps:$4 sm:$0xff]   ;;  %v3450_v40 = vld [vmem:[%s3779_s26 + $0x344] ss:$200 sps:$4 sm:$0xff]  }
  0x1b   : > { %1497 = vmatpush1.bf16.msra.mxu1 %v3411_v14  ;;  %1457 = vmatprep.subr.bf16.mxu0 %v3412_v15  ;;  %v3439_v35 = vld [vmem:[%s3779_s26 + $0x18] ss:$200 sps:$4 sm:$0xff]   ;;  %v3447_v37 = vld [vmem:[%s3779_s26 + $0x4dc] ss:$200 sps:$4 sm:$0xff]   ;;  %v3453_v41 = vld [vmem:[%s3779_s26 + $0x34c] ss:$200 sps:$4 sm:$0xff]  }
  0x1c   : > { %1498 = vmatprep.subr.bf16.mxu1 %v3414_v16  ;;  %v3442_v38 = vld [vmem:[%s3779_s26 + $0x4d0] ss:$200 sps:$4 sm:$0xff]   ;;  %v3448_v42 = vld [vmem:[%s3779_s26 + $0x340] ss:$200 sps:$4 sm:$0xff]   ;;  %v3456_v44 = vld [vmem:[%s3779_s26 + $0x1b4] ss:$200 sps:$4 sm:$0xff]  }
  0x1d   : > { %v3445_v39 = vld [vmem:[%s3779_s26 + $0x4d8] ss:$200 sps:$4 sm:$0xff]   ;;  %v3451_v43 = vld [vmem:[%s3779_s26 + $0x348] ss:$200 sps:$4 sm:$0xff]   ;;  %v3459_v45 = vld [vmem:[%s3779_s26 + $0x1bc] ss:$200 sps:$4 sm:$0xff]  }
  0x1e   : > { %1458 = vmatpush1.bf16.msra.mxu0 %v3416_v17  ;;  %v3454_v46 = vld [vmem:[%s3779_s26 + $0x1b0] ss:$200 sps:$4 sm:$0xff]   ;;  %v3462_v48 = vld [vmem:[%s3779_s26 + $0x24] ss:$200 sps:$4 sm:$0xff]   ;;  %v3460_v50 = vld [vmem:[%s3779_s26 + $0x20] ss:$200 sps:$4 sm:$0xff]  }
  0x1f   : > { %1499 = vmatpush1.bf16.msra.mxu1 %v3417_v18  ;;  %1533 = vmatprep.subr.bf16.mxu0 %v3420_v19  ;;  %v3457_v47 = vld [vmem:[%s3779_s26 + $0x1b8] ss:$200 sps:$4 sm:$0xff]   ;;  %v3465_v49 = vld [vmem:[%s3779_s26 + $0x2c] ss:$200 sps:$4 sm:$0xff]   ;;  %v3463_v51 = vld [vmem:[%s3779_s26 + $0x28] ss:$200 sps:$4 sm:$0xff]  }
  0x20   : > { %1574 = vmatprep.subr.bf16.mxu1 %v3423_v20  ;;  %v3468_v52 = vld [vmem:[%s3779_s26 + $0x4e4] ss:$200 sps:$4 sm:$0xff]   ;;  %v3466_v54 = vld [vmem:[%s3779_s26 + $0x4e0] ss:$200 sps:$4 sm:$0xff]   ;;  %v3474_v56 = vld [vmem:[%s3779_s26 + $0x354] ss:$200 sps:$4 sm:$0xff]  }
  0x21   : > { %3312 = vmatmul.mubr.msk.bf16.vlgmr.msra.gmra.mxu0 %vm1439_vm0, %v3802_v21  ;;  %v3471_v53 = vld [vmem:[%s3779_s26 + $0x4ec] ss:$200 sps:$4 sm:$0xff]   ;;  %v3469_v55 = vld [vmem:[%s3779_s26 + $0x4e8] ss:$200 sps:$4 sm:$0xff]   ;;  %v3477_v57 = vld [vmem:[%s3779_s26 + $0x35c] ss:$200 sps:$4 sm:$0xff]  }
  0x22   : > { %3313 = vmatmul.mubr.msk.bf16.vlgmr.msra.gmra.mxu1 %vm1439_vm0, %v3802_v21  ;;  %1534 = vmatpush1.bf16.msra.mxu0 %v3418_v22  ;;  %v3472_v58 = vld [vmem:[%s3779_s26 + $0x350] ss:$200 sps:$4 sm:$0xff]   ;;  %v3480_v60 = vld [vmem:[%s3779_s26 + $0x1c4] ss:$200 sps:$4 sm:$0xff]   ;;  %v3478_v62 = vld [vmem:[%s3779_s26 + $0x1c0] ss:$200 sps:$4 sm:$0xff]  }
  0x23   : > { %1575 = vmatpush1.bf16.msra.mxu1 %v3421_v23  ;;  %1535 = vmatprep.subr.bf16.mxu0 %v3426_v24  ;;  %v3475_v59 = vld [vmem:[%s3779_s26 + $0x358] ss:$200 sps:$4 sm:$0xff]   ;;  %v3483_v61 = vld [vmem:[%s3779_s26 + $0x1cc] ss:$200 sps:$4 sm:$0xff]   ;;  %v3481_v63 = vld [vmem:[%s3779_s26 + $0x1c8] ss:$200 sps:$4 sm:$0xff]  }
  0x24   : > { %1576 = vmatprep.subr.bf16.mxu1 %v3429_v25  ;;  %1557 = vmatprep.mubr.bf16.mxu0 %v3719_v0  ;;  %v3486_v1 = vld [vmem:[%s3779_s26 + $0x34] ss:$200 sps:$4 sm:$0xff]   ;;  %v3484_v3 = vld [vmem:[%s3779_s26 + $0x30] ss:$200 sps:$4 sm:$0xff]   ;;  %v3498_v9 = vld [vmem:[%s3779_s26 + $0x364] ss:$200 sps:$4 sm:$0xff]  }
  0x25   : > { %1598 = vmatprep.mubr.bf16.mxu1 %v3719_v0  ;;  %v3489_v2 = vld [vmem:[%s3779_s26 + $0x3c] ss:$200 sps:$4 sm:$0xff]   ;;  %v3487_v4 = vld [vmem:[%s3779_s26 + $0x38] ss:$200 sps:$4 sm:$0xff]   ;;  %v3501_v10 = vld [vmem:[%s3779_s26 + $0x36c] ss:$200 sps:$4 sm:$0xff]  }
  0x26   : > { %1536 = vmatpush1.bf16.msra.mxu0 %v3424_v26  ;;  %v3492_v5 = vld [vmem:[%s3779_s26 + $0x4f4] ss:$200 sps:$4 sm:$0xff]   ;;  %v3490_v7 = vld [vmem:[%s3779_s26 + $0x4f0] ss:$200 sps:$4 sm:$0xff]   ;;  %v3496_v11 = vld [vmem:[%s3779_s26 + $0x360] ss:$200 sps:$4 sm:$0xff]  }
  0x27   : > { %1577 = vmatpush1.bf16.msra.mxu1 %v3427_v27  ;;  %1537 = vmatprep.subr.bf16.mxu0 %v3432_v28  ;;  %v3495_v6 = vld [vmem:[%s3779_s26 + $0x4fc] ss:$200 sps:$4 sm:$0xff]   ;;  %v3493_v8 = vld [vmem:[%s3779_s26 + $0x4f8] ss:$200 sps:$4 sm:$0xff]   ;;  %v3499_v12 = vld [vmem:[%s3779_s26 + $0x368] ss:$200 sps:$4 sm:$0xff]  }
  0x28   : > { %1578 = vmatprep.subr.bf16.mxu1 %v3435_v29  ;;  %v3504_v13 = vld [vmem:[%s3779_s26 + $0x1d4] ss:$200 sps:$4 sm:$0xff]   ;;  %v3502_v15 = vld [vmem:[%s3779_s26 + $0x1d0] ss:$200 sps:$4 sm:$0xff]   ;;  %v3510_v17 = vld [vmem:[%s3779_s26 + $0x44] ss:$200 sps:$4 sm:$0xff]  }
  0x29   : > { %v3507_v14 = vld [vmem:[%s3779_s26 + $0x1dc] ss:$200 sps:$4 sm:$0xff]   ;;  %v3505_v16 = vld [vmem:[%s3779_s26 + $0x1d8] ss:$200 sps:$4 sm:$0xff]   ;;  %v3513_v18 = vld [vmem:[%s3779_s26 + $0x4c] ss:$200 sps:$4 sm:$0xff]  }
  0x2a   : > { %1538 = vmatpush1.bf16.msra.mxu0 %v3430_v30  ;;  %v3508_v19 = vld [vmem:[%s3779_s26 + $0x40] ss:$200 sps:$4 sm:$0xff]   ;;  %v3516_v22 = vld [vmem:[%s3779_s26 + $0x504] ss:$200 sps:$4 sm:$0xff]   ;;  %v3522_v26 = vld [vmem:[%s3779_s26 + $0x374] ss:$200 sps:$4 sm:$0xff]  }
  0x2b   : > { %1579 = vmatpush1.bf16.msra.mxu1 %v3433_v31  ;;  %1539 = vmatprep.subr.bf16.mxu0 %v3438_v32  ;;  %v3511_v20 = vld [vmem:[%s3779_s26 + $0x48] ss:$200 sps:$4 sm:$0xff]   ;;  %v3519_v23 = vld [vmem:[%s3779_s26 + $0x50c] ss:$200 sps:$4 sm:$0xff]   ;;  %v3525_v27 = vld [vmem:[%s3779_s26 + $0x37c] ss:$200 sps:$4 sm:$0xff]  }
  0x2c   : > { %1580 = vmatprep.subr.bf16.mxu1 %v3441_v33  ;;  %v3514_v24 = vld [vmem:[%s3779_s26 + $0x500] ss:$200 sps:$4 sm:$0xff]   ;;  %v3520_v28 = vld [vmem:[%s3779_s26 + $0x370] ss:$200 sps:$4 sm:$0xff]   ;;  %v3528_v30 = vld [vmem:[%s3779_s26 + $0x1e4] ss:$200 sps:$4 sm:$0xff]  }
  0x2d   : > { %v3517_v25 = vld [vmem:[%s3779_s26 + $0x508] ss:$200 sps:$4 sm:$0xff]   ;;  %v3523_v29 = vld [vmem:[%s3779_s26 + $0x378] ss:$200 sps:$4 sm:$0xff]   ;;  %v3531_v31 = vld [vmem:[%s3779_s26 + $0x1ec] ss:$200 sps:$4 sm:$0xff]  }
  0x2e   : > { %1540 = vmatpush1.bf16.msra.mxu0 %v3436_v34  ;;  %v3526_v32 = vld [vmem:[%s3779_s26 + $0x1e0] ss:$200 sps:$4 sm:$0xff]   ;;  %v3534_v34 = vld [vmem:[%s3779_s26 + $0x54] ss:$200 sps:$4 sm:$0xff]  }
  0x2f   : > { %1581 = vmatpush1.bf16.msra.mxu1 %v3439_v35  ;;  %1615 = vmatprep.subr.bf16.mxu0 %v3444_v36  ;;  %v3529_v33 = vld [vmem:[%s3779_s26 + $0x1e8] ss:$200 sps:$4 sm:$0xff]   ;;  %v3537_v35 = vld [vmem:[%s3779_s26 + $0x5c] ss:$200 sps:$4 sm:$0xff]  }
  0x30   : > { %1656 = vmatprep.subr.bf16.mxu1 %v3447_v37  ;;  %v3532_v36 = vld [vmem:[%s3779_s26 + $0x50] ss:$200 sps:$4 sm:$0xff]  }
  0x31   : > { %3314 = vmatmul.mubr.msk.bf16.vlgmr.msra.gmra.mxu0 %vm1439_vm0, %v3802_v21  ;;  %v3535_v37 = vld [vmem:[%s3779_s26 + $0x58] ss:$200 sps:$4 sm:$0xff]  }
  0x32   : > { %3315 = vmatmul.mubr.msk.bf16.vlgmr.msra.gmra.mxu1 %vm1439_vm0, %v3802_v21  ;;  %1616 = vmatpush1.bf16.msra.mxu0 %v3442_v38  ;;  %v3540_v38 = vld [vmem:[%s3779_s26 + $0x514] ss:$200 sps:$4 sm:$0xff]  }
  0x33   : > { %1657 = vmatpush1.bf16.msra.mxu1 %v3445_v39  ;;  %1617 = vmatprep.subr.bf16.mxu0 %v3450_v40  ;;  %v3543_v39 = vld [vmem:[%s3779_s26 + $0x51c] ss:$200 sps:$4 sm:$0xff]   ;;  %v3538_v40 = vld [vmem:[%s3779_s26 + $0x510] ss:$200 sps:$4 sm:$0xff]  }
  0x34   : > { %1658 = vmatprep.subr.bf16.mxu1 %v3453_v41  ;;  %1639 = vmatprep.mubr.bf16.mxu0 %v3719_v0  ;;  %v3541_v41 = vld [vmem:[%s3779_s26 + $0x518] ss:$200 sps:$4 sm:$0xff]  }
  0x35   : > { %1680 = vmatprep.mubr.bf16.mxu1 %v3719_v0 }
  0x36   : > { %1618 = vmatpush1.bf16.msra.mxu0 %v3448_v42  ;;  %v3546_v42 = vld [vmem:[%s3779_s26 + $0x384] ss:$200 sps:$4 sm:$0xff]  }
  0x37   : > { %1659 = vmatpush1.bf16.msra.mxu1 %v3451_v43  ;;  %1619 = vmatprep.subr.bf16.mxu0 %v3456_v44  ;;  %v3549_v43 = vld [vmem:[%s3779_s26 + $0x38c] ss:$200 sps:$4 sm:$0xff]   ;;  %v3544_v44 = vld [vmem:[%s3779_s26 + $0x380] ss:$200 sps:$4 sm:$0xff]  }
  0x38   : > { %1660 = vmatprep.subr.bf16.mxu1 %v3459_v45  ;;  %v3547_v45 = vld [vmem:[%s3779_s26 + $0x388] ss:$200 sps:$4 sm:$0xff]  }
  0x3a   : > { %1620 = vmatpush1.bf16.msra.mxu0 %v3454_v46  ;;  %v3552_v46 = vld [vmem:[%s3779_s26 + $0x1f4] ss:$200 sps:$4 sm:$0xff]  }
  0x3b   : > { %1661 = vmatpush1.bf16.msra.mxu1 %v3457_v47  ;;  %1621 = vmatprep.subr.bf16.mxu0 %v3462_v48  ;;  %v3555_v47 = vld [vmem:[%s3779_s26 + $0x1fc] ss:$200 sps:$4 sm:$0xff]   ;;  %v3550_v48 = vld [vmem:[%s3779_s26 + $0x1f0] ss:$200 sps:$4 sm:$0xff]  }
  0x3c   : > { %1662 = vmatprep.subr.bf16.mxu1 %v3465_v49  ;;  %v3553_v49 = vld [vmem:[%s3779_s26 + $0x1f8] ss:$200 sps:$4 sm:$0xff]  }
  0x3e   : > { %1622 = vmatpush1.bf16.msra.mxu0 %v3460_v50  ;;  %v3558_v50 = vld [vmem:[%s3779_s26 + $0x64] ss:$200 sps:$4 sm:$0xff]  }
  0x3f   : > { %1663 = vmatpush1.bf16.msra.mxu1 %v3463_v51  ;;  %1697 = vmatprep.subr.bf16.mxu0 %v3468_v52  ;;  %v3561_v51 = vld [vmem:[%s3779_s26 + $0x6c] ss:$200 sps:$4 sm:$0xff]   ;;  %v3556_v52 = vld [vmem:[%s3779_s26 + $0x60] ss:$200 sps:$4 sm:$0xff]  }
  0x40   : > { %1738 = vmatprep.subr.bf16.mxu1 %v3471_v53  ;;  %v3559_v53 = vld [vmem:[%s3779_s26 + $0x68] ss:$200 sps:$4 sm:$0xff]  }
  0x41   : > { %3316 = vmatmul.mubr.msk.bf16.vlgmr.msra.gmra.mxu0 %vm1439_vm0, %v3802_v21 }
  0x42   : > { %3317 = vmatmul.mubr.msk.bf16.vlgmr.msra.gmra.mxu1 %vm1439_vm0, %v3802_v21  ;;  %1698 = vmatpush1.bf16.msra.mxu0 %v3466_v54  ;;  %v3564_v54 = vld [vmem:[%s3779_s26 + $0x524] ss:$200 sps:$4 sm:$0xff]  }
  0x43   : > { %1739 = vmatpush1.bf16.msra.mxu1 %v3469_v55  ;;  %1699 = vmatprep.subr.bf16.mxu0 %v3474_v56  ;;  %v3567_v55 = vld [vmem:[%s3779_s26 + $0x52c] ss:$200 sps:$4 sm:$0xff]   ;;  %v3562_v56 = vld [vmem:[%s3779_s26 + $0x520] ss:$200 sps:$4 sm:$0xff]  }
  0x44   : > { %1740 = vmatprep.subr.bf16.mxu1 %v3477_v57  ;;  %1721 = vmatprep.mubr.bf16.mxu0 %v3719_v0  ;;  %v3565_v57 = vld [vmem:[%s3779_s26 + $0x528] ss:$200 sps:$4 sm:$0xff]  }
  0x45   : > { %1762 = vmatprep.mubr.bf16.mxu1 %v3719_v0 }
  0x46   : > { %1700 = vmatpush1.bf16.msra.mxu0 %v3472_v58  ;;  %v3570_v58 = vld [vmem:[%s3779_s26 + $0x394] ss:$200 sps:$4 sm:$0xff]  }
  0x47   : > { %1741 = vmatpush1.bf16.msra.mxu1 %v3475_v59  ;;  %1701 = vmatprep.subr.bf16.mxu0 %v3480_v60  ;;  %v3573_v59 = vld [vmem:[%s3779_s26 + $0x39c] ss:$200 sps:$4 sm:$0xff]   ;;  %v3568_v60 = vld [vmem:[%s3779_s26 + $0x390] ss:$200 sps:$4 sm:$0xff]  }
  0x48   : > { %1742 = vmatprep.subr.bf16.mxu1 %v3483_v61  ;;  %v3571_v61 = vld [vmem:[%s3779_s26 + $0x398] ss:$200 sps:$4 sm:$0xff]  }
  0x4a   : > { %1702 = vmatpush1.bf16.msra.mxu0 %v3478_v62  ;;  %v3576_v62 = vld [vmem:[%s3779_s26 + $0x204] ss:$200 sps:$4 sm:$0xff]  }
  0x4b   : > { %1743 = vmatpush1.bf16.msra.mxu1 %v3481_v63  ;;  %1703 = vmatprep.subr.bf16.mxu0 %v3486_v1  ;;  %v3579_v63 = vld [vmem:[%s3779_s26 + $0x20c] ss:$200 sps:$4 sm:$0xff]   ;;  %v3574_v1 = vld [vmem:[%s3779_s26 + $0x200] ss:$200 sps:$4 sm:$0xff]  }
  0x4c   : > { %1744 = vmatprep.subr.bf16.mxu1 %v3489_v2  ;;  %v3577_v2 = vld [vmem:[%s3779_s26 + $0x208] ss:$200 sps:$4 sm:$0xff]  }
  0x4e   : > { %1704 = vmatpush1.bf16.msra.mxu0 %v3484_v3  ;;  %v3582_v3 = vld [vmem:[%s3779_s26 + $0x74] ss:$200 sps:$4 sm:$0xff]  }
  0x4f   : > { %1745 = vmatpush1.bf16.msra.mxu1 %v3487_v4  ;;  %1779 = vmatprep.subr.bf16.mxu0 %v3492_v5  ;;  %v3585_v4 = vld [vmem:[%s3779_s26 + $0x7c] ss:$200 sps:$4 sm:$0xff]   ;;  %v3580_v5 = vld [vmem:[%s3779_s26 + $0x70] ss:$200 sps:$4 sm:$0xff]  }
  0x50   : > { %1820 = vmatprep.subr.bf16.mxu1 %v3495_v6  ;;  %v3583_v6 = vld [vmem:[%s3779_s26 + $0x78] ss:$200 sps:$4 sm:$0xff]  }
  0x51   : > { %3318 = vmatmul.mubr.msk.bf16.vlgmr.msra.gmra.mxu0 %vm1439_vm0, %v3802_v21 }
  0x52   : > { %3319 = vmatmul.mubr.msk.bf16.vlgmr.msra.gmra.mxu1 %vm1439_vm0, %v3802_v21  ;;  %1780 = vmatpush1.bf16.msra.mxu0 %v3490_v7  ;;  %v3588_v7 = vld [vmem:[%s3779_s26 + $0x534] ss:$200 sps:$4 sm:$0xff]  }
  0x53   : > { %1821 = vmatpush1.bf16.msra.mxu1 %v3493_v8  ;;  %1781 = vmatprep.subr.bf16.mxu0 %v3498_v9  ;;  %v3591_v8 = vld [vmem:[%s3779_s26 + $0x53c] ss:$200 sps:$4 sm:$0xff]   ;;  %v3586_v9 = vld [vmem:[%s3779_s26 + $0x530] ss:$200 sps:$4 sm:$0xff]  }
  0x54   : > { %1822 = vmatprep.subr.bf16.mxu1 %v3501_v10  ;;  %1803 = vmatprep.mubr.bf16.mxu0 %v3719_v0  ;;  %v3589_v10 = vld [vmem:[%s3779_s26 + $0x538] ss:$200 sps:$4 sm:$0xff]  }
  0x55   : > { %1844 = vmatprep.mubr.bf16.mxu1 %v3719_v0 }
  0x56   : > { %1782 = vmatpush1.bf16.msra.mxu0 %v3496_v11  ;;  %v3594_v11 = vld [vmem:[%s3779_s26 + $0x3a4] ss:$200 sps:$4 sm:$0xff]  }
  0x57   : > { %1823 = vmatpush1.bf16.msra.mxu1 %v3499_v12  ;;  %1783 = vmatprep.subr.bf16.mxu0 %v3504_v13  ;;  %v3597_v12 = vld [vmem:[%s3779_s26 + $0x3ac] ss:$200 sps:$4 sm:$0xff]   ;;  %v3592_v13 = vld [vmem:[%s3779_s26 + $0x3a0] ss:$200 sps:$4 sm:$0xff]  }
  0x58   : > { %1824 = vmatprep.subr.bf16.mxu1 %v3507_v14  ;;  %v3595_v14 = vld [vmem:[%s3779_s26 + $0x3a8] ss:$200 sps:$4 sm:$0xff]  }
  0x5a   : > { %1784 = vmatpush1.bf16.msra.mxu0 %v3502_v15  ;;  %v3600_v15 = vld [vmem:[%s3779_s26 + $0x214] ss:$200 sps:$4 sm:$0xff]  }
  0x5b   : > { %1825 = vmatpush1.bf16.msra.mxu1 %v3505_v16  ;;  %1785 = vmatprep.subr.bf16.mxu0 %v3510_v17  ;;  %v3603_v16 = vld [vmem:[%s3779_s26 + $0x21c] ss:$200 sps:$4 sm:$0xff]   ;;  %v3598_v17 = vld [vmem:[%s3779_s26 + $0x210] ss:$200 sps:$4 sm:$0xff]  }
  0x5c   : > { %1826 = vmatprep.subr.bf16.mxu1 %v3513_v18  ;;  %v3601_v18 = vld [vmem:[%s3779_s26 + $0x218] ss:$200 sps:$4 sm:$0xff]  }
  0x5e   : > { %1786 = vmatpush1.bf16.msra.mxu0 %v3508_v19  ;;  %v3606_v19 = vld [vmem:[%s3779_s26 + $0x84] ss:$200 sps:$4 sm:$0xff]  }
  0x5f   : > { %1827 = vmatpush1.bf16.msra.mxu1 %v3511_v20  ;;  %1861 = vmatprep.subr.bf16.mxu0 %v3516_v22  ;;  %v3609_v20 = vld [vmem:[%s3779_s26 + $0x8c] ss:$200 sps:$4 sm:$0xff]   ;;  %v3604_v22 = vld [vmem:[%s3779_s26 + $0x80] ss:$200 sps:$4 sm:$0xff]  }
  0x60   : > { %1902 = vmatprep.subr.bf16.mxu1 %v3519_v23  ;;  %v3607_v23 = vld [vmem:[%s3779_s26 + $0x88] ss:$200 sps:$4 sm:$0xff]  }
  0x61   : > { %3320 = vmatmul.mubr.msk.bf16.vlgmr.msra.gmra.mxu0 %vm1439_vm0, %v3802_v21 }
  0x62   : > { %3321 = vmatmul.mubr.msk.bf16.vlgmr.msra.gmra.mxu1 %vm1439_vm0, %v3802_v21  ;;  %1862 = vmatpush1.bf16.msra.mxu0 %v3514_v24  ;;  %v3612_v24 = vld [vmem:[%s3779_s26 + $0x544] ss:$200 sps:$4 sm:$0xff]  }
  0x63   : > { %1903 = vmatpush1.bf16.msra.mxu1 %v3517_v25  ;;  %1863 = vmatprep.subr.bf16.mxu0 %v3522_v26  ;;  %v3615_v25 = vld [vmem:[%s3779_s26 + $0x54c] ss:$200 sps:$4 sm:$0xff]   ;;  %v3610_v26 = vld [vmem:[%s3779_s26 + $0x540] ss:$200 sps:$4 sm:$0xff]  }
  0x64   : > { %1904 = vmatprep.subr.bf16.mxu1 %v3525_v27  ;;  %1885 = vmatprep.mubr.bf16.mxu0 %v3719_v0  ;;  %v3613_v27 = vld [vmem:[%s3779_s26 + $0x548] ss:$200 sps:$4 sm:$0xff]  }
  0x65   : > { %1926 = vmatprep.mubr.bf16.mxu1 %v3719_v0 }
  0x66   : > { %1864 = vmatpush1.bf16.msra.mxu0 %v3520_v28  ;;  %v3618_v28 = vld [vmem:[%s3779_s26 + $0x3b4] ss:$200 sps:$4 sm:$0xff]  }
  0x67   : > { %1905 = vmatpush1.bf16.msra.mxu1 %v3523_v29  ;;  %1865 = vmatprep.subr.bf16.mxu0 %v3528_v30  ;;  %v3621_v29 = vld [vmem:[%s3779_s26 + $0x3bc] ss:$200 sps:$4 sm:$0xff]   ;;  %v3616_v30 = vld [vmem:[%s3779_s26 + $0x3b0] ss:$200 sps:$4 sm:$0xff]  }
  0x68   : > { %1906 = vmatprep.subr.bf16.mxu1 %v3531_v31  ;;  %v3619_v31 = vld [vmem:[%s3779_s26 + $0x3b8] ss:$200 sps:$4 sm:$0xff]  }
  0x6a   : > { %1866 = vmatpush1.bf16.msra.mxu0 %v3526_v32  ;;  %v3624_v32 = vld [vmem:[%s3779_s26 + $0x224] ss:$200 sps:$4 sm:$0xff]  }
  0x6b   : > { %1907 = vmatpush1.bf16.msra.mxu1 %v3529_v33  ;;  %1867 = vmatprep.subr.bf16.mxu0 %v3534_v34  ;;  %v3627_v33 = vld [vmem:[%s3779_s26 + $0x22c] ss:$200 sps:$4 sm:$0xff]   ;;  %v3625_v34 = vld [vmem:[%s3779_s26 + $0x228] ss:$200 sps:$4 sm:$0xff]  }
  0x6c   : > { %1908 = vmatprep.subr.bf16.mxu1 %v3537_v35  ;;  %v3630_v35 = vld [vmem:[%s3779_s26 + $0x94] ss:$200 sps:$4 sm:$0xff]  }
  0x6e   : > { %1868 = vmatpush1.bf16.msra.mxu0 %v3532_v36  ;;  %v3633_v36 = vld [vmem:[%s3779_s26 + $0x9c] ss:$200 sps:$4 sm:$0xff]  }
  0x6f   : > { %1909 = vmatpush1.bf16.msra.mxu1 %v3535_v37  ;;  %1943 = vmatprep.subr.bf16.mxu0 %v3540_v38  ;;  %v3628_v37 = vld [vmem:[%s3779_s26 + $0x90] ss:$200 sps:$4 sm:$0xff]  }
  0x70   : > { %1984 = vmatprep.subr.bf16.mxu1 %v3543_v39  ;;  %v3631_v38 = vld [vmem:[%s3779_s26 + $0x98] ss:$200 sps:$4 sm:$0xff]   ;;  %v3636_v39 = vld [vmem:[%s3779_s26 + $0x554] ss:$200 sps:$4 sm:$0xff]  }
  0x71   : > { %3322 = vmatmul.mubr.msk.bf16.vlgmr.msra.gmra.mxu0 %vm1439_vm0, %v3802_v21 }
  0x72   : > { %3323 = vmatmul.mubr.msk.bf16.vlgmr.msra.gmra.mxu1 %vm1439_vm0, %v3802_v21  ;;  %1944 = vmatpush1.bf16.msra.mxu0 %v3538_v40  ;;  %v3639_v40 = vld [vmem:[%s3779_s26 + $0x55c] ss:$200 sps:$4 sm:$0xff]  }
  0x73   : > { %1985 = vmatpush1.bf16.msra.mxu1 %v3541_v41  ;;  %1945 = vmatprep.subr.bf16.mxu0 %v3546_v42  ;;  %v3634_v41 = vld [vmem:[%s3779_s26 + $0x550] ss:$200 sps:$4 sm:$0xff]  }
  0x74   : > { %1986 = vmatprep.subr.bf16.mxu1 %v3549_v43  ;;  %1967 = vmatprep.mubr.bf16.mxu0 %v3719_v0  ;;  %v3637_v42 = vld [vmem:[%s3779_s26 + $0x558] ss:$200 sps:$4 sm:$0xff]   ;;  %v3642_v43 = vld [vmem:[%s3779_s26 + $0x3c4] ss:$200 sps:$4 sm:$0xff]  }
  0x75   : > { %2008 = vmatprep.mubr.bf16.mxu1 %v3719_v0 }
  0x76   : > { %1946 = vmatpush1.bf16.msra.mxu0 %v3544_v44  ;;  %v3645_v44 = vld [vmem:[%s3779_s26 + $0x3cc] ss:$200 sps:$4 sm:$0xff]  }
  0x77   : > { %1987 = vmatpush1.bf16.msra.mxu1 %v3547_v45  ;;  %1947 = vmatprep.subr.bf16.mxu0 %v3552_v46  ;;  %v4009_v45 = vld [vmem:[%s4223_s1] sm:$0x3] }
  0x78   : > { %1988 = vmatprep.subr.bf16.mxu1 %v3555_v47  ;;  %v3640_v46 = vld [vmem:[%s3779_s26 + $0x3c0] ss:$200 sps:$4 sm:$0xff]  }
  0x79   : > { %v3643_v47 = vld [vmem:[%s3779_s26 + $0x3c8] ss:$200 sps:$4 sm:$0xff]  }
  0x7a   : > { %1948 = vmatpush1.bf16.msra.mxu0 %v3550_v48  ;;  %v3648_v48 = vld [vmem:[%s3779_s26 + $0x234] ss:$200 sps:$4 sm:$0xff]  }
  0x7b   : > { %1989 = vmatpush1.bf16.msra.mxu1 %v3553_v49  ;;  %1949 = vmatprep.subr.bf16.mxu0 %v3558_v50  ;;  %v3651_v49 = vld [vmem:[%s3779_s26 + $0x23c] ss:$200 sps:$4 sm:$0xff]   ;;  %v3646_v50 = vld [vmem:[%s3779_s26 + $0x230] ss:$200 sps:$4 sm:$0xff]  }
  0x7c   : > { %1990 = vmatprep.subr.bf16.mxu1 %v3561_v51  ;;  %v3649_v51 = vld [vmem:[%s3779_s26 + $0x238] ss:$200 sps:$4 sm:$0xff]  }
  0x7e   : > { %1950 = vmatpush1.bf16.msra.mxu0 %v3556_v52  ;;  %v3654_v52 = vld [vmem:[%s3779_s26 + $0xa4] ss:$200 sps:$4 sm:$0xff]  }
  0x7f   : > { %1991 = vmatpush1.bf16.msra.mxu1 %v3559_v53  ;;  %2025 = vmatprep.subr.bf16.mxu0 %v3564_v54  ;;  %v3657_v53 = vld [vmem:[%s3779_s26 + $0xac] ss:$200 sps:$4 sm:$0xff]   ;;  %v3652_v54 = vld [vmem:[%s3779_s26 + $0xa0] ss:$200 sps:$4 sm:$0xff]  }
  0x80   : > { %2066 = vmatprep.subr.bf16.mxu1 %v3567_v55  ;;  %v3655_v55 = vld [vmem:[%s3779_s26 + $0xa8] ss:$200 sps:$4 sm:$0xff]  }
  0x81   : > { %3324 = vmatmul.mubr.msk.bf16.vlgmr.msra.gmra.mxu0 %vm1439_vm0, %v3802_v21 }
  0x82   : > { %3325 = vmatmul.mubr.msk.bf16.vlgmr.msra.gmra.mxu1 %vm1439_vm0, %v3802_v21  ;;  %2026 = vmatpush1.bf16.msra.mxu0 %v3562_v56  ;;  %v3660_v56 = vld [vmem:[%s3779_s26 + $0x564] ss:$200 sps:$4 sm:$0xff]  }
  0x83   : > { %2067 = vmatpush1.bf16.msra.mxu1 %v3565_v57  ;;  %2027 = vmatprep.subr.bf16.mxu0 %v3570_v58  ;;  %v3663_v57 = vld [vmem:[%s3779_s26 + $0x56c] ss:$200 sps:$4 sm:$0xff]   ;;  %v3658_v58 = vld [vmem:[%s3779_s26 + $0x560] ss:$200 sps:$4 sm:$0xff]  }
  0x84   : > { %2068 = vmatprep.subr.bf16.mxu1 %v3573_v59  ;;  %2049 = vmatprep.mubr.bf16.mxu0 %v3719_v0  ;;  %v3661_v59 = vld [vmem:[%s3779_s26 + $0x568] ss:$200 sps:$4 sm:$0xff]  }
  0x85   : > { %2090 = vmatprep.mubr.bf16.mxu1 %v3719_v0 }
  0x86   : > { %2028 = vmatpush1.bf16.msra.mxu0 %v3568_v60  ;;  %v3666_v60 = vld [vmem:[%s3779_s26 + $0x3d4] ss:$200 sps:$4 sm:$0xff]  }
  0x87   : > { %2069 = vmatpush1.bf16.msra.mxu1 %v3571_v61  ;;  %2029 = vmatprep.subr.bf16.mxu0 %v3576_v62  ;;  %v3669_v61 = vld [vmem:[%s3779_s26 + $0x3dc] ss:$200 sps:$4 sm:$0xff]   ;;  %v3664_v62 = vld [vmem:[%s3779_s26 + $0x3d0] ss:$200 sps:$4 sm:$0xff]  }
  0x88   : > { %2070 = vmatprep.subr.bf16.mxu1 %v3579_v63  ;;  %v3667_v63 = vld [vmem:[%s3779_s26 + $0x3d8] ss:$200 sps:$4 sm:$0xff]  }
  0x8a   : > { %2030 = vmatpush1.bf16.msra.mxu0 %v3574_v1  ;;  %v3672_v1 = vld [vmem:[%s3779_s26 + $0x244] ss:$200 sps:$4 sm:$0xff]  }
  0x8b   : > { %2071 = vmatpush1.bf16.msra.mxu1 %v3577_v2  ;;  %2031 = vmatprep.subr.bf16.mxu0 %v3582_v3  ;;  %v3675_v2 = vld [vmem:[%s3779_s26 + $0x24c] ss:$200 sps:$4 sm:$0xff]   ;;  %v3670_v3 = vld [vmem:[%s3779_s26 + $0x240] ss:$200 sps:$4 sm:$0xff]  }
  0x8c   : > { %2072 = vmatprep.subr.bf16.mxu1 %v3585_v4  ;;  %v3673_v4 = vld [vmem:[%s3779_s26 + $0x248] ss:$200 sps:$4 sm:$0xff]  }
  0x8e   : > { %2032 = vmatpush1.bf16.msra.mxu0 %v3580_v5  ;;  %v3678_v5 = vld [vmem:[%s3779_s26 + $0xb4] ss:$200 sps:$4 sm:$0xff]  }
  0x8f   : > { %2073 = vmatpush1.bf16.msra.mxu1 %v3583_v6  ;;  %2107 = vmatprep.subr.bf16.mxu0 %v3588_v7  ;;  %v3681_v6 = vld [vmem:[%s3779_s26 + $0xbc] ss:$200 sps:$4 sm:$0xff]   ;;  %v3676_v7 = vld [vmem:[%s3779_s26 + $0xb0] ss:$200 sps:$4 sm:$0xff]  }
  0x90   : > { %2148 = vmatprep.subr.bf16.mxu1 %v3591_v8  ;;  %v3679_v8 = vld [vmem:[%s3779_s26 + $0xb8] ss:$200 sps:$4 sm:$0xff]  }
  0x91   : > { %3326 = vmatmul.mubr.msk.bf16.vlgmr.msra.gmra.mxu0 %vm1439_vm0, %v3802_v21 }
  0x92   : > { %3327 = vmatmul.mubr.msk.bf16.vlgmr.msra.gmra.mxu1 %vm1439_vm0, %v3802_v21  ;;  %2108 = vmatpush1.bf16.msra.mxu0 %v3586_v9  ;;  %v3684_v9 = vld [vmem:[%s3779_s26 + $0x574] ss:$200 sps:$4 sm:$0xff]  }
  0x93   : > { %2149 = vmatpush1.bf16.msra.mxu1 %v3589_v10  ;;  %2109 = vmatprep.subr.bf16.mxu0 %v3594_v11  ;;  %v3682_v10 = vld [vmem:[%s3779_s26 + $0x570] ss:$200 sps:$4 sm:$0xff]   ;;  %v3687_v11 = vld [vmem:[%s3779_s26 + $0x3e4] ss:$200 sps:$4 sm:$0xff]  }
  0x94   : > { %2150 = vmatprep.subr.bf16.mxu1 %v3597_v12  ;;  %2131 = vmatprep.mubr.bf16.mxu0 %v3719_v0  ;;  %v3685_v12 = vld [vmem:[%s3779_s26 + $0x3e0] ss:$200 sps:$4 sm:$0xff]  }
  0x95   : > { %2172 = vmatprep.mubr.bf16.mxu1 %v3719_v0 }
  0x96   : > { %2110 = vmatpush1.bf16.msra.mxu0 %v3592_v13  ;;  %v3690_v13 = vld [vmem:[%s3779_s26 + $0x254] ss:$200 sps:$4 sm:$0xff]  }
  0x97   : > { %2151 = vmatpush1.bf16.msra.mxu1 %v3595_v14  ;;  %2111 = vmatprep.subr.bf16.mxu0 %v3600_v15  ;;  %v3688_v14 = vld [vmem:[%s3779_s26 + $0x250] ss:$200 sps:$4 sm:$0xff]   ;;  %v3693_v15 = vld [vmem:[%s3779_s26 + $0xc4] ss:$200 sps:$4 sm:$0xff]  }
  0x98   : > { %2152 = vmatprep.subr.bf16.mxu1 %v3603_v16  ;;  %v3691_v16 = vld [vmem:[%s3779_s26 + $0xc0] ss:$200 sps:$4 sm:$0xff]  }
  0x9a   : > { %2112 = vmatpush1.bf16.msra.mxu0 %v3598_v17  ;;  %v4062_v17 = vpop.permute.xlu0 %2471 }
  0x9b   : > { %2153 = vmatpush1.bf16.msra.mxu1 %v3601_v18  ;;  %2113 = vmatprep.subr.bf16.mxu0 %v3606_v19 }
  0x9c   : > { %2154 = vmatprep.subr.bf16.mxu1 %v3609_v20 }
  0x9e   : > { %2114 = vmatpush1.bf16.msra.mxu0 %v3604_v22  ;;  %v4064_v18 = vpop.permute.xlu0 %2527 }
  0x9f   : > { %2155 = vmatpush1.bf16.msra.mxu1 %v3607_v23  ;;  %2189 = vmatprep.subr.bf16.mxu0 %v3612_v24  ;;  %v2785_v23 = vlaneseq }
  0xa0   : > { %2230 = vmatprep.subr.bf16.mxu1 %v3615_v25 }
  0xa1   : > { %3328 = vmatmul.mubr.msk.bf16.vlgmr.msra.gmra.mxu0 %vm1439_vm0, %v3802_v21 }
  0xa2   : > { %3329 = vmatmul.mubr.msk.bf16.vlgmr.msra.gmra.mxu1 %vm1439_vm0, %v3802_v21  ;;  %2190 = vmatpush1.bf16.msra.mxu0 %v3610_v26  ;;  %v3622_v21 = vld [vmem:[%s3779_s26 + $0x220] ss:$200 sps:$4 sm:$0xff]  }
  0xa3   : > { %2231 = vmatpush1.bf16.msra.mxu1 %v3613_v27  ;;  %2191 = vmatprep.subr.bf16.mxu0 %v3618_v28 }
  0xa4   : > { %2232 = vmatprep.subr.bf16.mxu1 %v3621_v29  ;;  %2213 = vmatprep.mubr.bf16.mxu0 %v3719_v0 }
  0xa5   : > { %2254 = vmatprep.mubr.bf16.mxu1 %v3719_v0 }
  0xa6   : > { %2192 = vmatpush1.bf16.msra.mxu0 %v3616_v30 }
  0xa7   : > { %2233 = vmatpush1.bf16.msra.mxu1 %v3619_v31  ;;  %2193 = vmatprep.subr.bf16.mxu0 %v3624_v32 }
  0xa8   : > { %2234 = vmatprep.subr.bf16.mxu1 %v3627_v33  ;;  %v2786_v33 = vshrl.u32 %v2785_v23, 7 }
  0xaa   : > { %2194 = vmatpush1.bf16.msra.mxu0 %v3622_v21 }
  0xab   : > { %2235 = vmatpush1.bf16.msra.mxu1 %v3625_v34  ;;  %2195 = vmatprep.subr.bf16.mxu0 %v3630_v35 }
  0xac   : > { %2236 = vmatprep.subr.bf16.mxu1 %v3633_v36 }
  0xae   : > { %2196 = vmatpush1.bf16.msra.mxu0 %v3628_v37 }
  0xaf   : > { %2237 = vmatpush1.bf16.msra.mxu1 %v3631_v38  ;;  %2271 = vmatprep.subr.bf16.mxu0 %v3636_v39 }
  0xb0   : > { %2312 = vmatprep.subr.bf16.mxu1 %v3639_v40 }
  0xb1   : > { %3330 = vmatmul.mubr.msk.bf16.vlgmr.msra.gmra.mxu0 %vm1439_vm0, %v4009_v45 }
  0xb2   : > { %3331 = vmatmul.mubr.msk.bf16.vlgmr.msra.gmra.mxu1 %vm1439_vm0, %v4009_v45  ;;  %2272 = vmatpush1.bf16.msra.mxu0 %v3634_v41 }
  0xb3   : > { %2313 = vmatpush1.bf16.msra.mxu1 %v3637_v42  ;;  %2273 = vmatprep.subr.bf16.mxu0 %v3642_v43 }
  0xb4   : > { %2314 = vmatprep.subr.bf16.mxu1 %v3645_v44  ;;  %2295 = vmatprep.mubr.bf16.mxu0 %v3719_v0 }
  0xb5   : > { %2336 = vmatprep.mubr.bf16.mxu1 %v3719_v0 }
  0xb6   : > { %2274 = vmatpush1.bf16.msra.mxu0 %v3640_v46 }
  0xb7   : > { %2315 = vmatpush1.bf16.msra.mxu1 %v3643_v47  ;;  %2275 = vmatprep.subr.bf16.mxu0 %v3648_v48 }
  0xb8   : > { %2316 = vmatprep.subr.bf16.mxu1 %v3651_v49 }
  0xba   : > { %2276 = vmatpush1.bf16.msra.mxu0 %v3646_v50 }
  0xbb   : > { %2317 = vmatpush1.bf16.msra.mxu1 %v3649_v51  ;;  %2277 = vmatprep.subr.bf16.mxu0 %v3654_v52 }
  0xbc   : > { %2318 = vmatprep.subr.bf16.mxu1 %v3657_v53 }
  0xbe   : > { %2278 = vmatpush1.bf16.msra.mxu0 %v3652_v54 }
  0xbf   : > { %2319 = vmatpush1.bf16.msra.mxu1 %v3655_v55  ;;  %2353 = vmatprep.subr.bf16.mxu0 %v3660_v56 }
  0xc0   : > { %2394 = vmatprep.subr.bf16.mxu1 %v3663_v57 }
  0xc1   : > { %3332 = vmatmul.mubr.msk.bf16.vlgmr.msra.gmra.mxu0 %vm1439_vm0, %v4009_v45 }
  0xc2   : > { %3333 = vmatmul.mubr.msk.bf16.vlgmr.msra.gmra.mxu1 %vm1439_vm0, %v4009_v45  ;;  %2354 = vmatpush1.bf16.msra.mxu0 %v3658_v58 }
  0xc3   : > { %2395 = vmatpush1.bf16.msra.mxu1 %v3661_v59  ;;  %2355 = vmatprep.subr.bf16.mxu0 %v3666_v60 }
  0xc4   : > { %2396 = vmatprep.subr.bf16.mxu1 %v3669_v61  ;;  %2377 = vmatprep.mubr.bf16.mxu0 %v3719_v0 }
  0xc5   : > { %2418 = vmatprep.mubr.bf16.mxu1 %v3719_v0 }
  0xc6   : > { %2356 = vmatpush1.bf16.msra.mxu0 %v3664_v62 }
  0xc7   : > { %2397 = vmatpush1.bf16.msra.mxu1 %v3667_v63  ;;  %2357 = vmatprep.subr.bf16.mxu0 %v3672_v1 }
  0xc8   : > { %2398 = vmatprep.subr.bf16.mxu1 %v3675_v2 }
  0xca   : > { %2358 = vmatpush1.bf16.msra.mxu0 %v3670_v3 }
  0xcb   : > { %2399 = vmatpush1.bf16.msra.mxu1 %v3673_v4  ;;  %2359 = vmatprep.subr.bf16.mxu0 %v3678_v5 }
  0xcc   : > { %2400 = vmatprep.subr.bf16.mxu1 %v3681_v6 }
  0xce   : > { %2360 = vmatpush1.bf16.msra.mxu0 %v3676_v7 }
  0xcf   : > { %2401 = vmatpush1.bf16.msra.mxu1 %v3679_v8  ;;  %2435 = vmatprep.subr.bf16.mxu0 %v3684_v9 }
  0xd1   : > { %3334 = vmatmul.mubr.msk.bf16.vlgmr.msra.gmra.mxu0 %vm1439_vm0, %v4009_v45 }
  0xd2   : > { %3335 = vmatmul.mubr.msk.bf16.vlgmr.msra.gmra.mxu1 %vm1439_vm0, %v4009_v45  ;;  %2436 = vmatpush1.bf16.msra.mxu0 %v3682_v10 }
  0xd3   : > { %2459 = vmatprep.mubr.bf16.mxu0 %v3719_v0  ;;  %2437 = vmatprep.subr.bf16.mxu0 %v3687_v11  ;;  %v3720_v0 = vmov 1983009808  }
  0xd4   : > { %v2783_v22 = vunpack.c.l.s4 %v3720_v0 }
  0xd6   : > { %2438 = vmatpush1.bf16.msra.mxu0 %v3685_v12  ;;  %v2784_v32 = vunpack.c.0.s8 %v2783_v22 }
  0xd7   : > { %2439 = vmatprep.subr.bf16.mxu0 %v3690_v13 }
  0xd8   : > { %v4076_v46 = vsub.s32 %v2784_v32, %v2786_v33 }
  0xda   : > { %2440 = vmatpush1.bf16.msra.mxu0 %v3688_v14 }
  0xdb   : > { %2441 = vmatprep.subr.bf16.mxu0 %v3693_v15 }
  0xde   : > { %2442 = vmatpush1.bf16.msra.mxu0 %v3691_v16 }
  0xe1   : > { %v1477_v19 = vpop.f32.mrf.mxu0  ;;  %3336 = vmatmul.mubr.msk.bf16.vlgmr.msra.gmra.mxu0 %vm1439_vm0, %v4009_v45 }
  0xe2   : > { %v1518_v20 = vpop.f32.mrf.mxu1  ;;  %v2474_v24 = vmul.f32 %v4062_v17, %v1477_v19 }
  0xe3   : > { %v2476_v25 = vmul.f32 %v4062_v17, %v1518_v20  ;;  %v1479_v26 = vpop.f32.mrf.mxu0 }
  0xe4   : > { %v1520_v27 = vpop.f32.mrf.mxu1  ;;  %v2475_v28 = vmul.f32 %v4062_v17, %v1479_v26  ;;  %v2530_v29 = vadd.f32 %v4064_v18, %v2474_v24 }
  0xe5   : > { %v2477_v30 = vmul.f32 %v4062_v17, %v1520_v27  ;;  %v2532_v31 = vadd.f32 %v4064_v18, %v2476_v25  ;;  %v1481_v21 = vpop.f32.mrf.mxu0 }
  0xe6   : > { %v1522_v34 = vpop.f32.mrf.mxu1  ;;  %v2531_v35 = vadd.f32 %v4064_v18, %v2475_v28  ;;  %v2580_v36 = vmul.f32 0.2, %v2530_v29 }
  0xe7   : > { %v2533_v37 = vadd.f32 %v4064_v18, %v2477_v30  ;;  %v2582_v38 = vmul.f32 0.2, %v2532_v31  ;;  %v1482_v39 = vpop.f32.mrf.mxu0 }
  0xe8   : > { %v1523_v40 = vpop.f32.mrf.mxu1  ;;  %v2581_v41 = vmul.f32 0.2, %v2531_v35  ;;  %v2630_v44 = vmax.f32 %v2530_v29, %v2580_v36 }
  0xe9   : > { %v2583_v42 = vmul.f32 0.2, %v2533_v37  ;;  %v2632_v43 = vmax.f32 %v2532_v31, %v2582_v38 }
  0xea   : > { %v2631_v45 = vmax.f32 %v2531_v35, %v2581_v41 }
  0xeb   : > { %v2633_v47 = vmax.f32 %v2533_v37, %v2583_v42 }
  0xec   : > { %v3337_v48 = vpack.c.bf16 %v2631_v45, %v2630_v44 }
  0xed   : > { %v3338_v49 = vpack.c.bf16 %v2633_v47, %v2632_v43 }
  0xee   : > { %v2788_v50 = vrot.slane %v3337_v48, %v4076_v46 }
  0xef   : > { %v2795_v51 = vrot.slane %v3338_v49, %v4076_v46 }
  0xf1   : > { %v2796_v52 = vcombine.low %v2788_v50, %v2795_v51  ;;  %v1559_v53 = vpop.f32.mrf.mxu0 }
  0xf2   : > { %v1600_v54 = vpop.f32.mrf.mxu1  ;;  %v2478_v55 = vmul.f32 %v4062_v17, %v1559_v53 }
  0xf3   : > { %3005 = vst [vmem:[%s4084_s8] sm:$0xff] %v2796_v52  ;;  %v2480_v56 = vmul.f32 %v4062_v17, %v1600_v54  ;;  %v1561_v57 = vpop.f32.mrf.mxu0 }
  0xf4   : > { %v1602_v58 = vpop.f32.mrf.mxu1  ;;  %v2534_v59 = vadd.f32 %v4064_v18, %v2478_v55  ;;  %v2479_v61 = vmul.f32 %v4062_v17, %v1561_v57 }
  0xf5   : > { %v2536_v60 = vadd.f32 %v4064_v18, %v2480_v56  ;;  %v2481_v62 = vmul.f32 %v4062_v17, %v1602_v58  ;;  %v1563_v63 = vpop.f32.mrf.mxu0 }
  0xf6   : > { %v1604_v1 = vpop.f32.mrf.mxu1  ;;  %v2584_v2 = vmul.f32 0.2, %v2534_v59  ;;  %v2535_v4 = vadd.f32 %v4064_v18, %v2479_v61 }
  0xf7   : > { %v2586_v3 = vmul.f32 0.2, %v2536_v60  ;;  %v2537_v5 = vadd.f32 %v4064_v18, %v2481_v62  ;;  %v1564_v6 = vpop.f32.mrf.mxu0 }
  0xf8   : > { %v1605_v7 = vpop.f32.mrf.mxu1  ;;  %v2585_v9 = vmul.f32 0.2, %v2535_v4  ;;  %v2634_v11 = vmax.f32 %v2534_v59, %v2584_v2 }
  0xf9   : > { %v2636_v8 = vmax.f32 %v2536_v60, %v2586_v3  ;;  %v2587_v10 = vmul.f32 0.2, %v2537_v5 }
  0xfa   : > { %v2635_v12 = vmax.f32 %v2535_v4, %v2585_v9 }
  0xfb   : > { %v2637_v13 = vmax.f32 %v2537_v5, %v2587_v10 }
  0xfc   : > { %v3339_v14 = vpack.c.bf16 %v2635_v12, %v2634_v11 }
  0xfd   : > { %v3340_v15 = vpack.c.bf16 %v2637_v13, %v2636_v8 }
  0xfe   : > { %v2805_v16 = vrot.slane %v3339_v14, %v4076_v46 }
  0xff   : > { %v2812_v19 = vrot.slane %v3340_v15, %v4076_v46 }
 0x101   : > { %v2813_v20 = vcombine.low %v2805_v16, %v2812_v19  ;;  %v1641_v0 = vpop.f32.mrf.mxu0 }
 0x102   : > { %v1682_v22 = vpop.f32.mrf.mxu1  ;;  %v2482_v23 = vmul.f32 %v4062_v17, %v1641_v0 }
 0x103   : > { %3006 = vst [vmem:[%s4084_s8 + $0x8] sm:$0xff] %v2813_v20  ;;  %v2484_v24 = vmul.f32 %v4062_v17, %v1682_v22  ;;  %v1643_v25 = vpop.f32.mrf.mxu0 }
 0x104   : > { %v1684_v26 = vpop.f32.mrf.mxu1  ;;  %v2538_v27 = vadd.f32 %v4064_v18, %v2482_v23  ;;  %v2483_v29 = vmul.f32 %v4062_v17, %v1643_v25 }
 0x105   : > { %v2540_v28 = vadd.f32 %v4064_v18, %v2484_v24  ;;  %v2485_v30 = vmul.f32 %v4062_v17, %v1684_v26  ;;  %v1645_v31 = vpop.f32.mrf.mxu0 }
 0x106   : > { %v1686_v32 = vpop.f32.mrf.mxu1  ;;  %v2588_v33 = vmul.f32 0.2, %v2538_v27  ;;  %v2539_v34 = vadd.f32 %v4064_v18, %v2483_v29 }
 0x107   : > { %v2590_v21 = vmul.f32 0.2, %v2540_v28  ;;  %v2541_v35 = vadd.f32 %v4064_v18, %v2485_v30  ;;  %v1646_v36 = vpop.f32.mrf.mxu0 }
 0x108   : > { %v1687_v37 = vpop.f32.mrf.mxu1  ;;  %v2589_v39 = vmul.f32 0.2, %v2539_v34  ;;  %v2638_v41 = vmax.f32 %v2538_v27, %v2588_v33 }
 0x109   : > { %v2640_v38 = vmax.f32 %v2540_v28, %v2590_v21  ;;  %v2591_v40 = vmul.f32 0.2, %v2541_v35 }
 0x10a   : > { %v2639_v42 = vmax.f32 %v2539_v34, %v2589_v39 }
 0x10b   : > { %v2641_v43 = vmax.f32 %v2541_v35, %v2591_v40 }
 0x10c   : > { %v3341_v44 = vpack.c.bf16 %v2639_v42, %v2638_v41 }
 0x10d   : > { %v3342_v45 = vpack.c.bf16 %v2641_v43, %v2640_v38 }
 0x10e   : > { %v2822_v47 = vrot.slane %v3341_v44, %v4076_v46 }
 0x10f   : > { %v2829_v48 = vrot.slane %v3342_v45, %v4076_v46 }
 0x111   : > { %v2830_v49 = vcombine.low %v2822_v47, %v2829_v48  ;;  %v1723_v50 = vpop.f32.mrf.mxu0 }
 0x112   : > { %v1764_v51 = vpop.f32.mrf.mxu1  ;;  %v2486_v52 = vmul.f32 %v4062_v17, %v1723_v50 }
 0x113   : > { %3007 = vst [vmem:[%s4084_s8 + $0x10] sm:$0xff] %v2830_v49  ;;  %v2488_v53 = vmul.f32 %v4062_v17, %v1764_v51  ;;  %v1725_v54 = vpop.f32.mrf.mxu0 }
 0x114   : > { %v1766_v55 = vpop.f32.mrf.mxu1  ;;  %v2542_v56 = vadd.f32 %v4064_v18, %v2486_v52  ;;  %v2487_v58 = vmul.f32 %v4062_v17, %v1725_v54 }
 0x115   : > { %v2544_v57 = vadd.f32 %v4064_v18, %v2488_v53  ;;  %v2489_v59 = vmul.f32 %v4062_v17, %v1766_v55  ;;  %v1727_v60 = vpop.f32.mrf.mxu0 }
 0x116   : > { %v1768_v61 = vpop.f32.mrf.mxu1  ;;  %v2592_v62 = vmul.f32 0.2, %v2542_v56  ;;  %v2543_v1 = vadd.f32 %v4064_v18, %v2487_v58 }
 0x117   : > { %v2594_v63 = vmul.f32 0.2, %v2544_v57  ;;  %v2545_v2 = vadd.f32 %v4064_v18, %v2489_v59  ;;  %v1728_v3 = vpop.f32.mrf.mxu0 }
 0x118   : > { %v1769_v4 = vpop.f32.mrf.mxu1  ;;  %v2593_v6 = vmul.f32 0.2, %v2543_v1  ;;  %v2642_v8 = vmax.f32 %v2542_v56, %v2592_v62 }
 0x119   : > { %v2644_v5 = vmax.f32 %v2544_v57, %v2594_v63  ;;  %v2595_v7 = vmul.f32 0.2, %v2545_v2 }
 0x11a   : > { %v2643_v9 = vmax.f32 %v2543_v1, %v2593_v6 }
 0x11b   : > { %v2645_v10 = vmax.f32 %v2545_v2, %v2595_v7 }
 0x11c   : > { %v3343_v11 = vpack.c.bf16 %v2643_v9, %v2642_v8 }
 0x11d   : > { %v3344_v12 = vpack.c.bf16 %v2645_v10, %v2644_v5 }
 0x11e   : > { %v2839_v13 = vrot.slane %v3343_v11, %v4076_v46 }
 0x11f   : > { %v2846_v14 = vrot.slane %v3344_v12, %v4076_v46 }
 0x121   : > { %v2847_v15 = vcombine.low %v2839_v13, %v2846_v14  ;;  %v1805_v16 = vpop.f32.mrf.mxu0 }
 0x122   : > { %v1846_v19 = vpop.f32.mrf.mxu1  ;;  %v2490_v20 = vmul.f32 %v4062_v17, %v1805_v16 }
 0x123   : > { %3008 = vst [vmem:[%s4084_s8 + $0x18] sm:$0xff] %v2847_v15  ;;  %v2492_v0 = vmul.f32 %v4062_v17, %v1846_v19  ;;  %v1807_v22 = vpop.f32.mrf.mxu0 }
 0x124   : > { %v1848_v23 = vpop.f32.mrf.mxu1  ;;  %v2546_v24 = vadd.f32 %v4064_v18, %v2490_v20  ;;  %v2491_v26 = vmul.f32 %v4062_v17, %v1807_v22 }
 0x125   : > { %v2548_v25 = vadd.f32 %v4064_v18, %v2492_v0  ;;  %v2493_v27 = vmul.f32 %v4062_v17, %v1848_v23  ;;  %v1809_v28 = vpop.f32.mrf.mxu0 }
 0x126   : > { %v1850_v29 = vpop.f32.mrf.mxu1  ;;  %v2596_v30 = vmul.f32 0.2, %v2546_v24  ;;  %v2547_v32 = vadd.f32 %v4064_v18, %v2491_v26 }
 0x127   : > { %v2598_v31 = vmul.f32 0.2, %v2548_v25  ;;  %v2549_v33 = vadd.f32 %v4064_v18, %v2493_v27  ;;  %v1810_v21 = vpop.f32.mrf.mxu0 }
 0x128   : > { %v1851_v34 = vpop.f32.mrf.mxu1  ;;  %v2597_v36 = vmul.f32 0.2, %v2547_v32  ;;  %v2646_v38 = vmax.f32 %v2546_v24, %v2596_v30 }
 0x129   : > { %v2648_v35 = vmax.f32 %v2548_v25, %v2598_v31  ;;  %v2599_v37 = vmul.f32 0.2, %v2549_v33 }
 0x12a   : > { %v2647_v39 = vmax.f32 %v2547_v32, %v2597_v36 }
 0x12b   : > { %v2649_v40 = vmax.f32 %v2549_v33, %v2599_v37 }
 0x12c   : > { %v3345_v41 = vpack.c.bf16 %v2647_v39, %v2646_v38 }
 0x12d   : > { %v3346_v42 = vpack.c.bf16 %v2649_v40, %v2648_v35 }
 0x12e   : > { %v2856_v43 = vrot.slane %v3345_v41, %v4076_v46 }
 0x12f   : > { %v2863_v44 = vrot.slane %v3346_v42, %v4076_v46 }
 0x131   : > { %v2864_v45 = vcombine.low %v2856_v43, %v2863_v44  ;;  %v1887_v47 = vpop.f32.mrf.mxu0 }
 0x132   : > { %v1928_v48 = vpop.f32.mrf.mxu1  ;;  %v2494_v49 = vmul.f32 %v4062_v17, %v1887_v47 }
 0x133   : > { %3009 = vst [vmem:[%s4084_s8 + $0x20] sm:$0xff] %v2864_v45  ;;  %v2496_v50 = vmul.f32 %v4062_v17, %v1928_v48  ;;  %v1889_v51 = vpop.f32.mrf.mxu0 }
 0x134   : > { %v1930_v52 = vpop.f32.mrf.mxu1  ;;  %v2550_v53 = vadd.f32 %v4064_v18, %v2494_v49  ;;  %v2495_v55 = vmul.f32 %v4062_v17, %v1889_v51 }
 0x135   : > { %v2552_v54 = vadd.f32 %v4064_v18, %v2496_v50  ;;  %v2497_v56 = vmul.f32 %v4062_v17, %v1930_v52  ;;  %v1891_v57 = vpop.f32.mrf.mxu0 }
 0x136   : > { %v1932_v58 = vpop.f32.mrf.mxu1  ;;  %v2600_v59 = vmul.f32 0.2, %v2550_v53  ;;  %v2551_v61 = vadd.f32 %v4064_v18, %v2495_v55 }
 0x137   : > { %v2602_v60 = vmul.f32 0.2, %v2552_v54  ;;  %v2553_v62 = vadd.f32 %v4064_v18, %v2497_v56  ;;  %v1892_v63 = vpop.f32.mrf.mxu0 }
 0x138   : > { %v1933_v1 = vpop.f32.mrf.mxu1  ;;  %v2601_v3 = vmul.f32 0.2, %v2551_v61  ;;  %v2650_v5 = vmax.f32 %v2550_v53, %v2600_v59 }
 0x139   : > { %v2652_v2 = vmax.f32 %v2552_v54, %v2602_v60  ;;  %v2603_v4 = vmul.f32 0.2, %v2553_v62 }
 0x13a   : > { %v2651_v6 = vmax.f32 %v2551_v61, %v2601_v3 }
 0x13b   : > { %v2653_v7 = vmax.f32 %v2553_v62, %v2603_v4 }
 0x13c   : > { %v3347_v8 = vpack.c.bf16 %v2651_v6, %v2650_v5 }
 0x13d   : > { %v3348_v9 = vpack.c.bf16 %v2653_v7, %v2652_v2 }
 0x13e   : > { %v2873_v10 = vrot.slane %v3347_v8, %v4076_v46 }
 0x13f   : > { %v2880_v11 = vrot.slane %v3348_v9, %v4076_v46 }
 0x141   : > { %v2881_v12 = vcombine.low %v2873_v10, %v2880_v11  ;;  %v1969_v13 = vpop.f32.mrf.mxu0 }
 0x142   : > { %v2010_v14 = vpop.f32.mrf.mxu1  ;;  %v2498_v15 = vmul.f32 %v4062_v17, %v1969_v13 }
 0x143   : > { %3010 = vst [vmem:[%s4084_s8 + $0x28] sm:$0xff] %v2881_v12  ;;  %v2500_v16 = vmul.f32 %v4062_v17, %v2010_v14  ;;  %v1971_v19 = vpop.f32.mrf.mxu0 }
 0x144   : > { %v2012_v20 = vpop.f32.mrf.mxu1  ;;  %v2554_v0 = vadd.f32 %v4064_v18, %v2498_v15  ;;  %v2499_v23 = vmul.f32 %v4062_v17, %v1971_v19 }
 0x145   : > { %v2556_v22 = vadd.f32 %v4064_v18, %v2500_v16  ;;  %v2501_v24 = vmul.f32 %v4062_v17, %v2012_v20  ;;  %v1973_v25 = vpop.f32.mrf.mxu0 }
 0x146   : > { %v2014_v26 = vpop.f32.mrf.mxu1  ;;  %v2604_v27 = vmul.f32 0.2, %v2554_v0  ;;  %v2555_v29 = vadd.f32 %v4064_v18, %v2499_v23 }
 0x147   : > { %v2606_v28 = vmul.f32 0.2, %v2556_v22  ;;  %v2557_v30 = vadd.f32 %v4064_v18, %v2501_v24  ;;  %v1974_v31 = vpop.f32.mrf.mxu0 }
 0x148   : > { %v2015_v32 = vpop.f32.mrf.mxu1  ;;  %v2605_v21 = vmul.f32 0.2, %v2555_v29  ;;  %v2654_v35 = vmax.f32 %v2554_v0, %v2604_v27 }
 0x149   : > { %v2656_v33 = vmax.f32 %v2556_v22, %v2606_v28  ;;  %v2607_v34 = vmul.f32 0.2, %v2557_v30 }
 0x14a   : > { %v2655_v36 = vmax.f32 %v2555_v29, %v2605_v21 }
 0x14b   : > { %v2657_v37 = vmax.f32 %v2557_v30, %v2607_v34 }
 0x14c   : > { %v3349_v38 = vpack.c.bf16 %v2655_v36, %v2654_v35 }
 0x14d   : > { %v3350_v39 = vpack.c.bf16 %v2657_v37, %v2656_v33 }
 0x14e   : > { %v2890_v40 = vrot.slane %v3349_v38, %v4076_v46 }
 0x14f   : > { %v2897_v41 = vrot.slane %v3350_v39, %v4076_v46 }
 0x151   : > { %v2898_v42 = vcombine.low %v2890_v40, %v2897_v41  ;;  %v2051_v43 = vpop.f32.mrf.mxu0 }
 0x152   : > { %v2092_v44 = vpop.f32.mrf.mxu1  ;;  %v2502_v45 = vmul.f32 %v4062_v17, %v2051_v43 }
 0x153   : > { %3011 = vst [vmem:[%s4084_s8 + $0x30] sm:$0xff] %v2898_v42  ;;  %v2504_v47 = vmul.f32 %v4062_v17, %v2092_v44  ;;  %v2053_v48 = vpop.f32.mrf.mxu0 }
 0x154   : > { %v2094_v49 = vpop.f32.mrf.mxu1  ;;  %v2558_v50 = vadd.f32 %v4064_v18, %v2502_v45  ;;  %v2503_v52 = vmul.f32 %v4062_v17, %v2053_v48 }
 0x155   : > { %v2560_v51 = vadd.f32 %v4064_v18, %v2504_v47  ;;  %v2505_v53 = vmul.f32 %v4062_v17, %v2094_v49  ;;  %v2055_v54 = vpop.f32.mrf.mxu0 }
 0x156   : > { %v2096_v55 = vpop.f32.mrf.mxu1  ;;  %v2608_v56 = vmul.f32 0.2, %v2558_v50  ;;  %v2559_v58 = vadd.f32 %v4064_v18, %v2503_v52 }
 0x157   : > { %v2610_v57 = vmul.f32 0.2, %v2560_v51  ;;  %v2561_v59 = vadd.f32 %v4064_v18, %v2505_v53  ;;  %v2056_v60 = vpop.f32.mrf.mxu0 }
 0x158   : > { %v2097_v61 = vpop.f32.mrf.mxu1  ;;  %v2609_v63 = vmul.f32 0.2, %v2559_v58  ;;  %v2658_v2 = vmax.f32 %v2558_v50, %v2608_v56 }
 0x159   : > { %v2660_v62 = vmax.f32 %v2560_v51, %v2610_v57  ;;  %v2611_v1 = vmul.f32 0.2, %v2561_v59 }
 0x15a   : > { %v2659_v3 = vmax.f32 %v2559_v58, %v2609_v63 }
 0x15b   : > { %v2661_v4 = vmax.f32 %v2561_v59, %v2611_v1 }
 0x15c   : > { %v3351_v5 = vpack.c.bf16 %v2659_v3, %v2658_v2 }
 0x15d   : > { %v3352_v6 = vpack.c.bf16 %v2661_v4, %v2660_v62 }
 0x15e   : > { %v2907_v7 = vrot.slane %v3351_v5, %v4076_v46 }
 0x15f   : > { %v2914_v8 = vrot.slane %v3352_v6, %v4076_v46 }
 0x161   : > { %v2915_v9 = vcombine.low %v2907_v7, %v2914_v8  ;;  %v2133_v10 = vpop.f32.mrf.mxu0 }
 0x162   : > { %v2174_v11 = vpop.f32.mrf.mxu1  ;;  %v2506_v12 = vmul.f32 %v4062_v17, %v2133_v10 }
 0x163   : > { %3012 = vst [vmem:[%s4084_s8 + $0x38] sm:$0xff] %v2915_v9  ;;  %v2508_v13 = vmul.f32 %v4062_v17, %v2174_v11  ;;  %v2135_v14 = vpop.f32.mrf.mxu0 }
 0x164   : > { %v2176_v15 = vpop.f32.mrf.mxu1  ;;  %v2562_v16 = vadd.f32 %v4064_v18, %v2506_v12  ;;  %v2507_v20 = vmul.f32 %v4062_v17, %v2135_v14 }
 0x165   : > { %v2564_v19 = vadd.f32 %v4064_v18, %v2508_v13  ;;  %v2509_v0 = vmul.f32 %v4062_v17, %v2176_v15  ;;  %v2137_v22 = vpop.f32.mrf.mxu0 }
 0x166   : > { %v2178_v23 = vpop.f32.mrf.mxu1  ;;  %v2612_v24 = vmul.f32 0.2, %v2562_v16  ;;  %v2563_v26 = vadd.f32 %v4064_v18, %v2507_v20 }
 0x167   : > { %v2614_v25 = vmul.f32 0.2, %v2564_v19  ;;  %v2565_v27 = vadd.f32 %v4064_v18, %v2509_v0  ;;  %v2138_v28 = vpop.f32.mrf.mxu0 }
 0x168   : > { %v2179_v29 = vpop.f32.mrf.mxu1  ;;  %v2613_v31 = vmul.f32 0.2, %v2563_v26  ;;  %v2662_v33 = vmax.f32 %v2562_v16, %v2612_v24 }
 0x169   : > { %v2664_v30 = vmax.f32 %v2564_v19, %v2614_v25  ;;  %v2615_v32 = vmul.f32 0.2, %v2565_v27 }
 0x16a   : > { %v2663_v21 = vmax.f32 %v2563_v26, %v2613_v31 }
 0x16b   : > { %v2665_v34 = vmax.f32 %v2565_v27, %v2615_v32 }
 0x16c   : > { %v3353_v35 = vpack.c.bf16 %v2663_v21, %v2662_v33 }
 0x16d   : > { %v3354_v36 = vpack.c.bf16 %v2665_v34, %v2664_v30 }
 0x16e   : > { %v2924_v37 = vrot.slane %v3353_v35, %v4076_v46 }
 0x16f   : > { %v2931_v38 = vrot.slane %v3354_v36, %v4076_v46 }
 0x171   : > { %v2932_v39 = vcombine.low %v2924_v37, %v2931_v38  ;;  %v2215_v40 = vpop.f32.mrf.mxu0 }
 0x172   : > { %v2256_v41 = vpop.f32.mrf.mxu1  ;;  %v2510_v42 = vmul.f32 %v4062_v17, %v2215_v40 }
 0x173   : > { %3013 = vst [vmem:[%s4084_s8 + $0x40] sm:$0xff] %v2932_v39  ;;  %v2512_v43 = vmul.f32 %v4062_v17, %v2256_v41  ;;  %v2217_v44 = vpop.f32.mrf.mxu0 }
 0x174   : > { %v2258_v45 = vpop.f32.mrf.mxu1  ;;  %v2566_v47 = vadd.f32 %v4064_v18, %v2510_v42  ;;  %v2511_v49 = vmul.f32 %v4062_v17, %v2217_v44 }
 0x175   : > { %v2568_v48 = vadd.f32 %v4064_v18, %v2512_v43  ;;  %v2513_v50 = vmul.f32 %v4062_v17, %v2258_v45  ;;  %v2219_v51 = vpop.f32.mrf.mxu0 }
 0x176   : > { %v2260_v52 = vpop.f32.mrf.mxu1  ;;  %v2616_v53 = vmul.f32 0.2, %v2566_v47  ;;  %v2567_v55 = vadd.f32 %v4064_v18, %v2511_v49 }
 0x177   : > { %v2618_v54 = vmul.f32 0.2, %v2568_v48  ;;  %v2569_v56 = vadd.f32 %v4064_v18, %v2513_v50  ;;  %v2220_v57 = vpop.f32.mrf.mxu0 }
 0x178   : > { %v2261_v58 = vpop.f32.mrf.mxu1  ;;  %v2617_v60 = vmul.f32 0.2, %v2567_v55  ;;  %v2666_v62 = vmax.f32 %v2566_v47, %v2616_v53 }
 0x179   : > { %v2668_v59 = vmax.f32 %v2568_v48, %v2618_v54  ;;  %v2619_v61 = vmul.f32 0.2, %v2569_v56 }
 0x17a   : > { %v2667_v63 = vmax.f32 %v2567_v55, %v2617_v60 }
 0x17b   : > { %v2669_v1 = vmax.f32 %v2569_v56, %v2619_v61 }
 0x17c   : > { %v3355_v2 = vpack.c.bf16 %v2667_v63, %v2666_v62 }
 0x17d   : > { %v3356_v3 = vpack.c.bf16 %v2669_v1, %v2668_v59 }
 0x17e   : > { %v2941_v4 = vrot.slane %v3355_v2, %v4076_v46 }
 0x17f   : > { %v2948_v5 = vrot.slane %v3356_v3, %v4076_v46 }
 0x181   : > { %v2949_v6 = vcombine.low %v2941_v4, %v2948_v5  ;;  %v2297_v7 = vpop.f32.mrf.mxu0 }
 0x182   : > { %v2338_v8 = vpop.f32.mrf.mxu1  ;;  %v2514_v9 = vmul.f32 %v4062_v17, %v2297_v7 }
 0x183   : > { %3014 = vst [vmem:[%s4084_s8 + $0x48] sm:$0xff] %v2949_v6  ;;  %v2516_v10 = vmul.f32 %v4062_v17, %v2338_v8  ;;  %v2299_v11 = vpop.f32.mrf.mxu0 }
 0x184   : > { %v2340_v12 = vpop.f32.mrf.mxu1  ;;  %v2570_v13 = vadd.f32 %v4064_v18, %v2514_v9  ;;  %v2515_v15 = vmul.f32 %v4062_v17, %v2299_v11 }
 0x185   : > { %v2572_v14 = vadd.f32 %v4064_v18, %v2516_v10  ;;  %v2517_v16 = vmul.f32 %v4062_v17, %v2340_v12  ;;  %v2301_v19 = vpop.f32.mrf.mxu0 }
 0x186   : > { %v2342_v20 = vpop.f32.mrf.mxu1  ;;  %v2620_v0 = vmul.f32 0.2, %v2570_v13  ;;  %v2571_v23 = vadd.f32 %v4064_v18, %v2515_v15 }
 0x187   : > { %v2622_v22 = vmul.f32 0.2, %v2572_v14  ;;  %v2573_v24 = vadd.f32 %v4064_v18, %v2517_v16  ;;  %v2302_v25 = vpop.f32.mrf.mxu0 }
 0x188   : > { %v2343_v26 = vpop.f32.mrf.mxu1  ;;  %v2621_v28 = vmul.f32 0.2, %v2571_v23  ;;  %v2670_v30 = vmax.f32 %v2570_v13, %v2620_v0 }
 0x189   : > { %v2672_v27 = vmax.f32 %v2572_v14, %v2622_v22  ;;  %v2623_v29 = vmul.f32 0.2, %v2573_v24 }
 0x18a   : > { %v2671_v31 = vmax.f32 %v2571_v23, %v2621_v28 }
 0x18b   : > { %v2673_v32 = vmax.f32 %v2573_v24, %v2623_v29 }
 0x18c   : > { %v3357_v33 = vpack.c.bf16 %v2671_v31, %v2670_v30 }
 0x18d   : > { %v3358_v21 = vpack.c.bf16 %v2673_v32, %v2672_v27 }
 0x18e   : > { %v2958_v34 = vrot.slane %v3357_v33, %v4076_v46 }
 0x18f   : > { %v2965_v35 = vrot.slane %v3358_v21, %v4076_v46 }
 0x191   : > { %v2966_v36 = vcombine.low %v2958_v34, %v2965_v35  ;;  %v2379_v37 = vpop.f32.mrf.mxu0 }
 0x192   : > { %v2420_v38 = vpop.f32.mrf.mxu1  ;;  %v2518_v39 = vmul.f32 %v4062_v17, %v2379_v37 }
 0x193   : > { %3015 = vst [vmem:[%s4084_s8 + $0x50] sm:$0xff] %v2966_v36  ;;  %v2520_v40 = vmul.f32 %v4062_v17, %v2420_v38  ;;  %v2381_v41 = vpop.f32.mrf.mxu0 }
 0x194   : > { %v2422_v42 = vpop.f32.mrf.mxu1  ;;  %v2574_v43 = vadd.f32 %v4064_v18, %v2518_v39  ;;  %v2519_v45 = vmul.f32 %v4062_v17, %v2381_v41 }
 0x195   : > { %v2576_v44 = vadd.f32 %v4064_v18, %v2520_v40  ;;  %v2521_v47 = vmul.f32 %v4062_v17, %v2422_v42  ;;  %v2383_v48 = vpop.f32.mrf.mxu0 }
 0x196   : > { %v2424_v49 = vpop.f32.mrf.mxu1  ;;  %v2624_v50 = vmul.f32 0.2, %v2574_v43  ;;  %v2575_v52 = vadd.f32 %v4064_v18, %v2519_v45 }
 0x197   : > { %v2626_v51 = vmul.f32 0.2, %v2576_v44  ;;  %v2577_v53 = vadd.f32 %v4064_v18, %v2521_v47  ;;  %v2384_v54 = vpop.f32.mrf.mxu0 }
 0x198   : > { %v2425_v55 = vpop.f32.mrf.mxu1  ;;  %v2625_v57 = vmul.f32 0.2, %v2575_v52  ;;  %v2674_v59 = vmax.f32 %v2574_v43, %v2624_v50 }
 0x199   : > { %v2676_v56 = vmax.f32 %v2576_v44, %v2626_v51  ;;  %v2627_v58 = vmul.f32 0.2, %v2577_v53 }
 0x19a   : > { %v2675_v60 = vmax.f32 %v2575_v52, %v2625_v57 }
 0x19b   : > { %v2677_v61 = vmax.f32 %v2577_v53, %v2627_v58 }
 0x19c   : > { %v3359_v62 = vpack.c.bf16 %v2675_v60, %v2674_v59 }
 0x19d   : > { %v3360_v63 = vpack.c.bf16 %v2677_v61, %v2676_v56 }
 0x19e   : > { %v2975_v1 = vrot.slane %v3359_v62, %v4076_v46 }
 0x19f   : > { %v2982_v2 = vrot.slane %v3360_v63, %v4076_v46 }
 0x1a1   : > { %v2983_v3 = vcombine.low %v2975_v1, %v2982_v2  ;;  %v2461_v4 = vpop.f32.mrf.mxu0 }
 0x1a2   : > { %v2522_v5 = vmul.f32 %v4062_v17, %v2461_v4 }
 0x1a3   : > { %3016 = vst [vmem:[%s4084_s8 + $0x58] sm:$0xff] %v2983_v3  ;;  %v2463_v6 = vpop.f32.mrf.mxu0 }
 0x1a4   : > { %v2578_v7 = vadd.f32 %v4064_v18, %v2522_v5  ;;  %v2523_v8 = vmul.f32 %v4062_v17, %v2463_v6 }
 0x1a5   : > { %v2465_v9 = vpop.f32.mrf.mxu0 }
 0x1a6   : > { %v2628_v10 = vmul.f32 0.2, %v2578_v7  ;;  %v2579_v11 = vadd.f32 %v4064_v18, %v2523_v8 }
 0x1a7   : > { %v2466_v12 = vpop.f32.mrf.mxu0 }
 0x1a8   : > { %v2629_v13 = vmul.f32 0.2, %v2579_v11  ;;  %v2678_v14 = vmax.f32 %v2578_v7, %v2628_v10 }
 0x1aa   : > { %v2679_v15 = vmax.f32 %v2579_v11, %v2629_v13 }
 0x1ac   : > { %v3361_v46 = vpack.c.bf16 %v2679_v15, %v2678_v14 }
 0x1ae   : > { %3362 = vst.sshfl [vmem:[%s4084_s8 + $0x60] sm:$0x33 pattern:$0x76325410] %v3361_v46 }
 0x1af PF: > { %s14_s17 = sadd.s32 1, %s3717_s17   ;;  %s4227_s15 = smov %s3713_s16 }
 0x1b0   : > { %p11_p5 = scmp.ge.s32.totalorder %s14_s17, 4   ;;  %s4228_s16 = smov %s4230_s18 }
 0x1b2   :  { %13 = sbr.rel (!%p11_p5) target bundleno = 2 (0x2), region = 66 }

// kernel: forward.13
= control target key start
LH: loop header
LB: loop body
LE: loop exit
PB: predicated region body
PF: predicated region fallthrough
CT: control target
= control target key end

     0   :  { %s3230_s15 = smov 0   ;;  %s3232_s16 = smov 0   ;;  %s3662_s0 = inlined_call_operand.vmem [shape: bf16[2,36,6400], index: 0, kind: input, shape index: {}]   ;;  %s3663_s1 = inlined_call_operand.vmem [shape: bf16[8,36], index: 1, kind: input, shape index: {}]   ;;  %s3664_s2 = inlined_call_operand.vmem [shape: f32[8,1], index: 2, kind: input, shape index: {}]   ;;  %s3665_s3 = inlined_call_operand.vmem [shape: f32[8,1], index: 3, kind: input, shape index: {}]   ;;  %s3666_s4 = inlined_call_operand.vmem [shape: bf16[2,8,6400], index: 4, kind: output, shape index: {}]  }
   0x1   :  { %s3234_s17 = smov 0  }
   0x2 LB: > { %s26_s18 = sadd.s32 1, %s3198_s16  ;;  %p2697_p0 = scmp.ge.s32.totalorder %s3202_s17, 1  ;;  %s3202_s17 = sphi %s3234_s17, %s14_s17   ;;  %s3198_s16 = sphi %s3232_s16, %s3668_s16   ;;  %s3194_s15 = sphi %s3230_s15, %s3667_s15  }
   0x3   : > { %p28_p1 = scmp.ge.s32.totalorder %s26_s18, 2  ;;  %p183_p2 = scmp.lt.s32.totalorder %s3202_s17, 3 }
   0x5   : > { %s3670_s18 = smov (%p28_p1, %s26_s18), 0  ;;  %p184_p3 = pnand %p2697_p0, %p183_p2 }
   0x6   : > { %p218_p4 = scmp.lt.s32.totalorder (!%p184_p3), %s3194_s15, 1 }
   0x7   : > { %187 = sbr.rel (%p184_p3) target bundleno = 381 (0x17d), region = 36 }
   0xc   : > { %v3204_v0 = vmov 0   ;;  %v2169_v1 = vld [vmem:[%s3664_s2] sm:$0xff]  ;;  %s3672_s15 = smov (!%p218_p4, %s3194_s15), 1  ;;  %vm993_vm0 = vcmask 1041408   ;;  %vm989_vm1 = vcmask 293888  }
   0xd   : > { %1176 = vmatprep.mubr.bf16.mxu0 %v3204_v0  ;;  %1217 = vmatprep.mubr.bf16.mxu1 %v3204_v0  ;;  %s2952_s21 = smul.u32 1000, %s3672_s15  ;;  %v2225_v2 = vld [vmem:[%s3665_s3] sm:$0xff] }
   0xe   : > { %2979 = vset.pattern.permute.xlu0 %v3204_v0  ;;  %v3284_v25 = vld [vmem:[%s3663_s1] sm:$0xf]  ;;  %s2953_s29 = smul.u32 200, %s3672_s15 }
   0xf   : > { %2172 = vperm.xlu0 %2979, %v2169_v1   ;;  %s3263_s26 = scalar_lea.vmem %s3662_s0, %s2952_s21 }
  0x10   : > { %v339_v3 = vld [vmem:[%s3263_s26 + $0x320] sm:$0x33]  ;;  %v2982_v6 = vld [vmem:[%s3263_s26 + $0x194] ss:$200 sps:$4 sm:$0xff]   ;;  %v340_v7 = vld [vmem:[%s3263_s26 + $0x328] sm:$0x33]  ;;  %s3534_s6 = scalar_lea.vmem %s3666_s4, %s2953_s29 }
  0x11   : > { %v2801_v4 = vcombine.high %v339_v3, %v339_v3  ;;  %v2800_v5 = vcombine.low %v339_v3, %v339_v3  ;;  %v2803_v8 = vcombine.high %v340_v7, %v340_v7  ;;  %v2802_v9 = vcombine.low %v340_v7, %v340_v7  ;;  %v2984_v11 = vld [vmem:[%s3263_s26 + $0x190] ss:$200 sps:$4 sm:$0xff]   ;;  %v2987_v13 = vld [vmem:[%s3263_s26 + $0x4] ss:$200 sps:$4 sm:$0xff]   ;;  %v2989_v19 = vld [vmem:[%s3263_s26] ss:$200 sps:$4 sm:$0xff]  }
  0x12   : > { %v2990_v14 = vld [vmem:[%s3263_s26 + $0x19c] ss:$200 sps:$4 sm:$0xff]   ;;  %v2992_v15 = vld [vmem:[%s3263_s26 + $0x198] ss:$200 sps:$4 sm:$0xff]   ;;  %v341_v16 = vld [vmem:[%s3263_s26 + $0x330] sm:$0x33] }
  0x13   : > { %2228 = vperm.xlu0 %2979, %v2225_v2   ;;  %2850 = vmatprep.subr.msk.bf16.mxu0 %vm993_vm0, %v2801_v4  ;;  %v995_v10 = vsel %vm993_vm0, %v2800_v5, 0  ;;  %v1001_v12 = vsel %vm993_vm0, %v2802_v9, 0  ;;  %v2995_v17 = vld [vmem:[%s3263_s26 + $0xc] ss:$200 sps:$4 sm:$0xff]   ;;  %v342_v18 = vld [vmem:[%s3263_s26 + $0x338] sm:$0x33]  ;;  %v2805_v20 = vcombine.high %v341_v16, %v341_v16  ;;  %v2804_v21 = vcombine.low %v341_v16, %v341_v16 }
  0x14   : > { %1155 = vmatpush1.bf16.msra.mxu0 %v995_v10  ;;  %2852 = vmatprep.subr.msk.bf16.mxu1 %vm993_vm0, %v2803_v8  ;;  %v2997_v22 = vld [vmem:[%s3263_s26 + $0x8] ss:$200 sps:$4 sm:$0xff]   ;;  %v2807_v23 = vcombine.high %v342_v18, %v342_v18  ;;  %v2806_v24 = vcombine.low %v342_v18, %v342_v18  ;;  %v3000_v27 = vld [vmem:[%s3263_s26 + $0x1a4] ss:$200 sps:$4 sm:$0xff]   ;;  %v3005_v31 = vld [vmem:[%s3263_s26 + $0x14] ss:$200 sps:$4 sm:$0xff]  }
  0x15   : > { %1156 = vmatprep.subr.bf16.mxu0 %v2982_v6  ;;  %1196 = vmatpush1.bf16.msra.mxu1 %v1001_v12  ;;  %v1007_v26 = vsel %vm993_vm0, %v2804_v21, 0  ;;  %v3008_v29 = vld [vmem:[%s3263_s26 + $0x1ac] ss:$200 sps:$4 sm:$0xff]   ;;  %v2998_v30 = vld [vmem:[%s3263_s26 + $0x1a0] ss:$200 sps:$4 sm:$0xff]  }
  0x16   : > { %1197 = vmatprep.subr.bf16.mxu1 %v2990_v14  ;;  %v1013_v28 = vsel %vm993_vm0, %v2806_v24, 0  ;;  %v3006_v32 = vld [vmem:[%s3263_s26 + $0x1a8] ss:$200 sps:$4 sm:$0xff]   ;;  %v343_v33 = vld [vmem:[%s3263_s26 + $0x340] sm:$0x33] }
  0x17   : > { %v3013_v34 = vld [vmem:[%s3263_s26 + $0x1c] ss:$200 sps:$4 sm:$0xff]   ;;  %v344_v35 = vld [vmem:[%s3263_s26 + $0x348] sm:$0x33]  ;;  %v3003_v36 = vld [vmem:[%s3263_s26 + $0x10] ss:$200 sps:$4 sm:$0xff]   ;;  %v2809_v37 = vcombine.high %v343_v33, %v343_v33  ;;  %v2808_v38 = vcombine.low %v343_v33, %v343_v33 }
  0x18   : > { %1157 = vmatpush1.bf16.msra.mxu0 %v2984_v11  ;;  %v3011_v39 = vld [vmem:[%s3263_s26 + $0x18] ss:$200 sps:$4 sm:$0xff]   ;;  %v2811_v40 = vcombine.high %v344_v35, %v344_v35  ;;  %v2810_v41 = vcombine.low %v344_v35, %v344_v35  ;;  %v3016_v43 = vld [vmem:[%s3263_s26 + $0x1b4] ss:$200 sps:$4 sm:$0xff]   ;;  %v3021_v47 = vld [vmem:[%s3263_s26 + $0x24] ss:$200 sps:$4 sm:$0xff]  }
  0x19   : > { %1158 = vmatprep.subr.bf16.mxu0 %v2987_v13  ;;  %1198 = vmatpush1.bf16.msra.mxu1 %v2992_v15  ;;  %v1019_v42 = vsel %vm993_vm0, %v2808_v38, 0  ;;  %v3024_v45 = vld [vmem:[%s3263_s26 + $0x1bc] ss:$200 sps:$4 sm:$0xff]   ;;  %v3014_v46 = vld [vmem:[%s3263_s26 + $0x1b0] ss:$200 sps:$4 sm:$0xff]  }
  0x1a   : > { %1199 = vmatprep.subr.bf16.mxu1 %v2995_v17  ;;  %v1025_v44 = vsel %vm993_vm0, %v2810_v41, 0  ;;  %v3022_v48 = vld [vmem:[%s3263_s26 + $0x1b8] ss:$200 sps:$4 sm:$0xff]   ;;  %v345_v49 = vld [vmem:[%s3263_s26 + $0x350] sm:$0x33] }
  0x1b   : > { %v3029_v50 = vld [vmem:[%s3263_s26 + $0x2c] ss:$200 sps:$4 sm:$0xff]   ;;  %v346_v51 = vld [vmem:[%s3263_s26 + $0x358] sm:$0x33]  ;;  %v3019_v52 = vld [vmem:[%s3263_s26 + $0x20] ss:$200 sps:$4 sm:$0xff]   ;;  %v2813_v53 = vcombine.high %v345_v49, %v345_v49  ;;  %v2812_v54 = vcombine.low %v345_v49, %v345_v49 }
  0x1c   : > { %1159 = vmatpush1.bf16.msra.mxu0 %v2989_v19  ;;  %v3027_v55 = vld [vmem:[%s3263_s26 + $0x28] ss:$200 sps:$4 sm:$0xff]   ;;  %v2815_v56 = vcombine.high %v346_v51, %v346_v51  ;;  %v2814_v57 = vcombine.low %v346_v51, %v346_v51  ;;  %v3032_v59 = vld [vmem:[%s3263_s26 + $0x1c4] ss:$200 sps:$4 sm:$0xff]   ;;  %v3037_v63 = vld [vmem:[%s3263_s26 + $0x34] ss:$200 sps:$4 sm:$0xff]  }
  0x1d   : > { %2854 = vmatprep.subr.msk.bf16.mxu0 %vm993_vm0, %v2805_v20  ;;  %1200 = vmatpush1.bf16.msra.mxu1 %v2997_v22  ;;  %v1031_v58 = vsel %vm993_vm0, %v2812_v54, 0  ;;  %v3040_v61 = vld [vmem:[%s3263_s26 + $0x1cc] ss:$200 sps:$4 sm:$0xff]   ;;  %v3030_v62 = vld [vmem:[%s3263_s26 + $0x1c0] ss:$200 sps:$4 sm:$0xff]  }
  0x1e   : > { %2856 = vmatprep.subr.msk.bf16.mxu1 %vm993_vm0, %v2807_v23  ;;  %v1037_v60 = vsel %vm993_vm0, %v2814_v57, 0  ;;  %v3038_v1 = vld [vmem:[%s3263_s26 + $0x1c8] ss:$200 sps:$4 sm:$0xff]   ;;  %v347_v2 = vld [vmem:[%s3263_s26 + $0x360] sm:$0x33] }
  0x1f   : > { %2851 = vmatmul.mubr.msk.bf16.vlgmr.msra.gmra.mxu0 %vm989_vm1, %v3284_v25  ;;  %v3045_v3 = vld [vmem:[%s3263_s26 + $0x3c] ss:$200 sps:$4 sm:$0xff]   ;;  %v348_v4 = vld [vmem:[%s3263_s26 + $0x368] sm:$0x33]  ;;  %v3035_v5 = vld [vmem:[%s3263_s26 + $0x30] ss:$200 sps:$4 sm:$0xff]   ;;  %v2817_v6 = vcombine.high %v347_v2, %v347_v2  ;;  %v2816_v7 = vcombine.low %v347_v2, %v347_v2 }
  0x20   : > { %1237 = vmatpush1.bf16.msra.mxu0 %v1007_v26  ;;  %2853 = vmatmul.mubr.msk.bf16.vlgmr.msra.gmra.mxu1 %vm989_vm1, %v3284_v25  ;;  %v3043_v8 = vld [vmem:[%s3263_s26 + $0x38] ss:$200 sps:$4 sm:$0xff]   ;;  %v2819_v9 = vcombine.high %v348_v4, %v348_v4  ;;  %v2818_v10 = vcombine.low %v348_v4, %v348_v4  ;;  %v3048_v12 = vld [vmem:[%s3263_s26 + $0x1d4] ss:$200 sps:$4 sm:$0xff]   ;;  %v3053_v16 = vld [vmem:[%s3263_s26 + $0x44] ss:$200 sps:$4 sm:$0xff]  }
  0x21   : > { %1238 = vmatprep.subr.bf16.mxu0 %v3000_v27  ;;  %1278 = vmatpush1.bf16.msra.mxu1 %v1013_v28  ;;  %v1043_v11 = vsel %vm993_vm0, %v2816_v7, 0  ;;  %v3056_v14 = vld [vmem:[%s3263_s26 + $0x1dc] ss:$200 sps:$4 sm:$0xff]   ;;  %v3046_v15 = vld [vmem:[%s3263_s26 + $0x1d0] ss:$200 sps:$4 sm:$0xff]  }
  0x22   : > { %1279 = vmatprep.subr.bf16.mxu1 %v3008_v29  ;;  %1258 = vmatprep.mubr.bf16.mxu0 %v3204_v0  ;;  %v1049_v13 = vsel %vm993_vm0, %v2818_v10, 0  ;;  %v3054_v17 = vld [vmem:[%s3263_s26 + $0x1d8] ss:$200 sps:$4 sm:$0xff]   ;;  %v349_v18 = vld [vmem:[%s3263_s26 + $0x370] sm:$0x33] }
  0x23   : > { %1299 = vmatprep.mubr.bf16.mxu1 %v3204_v0  ;;  %v3061_v19 = vld [vmem:[%s3263_s26 + $0x4c] ss:$200 sps:$4 sm:$0xff]   ;;  %v350_v20 = vld [vmem:[%s3263_s26 + $0x378] sm:$0x33]  ;;  %v3051_v21 = vld [vmem:[%s3263_s26 + $0x40] ss:$200 sps:$4 sm:$0xff]   ;;  %v2821_v22 = vcombine.high %v349_v18, %v349_v18  ;;  %v2820_v23 = vcombine.low %v349_v18, %v349_v18 }
  0x24   : > { %1239 = vmatpush1.bf16.msra.mxu0 %v2998_v30  ;;  %v3059_v24 = vld [vmem:[%s3263_s26 + $0x48] ss:$200 sps:$4 sm:$0xff]   ;;  %v2823_v26 = vcombine.high %v350_v20, %v350_v20  ;;  %v2822_v27 = vcombine.low %v350_v20, %v350_v20  ;;  %v3064_v29 = vld [vmem:[%s3263_s26 + $0x1e4] ss:$200 sps:$4 sm:$0xff]   ;;  %v3069_v33 = vld [vmem:[%s3263_s26 + $0x54] ss:$200 sps:$4 sm:$0xff]  }
  0x25   : > { %1240 = vmatprep.subr.bf16.mxu0 %v3005_v31  ;;  %1280 = vmatpush1.bf16.msra.mxu1 %v3006_v32  ;;  %v1055_v28 = vsel %vm993_vm0, %v2820_v23, 0  ;;  %v3072_v31 = vld [vmem:[%s3263_s26 + $0x1ec] ss:$200 sps:$4 sm:$0xff]   ;;  %v3062_v32 = vld [vmem:[%s3263_s26 + $0x1e0] ss:$200 sps:$4 sm:$0xff]  }
  0x26   : > { %1281 = vmatprep.subr.bf16.mxu1 %v3013_v34  ;;  %v1061_v30 = vsel %vm993_vm0, %v2822_v27, 0  ;;  %v3070_v34 = vld [vmem:[%s3263_s26 + $0x1e8] ss:$200 sps:$4 sm:$0xff]   ;;  %v351_v35 = vld [vmem:[%s3263_s26 + $0x380] sm:$0x33] }
  0x27   : > { %v3067_v38 = vld [vmem:[%s3263_s26 + $0x50] ss:$200 sps:$4 sm:$0xff]   ;;  %v3085_v49 = vld [vmem:[%s3263_s26 + $0x64] ss:$200 sps:$4 sm:$0xff]   ;;  %v3083_v54 = vld [vmem:[%s3263_s26 + $0x60] ss:$200 sps:$4 sm:$0xff]  }
  0x28   : > { %1241 = vmatpush1.bf16.msra.mxu0 %v3003_v36  ;;  %v3077_v36 = vld [vmem:[%s3263_s26 + $0x5c] ss:$200 sps:$4 sm:$0xff]   ;;  %v3075_v41 = vld [vmem:[%s3263_s26 + $0x58] ss:$200 sps:$4 sm:$0xff]   ;;  %v353_v51 = vld [vmem:[%s3263_s26 + $0x390] sm:$0x33] }
  0x29   : > { %2858 = vmatprep.subr.msk.bf16.mxu0 %vm993_vm0, %v2809_v37  ;;  %1282 = vmatpush1.bf16.msra.mxu1 %v3011_v39  ;;  %v352_v37 = vld [vmem:[%s3263_s26 + $0x388] sm:$0x33]  ;;  %v2825_v39 = vcombine.high %v351_v35, %v351_v35  ;;  %v3101_v2 = vld [vmem:[%s3263_s26 + $0x74] ss:$200 sps:$4 sm:$0xff]   ;;  %v355_v4 = vld [vmem:[%s3263_s26 + $0x3a0] sm:$0x33] }
  0x2a   : > { %2860 = vmatprep.subr.msk.bf16.mxu1 %vm993_vm0, %v2811_v40  ;;  %v2824_v40 = vcombine.low %v351_v35, %v351_v35  ;;  %v3091_v57 = vld [vmem:[%s3263_s26 + $0x68] ss:$200 sps:$4 sm:$0xff]   ;;  %v3107_v10 = vld [vmem:[%s3263_s26 + $0x78] ss:$200 sps:$4 sm:$0xff]   ;;  %v3117_v18 = vld [vmem:[%s3263_s26 + $0x84] ss:$200 sps:$4 sm:$0xff]  }
  0x2b   : > { %2855 = vmatmul.mubr.msk.bf16.vlgmr.msra.gmra.mxu0 %vm989_vm1, %v3284_v25  ;;  %v3099_v7 = vld [vmem:[%s3263_s26 + $0x70] ss:$200 sps:$4 sm:$0xff]   ;;  %v3115_v23 = vld [vmem:[%s3263_s26 + $0x80] ss:$200 sps:$4 sm:$0xff]   ;;  %v3133_v35 = vld [vmem:[%s3263_s26 + $0x94] ss:$200 sps:$4 sm:$0xff]  }
  0x2c   : > { %1319 = vmatpush1.bf16.msra.mxu0 %v1019_v42  ;;  %2857 = vmatmul.mubr.msk.bf16.vlgmr.msra.gmra.mxu1 %vm989_vm1, %v3284_v25  ;;  %v2827_v42 = vcombine.high %v352_v37, %v352_v37  ;;  %v357_v20 = vld [vmem:[%s3263_s26 + $0x3b0] sm:$0x33] }
  0x2d   : > { %1320 = vmatprep.subr.bf16.mxu0 %v3016_v43  ;;  %1360 = vmatpush1.bf16.msra.mxu1 %v1025_v44  ;;  %v2826_v43 = vcombine.low %v352_v37, %v352_v37  ;;  %v1067_v44 = vsel %vm993_vm0, %v2824_v40, 0  ;;  %v3123_v27 = vld [vmem:[%s3263_s26 + $0x88] ss:$200 sps:$4 sm:$0xff]   ;;  %v359_v37 = vld [vmem:[%s3263_s26 + $0x3c0] sm:$0x33] }
  0x2e   : > { %1361 = vmatprep.subr.bf16.mxu1 %v3024_v45  ;;  %1340 = vmatprep.mubr.bf16.mxu0 %v3204_v0  ;;  %v3080_v45 = vld [vmem:[%s3263_s26 + $0x1f4] ss:$200 sps:$4 sm:$0xff]   ;;  %v3131_v40 = vld [vmem:[%s3263_s26 + $0x90] ss:$200 sps:$4 sm:$0xff]  }
  0x2f   : > { %1381 = vmatprep.mubr.bf16.mxu1 %v3204_v0 }
  0x30   : > { %1321 = vmatpush1.bf16.msra.mxu0 %v3014_v46  ;;  %v1073_v46 = vsel %vm993_vm0, %v2826_v43, 0  ;;  %v3139_v43 = vld [vmem:[%s3263_s26 + $0x98] ss:$200 sps:$4 sm:$0xff]  }
  0x31   : > { %1322 = vmatprep.subr.bf16.mxu0 %v3021_v47  ;;  %1362 = vmatpush1.bf16.msra.mxu1 %v3022_v48  ;;  %v3088_v47 = vld [vmem:[%s3263_s26 + $0x1fc] ss:$200 sps:$4 sm:$0xff]   ;;  %v3078_v48 = vld [vmem:[%s3263_s26 + $0x1f0] ss:$200 sps:$4 sm:$0xff]  }
  0x32   : > { %1363 = vmatprep.subr.bf16.mxu1 %v3029_v50  ;;  %v3086_v50 = vld [vmem:[%s3263_s26 + $0x1f8] ss:$200 sps:$4 sm:$0xff]  }
  0x34   : > { %1323 = vmatpush1.bf16.msra.mxu0 %v3019_v52  ;;  %v3093_v52 = vld [vmem:[%s3263_s26 + $0x6c] ss:$200 sps:$4 sm:$0xff]  }
  0x35   : > { %2862 = vmatprep.subr.msk.bf16.mxu0 %vm993_vm0, %v2813_v53  ;;  %1364 = vmatpush1.bf16.msra.mxu1 %v3027_v55  ;;  %v354_v53 = vld [vmem:[%s3263_s26 + $0x398] sm:$0x33]  ;;  %v2829_v55 = vcombine.high %v353_v51, %v353_v51 }
  0x36   : > { %2864 = vmatprep.subr.msk.bf16.mxu1 %vm993_vm0, %v2815_v56  ;;  %v2828_v56 = vcombine.low %v353_v51, %v353_v51  ;;  %v3149_v51 = vld [vmem:[%s3263_s26 + $0xa4] ss:$200 sps:$4 sm:$0xff]  }
  0x37   : > { %2859 = vmatmul.mubr.msk.bf16.vlgmr.msra.gmra.mxu0 %vm989_vm1, %v3284_v25 }
  0x38   : > { %1401 = vmatpush1.bf16.msra.mxu0 %v1031_v58  ;;  %2861 = vmatmul.mubr.msk.bf16.vlgmr.msra.gmra.mxu1 %vm989_vm1, %v3284_v25  ;;  %v2831_v58 = vcombine.high %v354_v53, %v354_v53 }
  0x39   : > { %1402 = vmatprep.subr.bf16.mxu0 %v3032_v59  ;;  %1442 = vmatpush1.bf16.msra.mxu1 %v1037_v60  ;;  %v2830_v59 = vcombine.low %v354_v53, %v354_v53  ;;  %v1079_v60 = vsel %vm993_vm0, %v2828_v56, 0  ;;  %v361_v53 = vld [vmem:[%s3263_s26 + $0x3d0] sm:$0x33]  ;;  %v3147_v56 = vld [vmem:[%s3263_s26 + $0xa0] ss:$200 sps:$4 sm:$0xff]  }
  0x3a   : > { %1443 = vmatprep.subr.bf16.mxu1 %v3040_v61  ;;  %1422 = vmatprep.mubr.bf16.mxu0 %v3204_v0  ;;  %v3096_v61 = vld [vmem:[%s3263_s26 + $0x204] ss:$200 sps:$4 sm:$0xff]  }
  0x3b   : > { %1463 = vmatprep.mubr.bf16.mxu1 %v3204_v0 }
  0x3c   : > { %1403 = vmatpush1.bf16.msra.mxu0 %v3030_v62  ;;  %v1085_v62 = vsel %vm993_vm0, %v2830_v59, 0  ;;  %v3155_v59 = vld [vmem:[%s3263_s26 + $0xa8] ss:$200 sps:$4 sm:$0xff]  }
  0x3d   : > { %1404 = vmatprep.subr.bf16.mxu0 %v3037_v63  ;;  %1444 = vmatpush1.bf16.msra.mxu1 %v3038_v1  ;;  %v3104_v63 = vld [vmem:[%s3263_s26 + $0x20c] ss:$200 sps:$4 sm:$0xff]   ;;  %v3094_v1 = vld [vmem:[%s3263_s26 + $0x200] ss:$200 sps:$4 sm:$0xff]  }
  0x3e   : > { %1445 = vmatprep.subr.bf16.mxu1 %v3045_v3  ;;  %v3102_v3 = vld [vmem:[%s3263_s26 + $0x208] ss:$200 sps:$4 sm:$0xff]  }
  0x40   : > { %1405 = vmatpush1.bf16.msra.mxu0 %v3035_v5  ;;  %v3109_v5 = vld [vmem:[%s3263_s26 + $0x7c] ss:$200 sps:$4 sm:$0xff]  }
  0x41   : > { %2866 = vmatprep.subr.msk.bf16.mxu0 %vm993_vm0, %v2817_v6  ;;  %1446 = vmatpush1.bf16.msra.mxu1 %v3043_v8  ;;  %v356_v6 = vld [vmem:[%s3263_s26 + $0x3a8] sm:$0x33]  ;;  %v2833_v8 = vcombine.high %v355_v4, %v355_v4 }
  0x42   : > { %2868 = vmatprep.subr.msk.bf16.mxu1 %vm993_vm0, %v2819_v9  ;;  %v2832_v9 = vcombine.low %v355_v4, %v355_v4  ;;  %v3165_v4 = vld [vmem:[%s3263_s26 + $0xb4] ss:$200 sps:$4 sm:$0xff]  }
  0x43   : > { %2863 = vmatmul.mubr.msk.bf16.vlgmr.msra.gmra.mxu0 %vm989_vm1, %v3284_v25 }
  0x44   : > { %1483 = vmatpush1.bf16.msra.mxu0 %v1043_v11  ;;  %2865 = vmatmul.mubr.msk.bf16.vlgmr.msra.gmra.mxu1 %vm989_vm1, %v3284_v25  ;;  %v2835_v11 = vcombine.high %v356_v6, %v356_v6 }
  0x45   : > { %1484 = vmatprep.subr.bf16.mxu0 %v3048_v12  ;;  %1524 = vmatpush1.bf16.msra.mxu1 %v1049_v13  ;;  %v2834_v12 = vcombine.low %v356_v6, %v356_v6  ;;  %v1091_v13 = vsel %vm993_vm0, %v2832_v9, 0  ;;  %v363_v6 = vld [vmem:[%s3263_s26 + $0x3e0] sm:$0x33] }
  0x46   : > { %1525 = vmatprep.subr.bf16.mxu1 %v3056_v14  ;;  %1504 = vmatprep.mubr.bf16.mxu0 %v3204_v0  ;;  %v3112_v14 = vld [vmem:[%s3263_s26 + $0x214] ss:$200 sps:$4 sm:$0xff]   ;;  %v2849_v9 = vcombine.high %v363_v6, %v363_v6 }
  0x47   : > { %1545 = vmatprep.mubr.bf16.mxu1 %v3204_v0 }
  0x48   : > { %1485 = vmatpush1.bf16.msra.mxu0 %v3046_v15  ;;  %v1097_v15 = vsel %vm993_vm0, %v2834_v12, 0 }
  0x49   : > { %1486 = vmatprep.subr.bf16.mxu0 %v3053_v16  ;;  %1526 = vmatpush1.bf16.msra.mxu1 %v3054_v17  ;;  %v3120_v16 = vld [vmem:[%s3263_s26 + $0x21c] ss:$200 sps:$4 sm:$0xff]   ;;  %v3110_v17 = vld [vmem:[%s3263_s26 + $0x210] ss:$200 sps:$4 sm:$0xff]  }
  0x4a   : > { %1527 = vmatprep.subr.bf16.mxu1 %v3061_v19  ;;  %v3118_v19 = vld [vmem:[%s3263_s26 + $0x218] ss:$200 sps:$4 sm:$0xff]  }
  0x4c   : > { %1487 = vmatpush1.bf16.msra.mxu0 %v3051_v21  ;;  %v3125_v21 = vld [vmem:[%s3263_s26 + $0x8c] ss:$200 sps:$4 sm:$0xff]  }
  0x4d   : > { %2870 = vmatprep.subr.msk.bf16.mxu0 %vm993_vm0, %v2821_v22  ;;  %1528 = vmatpush1.bf16.msra.mxu1 %v3059_v24  ;;  %v358_v22 = vld [vmem:[%s3263_s26 + $0x3b8] sm:$0x33]  ;;  %v2837_v24 = vcombine.high %v357_v20, %v357_v20 }
  0x4e   : > { %2872 = vmatprep.subr.msk.bf16.mxu1 %vm993_vm0, %v2823_v26  ;;  %v2836_v26 = vcombine.low %v357_v20, %v357_v20 }
  0x4f   : > { %2867 = vmatmul.mubr.msk.bf16.vlgmr.msra.gmra.mxu0 %vm989_vm1, %v3284_v25 }
  0x50   : > { %1565 = vmatpush1.bf16.msra.mxu0 %v1055_v28  ;;  %2869 = vmatmul.mubr.msk.bf16.vlgmr.msra.gmra.mxu1 %vm989_vm1, %v3284_v25  ;;  %v2839_v28 = vcombine.high %v358_v22, %v358_v22 }
  0x51   : > { %1566 = vmatprep.subr.bf16.mxu0 %v3064_v29  ;;  %1606 = vmatpush1.bf16.msra.mxu1 %v1061_v30  ;;  %v2838_v29 = vcombine.low %v358_v22, %v358_v22  ;;  %v1103_v30 = vsel %vm993_vm0, %v2836_v26, 0 }
  0x52   : > { %1607 = vmatprep.subr.bf16.mxu1 %v3072_v31  ;;  %1586 = vmatprep.mubr.bf16.mxu0 %v3204_v0  ;;  %v3128_v31 = vld [vmem:[%s3263_s26 + $0x224] ss:$200 sps:$4 sm:$0xff]  }
  0x53   : > { %1627 = vmatprep.mubr.bf16.mxu1 %v3204_v0 }
  0x54   : > { %1567 = vmatpush1.bf16.msra.mxu0 %v3062_v32  ;;  %v1109_v32 = vsel %vm993_vm0, %v2838_v29, 0 }
  0x55   : > { %1568 = vmatprep.subr.bf16.mxu0 %v3069_v33  ;;  %1608 = vmatpush1.bf16.msra.mxu1 %v3070_v34  ;;  %v3136_v33 = vld [vmem:[%s3263_s26 + $0x22c] ss:$200 sps:$4 sm:$0xff]   ;;  %v3126_v34 = vld [vmem:[%s3263_s26 + $0x220] ss:$200 sps:$4 sm:$0xff]  }
  0x56   : > { %1609 = vmatprep.subr.bf16.mxu1 %v3077_v36  ;;  %v3134_v36 = vld [vmem:[%s3263_s26 + $0x228] ss:$200 sps:$4 sm:$0xff]  }
  0x58   : > { %1569 = vmatpush1.bf16.msra.mxu0 %v3067_v38  ;;  %v3141_v38 = vld [vmem:[%s3263_s26 + $0x9c] ss:$200 sps:$4 sm:$0xff]  }
  0x59   : > { %2874 = vmatprep.subr.msk.bf16.mxu0 %vm993_vm0, %v2825_v39  ;;  %1610 = vmatpush1.bf16.msra.mxu1 %v3075_v41  ;;  %v360_v39 = vld [vmem:[%s3263_s26 + $0x3c8] sm:$0x33]  ;;  %v2841_v41 = vcombine.high %v359_v37, %v359_v37 }
  0x5a   : > { %2876 = vmatprep.subr.msk.bf16.mxu1 %vm993_vm0, %v2827_v42  ;;  %v2840_v42 = vcombine.low %v359_v37, %v359_v37 }
  0x5b   : > { %2871 = vmatmul.mubr.msk.bf16.vlgmr.msra.gmra.mxu0 %vm989_vm1, %v3284_v25 }
  0x5c   : > { %1647 = vmatpush1.bf16.msra.mxu0 %v1067_v44  ;;  %2873 = vmatmul.mubr.msk.bf16.vlgmr.msra.gmra.mxu1 %vm989_vm1, %v3284_v25  ;;  %v2843_v44 = vcombine.high %v360_v39, %v360_v39 }
  0x5d   : > { %1648 = vmatprep.subr.bf16.mxu0 %v3080_v45  ;;  %1688 = vmatpush1.bf16.msra.mxu1 %v1073_v46  ;;  %v2842_v45 = vcombine.low %v360_v39, %v360_v39  ;;  %v1115_v46 = vsel %vm993_vm0, %v2840_v42, 0 }
  0x5e   : > { %1689 = vmatprep.subr.bf16.mxu1 %v3088_v47  ;;  %1668 = vmatprep.mubr.bf16.mxu0 %v3204_v0  ;;  %v3144_v47 = vld [vmem:[%s3263_s26 + $0x234] ss:$200 sps:$4 sm:$0xff]  }
  0x5f   : > { %1709 = vmatprep.mubr.bf16.mxu1 %v3204_v0 }
  0x60   : > { %1649 = vmatpush1.bf16.msra.mxu0 %v3078_v48  ;;  %v1121_v48 = vsel %vm993_vm0, %v2842_v45, 0 }
  0x61   : > { %1650 = vmatprep.subr.bf16.mxu0 %v3085_v49  ;;  %1690 = vmatpush1.bf16.msra.mxu1 %v3086_v50  ;;  %v3152_v49 = vld [vmem:[%s3263_s26 + $0x23c] ss:$200 sps:$4 sm:$0xff]   ;;  %v3142_v50 = vld [vmem:[%s3263_s26 + $0x230] ss:$200 sps:$4 sm:$0xff]  }
  0x62   : > { %1691 = vmatprep.subr.bf16.mxu1 %v3093_v52  ;;  %v3150_v52 = vld [vmem:[%s3263_s26 + $0x238] ss:$200 sps:$4 sm:$0xff]  }
  0x64   : > { %1651 = vmatpush1.bf16.msra.mxu0 %v3083_v54  ;;  %v3157_v54 = vld [vmem:[%s3263_s26 + $0xac] ss:$200 sps:$4 sm:$0xff]  }
  0x65   : > { %2878 = vmatprep.subr.msk.bf16.mxu0 %vm993_vm0, %v2829_v55  ;;  %1692 = vmatpush1.bf16.msra.mxu1 %v3091_v57  ;;  %v362_v55 = vld [vmem:[%s3263_s26 + $0x3d8] sm:$0x33]  ;;  %v2845_v57 = vcombine.high %v361_v53, %v361_v53 }
  0x66   : > { %2880 = vmatprep.subr.msk.bf16.mxu1 %vm993_vm0, %v2831_v58  ;;  %v2844_v58 = vcombine.low %v361_v53, %v361_v53 }
  0x67   : > { %2875 = vmatmul.mubr.msk.bf16.vlgmr.msra.gmra.mxu0 %vm989_vm1, %v3284_v25 }
  0x68   : > { %1729 = vmatpush1.bf16.msra.mxu0 %v1079_v60  ;;  %2877 = vmatmul.mubr.msk.bf16.vlgmr.msra.gmra.mxu1 %vm989_vm1, %v3284_v25  ;;  %v2847_v60 = vcombine.high %v362_v55, %v362_v55 }
  0x69   : > { %1730 = vmatprep.subr.bf16.mxu0 %v3096_v61  ;;  %1770 = vmatpush1.bf16.msra.mxu1 %v1085_v62  ;;  %v2846_v61 = vcombine.low %v362_v55, %v362_v55  ;;  %v1127_v62 = vsel %vm993_vm0, %v2844_v58, 0 }
  0x6a   : > { %1771 = vmatprep.subr.bf16.mxu1 %v3104_v63  ;;  %1750 = vmatprep.mubr.bf16.mxu0 %v3204_v0  ;;  %v3160_v63 = vld [vmem:[%s3263_s26 + $0x244] ss:$200 sps:$4 sm:$0xff]  }
  0x6b   : > { %1791 = vmatprep.mubr.bf16.mxu1 %v3204_v0 }
  0x6c   : > { %1731 = vmatpush1.bf16.msra.mxu0 %v3094_v1  ;;  %v1133_v1 = vsel %vm993_vm0, %v2846_v61, 0 }
  0x6d   : > { %1732 = vmatprep.subr.bf16.mxu0 %v3101_v2  ;;  %1772 = vmatpush1.bf16.msra.mxu1 %v3102_v3  ;;  %v3168_v2 = vld [vmem:[%s3263_s26 + $0x24c] ss:$200 sps:$4 sm:$0xff]   ;;  %v3158_v3 = vld [vmem:[%s3263_s26 + $0x240] ss:$200 sps:$4 sm:$0xff]  }
  0x6e   : > { %1773 = vmatprep.subr.bf16.mxu1 %v3109_v5  ;;  %v3166_v5 = vld [vmem:[%s3263_s26 + $0x248] ss:$200 sps:$4 sm:$0xff]  }
  0x70   : > { %1733 = vmatpush1.bf16.msra.mxu0 %v3099_v7  ;;  %v3173_v7 = vld [vmem:[%s3263_s26 + $0xbc] ss:$200 sps:$4 sm:$0xff]  }
  0x71   : > { %2882 = vmatprep.subr.msk.bf16.mxu0 %vm993_vm0, %v2833_v8  ;;  %1774 = vmatpush1.bf16.msra.mxu1 %v3107_v10  ;;  %v3163_v8 = vld [vmem:[%s3263_s26 + $0xb0] ss:$200 sps:$4 sm:$0xff]   ;;  %v2848_v10 = vcombine.low %v363_v6, %v363_v6 }
  0x72   : > { %2884 = vmatprep.subr.msk.bf16.mxu1 %vm993_vm0, %v2835_v11  ;;  %v3171_v11 = vld [vmem:[%s3263_s26 + $0xb8] ss:$200 sps:$4 sm:$0xff]  }
  0x73   : > { %2879 = vmatmul.mubr.msk.bf16.vlgmr.msra.gmra.mxu0 %vm989_vm1, %v3284_v25  ;;  %v1139_v12 = vsel %vm993_vm0, %v2848_v10, 0 }
  0x74   : > { %1811 = vmatpush1.bf16.msra.mxu0 %v1091_v13  ;;  %2881 = vmatmul.mubr.msk.bf16.vlgmr.msra.gmra.mxu1 %vm989_vm1, %v3284_v25  ;;  %v3176_v13 = vld [vmem:[%s3263_s26 + $0x254] ss:$200 sps:$4 sm:$0xff]  }
  0x75   : > { %1812 = vmatprep.subr.bf16.mxu0 %v3112_v14  ;;  %1852 = vmatpush1.bf16.msra.mxu1 %v1097_v15  ;;  %v3174_v14 = vld [vmem:[%s3263_s26 + $0x250] ss:$200 sps:$4 sm:$0xff]   ;;  %v3179_v15 = vld [vmem:[%s3263_s26 + $0xc4] ss:$200 sps:$4 sm:$0xff]  }
  0x76   : > { %1853 = vmatprep.subr.bf16.mxu1 %v3120_v16  ;;  %1832 = vmatprep.mubr.bf16.mxu0 %v3204_v0  ;;  %v3177_v16 = vld [vmem:[%s3263_s26 + $0xc0] ss:$200 sps:$4 sm:$0xff]  }
  0x77   : > { %1873 = vmatprep.mubr.bf16.mxu1 %v3204_v0 }
  0x78   : > { %1813 = vmatpush1.bf16.msra.mxu0 %v3110_v17 }
  0x79   : > { %1814 = vmatprep.subr.bf16.mxu0 %v3117_v18  ;;  %1854 = vmatpush1.bf16.msra.mxu1 %v3118_v19 }
  0x7a   : > { %1855 = vmatprep.subr.bf16.mxu1 %v3125_v21 }
  0x7c   : > { %1815 = vmatpush1.bf16.msra.mxu0 %v3115_v23 }
  0x7d   : > { %2886 = vmatprep.subr.msk.bf16.mxu0 %vm993_vm0, %v2837_v24  ;;  %1856 = vmatpush1.bf16.msra.mxu1 %v3123_v27 }
  0x7e   : > { %2888 = vmatprep.subr.msk.bf16.mxu1 %vm993_vm0, %v2839_v28 }
  0x7f   : > { %2883 = vmatmul.mubr.msk.bf16.vlgmr.msra.gmra.mxu0 %vm989_vm1, %v3284_v25 }
  0x80   : > { %1893 = vmatpush1.bf16.msra.mxu0 %v1103_v30  ;;  %2885 = vmatmul.mubr.msk.bf16.vlgmr.msra.gmra.mxu1 %vm989_vm1, %v3284_v25 }
  0x81   : > { %1894 = vmatprep.subr.bf16.mxu0 %v3128_v31  ;;  %1934 = vmatpush1.bf16.msra.mxu1 %v1109_v32 }
  0x82   : > { %1935 = vmatprep.subr.bf16.mxu1 %v3136_v33  ;;  %1914 = vmatprep.mubr.bf16.mxu0 %v3204_v0 }
  0x83   : > { %1955 = vmatprep.mubr.bf16.mxu1 %v3204_v0 }
  0x84   : > { %1895 = vmatpush1.bf16.msra.mxu0 %v3126_v34 }
  0x85   : > { %1896 = vmatprep.subr.bf16.mxu0 %v3133_v35  ;;  %1936 = vmatpush1.bf16.msra.mxu1 %v3134_v36 }
  0x86   : > { %1937 = vmatprep.subr.bf16.mxu1 %v3141_v38 }
  0x88   : > { %1897 = vmatpush1.bf16.msra.mxu0 %v3131_v40 }
  0x89   : > { %2890 = vmatprep.subr.msk.bf16.mxu0 %vm993_vm0, %v2841_v41  ;;  %1938 = vmatpush1.bf16.msra.mxu1 %v3139_v43 }
  0x8a   : > { %2892 = vmatprep.subr.msk.bf16.mxu1 %vm993_vm0, %v2843_v44  ;;  %v3518_v17 = vpop.permute.xlu0 %2172 }
  0x8b   : > { %2887 = vmatmul.mubr.msk.bf16.vlgmr.msra.gmra.mxu0 %vm989_vm1, %v3284_v25 }
  0x8c   : > { %1975 = vmatpush1.bf16.msra.mxu0 %v1115_v46  ;;  %2889 = vmatmul.mubr.msk.bf16.vlgmr.msra.gmra.mxu1 %vm989_vm1, %v3284_v25 }
  0x8d   : > { %1976 = vmatprep.subr.bf16.mxu0 %v3144_v47  ;;  %2016 = vmatpush1.bf16.msra.mxu1 %v1121_v48 }
  0x8e   : > { %2017 = vmatprep.subr.bf16.mxu1 %v3152_v49  ;;  %1996 = vmatprep.mubr.bf16.mxu0 %v3204_v0  ;;  %v3520_v19 = vpop.permute.xlu0 %2228 }
  0x8f   : > { %2037 = vmatprep.mubr.bf16.mxu1 %v3204_v0 }
  0x90   : > { %1977 = vmatpush1.bf16.msra.mxu0 %v3142_v50 }
  0x91   : > { %1978 = vmatprep.subr.bf16.mxu0 %v3149_v51  ;;  %2018 = vmatpush1.bf16.msra.mxu1 %v3150_v52 }
  0x92   : > { %2019 = vmatprep.subr.bf16.mxu1 %v3157_v54 }
  0x94   : > { %1979 = vmatpush1.bf16.msra.mxu0 %v3147_v56 }
  0x95   : > { %2894 = vmatprep.subr.msk.bf16.mxu0 %vm993_vm0, %v2845_v57  ;;  %2020 = vmatpush1.bf16.msra.mxu1 %v3155_v59 }
  0x96   : > { %2896 = vmatprep.subr.msk.bf16.mxu1 %vm993_vm0, %v2847_v60 }
  0x97   : > { %2891 = vmatmul.mubr.msk.bf16.vlgmr.msra.gmra.mxu0 %vm989_vm1, %v3284_v25 }
  0x98   : > { %2057 = vmatpush1.bf16.msra.mxu0 %v1127_v62  ;;  %2893 = vmatmul.mubr.msk.bf16.vlgmr.msra.gmra.mxu1 %vm989_vm1, %v3284_v25 }
  0x99   : > { %2058 = vmatprep.subr.bf16.mxu0 %v3160_v63  ;;  %2098 = vmatpush1.bf16.msra.mxu1 %v1133_v1 }
  0x9a   : > { %2099 = vmatprep.subr.bf16.mxu1 %v3168_v2  ;;  %2078 = vmatprep.mubr.bf16.mxu0 %v3204_v0 }
  0x9b   : > { %2119 = vmatprep.mubr.bf16.mxu1 %v3204_v0 }
  0x9c   : > { %2059 = vmatpush1.bf16.msra.mxu0 %v3158_v3 }
  0x9d   : > { %2060 = vmatprep.subr.bf16.mxu0 %v3165_v4  ;;  %2100 = vmatpush1.bf16.msra.mxu1 %v3166_v5 }
  0x9e   : > { %2101 = vmatprep.subr.bf16.mxu1 %v3173_v7 }
  0xa0   : > { %2061 = vmatpush1.bf16.msra.mxu0 %v3163_v8 }
  0xa1   : > { %2898 = vmatprep.subr.msk.bf16.mxu0 %vm993_vm0, %v2849_v9  ;;  %2102 = vmatpush1.bf16.msra.mxu1 %v3171_v11 }
  0xa3   : > { %2895 = vmatmul.mubr.msk.bf16.vlgmr.msra.gmra.mxu0 %vm989_vm1, %v3284_v25 }
  0xa4   : > { %2139 = vmatpush1.bf16.msra.mxu0 %v1139_v12  ;;  %2897 = vmatmul.mubr.msk.bf16.vlgmr.msra.gmra.mxu1 %vm989_vm1, %v3284_v25 }
  0xa5   : > { %2140 = vmatprep.subr.bf16.mxu0 %v3176_v13  ;;  %2160 = vmatprep.mubr.bf16.mxu0 %v3204_v0 }
  0xa8   : > { %2141 = vmatpush1.bf16.msra.mxu0 %v3174_v14 }
  0xa9   : > { %2142 = vmatprep.subr.bf16.mxu0 %v3179_v15 }
  0xac   : > { %2143 = vmatpush1.bf16.msra.mxu0 %v3177_v16 }
  0xaf   : > { %2899 = vmatmul.mubr.msk.bf16.vlgmr.msra.gmra.mxu0 %vm989_vm1, %v3284_v25 }
  0xdf   : > { %v1178_v18 = vpop.f32.mrf.mxu0 }
  0xe0   : > { %v2175_v20 = vmul.f32 %v3518_v17, %v1178_v18  ;;  %v1219_v21 = vpop.f32.mrf.mxu1 }
  0xe1   : > { %v1180_v22 = vpop.f32.mrf.mxu0  ;;  %v2177_v23 = vmul.f32 %v3518_v17, %v1219_v21 }
  0xe2   : > { %v2176_v0 = vmul.f32 %v3518_v17, %v1180_v22  ;;  %v2231_v24 = vadd.f32 %v3520_v19, %v2175_v20  ;;  %v1221_v26 = vpop.f32.mrf.mxu1 }
  0xe3   : > { %v1182_v27 = vpop.f32.mrf.mxu0  ;;  %v2233_v25 = vadd.f32 %v3520_v19, %v2177_v23  ;;  %v2178_v28 = vmul.f32 %v3518_v17, %v1221_v26 }
  0xe4   : > { %v2232_v29 = vadd.f32 %v3520_v19, %v2176_v0  ;;  %v2281_v30 = vmul.f32 0.2, %v2231_v24  ;;  %v1223_v31 = vpop.f32.mrf.mxu1 }
  0xe5   : > { %v1183_v32 = vpop.f32.mrf.mxu0  ;;  %v2283_v33 = vmul.f32 0.2, %v2233_v25  ;;  %v2234_v34 = vadd.f32 %v3520_v19, %v2178_v28 }
  0xe6   : > { %v2282_v35 = vmul.f32 0.2, %v2232_v29  ;;  %v1224_v36 = vpop.f32.mrf.mxu1  ;;  %v2331_v39 = vmax.f32 %v2231_v24, %v2281_v30 }
  0xe7   : > { %v2333_v37 = vmax.f32 %v2233_v25, %v2283_v33  ;;  %v2284_v38 = vmul.f32 0.2, %v2234_v34 }
  0xe8   : > { %v2332_v40 = vmax.f32 %v2232_v29, %v2282_v35 }
  0xe9   : > { %v2334_v41 = vmax.f32 %v2234_v34, %v2284_v38 }
  0xea   : > { %v2927_v42 = vpack.c.bf16 %v2332_v40, %v2331_v39 }
  0xeb   : > { %v2928_v43 = vpack.c.bf16 %v2334_v41, %v2333_v37  ;;  %v1260_v44 = vpop.f32.mrf.mxu0 }
  0xec   : > { %2581 = vst [vmem:[%s3534_s6] sm:$0xff] %v2927_v42  ;;  %v2179_v45 = vmul.f32 %v3518_v17, %v1260_v44  ;;  %v1301_v46 = vpop.f32.mrf.mxu1 }
  0xed   : > { %2582 = vst [vmem:[%s3534_s6 + $0x8] sm:$0xff] %v2928_v43  ;;  %v1262_v47 = vpop.f32.mrf.mxu0  ;;  %v2181_v48 = vmul.f32 %v3518_v17, %v1301_v46 }
  0xee   : > { %v2235_v49 = vadd.f32 %v3520_v19, %v2179_v45  ;;  %v2180_v50 = vmul.f32 %v3518_v17, %v1262_v47  ;;  %v1303_v51 = vpop.f32.mrf.mxu1 }
  0xef   : > { %v1264_v52 = vpop.f32.mrf.mxu0  ;;  %v2237_v53 = vadd.f32 %v3520_v19, %v2181_v48  ;;  %v2182_v54 = vmul.f32 %v3518_v17, %v1303_v51 }
  0xf0   : > { %v2285_v55 = vmul.f32 0.2, %v2235_v49  ;;  %v2236_v56 = vadd.f32 %v3520_v19, %v2180_v50  ;;  %v1305_v57 = vpop.f32.mrf.mxu1 }
  0xf1   : > { %v1265_v58 = vpop.f32.mrf.mxu0  ;;  %v2287_v59 = vmul.f32 0.2, %v2237_v53  ;;  %v2238_v60 = vadd.f32 %v3520_v19, %v2182_v54 }
  0xf2   : > { %v2286_v61 = vmul.f32 0.2, %v2236_v56  ;;  %v1306_v62 = vpop.f32.mrf.mxu1  ;;  %v2335_v2 = vmax.f32 %v2235_v49, %v2285_v55 }
  0xf3   : > { %v2337_v63 = vmax.f32 %v2237_v53, %v2287_v59  ;;  %v2288_v1 = vmul.f32 0.2, %v2238_v60 }
  0xf4   : > { %v2336_v3 = vmax.f32 %v2236_v56, %v2286_v61 }
  0xf5   : > { %v2338_v4 = vmax.f32 %v2238_v60, %v2288_v1 }
  0xf6   : > { %v2929_v5 = vpack.c.bf16 %v2336_v3, %v2335_v2 }
  0xf7   : > { %v2930_v6 = vpack.c.bf16 %v2338_v4, %v2337_v63  ;;  %v1342_v7 = vpop.f32.mrf.mxu0 }
  0xf8   : > { %2583 = vst [vmem:[%s3534_s6 + $0x10] sm:$0xff] %v2929_v5  ;;  %v2183_v8 = vmul.f32 %v3518_v17, %v1342_v7  ;;  %v1383_v9 = vpop.f32.mrf.mxu1 }
  0xf9   : > { %2584 = vst [vmem:[%s3534_s6 + $0x18] sm:$0xff] %v2930_v6  ;;  %v1344_v10 = vpop.f32.mrf.mxu0  ;;  %v2185_v11 = vmul.f32 %v3518_v17, %v1383_v9 }
  0xfa   : > { %v2239_v12 = vadd.f32 %v3520_v19, %v2183_v8  ;;  %v2184_v13 = vmul.f32 %v3518_v17, %v1344_v10  ;;  %v1385_v14 = vpop.f32.mrf.mxu1 }
  0xfb   : > { %v1346_v15 = vpop.f32.mrf.mxu0  ;;  %v2241_v16 = vadd.f32 %v3520_v19, %v2185_v11  ;;  %v2186_v18 = vmul.f32 %v3518_v17, %v1385_v14 }
  0xfc   : > { %v2289_v20 = vmul.f32 0.2, %v2239_v12  ;;  %v2240_v21 = vadd.f32 %v3520_v19, %v2184_v13  ;;  %v1387_v22 = vpop.f32.mrf.mxu1 }
  0xfd   : > { %v1347_v23 = vpop.f32.mrf.mxu0  ;;  %v2291_v0 = vmul.f32 0.2, %v2241_v16  ;;  %v2242_v24 = vadd.f32 %v3520_v19, %v2186_v18 }
  0xfe   : > { %v2290_v26 = vmul.f32 0.2, %v2240_v21  ;;  %v1388_v27 = vpop.f32.mrf.mxu1  ;;  %v2339_v29 = vmax.f32 %v2239_v12, %v2289_v20 }
  0xff   : > { %v2341_v25 = vmax.f32 %v2241_v16, %v2291_v0  ;;  %v2292_v28 = vmul.f32 0.2, %v2242_v24 }
 0x100   : > { %v2340_v30 = vmax.f32 %v2240_v21, %v2290_v26 }
 0x101   : > { %v2342_v31 = vmax.f32 %v2242_v24, %v2292_v28 }
 0x102   : > { %v2931_v32 = vpack.c.bf16 %v2340_v30, %v2339_v29 }
 0x103   : > { %v2932_v33 = vpack.c.bf16 %v2342_v31, %v2341_v25  ;;  %v1424_v34 = vpop.f32.mrf.mxu0 }
 0x104   : > { %2585 = vst [vmem:[%s3534_s6 + $0x20] sm:$0xff] %v2931_v32  ;;  %v2187_v35 = vmul.f32 %v3518_v17, %v1424_v34  ;;  %v1465_v36 = vpop.f32.mrf.mxu1 }
 0x105   : > { %2586 = vst [vmem:[%s3534_s6 + $0x28] sm:$0xff] %v2932_v33  ;;  %v1426_v37 = vpop.f32.mrf.mxu0  ;;  %v2189_v38 = vmul.f32 %v3518_v17, %v1465_v36 }
 0x106   : > { %v2243_v39 = vadd.f32 %v3520_v19, %v2187_v35  ;;  %v2188_v40 = vmul.f32 %v3518_v17, %v1426_v37  ;;  %v1467_v41 = vpop.f32.mrf.mxu1 }
 0x107   : > { %v1428_v42 = vpop.f32.mrf.mxu0  ;;  %v2245_v43 = vadd.f32 %v3520_v19, %v2189_v38  ;;  %v2190_v44 = vmul.f32 %v3518_v17, %v1467_v41 }
 0x108   : > { %v2293_v45 = vmul.f32 0.2, %v2243_v39  ;;  %v2244_v46 = vadd.f32 %v3520_v19, %v2188_v40  ;;  %v1469_v47 = vpop.f32.mrf.mxu1 }
 0x109   : > { %v1429_v48 = vpop.f32.mrf.mxu0  ;;  %v2295_v49 = vmul.f32 0.2, %v2245_v43  ;;  %v2246_v50 = vadd.f32 %v3520_v19, %v2190_v44 }
 0x10a   : > { %v2294_v51 = vmul.f32 0.2, %v2244_v46  ;;  %v1470_v52 = vpop.f32.mrf.mxu1  ;;  %v2343_v55 = vmax.f32 %v2243_v39, %v2293_v45 }
 0x10b   : > { %v2345_v53 = vmax.f32 %v2245_v43, %v2295_v49  ;;  %v2296_v54 = vmul.f32 0.2, %v2246_v50 }
 0x10c   : > { %v2344_v56 = vmax.f32 %v2244_v46, %v2294_v51 }
 0x10d   : > { %v2346_v57 = vmax.f32 %v2246_v50, %v2296_v54 }
 0x10e   : > { %v2933_v58 = vpack.c.bf16 %v2344_v56, %v2343_v55 }
 0x10f   : > { %v2934_v59 = vpack.c.bf16 %v2346_v57, %v2345_v53  ;;  %v1506_v60 = vpop.f32.mrf.mxu0 }
 0x110   : > { %2587 = vst [vmem:[%s3534_s6 + $0x30] sm:$0xff] %v2933_v58  ;;  %v2191_v61 = vmul.f32 %v3518_v17, %v1506_v60  ;;  %v1547_v62 = vpop.f32.mrf.mxu1 }
 0x111   : > { %2588 = vst [vmem:[%s3534_s6 + $0x38] sm:$0xff] %v2934_v59  ;;  %v1508_v63 = vpop.f32.mrf.mxu0  ;;  %v2193_v1 = vmul.f32 %v3518_v17, %v1547_v62 }
 0x112   : > { %v2247_v2 = vadd.f32 %v3520_v19, %v2191_v61  ;;  %v2192_v3 = vmul.f32 %v3518_v17, %v1508_v63  ;;  %v1549_v4 = vpop.f32.mrf.mxu1 }
 0x113   : > { %v1510_v5 = vpop.f32.mrf.mxu0  ;;  %v2249_v6 = vadd.f32 %v3520_v19, %v2193_v1  ;;  %v2194_v7 = vmul.f32 %v3518_v17, %v1549_v4 }
 0x114   : > { %v2297_v8 = vmul.f32 0.2, %v2247_v2  ;;  %v2248_v9 = vadd.f32 %v3520_v19, %v2192_v3  ;;  %v1551_v10 = vpop.f32.mrf.mxu1 }
 0x115   : > { %v1511_v11 = vpop.f32.mrf.mxu0  ;;  %v2299_v12 = vmul.f32 0.2, %v2249_v6  ;;  %v2250_v13 = vadd.f32 %v3520_v19, %v2194_v7 }
 0x116   : > { %v2298_v14 = vmul.f32 0.2, %v2248_v9  ;;  %v1552_v15 = vpop.f32.mrf.mxu1  ;;  %v2347_v20 = vmax.f32 %v2247_v2, %v2297_v8 }
 0x117   : > { %v2349_v16 = vmax.f32 %v2249_v6, %v2299_v12  ;;  %v2300_v18 = vmul.f32 0.2, %v2250_v13 }
 0x118   : > { %v2348_v21 = vmax.f32 %v2248_v9, %v2298_v14 }
 0x119   : > { %v2350_v22 = vmax.f32 %v2250_v13, %v2300_v18 }
 0x11a   : > { %v2935_v23 = vpack.c.bf16 %v2348_v21, %v2347_v20 }
 0x11b   : > { %v2936_v0 = vpack.c.bf16 %v2350_v22, %v2349_v16  ;;  %v1588_v24 = vpop.f32.mrf.mxu0 }
 0x11c   : > { %2589 = vst [vmem:[%s3534_s6 + $0x40] sm:$0xff] %v2935_v23  ;;  %v2195_v26 = vmul.f32 %v3518_v17, %v1588_v24  ;;  %v1629_v27 = vpop.f32.mrf.mxu1 }
 0x11d   : > { %2590 = vst [vmem:[%s3534_s6 + $0x48] sm:$0xff] %v2936_v0  ;;  %v1590_v25 = vpop.f32.mrf.mxu0  ;;  %v2197_v28 = vmul.f32 %v3518_v17, %v1629_v27 }
 0x11e   : > { %v2251_v29 = vadd.f32 %v3520_v19, %v2195_v26  ;;  %v2196_v30 = vmul.f32 %v3518_v17, %v1590_v25  ;;  %v1631_v31 = vpop.f32.mrf.mxu1 }
 0x11f   : > { %v1592_v32 = vpop.f32.mrf.mxu0  ;;  %v2253_v33 = vadd.f32 %v3520_v19, %v2197_v28  ;;  %v2198_v34 = vmul.f32 %v3518_v17, %v1631_v31 }
 0x120   : > { %v2301_v35 = vmul.f32 0.2, %v2251_v29  ;;  %v2252_v36 = vadd.f32 %v3520_v19, %v2196_v30  ;;  %v1633_v37 = vpop.f32.mrf.mxu1 }
 0x121   : > { %v1593_v38 = vpop.f32.mrf.mxu0  ;;  %v2303_v39 = vmul.f32 0.2, %v2253_v33  ;;  %v2254_v40 = vadd.f32 %v3520_v19, %v2198_v34 }
 0x122   : > { %v2302_v41 = vmul.f32 0.2, %v2252_v36  ;;  %v1634_v42 = vpop.f32.mrf.mxu1  ;;  %v2351_v45 = vmax.f32 %v2251_v29, %v2301_v35 }
 0x123   : > { %v2353_v43 = vmax.f32 %v2253_v33, %v2303_v39  ;;  %v2304_v44 = vmul.f32 0.2, %v2254_v40 }
 0x124   : > { %v2352_v46 = vmax.f32 %v2252_v36, %v2302_v41 }
 0x125   : > { %v2354_v47 = vmax.f32 %v2254_v40, %v2304_v44 }
 0x126   : > { %v2937_v48 = vpack.c.bf16 %v2352_v46, %v2351_v45 }
 0x127   : > { %v2938_v49 = vpack.c.bf16 %v2354_v47, %v2353_v43  ;;  %v1670_v50 = vpop.f32.mrf.mxu0 }
 0x128   : > { %2591 = vst [vmem:[%s3534_s6 + $0x50] sm:$0xff] %v2937_v48  ;;  %v2199_v51 = vmul.f32 %v3518_v17, %v1670_v50  ;;  %v1711_v52 = vpop.f32.mrf.mxu1 }
 0x129   : > { %2592 = vst [vmem:[%s3534_s6 + $0x58] sm:$0xff] %v2938_v49  ;;  %v1672_v53 = vpop.f32.mrf.mxu0  ;;  %v2201_v54 = vmul.f32 %v3518_v17, %v1711_v52 }
 0x12a   : > { %v2255_v55 = vadd.f32 %v3520_v19, %v2199_v51  ;;  %v2200_v56 = vmul.f32 %v3518_v17, %v1672_v53  ;;  %v1713_v57 = vpop.f32.mrf.mxu1 }
 0x12b   : > { %v1674_v58 = vpop.f32.mrf.mxu0  ;;  %v2257_v59 = vadd.f32 %v3520_v19, %v2201_v54  ;;  %v2202_v60 = vmul.f32 %v3518_v17, %v1713_v57 }
 0x12c   : > { %v2305_v61 = vmul.f32 0.2, %v2255_v55  ;;  %v2256_v62 = vadd.f32 %v3520_v19, %v2200_v56  ;;  %v1715_v63 = vpop.f32.mrf.mxu1 }
 0x12d   : > { %v1675_v1 = vpop.f32.mrf.mxu0  ;;  %v2307_v2 = vmul.f32 0.2, %v2257_v59  ;;  %v2258_v3 = vadd.f32 %v3520_v19, %v2202_v60 }
 0x12e   : > { %v2306_v4 = vmul.f32 0.2, %v2256_v62  ;;  %v1716_v5 = vpop.f32.mrf.mxu1  ;;  %v2355_v8 = vmax.f32 %v2255_v55, %v2305_v61 }
 0x12f   : > { %v2357_v6 = vmax.f32 %v2257_v59, %v2307_v2  ;;  %v2308_v7 = vmul.f32 0.2, %v2258_v3 }
 0x130   : > { %v2356_v9 = vmax.f32 %v2256_v62, %v2306_v4 }
 0x131   : > { %v2358_v10 = vmax.f32 %v2258_v3, %v2308_v7 }
 0x132   : > { %v2939_v11 = vpack.c.bf16 %v2356_v9, %v2355_v8 }
 0x133   : > { %v2940_v12 = vpack.c.bf16 %v2358_v10, %v2357_v6  ;;  %v1752_v13 = vpop.f32.mrf.mxu0 }
 0x134   : > { %2593 = vst [vmem:[%s3534_s6 + $0x60] sm:$0xff] %v2939_v11  ;;  %v2203_v14 = vmul.f32 %v3518_v17, %v1752_v13  ;;  %v1793_v15 = vpop.f32.mrf.mxu1 }
 0x135   : > { %2594 = vst [vmem:[%s3534_s6 + $0x68] sm:$0xff] %v2940_v12  ;;  %v1754_v16 = vpop.f32.mrf.mxu0  ;;  %v2205_v18 = vmul.f32 %v3518_v17, %v1793_v15 }
 0x136   : > { %v2259_v20 = vadd.f32 %v3520_v19, %v2203_v14  ;;  %v2204_v21 = vmul.f32 %v3518_v17, %v1754_v16  ;;  %v1795_v22 = vpop.f32.mrf.mxu1 }
 0x137   : > { %v1756_v23 = vpop.f32.mrf.mxu0  ;;  %v2261_v0 = vadd.f32 %v3520_v19, %v2205_v18  ;;  %v2206_v24 = vmul.f32 %v3518_v17, %v1795_v22 }
 0x138   : > { %v2309_v26 = vmul.f32 0.2, %v2259_v20  ;;  %v2260_v27 = vadd.f32 %v3520_v19, %v2204_v21  ;;  %v1797_v25 = vpop.f32.mrf.mxu1 }
 0x139   : > { %v1757_v28 = vpop.f32.mrf.mxu0  ;;  %v2311_v29 = vmul.f32 0.2, %v2261_v0  ;;  %v2262_v30 = vadd.f32 %v3520_v19, %v2206_v24 }
 0x13a   : > { %v2310_v31 = vmul.f32 0.2, %v2260_v27  ;;  %v1798_v32 = vpop.f32.mrf.mxu1  ;;  %v2359_v35 = vmax.f32 %v2259_v20, %v2309_v26 }
 0x13b   : > { %v2361_v33 = vmax.f32 %v2261_v0, %v2311_v29  ;;  %v2312_v34 = vmul.f32 0.2, %v2262_v30 }
 0x13c   : > { %v2360_v36 = vmax.f32 %v2260_v27, %v2310_v31 }
 0x13d   : > { %v2362_v37 = vmax.f32 %v2262_v30, %v2312_v34 }
 0x13e   : > { %v2941_v38 = vpack.c.bf16 %v2360_v36, %v2359_v35 }
 0x13f   : > { %v2942_v39 = vpack.c.bf16 %v2362_v37, %v2361_v33  ;;  %v1834_v40 = vpop.f32.mrf.mxu0 }
 0x140   : > { %2595 = vst [vmem:[%s3534_s6 + $0x70] sm:$0xff] %v2941_v38  ;;  %v2207_v41 = vmul.f32 %v3518_v17, %v1834_v40  ;;  %v1875_v42 = vpop.f32.mrf.mxu1 }
 0x141   : > { %2596 = vst [vmem:[%s3534_s6 + $0x78] sm:$0xff] %v2942_v39  ;;  %v1836_v43 = vpop.f32.mrf.mxu0  ;;  %v2209_v44 = vmul.f32 %v3518_v17, %v1875_v42 }
 0x142   : > { %v2263_v45 = vadd.f32 %v3520_v19, %v2207_v41  ;;  %v2208_v46 = vmul.f32 %v3518_v17, %v1836_v43  ;;  %v1877_v47 = vpop.f32.mrf.mxu1 }
 0x143   : > { %v1838_v48 = vpop.f32.mrf.mxu0  ;;  %v2265_v49 = vadd.f32 %v3520_v19, %v2209_v44  ;;  %v2210_v50 = vmul.f32 %v3518_v17, %v1877_v47 }
 0x144   : > { %v2313_v51 = vmul.f32 0.2, %v2263_v45  ;;  %v2264_v52 = vadd.f32 %v3520_v19, %v2208_v46  ;;  %v1879_v53 = vpop.f32.mrf.mxu1 }
 0x145   : > { %v1839_v54 = vpop.f32.mrf.mxu0  ;;  %v2315_v55 = vmul.f32 0.2, %v2265_v49  ;;  %v2266_v56 = vadd.f32 %v3520_v19, %v2210_v50 }
 0x146   : > { %v2314_v57 = vmul.f32 0.2, %v2264_v52  ;;  %v1880_v58 = vpop.f32.mrf.mxu1  ;;  %v2363_v61 = vmax.f32 %v2263_v45, %v2313_v51 }
 0x147   : > { %v2365_v59 = vmax.f32 %v2265_v49, %v2315_v55  ;;  %v2316_v60 = vmul.f32 0.2, %v2266_v56 }
 0x148   : > { %v2364_v62 = vmax.f32 %v2264_v52, %v2314_v57 }
 0x149   : > { %v2366_v63 = vmax.f32 %v2266_v56, %v2316_v60 }
 0x14a   : > { %v2943_v1 = vpack.c.bf16 %v2364_v62, %v2363_v61 }
 0x14b   : > { %v2944_v2 = vpack.c.bf16 %v2366_v63, %v2365_v59  ;;  %v1916_v3 = vpop.f32.mrf.mxu0 }
 0x14c   : > { %2597 = vst [vmem:[%s3534_s6 + $0x80] sm:$0xff] %v2943_v1  ;;  %v2211_v4 = vmul.f32 %v3518_v17, %v1916_v3  ;;  %v1957_v5 = vpop.f32.mrf.mxu1 }
 0x14d   : > { %2598 = vst [vmem:[%s3534_s6 + $0x88] sm:$0xff] %v2944_v2  ;;  %v1918_v6 = vpop.f32.mrf.mxu0  ;;  %v2213_v7 = vmul.f32 %v3518_v17, %v1957_v5 }
 0x14e   : > { %v2267_v8 = vadd.f32 %v3520_v19, %v2211_v4  ;;  %v2212_v9 = vmul.f32 %v3518_v17, %v1918_v6  ;;  %v1959_v10 = vpop.f32.mrf.mxu1 }
 0x14f   : > { %v1920_v11 = vpop.f32.mrf.mxu0  ;;  %v2269_v12 = vadd.f32 %v3520_v19, %v2213_v7  ;;  %v2214_v13 = vmul.f32 %v3518_v17, %v1959_v10 }
 0x150   : > { %v2317_v14 = vmul.f32 0.2, %v2267_v8  ;;  %v2268_v15 = vadd.f32 %v3520_v19, %v2212_v9  ;;  %v1961_v16 = vpop.f32.mrf.mxu1 }
 0x151   : > { %v1921_v18 = vpop.f32.mrf.mxu0  ;;  %v2319_v20 = vmul.f32 0.2, %v2269_v12  ;;  %v2270_v21 = vadd.f32 %v3520_v19, %v2214_v13 }
 0x152   : > { %v2318_v22 = vmul.f32 0.2, %v2268_v15  ;;  %v1962_v23 = vpop.f32.mrf.mxu1  ;;  %v2367_v26 = vmax.f32 %v2267_v8, %v2317_v14 }
 0x153   : > { %v2369_v0 = vmax.f32 %v2269_v12, %v2319_v20  ;;  %v2320_v24 = vmul.f32 0.2, %v2270_v21 }
 0x154   : > { %v2368_v27 = vmax.f32 %v2268_v15, %v2318_v22 }
 0x155   : > { %v2370_v25 = vmax.f32 %v2270_v21, %v2320_v24 }
 0x156   : > { %v2945_v28 = vpack.c.bf16 %v2368_v27, %v2367_v26 }
 0x157   : > { %v2946_v29 = vpack.c.bf16 %v2370_v25, %v2369_v0  ;;  %v1998_v30 = vpop.f32.mrf.mxu0 }
 0x158   : > { %2599 = vst [vmem:[%s3534_s6 + $0x90] sm:$0xff] %v2945_v28  ;;  %v2215_v31 = vmul.f32 %v3518_v17, %v1998_v30  ;;  %v2039_v32 = vpop.f32.mrf.mxu1 }
 0x159   : > { %2600 = vst [vmem:[%s3534_s6 + $0x98] sm:$0xff] %v2946_v29  ;;  %v2000_v33 = vpop.f32.mrf.mxu0  ;;  %v2217_v34 = vmul.f32 %v3518_v17, %v2039_v32 }
 0x15a   : > { %v2271_v35 = vadd.f32 %v3520_v19, %v2215_v31  ;;  %v2216_v36 = vmul.f32 %v3518_v17, %v2000_v33  ;;  %v2041_v37 = vpop.f32.mrf.mxu1 }
 0x15b   : > { %v2002_v38 = vpop.f32.mrf.mxu0  ;;  %v2273_v39 = vadd.f32 %v3520_v19, %v2217_v34  ;;  %v2218_v40 = vmul.f32 %v3518_v17, %v2041_v37 }
 0x15c   : > { %v2321_v41 = vmul.f32 0.2, %v2271_v35  ;;  %v2272_v42 = vadd.f32 %v3520_v19, %v2216_v36  ;;  %v2043_v43 = vpop.f32.mrf.mxu1 }
 0x15d   : > { %v2003_v44 = vpop.f32.mrf.mxu0  ;;  %v2323_v45 = vmul.f32 0.2, %v2273_v39  ;;  %v2274_v46 = vadd.f32 %v3520_v19, %v2218_v40 }
 0x15e   : > { %v2322_v47 = vmul.f32 0.2, %v2272_v42  ;;  %v2044_v48 = vpop.f32.mrf.mxu1  ;;  %v2371_v51 = vmax.f32 %v2271_v35, %v2321_v41 }
 0x15f   : > { %v2373_v49 = vmax.f32 %v2273_v39, %v2323_v45  ;;  %v2324_v50 = vmul.f32 0.2, %v2274_v46 }
 0x160   : > { %v2372_v52 = vmax.f32 %v2272_v42, %v2322_v47 }
 0x161   : > { %v2374_v53 = vmax.f32 %v2274_v46, %v2324_v50 }
 0x162   : > { %v2947_v54 = vpack.c.bf16 %v2372_v52, %v2371_v51 }
 0x163   : > { %v2948_v55 = vpack.c.bf16 %v2374_v53, %v2373_v49  ;;  %v2080_v56 = vpop.f32.mrf.mxu0 }
 0x164   : > { %2601 = vst [vmem:[%s3534_s6 + $0xa0] sm:$0xff] %v2947_v54  ;;  %v2219_v57 = vmul.f32 %v3518_v17, %v2080_v56  ;;  %v2121_v58 = vpop.f32.mrf.mxu1 }
 0x165   : > { %2602 = vst [vmem:[%s3534_s6 + $0xa8] sm:$0xff] %v2948_v55  ;;  %v2082_v59 = vpop.f32.mrf.mxu0  ;;  %v2221_v60 = vmul.f32 %v3518_v17, %v2121_v58 }
 0x166   : > { %v2275_v61 = vadd.f32 %v3520_v19, %v2219_v57  ;;  %v2220_v62 = vmul.f32 %v3518_v17, %v2082_v59  ;;  %v2123_v63 = vpop.f32.mrf.mxu1 }
 0x167   : > { %v2084_v1 = vpop.f32.mrf.mxu0  ;;  %v2277_v2 = vadd.f32 %v3520_v19, %v2221_v60  ;;  %v2222_v3 = vmul.f32 %v3518_v17, %v2123_v63 }
 0x168   : > { %v2325_v4 = vmul.f32 0.2, %v2275_v61  ;;  %v2276_v5 = vadd.f32 %v3520_v19, %v2220_v62  ;;  %v2125_v6 = vpop.f32.mrf.mxu1 }
 0x169   : > { %v2085_v7 = vpop.f32.mrf.mxu0  ;;  %v2327_v8 = vmul.f32 0.2, %v2277_v2  ;;  %v2278_v9 = vadd.f32 %v3520_v19, %v2222_v3 }
 0x16a   : > { %v2326_v10 = vmul.f32 0.2, %v2276_v5  ;;  %v2126_v11 = vpop.f32.mrf.mxu1  ;;  %v2375_v14 = vmax.f32 %v2275_v61, %v2325_v4 }
 0x16b   : > { %v2377_v12 = vmax.f32 %v2277_v2, %v2327_v8  ;;  %v2328_v13 = vmul.f32 0.2, %v2278_v9 }
 0x16c   : > { %v2376_v15 = vmax.f32 %v2276_v5, %v2326_v10 }
 0x16d   : > { %v2378_v16 = vmax.f32 %v2278_v9, %v2328_v13 }
 0x16e   : > { %v2949_v18 = vpack.c.bf16 %v2376_v15, %v2375_v14 }
 0x16f   : > { %v2950_v20 = vpack.c.bf16 %v2378_v16, %v2377_v12  ;;  %v2162_v21 = vpop.f32.mrf.mxu0 }
 0x170   : > { %2603 = vst [vmem:[%s3534_s6 + $0xb0] sm:$0xff] %v2949_v18  ;;  %v2223_v22 = vmul.f32 %v3518_v17, %v2162_v21 }
 0x171   : > { %2604 = vst [vmem:[%s3534_s6 + $0xb8] sm:$0xff] %v2950_v20  ;;  %v2164_v23 = vpop.f32.mrf.mxu0 }
 0x172   : > { %v2279_v0 = vadd.f32 %v3520_v19, %v2223_v22  ;;  %v2224_v24 = vmul.f32 %v3518_v17, %v2164_v23 }
 0x173   : > { %v2166_v26 = vpop.f32.mrf.mxu0 }
 0x174   : > { %v2329_v27 = vmul.f32 0.2, %v2279_v0  ;;  %v2280_v25 = vadd.f32 %v3520_v19, %v2224_v24 }
 0x175   : > { %v2167_v28 = vpop.f32.mrf.mxu0 }
 0x176   : > { %v2330_v29 = vmul.f32 0.2, %v2280_v25  ;;  %v2379_v30 = vmax.f32 %v2279_v0, %v2329_v27 }
 0x178   : > { %v2380_v31 = vmax.f32 %v2280_v25, %v2330_v29 }
 0x17a   : > { %v2951_v32 = vpack.c.bf16 %v2380_v31, %v2379_v30 }
 0x17c   : > { %2605 = vst [vmem:[%s3534_s6 + $0xc0] sm:$0xff] %v2951_v32 }
 0x17d PF: > { %s14_s17 = sadd.s32 1, %s3202_s17   ;;  %s3667_s15 = smov %s3198_s16 }
 0x17e   : > { %p11_p5 = scmp.ge.s32.totalorder %s14_s17, 4   ;;  %s3668_s16 = smov %s3670_s18 }
 0x180   :  { %13 = sbr.rel (!%p11_p5) target bundleno = 2 (0x2), region = 66 }

// kernel: forward.14
= control target key start
LH: loop header
LB: loop body
LE: loop exit
PB: predicated region body
PF: predicated region fallthrough
CT: control target
= control target key end

     0   :  { %s1766_s15 = smov 0   ;;  %s1768_s16 = smov 0   ;;  %s1973_s0 = inlined_call_operand.vmem [shape: bf16[2,128,1664], index: 0, kind: input, shape index: {}]   ;;  %s1974_s1 = inlined_call_operand.vmem [shape: bf16[8,128], index: 1, kind: input, shape index: {}]   ;;  %s1975_s2 = inlined_call_operand.vmem [shape: f32[8,1], index: 2, kind: input, shape index: {}]   ;;  %s1976_s3 = inlined_call_operand.vmem [shape: f32[8,1], index: 3, kind: input, shape index: {}]   ;;  %s1977_s4 = inlined_call_operand.vmem [shape: bf16[2,8,1664], index: 4, kind: output, shape index: {}]  }
   0x1   :  { %s1770_s17 = smov 0  }
   0x2 LB: > { %s26_s18 = sadd.s32 1, %s1732_s16  ;;  %p1380_p0 = scmp.ge.s32.totalorder %s1736_s17, 1  ;;  %s1736_s17 = sphi %s1770_s17, %s14_s17   ;;  %s1732_s16 = sphi %s1768_s16, %s1979_s16   ;;  %s1728_s15 = sphi %s1766_s15, %s1978_s15  }
   0x3   : > { %p28_p1 = scmp.ge.s32.totalorder %s26_s18, 2  ;;  %p183_p2 = scmp.lt.s32.totalorder %s1736_s17, 3 }
   0x5   : > { %s1981_s18 = smov (%p28_p1, %s26_s18), 0  ;;  %p184_p3 = pnand %p1380_p0, %p183_p2 }
   0x6   : > { %p218_p4 = scmp.lt.s32.totalorder (!%p184_p3), %s1728_s15, 1 }
   0x7   : > { %187 = sbr.rel (%p184_p3) target bundleno = 349 (0x15d), region = 36 }
   0xc   : > { %v1165_v0 = vld [vmem:[%s1975_s2] sm:$0xff]  ;;  %v1738_v1 = vmov 0   ;;  %s1983_s15 = smov (!%p218_p4, %s1728_s15), 1  ;;  %vm1740_vm0 = vmmov 0  }
   0xd   : > { %911 = vmatprep.mubr.bf16.mxu0 %v1738_v1  ;;  %952 = vmatprep.mubr.bf16.mxu1 %v1738_v1  ;;  %s1532_s21 = smul.u32 832, %s1983_s15  ;;  %v1184_v2 = vld [vmem:[%s1976_s3] sm:$0xff] }
   0xe   : > { %1561 = vset.pattern.permute.xlu0 %v1738_v1  ;;  %v1834_v33 = vld [vmem:[%s1974_s1] sm:$0xf]  ;;  %s1533_s29 = smul.u32 52, %s1983_s15 }
   0xf   : > { %1168 = vperm.xlu0 %1561, %v1165_v0   ;;  %s1799_s26 = scalar_lea.vmem %s1973_s0, %s1532_s21 }
  0x10   : > { %v1562_v3 = vld [vmem:[%s1799_s26 + $0x2dc] ss:$52 sps:$4 sm:$0xff]   ;;  %v1564_v4 = vld [vmem:[%s1799_s26 + $0x2d8] ss:$52 sps:$4 sm:$0xff]   ;;  %v1565_v5 = vld [vmem:[%s1799_s26 + $0x274] ss:$52 sps:$4 sm:$0xff]   ;;  %s1933_s6 = scalar_lea.vmem %s1977_s4, %s1533_s29 }
  0x11   : > { %879 = vmatprep.subr.bf16.mxu0 %v1562_v3  ;;  %v1567_v6 = vld [vmem:[%s1799_s26 + $0x270] ss:$52 sps:$4 sm:$0xff]   ;;  %v1568_v7 = vld [vmem:[%s1799_s26 + $0x20c] ss:$52 sps:$4 sm:$0xff]   ;;  %v1570_v8 = vld [vmem:[%s1799_s26 + $0x208] ss:$52 sps:$4 sm:$0xff]  }
  0x12   : > { %880 = vmatpush1.bf16.msra.mxu0 %v1564_v4  ;;  %v1571_v9 = vld [vmem:[%s1799_s26 + $0x1a4] ss:$52 sps:$4 sm:$0xff]   ;;  %v1585_v11 = vld [vmem:[%s1799_s26 + $0x2e0] ss:$52 sps:$4 sm:$0xff]   ;;  %v1574_v13 = vld [vmem:[%s1799_s26 + $0x13c] ss:$52 sps:$4 sm:$0xff]  }
  0x13   : > { %1187 = vperm.xlu0 %1561, %v1184_v2   ;;  %881 = vmatprep.subr.bf16.mxu0 %v1565_v5  ;;  %v1582_v10 = vld [vmem:[%s1799_s26 + $0x2e4] ss:$52 sps:$4 sm:$0xff]   ;;  %v1573_v12 = vld [vmem:[%s1799_s26 + $0x1a0] ss:$52 sps:$4 sm:$0xff]   ;;  %v1588_v14 = vld [vmem:[%s1799_s26 + $0x27c] ss:$52 sps:$4 sm:$0xff]  }
  0x14   : > { %920 = vmatprep.subr.bf16.mxu1 %v1582_v10  ;;  %v1591_v15 = vld [vmem:[%s1799_s26 + $0x278] ss:$52 sps:$4 sm:$0xff]   ;;  %v1592_v16 = vld [vmem:[%s1799_s26 + $0x214] ss:$52 sps:$4 sm:$0xff]   ;;  %v1597_v19 = vld [vmem:[%s1799_s26 + $0x210] ss:$52 sps:$4 sm:$0xff]  }
  0x15   : > { %921 = vmatpush1.bf16.msra.mxu1 %v1585_v11  ;;  %v1576_v17 = vld [vmem:[%s1799_s26 + $0x138] ss:$52 sps:$4 sm:$0xff]   ;;  %v1577_v18 = vld [vmem:[%s1799_s26 + $0xd4] ss:$52 sps:$4 sm:$0xff]   ;;  %v1579_v21 = vld [vmem:[%s1799_s26 + $0xd0] ss:$52 sps:$4 sm:$0xff]  }
  0x16   : > { %882 = vmatpush1.bf16.msra.mxu0 %v1567_v6  ;;  %922 = vmatprep.subr.bf16.mxu1 %v1588_v14  ;;  %v1598_v20 = vld [vmem:[%s1799_s26 + $0x1ac] ss:$52 sps:$4 sm:$0xff]   ;;  %v1603_v23 = vld [vmem:[%s1799_s26 + $0x1a8] ss:$52 sps:$4 sm:$0xff]   ;;  %v1604_v24 = vld [vmem:[%s1799_s26 + $0x144] ss:$52 sps:$4 sm:$0xff]  }
  0x17   : > { %883 = vmatprep.subr.bf16.mxu0 %v1568_v7  ;;  %v1580_v22 = vld [vmem:[%s1799_s26 + $0x6c] ss:$52 sps:$4 sm:$0xff]   ;;  %v1584_v25 = vld [vmem:[%s1799_s26 + $0x68] ss:$52 sps:$4 sm:$0xff]   ;;  %v1586_v26 = vld [vmem:[%s1799_s26 + $0x4] ss:$52 sps:$4 sm:$0xff]  }
  0x18   : > { %v1609_v27 = vld [vmem:[%s1799_s26 + $0x140] ss:$52 sps:$4 sm:$0xff]   ;;  %v1610_v28 = vld [vmem:[%s1799_s26 + $0xdc] ss:$52 sps:$4 sm:$0xff]   ;;  %v1615_v31 = vld [vmem:[%s1799_s26 + $0xd8] ss:$52 sps:$4 sm:$0xff]  }
  0x19   : > { %923 = vmatpush1.bf16.msra.mxu1 %v1591_v15  ;;  %v1590_v29 = vld [vmem:[%s1799_s26] ss:$52 sps:$4 sm:$0xff]   ;;  %v1594_v34 = vld [vmem:[%s1799_s26 + $0x2e8] ss:$52 sps:$4 sm:$0xff]   ;;  %v1602_v35 = vld [vmem:[%s1799_s26 + $0x284] ss:$52 sps:$4 sm:$0xff]  }
  0x1a   : > { %884 = vmatpush1.bf16.msra.mxu0 %v1570_v8  ;;  %924 = vmatprep.subr.bf16.mxu1 %v1592_v16  ;;  %v1596_v30 = vld [vmem:[%s1799_s26 + $0x2ec] ss:$52 sps:$4 sm:$0xff]   ;;  %v1616_v32 = vld [vmem:[%s1799_s26 + $0x74] ss:$52 sps:$4 sm:$0xff]   ;;  %v1621_v36 = vld [vmem:[%s1799_s26 + $0x70] ss:$52 sps:$4 sm:$0xff]  }
  0x1b   : > { %885 = vmatprep.subr.bf16.mxu0 %v1571_v9  ;;  %v1622_v37 = vld [vmem:[%s1799_s26 + $0xc] ss:$52 sps:$4 sm:$0xff]   ;;  %v1608_v39 = vld [vmem:[%s1799_s26 + $0x21c] ss:$52 sps:$4 sm:$0xff]   ;;  %v1633_v41 = vld [vmem:[%s1799_s26 + $0x2f4] ss:$52 sps:$4 sm:$0xff]  }
  0x1c   : > { %v1600_v38 = vld [vmem:[%s1799_s26 + $0x280] ss:$52 sps:$4 sm:$0xff]   ;;  %v1627_v40 = vld [vmem:[%s1799_s26 + $0x8] ss:$52 sps:$4 sm:$0xff]   ;;  %v1606_v42 = vld [vmem:[%s1799_s26 + $0x218] ss:$52 sps:$4 sm:$0xff]  }
  0x1d   : > { %925 = vmatpush1.bf16.msra.mxu1 %v1597_v19  ;;  %v1614_v43 = vld [vmem:[%s1799_s26 + $0x1b4] ss:$52 sps:$4 sm:$0xff]   ;;  %v1631_v44 = vld [vmem:[%s1799_s26 + $0x2f0] ss:$52 sps:$4 sm:$0xff]   ;;  %v1639_v45 = vld [vmem:[%s1799_s26 + $0x28c] ss:$52 sps:$4 sm:$0xff]  }
  0x1e   : > { %886 = vmatpush1.bf16.msra.mxu0 %v1573_v12  ;;  %926 = vmatprep.subr.bf16.mxu1 %v1598_v20  ;;  %v1612_v46 = vld [vmem:[%s1799_s26 + $0x1b0] ss:$52 sps:$4 sm:$0xff]   ;;  %v1620_v47 = vld [vmem:[%s1799_s26 + $0x14c] ss:$52 sps:$4 sm:$0xff]   ;;  %v1637_v48 = vld [vmem:[%s1799_s26 + $0x288] ss:$52 sps:$4 sm:$0xff]  }
  0x1f   : > { %887 = vmatprep.subr.bf16.mxu0 %v1574_v13  ;;  %v1642_v49 = vld [vmem:[%s1799_s26 + $0x224] ss:$52 sps:$4 sm:$0xff]   ;;  %v1618_v50 = vld [vmem:[%s1799_s26 + $0x148] ss:$52 sps:$4 sm:$0xff]   ;;  %v1640_v52 = vld [vmem:[%s1799_s26 + $0x220] ss:$52 sps:$4 sm:$0xff]  }
  0x20   : > { %v1626_v51 = vld [vmem:[%s1799_s26 + $0xe4] ss:$52 sps:$4 sm:$0xff]   ;;  %v1648_v53 = vld [vmem:[%s1799_s26 + $0x1bc] ss:$52 sps:$4 sm:$0xff]   ;;  %v1624_v54 = vld [vmem:[%s1799_s26 + $0xe0] ss:$52 sps:$4 sm:$0xff]  }
  0x21   : > { %927 = vmatpush1.bf16.msra.mxu1 %v1603_v23  ;;  %v1630_v55 = vld [vmem:[%s1799_s26 + $0x7c] ss:$52 sps:$4 sm:$0xff]   ;;  %v1646_v56 = vld [vmem:[%s1799_s26 + $0x1b8] ss:$52 sps:$4 sm:$0xff]   ;;  %v1654_v57 = vld [vmem:[%s1799_s26 + $0x154] ss:$52 sps:$4 sm:$0xff]  }
  0x22   : > { %888 = vmatpush1.bf16.msra.mxu0 %v1576_v17  ;;  %928 = vmatprep.subr.bf16.mxu1 %v1604_v24  ;;  %v1628_v58 = vld [vmem:[%s1799_s26 + $0x78] ss:$52 sps:$4 sm:$0xff]   ;;  %v1636_v59 = vld [vmem:[%s1799_s26 + $0x14] ss:$52 sps:$4 sm:$0xff]   ;;  %v1652_v60 = vld [vmem:[%s1799_s26 + $0x150] ss:$52 sps:$4 sm:$0xff]  }
  0x23   : > { %889 = vmatprep.subr.bf16.mxu0 %v1577_v18  ;;  %v1660_v61 = vld [vmem:[%s1799_s26 + $0xec] ss:$52 sps:$4 sm:$0xff]   ;;  %v1634_v62 = vld [vmem:[%s1799_s26 + $0x10] ss:$52 sps:$4 sm:$0xff]   ;;  %v1658_v0 = vld [vmem:[%s1799_s26 + $0xe8] ss:$52 sps:$4 sm:$0xff]  }
  0x24   : > { %v1645_v63 = vld [vmem:[%s1799_s26 + $0x2fc] ss:$52 sps:$4 sm:$0xff]   ;;  %v1666_v2 = vld [vmem:[%s1799_s26 + $0x84] ss:$52 sps:$4 sm:$0xff]   ;;  %v1651_v4 = vld [vmem:[%s1799_s26 + $0x294] ss:$52 sps:$4 sm:$0xff]  }
  0x25   : > { %929 = vmatpush1.bf16.msra.mxu1 %v1609_v27  ;;  %v1643_v3 = vld [vmem:[%s1799_s26 + $0x2f8] ss:$52 sps:$4 sm:$0xff]   ;;  %v1664_v5 = vld [vmem:[%s1799_s26 + $0x80] ss:$52 sps:$4 sm:$0xff]   ;;  %v1672_v6 = vld [vmem:[%s1799_s26 + $0x1c] ss:$52 sps:$4 sm:$0xff]  }
  0x26   : > { %890 = vmatpush1.bf16.msra.mxu0 %v1579_v21  ;;  %930 = vmatprep.subr.bf16.mxu1 %v1610_v28  ;;  %v1649_v7 = vld [vmem:[%s1799_s26 + $0x290] ss:$52 sps:$4 sm:$0xff]   ;;  %v1657_v8 = vld [vmem:[%s1799_s26 + $0x22c] ss:$52 sps:$4 sm:$0xff]   ;;  %v1655_v11 = vld [vmem:[%s1799_s26 + $0x228] ss:$52 sps:$4 sm:$0xff]  }
  0x27   : > { %891 = vmatprep.subr.bf16.mxu0 %v1580_v22  ;;  %v1670_v9 = vld [vmem:[%s1799_s26 + $0x18] ss:$52 sps:$4 sm:$0xff]   ;;  %v1679_v13 = vld [vmem:[%s1799_s26 + $0x300] ss:$52 sps:$4 sm:$0xff]   ;;  %v1687_v14 = vld [vmem:[%s1799_s26 + $0x29c] ss:$52 sps:$4 sm:$0xff]  }
  0x28   : > { %v1681_v10 = vld [vmem:[%s1799_s26 + $0x304] ss:$52 sps:$4 sm:$0xff]   ;;  %v1661_v15 = vld [vmem:[%s1799_s26 + $0x1c0] ss:$52 sps:$4 sm:$0xff]   ;;  %v1669_v16 = vld [vmem:[%s1799_s26 + $0x15c] ss:$52 sps:$4 sm:$0xff]  }
  0x29   : > { %931 = vmatpush1.bf16.msra.mxu1 %v1615_v31  ;;  %v1663_v12 = vld [vmem:[%s1799_s26 + $0x1c4] ss:$52 sps:$4 sm:$0xff]   ;;  %v1690_v18 = vld [vmem:[%s1799_s26 + $0x234] ss:$52 sps:$4 sm:$0xff]   ;;  %v1694_v22 = vld [vmem:[%s1799_s26 + $0x1cc] ss:$52 sps:$4 sm:$0xff]  }
  0x2a   : > { %892 = vmatpush1.bf16.msra.mxu0 %v1584_v25  ;;  %932 = vmatprep.subr.bf16.mxu1 %v1616_v32  ;;  %v1685_v17 = vld [vmem:[%s1799_s26 + $0x298] ss:$52 sps:$4 sm:$0xff]   ;;  %v1675_v20 = vld [vmem:[%s1799_s26 + $0xf4] ss:$52 sps:$4 sm:$0xff]   ;;  %v1688_v21 = vld [vmem:[%s1799_s26 + $0x230] ss:$52 sps:$4 sm:$0xff]  }
  0x2b   : > { %893 = vmatprep.subr.bf16.mxu0 %v1586_v26  ;;  %v1667_v19 = vld [vmem:[%s1799_s26 + $0x158] ss:$52 sps:$4 sm:$0xff]   ;;  %v1673_v23 = vld [vmem:[%s1799_s26 + $0xf0] ss:$52 sps:$4 sm:$0xff]   ;;  %v1676_v26 = vld [vmem:[%s1799_s26 + $0x88] ss:$52 sps:$4 sm:$0xff]  }
  0x2c   : > { %v1678_v24 = vld [vmem:[%s1799_s26 + $0x8c] ss:$52 sps:$4 sm:$0xff]   ;;  %v1698_v25 = vld [vmem:[%s1799_s26 + $0x164] ss:$52 sps:$4 sm:$0xff]   ;;  %v1706_v32 = vld [vmem:[%s1799_s26 + $0x94] ss:$52 sps:$4 sm:$0xff]  }
  0x2d   : > { %933 = vmatpush1.bf16.msra.mxu1 %v1621_v36  ;;  %v1684_v27 = vld [vmem:[%s1799_s26 + $0x24] ss:$52 sps:$4 sm:$0xff]   ;;  %v1696_v28 = vld [vmem:[%s1799_s26 + $0x160] ss:$52 sps:$4 sm:$0xff]  }
  0x2e   : > { %894 = vmatpush1.bf16.msra.mxu0 %v1590_v29  ;;  %934 = vmatprep.subr.bf16.mxu1 %v1622_v37  ;;  %v1702_v29 = vld [vmem:[%s1799_s26 + $0xfc] ss:$52 sps:$4 sm:$0xff]   ;;  %v1700_v31 = vld [vmem:[%s1799_s26 + $0xf8] ss:$52 sps:$4 sm:$0xff]  }
  0x2f   : > { %961 = vmatprep.subr.bf16.mxu0 %v1596_v30  ;;  %v1682_v30 = vld [vmem:[%s1799_s26 + $0x20] ss:$52 sps:$4 sm:$0xff]   ;;  %v1704_v36 = vld [vmem:[%s1799_s26 + $0x90] ss:$52 sps:$4 sm:$0xff]  }
  0x30   : > { %v1710_v37 = vld [vmem:[%s1799_s26 + $0x2c] ss:$52 sps:$4 sm:$0xff]  }
  0x31   : > { %912 = vmatmul.mubr.bf16.vlgmr.msra.gmra.mxu0 %v1834_v33  ;;  %935 = vmatpush1.bf16.msra.mxu1 %v1627_v40  ;;  %v1699_v40 = vld [vmem:[%s1799_s26 + $0x238] ss:$52 sps:$4 sm:$0xff]  }
  0x32   : > { %962 = vmatpush1.bf16.msra.mxu0 %v1594_v34  ;;  %993 = vmatprep.mubr.bf16.mxu0 %v1738_v1  ;;  %v1691_v34 = vld [vmem:[%s1799_s26 + $0x308] ss:$52 sps:$4 sm:$0xff]  }
  0x33   : > { %963 = vmatprep.subr.bf16.mxu0 %v1602_v35  ;;  %1002 = vmatprep.subr.bf16.mxu1 %v1633_v41  ;;  %v1739_v35 = vmov 0.0   ;;  %v1703_v41 = vld [vmem:[%s1799_s26 + $0x1d0] ss:$52 sps:$4 sm:$0xff]  }
  0x34   : > { %953 = vmatmul.mubr.bf16.vlgmr.msra.gmra.mxu1 %v1834_v33 }
  0x35   : > { %1003 = vmatpush1.bf16.msra.mxu1 %v1631_v44  ;;  %1034 = vmatprep.mubr.bf16.mxu1 %v1738_v1  ;;  %v1712_v44 = vld [vmem:[%s1799_s26 + $0x98] ss:$52 sps:$4 sm:$0xff]  }
  0x36   : > { %964 = vmatpush1.bf16.msra.mxu0 %v1600_v38  ;;  %1004 = vmatprep.subr.bf16.mxu1 %v1639_v45  ;;  %v1695_v38 = vld [vmem:[%s1799_s26 + $0x2a0] ss:$52 sps:$4 sm:$0xff]   ;;  %v1713_v45 = vld [vmem:[%s1799_s26 + $0x30] ss:$52 sps:$4 sm:$0xff]  }
  0x37   : > { %965 = vmatprep.subr.bf16.mxu0 %v1608_v39  ;;  %v1708_v39 = vld [vmem:[%s1799_s26 + $0x28] ss:$52 sps:$4 sm:$0xff]  }
  0x39   : > { %1005 = vmatpush1.bf16.msra.mxu1 %v1637_v48 }
  0x3a   : > { %966 = vmatpush1.bf16.msra.mxu0 %v1606_v42  ;;  %1006 = vmatprep.subr.bf16.mxu1 %v1642_v49  ;;  %v1707_v42 = vld [vmem:[%s1799_s26 + $0x168] ss:$52 sps:$4 sm:$0xff]  }
  0x3b   : > { %967 = vmatprep.subr.bf16.mxu0 %v1614_v43  ;;  %v1711_v43 = vld [vmem:[%s1799_s26 + $0x100] ss:$52 sps:$4 sm:$0xff]  }
  0x3d   : > { %1007 = vmatpush1.bf16.msra.mxu1 %v1640_v52 }
  0x3e   : > { %968 = vmatpush1.bf16.msra.mxu0 %v1612_v46  ;;  %1008 = vmatprep.subr.bf16.mxu1 %v1648_v53 }
  0x3f   : > { %969 = vmatprep.subr.bf16.mxu0 %v1620_v47 }
  0x41   : > { %1009 = vmatpush1.bf16.msra.mxu1 %v1646_v56 }
  0x42   : > { %970 = vmatpush1.bf16.msra.mxu0 %v1618_v50  ;;  %1010 = vmatprep.subr.bf16.mxu1 %v1654_v57 }
  0x43   : > { %971 = vmatprep.subr.bf16.mxu0 %v1626_v51 }
  0x45   : > { %1011 = vmatpush1.bf16.msra.mxu1 %v1652_v60 }
  0x46   : > { %972 = vmatpush1.bf16.msra.mxu0 %v1624_v54  ;;  %1012 = vmatprep.subr.bf16.mxu1 %v1660_v61 }
  0x47   : > { %973 = vmatprep.subr.bf16.mxu0 %v1630_v55 }
  0x49   : > { %1013 = vmatpush1.bf16.msra.mxu1 %v1658_v0 }
  0x4a   : > { %974 = vmatpush1.bf16.msra.mxu0 %v1628_v58  ;;  %1014 = vmatprep.subr.bf16.mxu1 %v1666_v2 }
  0x4b   : > { %975 = vmatprep.subr.bf16.mxu0 %v1636_v59 }
  0x4d   : > { %1015 = vmatpush1.bf16.msra.mxu1 %v1664_v5 }
  0x4e   : > { %976 = vmatpush1.bf16.msra.mxu0 %v1634_v62  ;;  %1016 = vmatprep.subr.bf16.mxu1 %v1672_v6 }
  0x4f   : > { %1043 = vmatprep.subr.bf16.mxu0 %v1645_v63 }
  0x51   : > { %994 = vmatmul.mubr.bf16.vlgmr.msra.gmra.mxu0 %v1834_v33  ;;  %1017 = vmatpush1.bf16.msra.mxu1 %v1670_v9 }
  0x52   : > { %1044 = vmatpush1.bf16.msra.mxu0 %v1643_v3  ;;  %1075 = vmatprep.mubr.bf16.mxu0 %v1738_v1 }
  0x53   : > { %1045 = vmatprep.subr.bf16.mxu0 %v1651_v4  ;;  %1084 = vmatprep.subr.bf16.mxu1 %v1681_v10 }
  0x54   : > { %1035 = vmatmul.mubr.bf16.vlgmr.msra.gmra.mxu1 %v1834_v33 }
  0x55   : > { %1085 = vmatpush1.bf16.msra.mxu1 %v1679_v13  ;;  %1116 = vmatprep.mubr.bf16.mxu1 %v1738_v1  ;;  %v1692_v1 = vld [vmem:[%s1799_s26 + $0x1c8] ss:$52 sps:$4 sm:$0xff]  }
  0x56   : > { %1046 = vmatpush1.bf16.msra.mxu0 %v1649_v7  ;;  %1086 = vmatprep.subr.bf16.mxu1 %v1687_v14 }
  0x57   : > { %1047 = vmatprep.subr.bf16.mxu0 %v1657_v8 }
  0x59   : > { %1087 = vmatpush1.bf16.msra.mxu1 %v1685_v17 }
  0x5a   : > { %1048 = vmatpush1.bf16.msra.mxu0 %v1655_v11  ;;  %1088 = vmatprep.subr.bf16.mxu1 %v1690_v18 }
  0x5b   : > { %1049 = vmatprep.subr.bf16.mxu0 %v1663_v12 }
  0x5d   : > { %1089 = vmatpush1.bf16.msra.mxu1 %v1688_v21 }
  0x5e   : > { %1050 = vmatpush1.bf16.msra.mxu0 %v1661_v15  ;;  %1090 = vmatprep.subr.bf16.mxu1 %v1694_v22 }
  0x5f   : > { %1051 = vmatprep.subr.bf16.mxu0 %v1669_v16 }
  0x61   : > { %1091 = vmatpush1.bf16.msra.mxu1 %v1692_v1 }
  0x62   : > { %1052 = vmatpush1.bf16.msra.mxu0 %v1667_v19  ;;  %1092 = vmatprep.subr.bf16.mxu1 %v1698_v25 }
  0x63   : > { %1053 = vmatprep.subr.bf16.mxu0 %v1675_v20 }
  0x65   : > { %1093 = vmatpush1.bf16.msra.mxu1 %v1696_v28 }
  0x66   : > { %1054 = vmatpush1.bf16.msra.mxu0 %v1673_v23  ;;  %1094 = vmatprep.subr.bf16.mxu1 %v1702_v29 }
  0x67   : > { %1055 = vmatprep.subr.bf16.mxu0 %v1678_v24 }
  0x69   : > { %1095 = vmatpush1.bf16.msra.mxu1 %v1700_v31 }
  0x6a   : > { %1056 = vmatpush1.bf16.msra.mxu0 %v1676_v26  ;;  %1096 = vmatprep.subr.bf16.mxu1 %v1706_v32 }
  0x6b   : > { %1057 = vmatprep.subr.bf16.mxu0 %v1684_v27 }
  0x6d   : > { %1097 = vmatpush1.bf16.msra.mxu1 %v1704_v36 }
  0x6e   : > { %1058 = vmatpush1.bf16.msra.mxu0 %v1682_v30  ;;  %1098 = vmatprep.subr.bf16.mxu1 %v1710_v37 }
  0x6f   : > { %1512 = vmatprep.subr.bf16.mxu0 %v1739_v35 }
  0x71   : > { %1076 = vmatmul.mubr.bf16.vlgmr.msra.gmra.mxu0 %v1834_v33  ;;  %1099 = vmatpush1.bf16.msra.mxu1 %v1708_v39 }
  0x72   : > { %1513 = vmatpush3.bf16.msra.mxu0 %v1691_v34  ;;  %1528 = vmatprep.mubr.msk.bf16.mxu0 %vm1740_vm0, %v1739_v35 }
  0x73   : > { %1514 = vmatprep.subr.bf16.mxu0 %v1739_v35 }
  0x74   : > { %1117 = vmatmul.mubr.bf16.vlgmr.msra.gmra.mxu1 %v1834_v33 }
  0x76   : > { %1515 = vmatpush3.bf16.msra.mxu0 %v1695_v38 }
  0x77   : > { %1516 = vmatprep.subr.bf16.mxu0 %v1739_v35 }
  0x7a   : > { %1517 = vmatpush3.bf16.msra.mxu0 %v1699_v40 }
  0x7b   : > { %1518 = vmatprep.subr.bf16.mxu0 %v1739_v35 }
  0x7e   : > { %1519 = vmatpush3.bf16.msra.mxu0 %v1703_v41 }
  0x7f   : > { %1520 = vmatprep.subr.bf16.mxu0 %v1739_v35 }
  0x82   : > { %1521 = vmatpush3.bf16.msra.mxu0 %v1707_v42 }
  0x83   : > { %1522 = vmatprep.subr.bf16.mxu0 %v1739_v35 }
  0x86   : > { %1523 = vmatpush3.bf16.msra.mxu0 %v1711_v43 }
  0x87   : > { %1524 = vmatprep.subr.bf16.mxu0 %v1739_v35 }
  0x8a   : > { %1525 = vmatpush3.bf16.msra.mxu0 %v1712_v44  ;;  %v1921_v46 = vpop.permute.xlu0 %1168 }
  0x8b   : > { %1526 = vmatprep.subr.bf16.mxu0 %v1739_v35 }
  0x8e   : > { %1527 = vmatpush3.bf16.msra.mxu0 %v1713_v45  ;;  %v1923_v48 = vpop.permute.xlu0 %1187 }
  0x91   : > { %1529 = vmatmul.mubr.bf16.vlgmr.msra.gmra.mxu0 %v1834_v33 }
  0xf1   : > { %v913_v47 = vpop.f32.mrf.mxu0 }
  0xf2   : > { %v1171_v49 = vmul.f32 %v1921_v46, %v913_v47 }
  0xf3   : > { %v915_v50 = vpop.f32.mrf.mxu0 }
  0xf4   : > { %v1172_v51 = vmul.f32 %v1921_v46, %v915_v50  ;;  %v1190_v52 = vadd.f32 %v1923_v48, %v1171_v49  ;;  %v954_v59 = vpop.f32.mrf.mxu1 }
  0xf5   : > { %v917_v53 = vpop.f32.mrf.mxu0  ;;  %v1173_v60 = vmul.f32 %v1921_v46, %v954_v59 }
  0xf6   : > { %v1191_v54 = vadd.f32 %v1923_v48, %v1172_v51  ;;  %v1203_v55 = vmul.f32 0.2, %v1190_v52  ;;  %v956_v62 = vpop.f32.mrf.mxu1 }
  0xf7   : > { %v918_v56 = vpop.f32.mrf.mxu0  ;;  %v1192_v63 = vadd.f32 %v1923_v48, %v1173_v60  ;;  %v1174_v0 = vmul.f32 %v1921_v46, %v956_v62 }
  0xf8   : > { %v1204_v57 = vmul.f32 0.2, %v1191_v54  ;;  %v1216_v33 = vmax.f32 %v1190_v52, %v1203_v55  ;;  %v958_v2 = vpop.f32.mrf.mxu1 }
  0xf9   : > { %v1205_v3 = vmul.f32 0.2, %v1192_v63  ;;  %v1193_v4 = vadd.f32 %v1923_v48, %v1174_v0 }
  0xfa   : > { %v1217_v58 = vmax.f32 %v1191_v54, %v1204_v57  ;;  %v959_v5 = vpop.f32.mrf.mxu1 }
  0xfb   : > { %v1218_v6 = vmax.f32 %v1192_v63, %v1205_v3  ;;  %v1206_v7 = vmul.f32 0.2, %v1193_v4 }
  0xfc   : > { %v1496_v61 = vpack.c.bf16 %v1217_v58, %v1216_v33 }
  0xfd   : > { %v1219_v8 = vmax.f32 %v1193_v4, %v1206_v7 }
  0xfe   : > { %1282 = vst [vmem:[%s1933_s6] sm:$0xff] %v1496_v61 }
  0xff   : > { %v1497_v9 = vpack.c.bf16 %v1219_v8, %v1218_v6 }
 0x101   : > { %1283 = vst [vmem:[%s1933_s6 + $0x8] sm:$0xff] %v1497_v9 }
 0x111   : > { %v995_v10 = vpop.f32.mrf.mxu0 }
 0x112   : > { %v1175_v11 = vmul.f32 %v1921_v46, %v995_v10 }
 0x113   : > { %v997_v12 = vpop.f32.mrf.mxu0 }
 0x114   : > { %v1194_v13 = vadd.f32 %v1923_v48, %v1175_v11  ;;  %v1176_v14 = vmul.f32 %v1921_v46, %v997_v12  ;;  %v1036_v22 = vpop.f32.mrf.mxu1 }
 0x115   : > { %v999_v15 = vpop.f32.mrf.mxu0  ;;  %v1177_v23 = vmul.f32 %v1921_v46, %v1036_v22 }
 0x116   : > { %v1207_v16 = vmul.f32 0.2, %v1194_v13  ;;  %v1195_v17 = vadd.f32 %v1923_v48, %v1176_v14  ;;  %v1038_v1 = vpop.f32.mrf.mxu1 }
 0x117   : > { %v1000_v18 = vpop.f32.mrf.mxu0  ;;  %v1196_v25 = vadd.f32 %v1923_v48, %v1177_v23  ;;  %v1178_v26 = vmul.f32 %v1921_v46, %v1038_v1 }
 0x118   : > { %v1208_v19 = vmul.f32 0.2, %v1195_v17  ;;  %v1220_v20 = vmax.f32 %v1194_v13, %v1207_v16  ;;  %v1040_v27 = vpop.f32.mrf.mxu1 }
 0x119   : > { %v1209_v28 = vmul.f32 0.2, %v1196_v25  ;;  %v1197_v29 = vadd.f32 %v1923_v48, %v1178_v26 }
 0x11a   : > { %v1221_v21 = vmax.f32 %v1195_v17, %v1208_v19  ;;  %v1041_v30 = vpop.f32.mrf.mxu1 }
 0x11b   : > { %v1222_v31 = vmax.f32 %v1196_v25, %v1209_v28  ;;  %v1210_v32 = vmul.f32 0.2, %v1197_v29 }
 0x11c   : > { %v1498_v24 = vpack.c.bf16 %v1221_v21, %v1220_v20 }
 0x11d   : > { %v1223_v34 = vmax.f32 %v1197_v29, %v1210_v32 }
 0x11e   : > { %1284 = vst [vmem:[%s1933_s6 + $0x10] sm:$0xff] %v1498_v24 }
 0x11f   : > { %v1499_v35 = vpack.c.bf16 %v1223_v34, %v1222_v31 }
 0x121   : > { %1285 = vst [vmem:[%s1933_s6 + $0x18] sm:$0xff] %v1499_v35 }
 0x131   : > { %v1077_v36 = vpop.f32.mrf.mxu0 }
 0x132   : > { %v1179_v37 = vmul.f32 %v1921_v46, %v1077_v36 }
 0x133   : > { %v1079_v38 = vpop.f32.mrf.mxu0 }
 0x134   : > { %v1198_v39 = vadd.f32 %v1923_v48, %v1179_v37  ;;  %v1180_v40 = vmul.f32 %v1921_v46, %v1079_v38  ;;  %v1118_v50 = vpop.f32.mrf.mxu1 }
 0x135   : > { %v1081_v41 = vpop.f32.mrf.mxu0  ;;  %v1181_v51 = vmul.f32 %v1921_v46, %v1118_v50 }
 0x136   : > { %v1211_v42 = vmul.f32 0.2, %v1198_v39  ;;  %v1199_v43 = vadd.f32 %v1923_v48, %v1180_v40  ;;  %v1120_v53 = vpop.f32.mrf.mxu1 }
 0x137   : > { %v1082_v44 = vpop.f32.mrf.mxu0  ;;  %v1200_v54 = vadd.f32 %v1923_v48, %v1181_v51  ;;  %v1182_v55 = vmul.f32 %v1921_v46, %v1120_v53 }
 0x138   : > { %v1212_v45 = vmul.f32 0.2, %v1199_v43  ;;  %v1224_v47 = vmax.f32 %v1198_v39, %v1211_v42  ;;  %v1122_v56 = vpop.f32.mrf.mxu1 }
 0x139   : > { %v1213_v57 = vmul.f32 0.2, %v1200_v54  ;;  %v1201_v33 = vadd.f32 %v1923_v48, %v1182_v55 }
 0x13a   : > { %v1225_v49 = vmax.f32 %v1199_v43, %v1212_v45  ;;  %v1123_v58 = vpop.f32.mrf.mxu1 }
 0x13b   : > { %v1226_v59 = vmax.f32 %v1200_v54, %v1213_v57  ;;  %v1214_v60 = vmul.f32 0.2, %v1201_v33 }
 0x13c   : > { %v1500_v52 = vpack.c.bf16 %v1225_v49, %v1224_v47 }
 0x13d   : > { %v1227_v61 = vmax.f32 %v1201_v33, %v1214_v60 }
 0x13e   : > { %1286 = vst [vmem:[%s1933_s6 + $0x20] sm:$0xff] %v1500_v52 }
 0x13f   : > { %v1501_v62 = vpack.c.bf16 %v1227_v61, %v1226_v59 }
 0x141   : > { %1287 = vst [vmem:[%s1933_s6 + $0x28] sm:$0xff] %v1501_v62 }
 0x151   : > { %v1159_v63 = vpop.f32.mrf.mxu0 }
 0x152   : > { %v1183_v0 = vmul.f32 %v1921_v46, %v1159_v63 }
 0x153   : > { %v1530_v2 = vpop.f32.mrf.mxu0 }
 0x154   : > { %v1202_v3 = vadd.f32 %v1923_v48, %v1183_v0 }
 0x155   : > { %v1162_v4 = vpop.f32.mrf.mxu0 }
 0x156   : > { %v1215_v5 = vmul.f32 0.2, %v1202_v3 }
 0x157   : > { %v1531_v6 = vpop.f32.mrf.mxu0 }
 0x158   : > { %v1228_v7 = vmax.f32 %v1202_v3, %v1215_v5 }
 0x15a   : > { %v1502_v8 = vpack.c.bf16 %v1228_v7, %v1228_v7 }
 0x15c   : > { %1288 = vst [vmem:[%s1933_s6 + $0x30] sm:$0xf] %v1502_v8 }
 0x15d PF: > { %s14_s17 = sadd.s32 1, %s1736_s17   ;;  %s1978_s15 = smov %s1732_s16 }
 0x15e   : > { %p11_p5 = scmp.ge.s32.totalorder %s14_s17, 4   ;;  %s1979_s16 = smov %s1981_s18 }
 0x160   :  { %13 = sbr.rel (!%p11_p5) target bundleno = 2 (0x2), region = 66 }

// kernel: forward.15
= control target key start
LH: loop header
LB: loop body
LE: loop exit
PB: predicated region body
PF: predicated region fallthrough
CT: control target
= control target key end

     0   :  { %s1566_s15 = smov 0   ;;  %s1568_s16 = smov 0   ;;  %s1792_s0 = inlined_call_operand.vmem [shape: bf16[2,72,1664], index: 0, kind: input, shape index: {}]   ;;  %s1793_s1 = inlined_call_operand.vmem [shape: bf16[16,72], index: 1, kind: input, shape index: {}]   ;;  %s1794_s2 = inlined_call_operand.vmem [shape: f32[16,1], index: 2, kind: input, shape index: {}]   ;;  %s1795_s3 = inlined_call_operand.vmem [shape: f32[16,1], index: 3, kind: input, shape index: {}]   ;;  %s1796_s4 = inlined_call_operand.vmem [shape: bf16[2,16,1664], index: 4, kind: output, shape index: {}]  }
   0x1   :  { %s1570_s17 = smov 0  }
   0x2 LB: > { %s26_s18 = sadd.s32 1, %s1532_s16  ;;  %p1261_p0 = scmp.ge.s32.totalorder %s1536_s17, 1  ;;  %s1536_s17 = sphi %s1570_s17, %s14_s17   ;;  %s1532_s16 = sphi %s1568_s16, %s1798_s16   ;;  %s1528_s15 = sphi %s1566_s15, %s1797_s15  }
   0x3   : > { %p28_p1 = scmp.ge.s32.totalorder %s26_s18, 2  ;;  %p183_p2 = scmp.lt.s32.totalorder %s1536_s17, 3 }
   0x5   : > { %s1800_s18 = smov (%p28_p1, %s26_s18), 0  ;;  %p184_p3 = pnand %p1261_p0, %p183_p2 }
   0x6   : > { %p218_p4 = scmp.lt.s32.totalorder (!%p184_p3), %s1528_s15, 1 }
   0x7   : > { %187 = sbr.rel (%p184_p3) target bundleno = 308 (0x134), region = 36 }
   0xc   : > { %v1538_v0 = vmov 0   ;;  %v948_v1 = vld [vmem:[%s1794_s2] sm:$0xff]  ;;  %s1802_s15 = smov (!%p218_p4, %s1528_s15), 1  ;;  %v949_v3 = vld [vmem:[%s1794_s2 + $0x8] sm:$0xff]  ;;  %vm609_vm0 = vcmask 1043456   ;;  %vm605_vm1 = vcmask 588800  }
   0xd   : > { %681 = vmatprep.mubr.bf16.mxu0 %v1538_v0  ;;  %724 = vmatprep.mubr.bf16.mxu1 %v1538_v0  ;;  %v986_v2 = vld [vmem:[%s1795_s3] sm:$0xff]  ;;  %s1393_s23 = smul.u32 468, %s1802_s15  ;;  %v987_v4 = vld [vmem:[%s1795_s3 + $0x8] sm:$0xff]  ;;  %vm1540_vm2 = vmmov 0  }
   0xe   : > { %1422 = vset.pattern.permute.xlu0 %v1538_v0  ;;  %1423 = vset.pattern.permute.xlu1 %v1538_v0  ;;  %v1634_v32 = vld [vmem:[%s1793_s1] sm:$0xff]   ;;  %s1394_s7 = smul.u32 104, %s1802_s15 }
   0xf   : > { %952 = vperm.xlu0 %1422, %v948_v1   ;;  %990 = vperm.xlu1 %1423, %v986_v2   ;;  %s1606_s30 = scalar_lea.vmem %s1792_s0, %s1393_s23 }
  0x10   : > { %v296_v5 = vld [vmem:[%s1606_s30 + $0x1a0] sm:$0xff]  ;;  %v1426_v8 = vld [vmem:[%s1606_s30 + $0x13c] ss:$52 sps:$4 sm:$0xff]   ;;  %v297_v10 = vld [vmem:[%s1606_s30 + $0x1a8] sm:$0xff]  ;;  %s1728_s10 = scalar_lea.vmem %s1796_s4, %s1394_s7 }
  0x11   : > { %v1318_v6 = vcombine.high %v296_v5, %v296_v5  ;;  %v1317_v7 = vcombine.low %v296_v5, %v296_v5  ;;  %v1428_v11 = vld [vmem:[%s1606_s30 + $0x138] ss:$52 sps:$4 sm:$0xff]   ;;  %v1320_v12 = vcombine.high %v297_v10, %v297_v10  ;;  %v1319_v13 = vcombine.low %v297_v10, %v297_v10  ;;  %v1429_v14 = vld [vmem:[%s1606_s30 + $0xd4] ss:$52 sps:$4 sm:$0xff]   ;;  %v1431_v18 = vld [vmem:[%s1606_s30 + $0xd0] ss:$52 sps:$4 sm:$0xff]  }
  0x12   : > { %v1437_v15 = vld [vmem:[%s1606_s30 + $0x144] ss:$52 sps:$4 sm:$0xff]   ;;  %v1439_v17 = vld [vmem:[%s1606_s30 + $0x140] ss:$52 sps:$4 sm:$0xff]   ;;  %v1443_v19 = vld [vmem:[%s1606_s30 + $0xdc] ss:$52 sps:$4 sm:$0xff]  }
  0x13   : > { %957 = vperm.xlu0 %1422, %v949_v3   ;;  %995 = vperm.xlu1 %1423, %v987_v4   ;;  %v611_v9 = vsel %vm609_vm0, %v1317_v7, 0  ;;  %v617_v16 = vsel %vm609_vm0, %v1319_v13, 0  ;;  %v1434_v20 = vld [vmem:[%s1606_s30 + $0x6c] ss:$52 sps:$4 sm:$0xff]   ;;  %v1436_v22 = vld [vmem:[%s1606_s30 + $0x68] ss:$52 sps:$4 sm:$0xff]  }
  0x14   : > { %1330 = vmatprep.subr.msk.bf16.mxu0 %vm609_vm0, %v1318_v6  ;;  %1332 = vmatprep.subr.msk.bf16.mxu1 %vm609_vm0, %v1320_v12  ;;  %v1445_v21 = vld [vmem:[%s1606_s30 + $0xd8] ss:$52 sps:$4 sm:$0xff]   ;;  %v1449_v23 = vld [vmem:[%s1606_s30 + $0x74] ss:$52 sps:$4 sm:$0xff]   ;;  %v1451_v27 = vld [vmem:[%s1606_s30 + $0x70] ss:$52 sps:$4 sm:$0xff]  }
  0x15   : > { %656 = vmatpush1.bf16.msra.mxu0 %v611_v9  ;;  %699 = vmatpush1.bf16.msra.mxu1 %v617_v16  ;;  %v1440_v24 = vld [vmem:[%s1606_s30 + $0x4] ss:$52 sps:$4 sm:$0xff]   ;;  %v298_v25 = vld [vmem:[%s1606_s30 + $0x1b0] sm:$0xff]  ;;  %v1455_v28 = vld [vmem:[%s1606_s30 + $0xc] ss:$52 sps:$4 sm:$0xff]  }
  0x16   : > { %657 = vmatprep.subr.bf16.mxu0 %v1426_v8  ;;  %700 = vmatprep.subr.bf16.mxu1 %v1437_v15  ;;  %v1442_v26 = vld [vmem:[%s1606_s30] ss:$52 sps:$4 sm:$0xff]   ;;  %v1322_v29 = vcombine.high %v298_v25, %v298_v25  ;;  %v1321_v30 = vcombine.low %v298_v25, %v298_v25  ;;  %v299_v31 = vld [vmem:[%s1606_s30 + $0x1b8] sm:$0xff]  ;;  %v1466_v42 = vld [vmem:[%s1606_s30 + $0x150] ss:$52 sps:$4 sm:$0xff]   ;;  %v1539_v15 = vmov 0.0  }
  0x17   : > { %v1457_v33 = vld [vmem:[%s1606_s30 + $0x8] ss:$52 sps:$4 sm:$0xff]   ;;  %v1324_v34 = vcombine.high %v299_v31, %v299_v31  ;;  %v1323_v35 = vcombine.low %v299_v31, %v299_v31  ;;  %v1454_v37 = vld [vmem:[%s1606_s30 + $0x14c] ss:$52 sps:$4 sm:$0xff]   ;;  %v1460_v41 = vld [vmem:[%s1606_s30 + $0xe4] ss:$52 sps:$4 sm:$0xff]  }
  0x18   : > { %v623_v36 = vsel %vm609_vm0, %v1321_v30, 0  ;;  %v1452_v38 = vld [vmem:[%s1606_s30 + $0x148] ss:$52 sps:$4 sm:$0xff]   ;;  %v1458_v43 = vld [vmem:[%s1606_s30 + $0xe0] ss:$52 sps:$4 sm:$0xff]  }
  0x19   : > { %658 = vmatpush1.bf16.msra.mxu0 %v1428_v11  ;;  %701 = vmatpush1.bf16.msra.mxu1 %v1439_v17  ;;  %v629_v39 = vsel %vm609_vm0, %v1323_v35, 0  ;;  %v1468_v40 = vld [vmem:[%s1606_s30 + $0x154] ss:$52 sps:$4 sm:$0xff]   ;;  %v1474_v44 = vld [vmem:[%s1606_s30 + $0xec] ss:$52 sps:$4 sm:$0xff]  }
  0x1a   : > { %659 = vmatprep.subr.bf16.mxu0 %v1429_v14  ;;  %702 = vmatprep.subr.bf16.mxu1 %v1443_v19  ;;  %v1465_v45 = vld [vmem:[%s1606_s30 + $0x7c] ss:$52 sps:$4 sm:$0xff]   ;;  %v1463_v46 = vld [vmem:[%s1606_s30 + $0x78] ss:$52 sps:$4 sm:$0xff]   ;;  %v1471_v49 = vld [vmem:[%s1606_s30 + $0x14] ss:$52 sps:$4 sm:$0xff]  }
  0x1b   : > { %v1472_v47 = vld [vmem:[%s1606_s30 + $0xe8] ss:$52 sps:$4 sm:$0xff]   ;;  %v1479_v48 = vld [vmem:[%s1606_s30 + $0x84] ss:$52 sps:$4 sm:$0xff]   ;;  %v1477_v52 = vld [vmem:[%s1606_s30 + $0x80] ss:$52 sps:$4 sm:$0xff]  }
  0x1c   : > { %v300_v50 = vld [vmem:[%s1606_s30 + $0x1c0] sm:$0xff]  ;;  %v1485_v53 = vld [vmem:[%s1606_s30 + $0x1c] ss:$52 sps:$4 sm:$0xff]   ;;  %v301_v56 = vld [vmem:[%s1606_s30 + $0x1c8] sm:$0xff] }
  0x1d   : > { %660 = vmatpush1.bf16.msra.mxu0 %v1431_v18  ;;  %703 = vmatpush1.bf16.msra.mxu1 %v1445_v21  ;;  %v1469_v51 = vld [vmem:[%s1606_s30 + $0x10] ss:$52 sps:$4 sm:$0xff]   ;;  %v1326_v54 = vcombine.high %v300_v50, %v300_v50  ;;  %v1325_v55 = vcombine.low %v300_v50, %v300_v50  ;;  %v1483_v57 = vld [vmem:[%s1606_s30 + $0x18] ss:$52 sps:$4 sm:$0xff]   ;;  %v1328_v58 = vcombine.high %v301_v56, %v301_v56  ;;  %v1488_v2 = vld [vmem:[%s1606_s30 + $0xf4] ss:$52 sps:$4 sm:$0xff]  }
  0x1e   : > { %661 = vmatprep.subr.bf16.mxu0 %v1434_v20  ;;  %704 = vmatprep.subr.bf16.mxu1 %v1449_v23  ;;  %v1327_v59 = vcombine.low %v301_v56, %v301_v56  ;;  %v1482_v61 = vld [vmem:[%s1606_s30 + $0x15c] ss:$52 sps:$4 sm:$0xff]   ;;  %v1480_v62 = vld [vmem:[%s1606_s30 + $0x158] ss:$52 sps:$4 sm:$0xff]   ;;  %v1494_v3 = vld [vmem:[%s1606_s30 + $0x160] ss:$52 sps:$4 sm:$0xff]  }
  0x1f   : > { %v635_v60 = vsel %vm609_vm0, %v1325_v55, 0  ;;  %v1496_v1 = vld [vmem:[%s1606_s30 + $0x164] ss:$52 sps:$4 sm:$0xff]   ;;  %v1502_v5 = vld [vmem:[%s1606_s30 + $0xfc] ss:$52 sps:$4 sm:$0xff]  }
  0x20   : > { %v641_v63 = vsel %vm609_vm0, %v1327_v59, 0  ;;  %v1486_v4 = vld [vmem:[%s1606_s30 + $0xf0] ss:$52 sps:$4 sm:$0xff]   ;;  %v1493_v6 = vld [vmem:[%s1606_s30 + $0x8c] ss:$52 sps:$4 sm:$0xff]  }
  0x21   : > { %662 = vmatpush1.bf16.msra.mxu0 %v1436_v22  ;;  %705 = vmatpush1.bf16.msra.mxu1 %v1451_v27  ;;  %v1500_v7 = vld [vmem:[%s1606_s30 + $0xf8] ss:$52 sps:$4 sm:$0xff]   ;;  %v1491_v8 = vld [vmem:[%s1606_s30 + $0x88] ss:$52 sps:$4 sm:$0xff]   ;;  %v1497_v11 = vld [vmem:[%s1606_s30 + $0x20] ss:$52 sps:$4 sm:$0xff]  }
  0x22   : > { %663 = vmatprep.subr.bf16.mxu0 %v1440_v24  ;;  %706 = vmatprep.subr.bf16.mxu1 %v1455_v28  ;;  %v1506_v9 = vld [vmem:[%s1606_s30 + $0x94] ss:$52 sps:$4 sm:$0xff]   ;;  %v1499_v10 = vld [vmem:[%s1606_s30 + $0x24] ss:$52 sps:$4 sm:$0xff]   ;;  %v1510_v12 = vld [vmem:[%s1606_s30 + $0x2c] ss:$52 sps:$4 sm:$0xff]  }
  0x23   : > { %v1503_v13 = vld [vmem:[%s1606_s30 + $0x1d0] ss:$0 sps:$4 sm:$0xff]   ;;  %v1508_v14 = vld [vmem:[%s1606_s30 + $0x28] ss:$52 sps:$4 sm:$0xff]   ;;  %v1511_v18 = vld [vmem:[%s1606_s30 + $0x100] ss:$52 sps:$4 sm:$0xff]  }
  0x24   : > { %v647_v16 = vsel %vm609_vm0, %v1503_v13, 0  ;;  %v1507_v17 = vld [vmem:[%s1606_s30 + $0x168] ss:$52 sps:$4 sm:$0xff]   ;;  %v1512_v19 = vld [vmem:[%s1606_s30 + $0x98] ss:$52 sps:$4 sm:$0xff]  }
  0x25   : > { %664 = vmatpush1.bf16.msra.mxu0 %v1442_v26  ;;  %707 = vmatpush1.bf16.msra.mxu1 %v1457_v33  ;;  %v1513_v20 = vld [vmem:[%s1606_s30 + $0x30] ss:$52 sps:$4 sm:$0xff]  }
  0x26   : > { %1334 = vmatprep.subr.msk.bf16.mxu0 %vm609_vm0, %v1322_v29  ;;  %1336 = vmatprep.subr.msk.bf16.mxu1 %vm609_vm0, %v1324_v34 }
  0x28   : > { %1331 = vmatmul.mubr.msk.bf16.vlgmr.msra.gmra.mxu0 %vm605_vm1, %v1634_v32  ;;  %1333 = vmatmul.mubr.msk.bf16.vlgmr.msra.gmra.mxu1 %vm605_vm1, %v1634_v32 }
  0x29   : > { %742 = vmatpush1.bf16.msra.mxu0 %v623_v36  ;;  %767 = vmatprep.mubr.bf16.mxu0 %v1538_v0 }
  0x2a   : > { %743 = vmatprep.subr.bf16.mxu0 %v1454_v37  ;;  %785 = vmatpush1.bf16.msra.mxu1 %v629_v39 }
  0x2b   : > { %810 = vmatprep.mubr.bf16.mxu1 %v1538_v0  ;;  %786 = vmatprep.subr.bf16.mxu1 %v1468_v40 }
  0x2d   : > { %744 = vmatpush1.bf16.msra.mxu0 %v1452_v38 }
  0x2e   : > { %745 = vmatprep.subr.bf16.mxu0 %v1460_v41  ;;  %787 = vmatpush1.bf16.msra.mxu1 %v1466_v42 }
  0x2f   : > { %788 = vmatprep.subr.bf16.mxu1 %v1474_v44 }
  0x31   : > { %746 = vmatpush1.bf16.msra.mxu0 %v1458_v43 }
  0x32   : > { %747 = vmatprep.subr.bf16.mxu0 %v1465_v45  ;;  %789 = vmatpush1.bf16.msra.mxu1 %v1472_v47 }
  0x33   : > { %790 = vmatprep.subr.bf16.mxu1 %v1479_v48 }
  0x35   : > { %748 = vmatpush1.bf16.msra.mxu0 %v1463_v46 }
  0x36   : > { %749 = vmatprep.subr.bf16.mxu0 %v1471_v49  ;;  %791 = vmatpush1.bf16.msra.mxu1 %v1477_v52 }
  0x37   : > { %792 = vmatprep.subr.bf16.mxu1 %v1485_v53 }
  0x39   : > { %750 = vmatpush1.bf16.msra.mxu0 %v1469_v51 }
  0x3a   : > { %1338 = vmatprep.subr.msk.bf16.mxu0 %vm609_vm0, %v1326_v54  ;;  %793 = vmatpush1.bf16.msra.mxu1 %v1483_v57 }
  0x3b   : > { %1340 = vmatprep.subr.msk.bf16.mxu1 %vm609_vm0, %v1328_v58 }
  0x3c   : > { %1335 = vmatmul.mubr.msk.bf16.vlgmr.msra.gmra.mxu0 %vm605_vm1, %v1634_v32 }
  0x3d   : > { %828 = vmatpush1.bf16.msra.mxu0 %v635_v60  ;;  %853 = vmatprep.mubr.bf16.mxu0 %v1538_v0 }
  0x3e   : > { %829 = vmatprep.subr.bf16.mxu0 %v1482_v61  ;;  %1337 = vmatmul.mubr.msk.bf16.vlgmr.msra.gmra.mxu1 %vm605_vm1, %v1634_v32 }
  0x3f   : > { %871 = vmatpush1.bf16.msra.mxu1 %v641_v63  ;;  %896 = vmatprep.mubr.bf16.mxu1 %v1538_v0  ;;  %v1504_v0 = vld [vmem:[%s1606_s30 + $0x90] ss:$52 sps:$4 sm:$0xff]  }
  0x40   : > { %872 = vmatprep.subr.bf16.mxu1 %v1496_v1 }
  0x41   : > { %830 = vmatpush1.bf16.msra.mxu0 %v1480_v62 }
  0x42   : > { %831 = vmatprep.subr.bf16.mxu0 %v1488_v2 }
  0x43   : > { %873 = vmatpush1.bf16.msra.mxu1 %v1494_v3 }
  0x44   : > { %874 = vmatprep.subr.bf16.mxu1 %v1502_v5 }
  0x45   : > { %832 = vmatpush1.bf16.msra.mxu0 %v1486_v4 }
  0x46   : > { %833 = vmatprep.subr.bf16.mxu0 %v1493_v6 }
  0x47   : > { %875 = vmatpush1.bf16.msra.mxu1 %v1500_v7 }
  0x48   : > { %876 = vmatprep.subr.bf16.mxu1 %v1506_v9 }
  0x49   : > { %834 = vmatpush1.bf16.msra.mxu0 %v1491_v8 }
  0x4a   : > { %835 = vmatprep.subr.bf16.mxu0 %v1499_v10 }
  0x4b   : > { %877 = vmatpush1.bf16.msra.mxu1 %v1504_v0 }
  0x4c   : > { %878 = vmatprep.subr.bf16.mxu1 %v1510_v12 }
  0x4d   : > { %836 = vmatpush1.bf16.msra.mxu0 %v1497_v11 }
  0x4e   : > { %1379 = vmatprep.subr.bf16.mxu0 %v1539_v15 }
  0x4f   : > { %879 = vmatpush1.bf16.msra.mxu1 %v1508_v14 }
  0x50   : > { %1339 = vmatmul.mubr.msk.bf16.vlgmr.msra.gmra.mxu0 %vm605_vm1, %v1634_v32 }
  0x51   : > { %1380 = vmatpush3.bf16.msra.mxu0 %v647_v16  ;;  %1389 = vmatprep.mubr.msk.bf16.mxu0 %vm1540_vm2, %v1539_v15 }
  0x52   : > { %1381 = vmatprep.subr.bf16.mxu0 %v1539_v15  ;;  %1341 = vmatmul.mubr.msk.bf16.vlgmr.msra.gmra.mxu1 %vm605_vm1, %v1634_v32 }
  0x55   : > { %1382 = vmatpush3.bf16.msra.mxu0 %v1507_v17 }
  0x56   : > { %1383 = vmatprep.subr.bf16.mxu0 %v1539_v15 }
  0x59   : > { %1384 = vmatpush3.bf16.msra.mxu0 %v1511_v18 }
  0x5a   : > { %1385 = vmatprep.subr.bf16.mxu0 %v1539_v15 }
  0x5d   : > { %1386 = vmatpush3.bf16.msra.mxu0 %v1512_v19 }
  0x5e   : > { %1387 = vmatprep.subr.bf16.mxu0 %v1539_v15 }
  0x61   : > { %1388 = vmatpush3.bf16.msra.mxu0 %v1513_v20 }
  0x64   : > { %1390 = vmatmul.mubr.msk.bf16.vlgmr.msra.gmra.mxu0 %vm605_vm1, %v1634_v32 }
  0x8a   : > { %v1703_v21 = vpop.permute.xlu0 %952  ;;  %v1705_v22 = vpop.permute.xlu1 %990 }
  0x8e   : > { %v1708_v26 = vpop.permute.xlu0 %957  ;;  %v1712_v31 = vpop.permute.xlu1 %995 }
  0xe8   : > { %v683_v23 = vpop.f32.mrf.mxu0  ;;  %v726_v29 = vpop.f32.mrf.mxu1 }
  0xe9   : > { %v960_v24 = vmul.f32 %v1703_v21, %v683_v23  ;;  %v962_v32 = vmul.f32 %v1703_v21, %v726_v29 }
  0xea   : > { %v685_v25 = vpop.f32.mrf.mxu0  ;;  %v728_v36 = vpop.f32.mrf.mxu1 }
  0xeb   : > { %v961_v27 = vmul.f32 %v1703_v21, %v685_v25  ;;  %v998_v28 = vadd.f32 %v1705_v22, %v960_v24  ;;  %v1000_v38 = vadd.f32 %v1705_v22, %v962_v32  ;;  %v963_v39 = vmul.f32 %v1703_v21, %v728_v36 }
  0xec   : > { %v687_v30 = vpop.f32.mrf.mxu0  ;;  %v730_v43 = vpop.f32.mrf.mxu1 }
  0xed   : > { %v999_v33 = vadd.f32 %v1705_v22, %v961_v27  ;;  %v1024_v34 = vmul.f32 0.2, %v998_v28  ;;  %v973_v35 = vmul.f32 %v1708_v26, %v687_v30  ;;  %v1026_v44 = vmul.f32 0.2, %v1000_v38 }
  0xee   : > { %v689_v37 = vpop.f32.mrf.mxu0  ;;  %v1001_v45 = vadd.f32 %v1705_v22, %v963_v39  ;;  %v975_v46 = vmul.f32 %v1708_v26, %v730_v43  ;;  %v732_v51 = vpop.f32.mrf.mxu1 }
  0xef   : > { %v1025_v40 = vmul.f32 0.2, %v999_v33  ;;  %v974_v41 = vmul.f32 %v1708_v26, %v689_v37  ;;  %v1011_v42 = vadd.f32 %v1712_v31, %v973_v35  ;;  %v1050_v47 = vmax.f32 %v998_v28, %v1024_v34 }
  0xf0   : > { %v1052_v52 = vmax.f32 %v1000_v38, %v1026_v44  ;;  %v1027_v53 = vmul.f32 0.2, %v1001_v45  ;;  %v1013_v54 = vadd.f32 %v1712_v31, %v975_v46  ;;  %v976_v55 = vmul.f32 %v1708_v26, %v732_v51 }
  0xf1   : > { %v1051_v48 = vmax.f32 %v999_v33, %v1025_v40  ;;  %v1012_v49 = vadd.f32 %v1712_v31, %v974_v41  ;;  %v1037_v50 = vmul.f32 0.2, %v1011_v42 }
  0xf2   : > { %v1053_v58 = vmax.f32 %v1001_v45, %v1027_v53  ;;  %v1039_v59 = vmul.f32 0.2, %v1013_v54  ;;  %v1014_v60 = vadd.f32 %v1712_v31, %v976_v55 }
  0xf3   : > { %v1359_v56 = vpack.c.bf16 %v1051_v48, %v1050_v47  ;;  %v1038_v57 = vmul.f32 0.2, %v1012_v49  ;;  %v1063_v61 = vmax.f32 %v1011_v42, %v1037_v50 }
  0xf4   : > { %v1360_v63 = vpack.c.bf16 %v1053_v58, %v1052_v52  ;;  %v1065_v1 = vmax.f32 %v1013_v54, %v1039_v59  ;;  %v1040_v2 = vmul.f32 0.2, %v1014_v60 }
  0xf5   : > { %1156 = vst [vmem:[%s1728_s10] sm:$0xff] %v1359_v56  ;;  %v1064_v62 = vmax.f32 %v1012_v49, %v1038_v57 }
  0xf6   : > { %1157 = vst [vmem:[%s1728_s10 + $0x8] sm:$0xff] %v1360_v63  ;;  %v1066_v4 = vmax.f32 %v1014_v60, %v1040_v2 }
  0xf7   : > { %v1366_v3 = vpack.c.bf16 %v1064_v62, %v1063_v61 }
  0xf8   : > { %v1367_v5 = vpack.c.bf16 %v1066_v4, %v1065_v1 }
  0xf9   : > { %1163 = vst [vmem:[%s1728_s10 + $0x34] sm:$0xff] %v1366_v3 }
  0xfa   : > { %1164 = vst [vmem:[%s1728_s10 + $0x3c] sm:$0xff] %v1367_v5 }
  0xfc   : > { %v769_v6 = vpop.f32.mrf.mxu0 }
  0xfd   : > { %v964_v7 = vmul.f32 %v1703_v21, %v769_v6 }
  0xfe   : > { %v771_v8 = vpop.f32.mrf.mxu0  ;;  %v812_v0 = vpop.f32.mrf.mxu1 }
  0xff   : > { %v1002_v9 = vadd.f32 %v1705_v22, %v964_v7  ;;  %v965_v10 = vmul.f32 %v1703_v21, %v771_v8  ;;  %v966_v12 = vmul.f32 %v1703_v21, %v812_v0 }
 0x100   : > { %v773_v11 = vpop.f32.mrf.mxu0  ;;  %v814_v16 = vpop.f32.mrf.mxu1 }
 0x101   : > { %v1028_v13 = vmul.f32 0.2, %v1002_v9  ;;  %v1003_v14 = vadd.f32 %v1705_v22, %v965_v10  ;;  %v977_v15 = vmul.f32 %v1708_v26, %v773_v11  ;;  %v1004_v18 = vadd.f32 %v1705_v22, %v966_v12 }
 0x102   : > { %v775_v17 = vpop.f32.mrf.mxu0  ;;  %v967_v19 = vmul.f32 %v1703_v21, %v814_v16  ;;  %v816_v25 = vpop.f32.mrf.mxu1 }
 0x103   : > { %v1029_v20 = vmul.f32 0.2, %v1003_v14  ;;  %v1015_v23 = vadd.f32 %v1712_v31, %v977_v15  ;;  %v978_v24 = vmul.f32 %v1708_v26, %v775_v17  ;;  %v1030_v27 = vmul.f32 0.2, %v1004_v18 }
 0x104   : > { %v1005_v28 = vadd.f32 %v1705_v22, %v967_v19  ;;  %v979_v29 = vmul.f32 %v1708_v26, %v816_v25  ;;  %v1054_v30 = vmax.f32 %v1002_v9, %v1028_v13  ;;  %v818_v35 = vpop.f32.mrf.mxu1 }
 0x105   : > { %v1055_v32 = vmax.f32 %v1003_v14, %v1029_v20  ;;  %v1041_v33 = vmul.f32 0.2, %v1015_v23  ;;  %v1016_v34 = vadd.f32 %v1712_v31, %v978_v24  ;;  %v1056_v36 = vmax.f32 %v1004_v18, %v1030_v27 }
 0x106   : > { %v1031_v37 = vmul.f32 0.2, %v1005_v28  ;;  %v1017_v38 = vadd.f32 %v1712_v31, %v979_v29  ;;  %v980_v39 = vmul.f32 %v1708_v26, %v818_v35 }
 0x107   : > { %v1361_v40 = vpack.c.bf16 %v1055_v32, %v1054_v30  ;;  %v1042_v41 = vmul.f32 0.2, %v1016_v34  ;;  %v1067_v45 = vmax.f32 %v1015_v23, %v1041_v33 }
 0x108   : > { %v1057_v42 = vmax.f32 %v1005_v28, %v1031_v37  ;;  %v1043_v43 = vmul.f32 0.2, %v1017_v38  ;;  %v1018_v44 = vadd.f32 %v1712_v31, %v980_v39 }
 0x109   : > { %1158 = vst [vmem:[%s1728_s10 + $0x10] sm:$0xff] %v1361_v40  ;;  %v1068_v46 = vmax.f32 %v1016_v34, %v1042_v41 }
 0x10a   : > { %v1362_v47 = vpack.c.bf16 %v1057_v42, %v1056_v36  ;;  %v1069_v48 = vmax.f32 %v1017_v38, %v1043_v43  ;;  %v1044_v49 = vmul.f32 0.2, %v1018_v44 }
 0x10b   : > { %v1368_v50 = vpack.c.bf16 %v1068_v46, %v1067_v45 }
 0x10c   : > { %1159 = vst [vmem:[%s1728_s10 + $0x18] sm:$0xff] %v1362_v47  ;;  %v1070_v51 = vmax.f32 %v1018_v44, %v1044_v49 }
 0x10d   : > { %1165 = vst [vmem:[%s1728_s10 + $0x44] sm:$0xff] %v1368_v50 }
 0x10e   : > { %v1369_v52 = vpack.c.bf16 %v1070_v51, %v1069_v48 }
 0x110   : > { %1166 = vst [vmem:[%s1728_s10 + $0x4c] sm:$0xff] %v1369_v52  ;;  %v855_v53 = vpop.f32.mrf.mxu0 }
 0x111   : > { %v968_v54 = vmul.f32 %v1703_v21, %v855_v53 }
 0x112   : > { %v857_v55 = vpop.f32.mrf.mxu0  ;;  %v898_v58 = vpop.f32.mrf.mxu1 }
 0x113   : > { %v1006_v56 = vadd.f32 %v1705_v22, %v968_v54  ;;  %v969_v57 = vmul.f32 %v1703_v21, %v857_v55  ;;  %v970_v60 = vmul.f32 %v1703_v21, %v898_v58 }
 0x114   : > { %v859_v59 = vpop.f32.mrf.mxu0  ;;  %v900_v1 = vpop.f32.mrf.mxu1 }
 0x115   : > { %v1032_v61 = vmul.f32 0.2, %v1006_v56  ;;  %v1007_v62 = vadd.f32 %v1705_v22, %v969_v57  ;;  %v981_v63 = vmul.f32 %v1708_v26, %v859_v59  ;;  %v1008_v3 = vadd.f32 %v1705_v22, %v970_v60 }
 0x116   : > { %v861_v2 = vpop.f32.mrf.mxu0  ;;  %v971_v4 = vmul.f32 %v1703_v21, %v900_v1  ;;  %v902_v8 = vpop.f32.mrf.mxu1 }
 0x117   : > { %v1033_v5 = vmul.f32 0.2, %v1007_v62  ;;  %v1019_v6 = vadd.f32 %v1712_v31, %v981_v63  ;;  %v982_v7 = vmul.f32 %v1708_v26, %v861_v2  ;;  %v1034_v9 = vmul.f32 0.2, %v1008_v3 }
 0x118   : > { %v1009_v10 = vadd.f32 %v1705_v22, %v971_v4  ;;  %v983_v0 = vmul.f32 %v1708_v26, %v902_v8  ;;  %v1058_v11 = vmax.f32 %v1006_v56, %v1032_v61  ;;  %v904_v15 = vpop.f32.mrf.mxu1 }
 0x119   : > { %v1059_v12 = vmax.f32 %v1007_v62, %v1033_v5  ;;  %v1045_v13 = vmul.f32 0.2, %v1019_v6  ;;  %v1020_v14 = vadd.f32 %v1712_v31, %v982_v7  ;;  %v1060_v16 = vmax.f32 %v1008_v3, %v1034_v9 }
 0x11a   : > { %v1035_v17 = vmul.f32 0.2, %v1009_v10  ;;  %v1021_v18 = vadd.f32 %v1712_v31, %v983_v0  ;;  %v984_v19 = vmul.f32 %v1708_v26, %v904_v15 }
 0x11b   : > { %v1363_v20 = vpack.c.bf16 %v1059_v12, %v1058_v11  ;;  %v1046_v23 = vmul.f32 0.2, %v1020_v14  ;;  %v1071_v28 = vmax.f32 %v1019_v6, %v1045_v13 }
 0x11c   : > { %v1061_v24 = vmax.f32 %v1009_v10, %v1035_v17  ;;  %v1047_v25 = vmul.f32 0.2, %v1021_v18  ;;  %v1022_v27 = vadd.f32 %v1712_v31, %v984_v19 }
 0x11d   : > { %1160 = vst [vmem:[%s1728_s10 + $0x20] sm:$0xff] %v1363_v20  ;;  %v1072_v29 = vmax.f32 %v1020_v14, %v1046_v23 }
 0x11e   : > { %v1364_v30 = vpack.c.bf16 %v1061_v24, %v1060_v16  ;;  %v1073_v32 = vmax.f32 %v1021_v18, %v1047_v25  ;;  %v1048_v33 = vmul.f32 0.2, %v1022_v27 }
 0x11f   : > { %v1370_v34 = vpack.c.bf16 %v1072_v29, %v1071_v28 }
 0x120   : > { %1161 = vst [vmem:[%s1728_s10 + $0x28] sm:$0xff] %v1364_v30  ;;  %v1074_v35 = vmax.f32 %v1022_v27, %v1048_v33 }
 0x121   : > { %1167 = vst [vmem:[%s1728_s10 + $0x54] sm:$0xff] %v1370_v34 }
 0x122   : > { %v1371_v36 = vpack.c.bf16 %v1074_v35, %v1073_v32 }
 0x124   : > { %1168 = vst [vmem:[%s1728_s10 + $0x5c] sm:$0xff] %v1371_v36  ;;  %v941_v37 = vpop.f32.mrf.mxu0 }
 0x125   : > { %v972_v38 = vmul.f32 %v1703_v21, %v941_v37 }
 0x126   : > { %v1391_v39 = vpop.f32.mrf.mxu0 }
 0x127   : > { %v1010_v40 = vadd.f32 %v1705_v22, %v972_v38 }
 0x128   : > { %v944_v41 = vpop.f32.mrf.mxu0 }
 0x129   : > { %v1036_v42 = vmul.f32 0.2, %v1010_v40  ;;  %v985_v43 = vmul.f32 %v1708_v26, %v944_v41 }
 0x12a   : > { %v1392_v44 = vpop.f32.mrf.mxu0 }
 0x12b   : > { %v1062_v45 = vmax.f32 %v1010_v40, %v1036_v42  ;;  %v1023_v46 = vadd.f32 %v1712_v31, %v985_v43 }
 0x12d   : > { %v1365_v47 = vpack.c.bf16 %v1062_v45, %v1062_v45  ;;  %v1049_v48 = vmul.f32 0.2, %v1023_v46 }
 0x12f   : > { %1162 = vst [vmem:[%s1728_s10 + $0x30] sm:$0xf] %v1365_v47  ;;  %v1075_v49 = vmax.f32 %v1023_v46, %v1049_v48 }
 0x131   : > { %v1372_v50 = vpack.c.bf16 %v1075_v49, %v1075_v49 }
 0x133   : > { %1169 = vst [vmem:[%s1728_s10 + $0x64] sm:$0xf] %v1372_v50 }
 0x134 PF: > { %s14_s17 = sadd.s32 1, %s1536_s17   ;;  %s1797_s15 = smov %s1532_s16 }
 0x135   : > { %p11_p5 = scmp.ge.s32.totalorder %s14_s17, 4   ;;  %s1798_s16 = smov %s1800_s18 }
 0x137   :  { %13 = sbr.rel (!%p11_p5) target bundleno = 2 (0x2), region = 66 }

// kernel: forward.16
= control target key start
LH: loop header
LB: loop body
LE: loop exit
PB: predicated region body
PF: predicated region fallthrough
CT: control target
= control target key end

     0   :  { %s1153_s15 = smov 0   ;;  %s1155_s16 = smov 0   ;;  %s1274_s0 = inlined_call_operand.vmem [shape: bf16[2,256,512], index: 0, kind: input, shape index: {}]   ;;  %s1275_s1 = inlined_call_operand.vmem [shape: bf16[16,256], index: 1, kind: input, shape index: {}]   ;;  %s1276_s2 = inlined_call_operand.vmem [shape: f32[16,1], index: 2, kind: input, shape index: {}]   ;;  %s1277_s3 = inlined_call_operand.vmem [shape: f32[16,1], index: 3, kind: input, shape index: {}]   ;;  %s1278_s4 = inlined_call_operand.vmem [shape: bf16[2,16,512], index: 4, kind: output, shape index: {}]  }
   0x1   :  { %s1157_s17 = smov 0  }
   0x2 LB: > { %s26_s18 = sadd.s32 1, %s1121_s16  ;;  %p894_p0 = scmp.ge.s32.totalorder %s1125_s17, 1  ;;  %s1125_s17 = sphi %s1157_s17, %s14_s17   ;;  %s1121_s16 = sphi %s1155_s16, %s1280_s16   ;;  %s1117_s15 = sphi %s1153_s15, %s1279_s15  }
   0x3   : > { %p28_p1 = scmp.ge.s32.totalorder %s26_s18, 2  ;;  %p183_p2 = scmp.lt.s32.totalorder %s1125_s17, 3 }
   0x5   : > { %s1282_s18 = smov (%p28_p1, %s26_s18), 0  ;;  %p184_p3 = pnand %p894_p0, %p183_p2 }
   0x6   : > { %p218_p4 = scmp.lt.s32.totalorder (!%p184_p3), %s1117_s15, 1 }
   0x7   : > { %187 = sbr.rel (%p184_p3) target bundleno = 290 (0x122), region = 36 }
   0xc   : > { %v1102_v0 = vld [vmem:[%s1275_s1 + $0x4] ss:$8 sps:$4 sm:$0xff]   ;;  %v1127_v1 = vmov 0   ;;  %s1284_s15 = smov (!%p218_p4, %s1117_s15), 1 }
   0xd   : > { %1002 = vset.pattern.permute.xlu0 %v1127_v1  ;;  %v719_v2 = vld [vmem:[%s1276_s2] sm:$0xff]  ;;  %1003 = vset.pattern.permute.xlu1 %v1127_v1  ;;  %v720_v4 = vld [vmem:[%s1276_s2 + $0x8] sm:$0xff]  ;;  %s971_s29 = sshll.u32 %s1284_s15, 9  ;;  %s972_s9 = sshll.u32 %s1284_s15, 5 }
   0xe   : > { %v739_v3 = vld [vmem:[%s1277_s3] sm:$0xff]  ;;  %723 = vperm.xlu0 %1002, %v719_v2   ;;  %665 = vmatprep.mubr.bf16.mxu0 %v1102_v0  ;;  %v740_v5 = vld [vmem:[%s1277_s3 + $0x8] sm:$0xff]  ;;  %s1192_s6 = scalar_lea.vmem %s1274_s0, %s971_s29  ;;  %s235_s12 = scalar_lea.vmem %s1278_s4, %s972_s9 }
   0xf   : > { %743 = vperm.xlu1 %1003, %v739_v3   ;;  %708 = vmatprep.mubr.bf16.mxu1 %v1102_v0  ;;  %v1004_v6 = vld [vmem:[%s1192_s6 + $0xe4] ss:$16 sps:$4 sm:$0xff]   ;;  %v1006_v7 = vld [vmem:[%s1192_s6 + $0xec] ss:$16 sps:$4 sm:$0xff]   ;;  %v1008_v8 = vld [vmem:[%s1192_s6 + $0xe0] ss:$16 sps:$4 sm:$0xff]  }
  0x10   : > { %633 = vmatprep.subr.bf16.mxu0 %v1004_v6  ;;  %v1009_v9 = vld [vmem:[%s1192_s6 + $0xe8] ss:$16 sps:$4 sm:$0xff]   ;;  %676 = vmatprep.subr.bf16.mxu1 %v1006_v7  ;;  %v1010_v10 = vld [vmem:[%s1192_s6 + $0xc4] ss:$16 sps:$4 sm:$0xff]   ;;  %v1012_v11 = vld [vmem:[%s1192_s6 + $0xcc] ss:$16 sps:$4 sm:$0xff]  }
  0x11   : > { %634 = vmatpush1.bf16.msra.mxu0 %v1008_v8  ;;  %677 = vmatpush1.bf16.msra.mxu1 %v1009_v9  ;;  %v1014_v12 = vld [vmem:[%s1192_s6 + $0xc0] ss:$16 sps:$4 sm:$0xff]   ;;  %v1015_v13 = vld [vmem:[%s1192_s6 + $0xc8] ss:$16 sps:$4 sm:$0xff]   ;;  %v1016_v14 = vld [vmem:[%s1192_s6 + $0xa4] ss:$16 sps:$4 sm:$0xff]  }
  0x12   : > { %728 = vperm.xlu0 %1002, %v720_v4   ;;  %635 = vmatprep.subr.bf16.mxu0 %v1010_v10  ;;  %v1018_v15 = vld [vmem:[%s1192_s6 + $0xac] ss:$16 sps:$4 sm:$0xff]   ;;  %v1020_v16 = vld [vmem:[%s1192_s6 + $0xa0] ss:$16 sps:$4 sm:$0xff]   ;;  %v1021_v17 = vld [vmem:[%s1192_s6 + $0xa8] ss:$16 sps:$4 sm:$0xff]  }
  0x13   : > { %748 = vperm.xlu1 %1003, %v740_v5   ;;  %678 = vmatprep.subr.bf16.mxu1 %v1012_v11  ;;  %v1022_v18 = vld [vmem:[%s1192_s6 + $0x84] ss:$16 sps:$4 sm:$0xff]   ;;  %v1024_v19 = vld [vmem:[%s1192_s6 + $0x8c] ss:$16 sps:$4 sm:$0xff]   ;;  %v1026_v20 = vld [vmem:[%s1192_s6 + $0x80] ss:$16 sps:$4 sm:$0xff]  }
  0x14   : > { %v1027_v21 = vld [vmem:[%s1192_s6 + $0x88] ss:$16 sps:$4 sm:$0xff]   ;;  %v1028_v22 = vld [vmem:[%s1192_s6 + $0x64] ss:$16 sps:$4 sm:$0xff]   ;;  %v1030_v23 = vld [vmem:[%s1192_s6 + $0x6c] ss:$16 sps:$4 sm:$0xff]  }
  0x15   : > { %636 = vmatpush1.bf16.msra.mxu0 %v1014_v12  ;;  %679 = vmatpush1.bf16.msra.mxu1 %v1015_v13  ;;  %v1032_v24 = vld [vmem:[%s1192_s6 + $0x60] ss:$16 sps:$4 sm:$0xff]   ;;  %v1033_v25 = vld [vmem:[%s1192_s6 + $0x68] ss:$16 sps:$4 sm:$0xff]   ;;  %v1034_v26 = vld [vmem:[%s1192_s6 + $0x44] ss:$16 sps:$4 sm:$0xff]  }
  0x16   : > { %637 = vmatprep.subr.bf16.mxu0 %v1016_v14  ;;  %680 = vmatprep.subr.bf16.mxu1 %v1018_v15  ;;  %v1036_v27 = vld [vmem:[%s1192_s6 + $0x4c] ss:$16 sps:$4 sm:$0xff]   ;;  %v1038_v28 = vld [vmem:[%s1192_s6 + $0x40] ss:$16 sps:$4 sm:$0xff]   ;;  %v1039_v29 = vld [vmem:[%s1192_s6 + $0x48] ss:$16 sps:$4 sm:$0xff]  }
  0x17   : > { %v1040_v30 = vld [vmem:[%s1192_s6 + $0x24] ss:$16 sps:$4 sm:$0xff]   ;;  %v1042_v31 = vld [vmem:[%s1192_s6 + $0x2c] ss:$16 sps:$4 sm:$0xff]   ;;  %v1044_v32 = vld [vmem:[%s1192_s6 + $0x20] ss:$16 sps:$4 sm:$0xff]  }
  0x18   : > { %v1045_v33 = vld [vmem:[%s1192_s6 + $0x28] ss:$16 sps:$4 sm:$0xff]   ;;  %v1046_v34 = vld [vmem:[%s1192_s6 + $0x4] ss:$16 sps:$4 sm:$0xff]   ;;  %v1048_v35 = vld [vmem:[%s1192_s6 + $0xc] ss:$16 sps:$4 sm:$0xff]  }
  0x19   : > { %638 = vmatpush1.bf16.msra.mxu0 %v1020_v16  ;;  %681 = vmatpush1.bf16.msra.mxu1 %v1021_v17  ;;  %v1050_v36 = vld [vmem:[%s1192_s6] ss:$16 sps:$4 sm:$0xff]   ;;  %v1051_v37 = vld [vmem:[%s1192_s6 + $0x8] ss:$16 sps:$4 sm:$0xff]   ;;  %v1052_v38 = vld [vmem:[%s1192_s6 + $0x1e4] ss:$16 sps:$4 sm:$0xff]  }
  0x1a   : > { %639 = vmatprep.subr.bf16.mxu0 %v1022_v18  ;;  %682 = vmatprep.subr.bf16.mxu1 %v1024_v19  ;;  %v1054_v39 = vld [vmem:[%s1192_s6 + $0x1ec] ss:$16 sps:$4 sm:$0xff]   ;;  %v1056_v40 = vld [vmem:[%s1192_s6 + $0x1e0] ss:$16 sps:$4 sm:$0xff]   ;;  %v1057_v41 = vld [vmem:[%s1192_s6 + $0x1e8] ss:$16 sps:$4 sm:$0xff]  }
  0x1b   : > { %v1058_v42 = vld [vmem:[%s1192_s6 + $0x1c4] ss:$16 sps:$4 sm:$0xff]   ;;  %v1060_v43 = vld [vmem:[%s1192_s6 + $0x1cc] ss:$16 sps:$4 sm:$0xff]   ;;  %v1062_v44 = vld [vmem:[%s1192_s6 + $0x1c0] ss:$16 sps:$4 sm:$0xff]  }
  0x1c   : > { %v1063_v45 = vld [vmem:[%s1192_s6 + $0x1c8] ss:$16 sps:$4 sm:$0xff]   ;;  %v1064_v46 = vld [vmem:[%s1192_s6 + $0x1a4] ss:$16 sps:$4 sm:$0xff]   ;;  %v1066_v47 = vld [vmem:[%s1192_s6 + $0x1ac] ss:$16 sps:$4 sm:$0xff]  }
  0x1d   : > { %640 = vmatpush1.bf16.msra.mxu0 %v1026_v20  ;;  %683 = vmatpush1.bf16.msra.mxu1 %v1027_v21  ;;  %v1068_v48 = vld [vmem:[%s1192_s6 + $0x1a0] ss:$16 sps:$4 sm:$0xff]   ;;  %v1069_v49 = vld [vmem:[%s1192_s6 + $0x1a8] ss:$16 sps:$4 sm:$0xff]   ;;  %v1070_v50 = vld [vmem:[%s1192_s6 + $0x184] ss:$16 sps:$4 sm:$0xff]  }
  0x1e   : > { %641 = vmatprep.subr.bf16.mxu0 %v1028_v22  ;;  %684 = vmatprep.subr.bf16.mxu1 %v1030_v23  ;;  %v1072_v51 = vld [vmem:[%s1192_s6 + $0x18c] ss:$16 sps:$4 sm:$0xff]   ;;  %v1074_v52 = vld [vmem:[%s1192_s6 + $0x180] ss:$16 sps:$4 sm:$0xff]   ;;  %v1075_v53 = vld [vmem:[%s1192_s6 + $0x188] ss:$16 sps:$4 sm:$0xff]  }
  0x1f   : > { %v1076_v54 = vld [vmem:[%s1192_s6 + $0x164] ss:$16 sps:$4 sm:$0xff]   ;;  %v1078_v55 = vld [vmem:[%s1192_s6 + $0x16c] ss:$16 sps:$4 sm:$0xff]   ;;  %v1080_v56 = vld [vmem:[%s1192_s6 + $0x160] ss:$16 sps:$4 sm:$0xff]  }
  0x20   : > { %v1081_v57 = vld [vmem:[%s1192_s6 + $0x168] ss:$16 sps:$4 sm:$0xff]   ;;  %v1082_v58 = vld [vmem:[%s1192_s6 + $0x144] ss:$16 sps:$4 sm:$0xff]   ;;  %v1084_v59 = vld [vmem:[%s1192_s6 + $0x14c] ss:$16 sps:$4 sm:$0xff]  }
  0x21   : > { %642 = vmatpush1.bf16.msra.mxu0 %v1032_v24  ;;  %685 = vmatpush1.bf16.msra.mxu1 %v1033_v25  ;;  %v1086_v60 = vld [vmem:[%s1192_s6 + $0x140] ss:$16 sps:$4 sm:$0xff]   ;;  %v1087_v61 = vld [vmem:[%s1192_s6 + $0x148] ss:$16 sps:$4 sm:$0xff]   ;;  %v1088_v62 = vld [vmem:[%s1192_s6 + $0x124] ss:$16 sps:$4 sm:$0xff]  }
  0x22   : > { %643 = vmatprep.subr.bf16.mxu0 %v1034_v26  ;;  %686 = vmatprep.subr.bf16.mxu1 %v1036_v27  ;;  %v1090_v63 = vld [vmem:[%s1192_s6 + $0x12c] ss:$16 sps:$4 sm:$0xff]   ;;  %v1092_v0 = vld [vmem:[%s1192_s6 + $0x120] ss:$16 sps:$4 sm:$0xff]   ;;  %v1093_v1 = vld [vmem:[%s1192_s6 + $0x128] ss:$16 sps:$4 sm:$0xff]  }
  0x23   : > { %v1094_v2 = vld [vmem:[%s1192_s6 + $0x104] ss:$16 sps:$4 sm:$0xff]   ;;  %v1096_v3 = vld [vmem:[%s1192_s6 + $0x10c] ss:$16 sps:$4 sm:$0xff]   ;;  %v1098_v4 = vld [vmem:[%s1192_s6 + $0x100] ss:$16 sps:$4 sm:$0xff]  }
  0x24   : > { %v1099_v5 = vld [vmem:[%s1192_s6 + $0x108] ss:$16 sps:$4 sm:$0xff]  }
  0x25   : > { %644 = vmatpush1.bf16.msra.mxu0 %v1038_v28  ;;  %687 = vmatpush1.bf16.msra.mxu1 %v1039_v29  ;;  %v1100_v6 = vld [vmem:[%s1275_s1] ss:$8 sps:$4 sm:$0xff]  }
  0x26   : > { %645 = vmatprep.subr.bf16.mxu0 %v1040_v30  ;;  %688 = vmatprep.subr.bf16.mxu1 %v1042_v31 }
  0x29   : > { %646 = vmatpush1.bf16.msra.mxu0 %v1044_v32  ;;  %689 = vmatpush1.bf16.msra.mxu1 %v1045_v33 }
  0x2a   : > { %647 = vmatprep.subr.bf16.mxu0 %v1046_v34  ;;  %690 = vmatprep.subr.bf16.mxu1 %v1048_v35 }
  0x2d   : > { %648 = vmatpush1.bf16.msra.mxu0 %v1050_v36  ;;  %691 = vmatpush1.bf16.msra.mxu1 %v1051_v37 }
  0x2e   : > { %649 = vmatprep.subr.bf16.mxu0 %v1052_v38  ;;  %692 = vmatprep.subr.bf16.mxu1 %v1054_v39 }
  0x31   : > { %650 = vmatpush2.bf16.msra.mxu0 %v1056_v40  ;;  %693 = vmatpush2.bf16.msra.mxu1 %v1057_v41 }
  0x32   : > { %651 = vmatprep.subr.bf16.mxu0 %v1058_v42  ;;  %694 = vmatprep.subr.bf16.mxu1 %v1060_v43 }
  0x35   : > { %652 = vmatpush2.bf16.msra.mxu0 %v1062_v44  ;;  %695 = vmatpush2.bf16.msra.mxu1 %v1063_v45 }
  0x36   : > { %653 = vmatprep.subr.bf16.mxu0 %v1064_v46  ;;  %696 = vmatprep.subr.bf16.mxu1 %v1066_v47 }
  0x39   : > { %654 = vmatpush2.bf16.msra.mxu0 %v1068_v48  ;;  %697 = vmatpush2.bf16.msra.mxu1 %v1069_v49 }
  0x3a   : > { %655 = vmatprep.subr.bf16.mxu0 %v1070_v50  ;;  %698 = vmatprep.subr.bf16.mxu1 %v1072_v51 }
  0x3d   : > { %656 = vmatpush2.bf16.msra.mxu0 %v1074_v52  ;;  %699 = vmatpush2.bf16.msra.mxu1 %v1075_v53 }
  0x3e   : > { %657 = vmatprep.subr.bf16.mxu0 %v1076_v54  ;;  %700 = vmatprep.subr.bf16.mxu1 %v1078_v55 }
  0x41   : > { %658 = vmatpush2.bf16.msra.mxu0 %v1080_v56  ;;  %701 = vmatpush2.bf16.msra.mxu1 %v1081_v57 }
  0x42   : > { %659 = vmatprep.subr.bf16.mxu0 %v1082_v58  ;;  %702 = vmatprep.subr.bf16.mxu1 %v1084_v59 }
  0x45   : > { %660 = vmatpush2.bf16.msra.mxu0 %v1086_v60  ;;  %703 = vmatpush2.bf16.msra.mxu1 %v1087_v61 }
  0x46   : > { %661 = vmatprep.subr.bf16.mxu0 %v1088_v62  ;;  %704 = vmatprep.subr.bf16.mxu1 %v1090_v63 }
  0x49   : > { %662 = vmatpush2.bf16.msra.mxu0 %v1092_v0  ;;  %705 = vmatpush2.bf16.msra.mxu1 %v1093_v1 }
  0x4a   : > { %663 = vmatprep.subr.bf16.mxu0 %v1094_v2  ;;  %706 = vmatprep.subr.bf16.mxu1 %v1096_v3 }
  0x4d   : > { %664 = vmatpush2.bf16.msra.mxu0 %v1098_v4  ;;  %707 = vmatpush2.bf16.msra.mxu1 %v1099_v5 }
  0x50   : > { %666 = vmatmul.mubr.bf16.vlgmr.msra.gmra.mxu0 %v1100_v6  ;;  %709 = vmatmul.mubr.bf16.vlgmr.msra.gmra.mxu1 %v1100_v6 }
  0x89   : > { %v724_v7 = vpop.permute.xlu0 %723 }
  0x8a   : > { %v744_v10 = vpop.permute.xlu1 %743 }
  0x8d   : > { %v729_v23 = vpop.permute.xlu0 %728 }
  0x8e   : > { %v749_v32 = vpop.permute.xlu1 %748 }
 0x110   : > { %v667_v8 = vpop.f32.mrf.mxu0  ;;  %v710_v9 = vpop.f32.mrf.mxu1 }
 0x111   : > { %v731_v11 = vmul.f32 %v724_v7, %v667_v8  ;;  %v733_v12 = vmul.f32 %v724_v7, %v710_v9 }
 0x112   : > { %v669_v13 = vpop.f32.mrf.mxu0  ;;  %v712_v14 = vpop.f32.mrf.mxu1 }
 0x113   : > { %v751_v15 = vadd.f32 %v744_v10, %v731_v11  ;;  %v753_v16 = vadd.f32 %v744_v10, %v733_v12  ;;  %v732_v17 = vmul.f32 %v724_v7, %v669_v13  ;;  %v734_v18 = vmul.f32 %v724_v7, %v712_v14 }
 0x114   : > { %v671_v19 = vpop.f32.mrf.mxu0  ;;  %v714_v20 = vpop.f32.mrf.mxu1 }
 0x115   : > { %v759_v21 = vmul.f32 0.2, %v751_v15  ;;  %v761_v22 = vmul.f32 0.2, %v753_v16  ;;  %v752_v24 = vadd.f32 %v744_v10, %v732_v17  ;;  %v754_v25 = vadd.f32 %v744_v10, %v734_v18 }
 0x116   : > { %v735_v26 = vmul.f32 %v729_v23, %v671_v19  ;;  %v737_v27 = vmul.f32 %v729_v23, %v714_v20  ;;  %v673_v28 = vpop.f32.mrf.mxu0  ;;  %v716_v29 = vpop.f32.mrf.mxu1 }
 0x117   : > { %v760_v30 = vmul.f32 0.2, %v752_v24  ;;  %v762_v31 = vmul.f32 0.2, %v754_v25  ;;  %v736_v35 = vmul.f32 %v729_v23, %v673_v28  ;;  %v738_v36 = vmul.f32 %v729_v23, %v716_v29 }
 0x118   : > { %v755_v33 = vadd.f32 %v749_v32, %v735_v26  ;;  %v757_v34 = vadd.f32 %v749_v32, %v737_v27  ;;  %v767_v37 = vmax.f32 %v751_v15, %v759_v21  ;;  %v769_v38 = vmax.f32 %v753_v16, %v761_v22 }
 0x119   : > { %v768_v39 = vmax.f32 %v752_v24, %v760_v30  ;;  %v770_v40 = vmax.f32 %v754_v25, %v762_v31  ;;  %v756_v43 = vadd.f32 %v749_v32, %v736_v35  ;;  %v758_v44 = vadd.f32 %v749_v32, %v738_v36 }
 0x11a   : > { %v763_v41 = vmul.f32 0.2, %v755_v33  ;;  %v765_v42 = vmul.f32 0.2, %v757_v34 }
 0x11b   : > { %v973_v45 = vpack.c.bf16 %v768_v39, %v767_v37  ;;  %v974_v46 = vpack.c.bf16 %v770_v40, %v769_v38  ;;  %v764_v47 = vmul.f32 0.2, %v756_v43  ;;  %v766_v48 = vmul.f32 0.2, %v758_v44 }
 0x11c   : > { %v771_v49 = vmax.f32 %v755_v33, %v763_v41  ;;  %v773_v50 = vmax.f32 %v757_v34, %v765_v42 }
 0x11d   : > { %799 = vst [vmem:[%s235_s12] sm:$0xff] %v973_v45  ;;  %800 = vst [vmem:[%s235_s12 + $0x8] sm:$0xff] %v974_v46  ;;  %v772_v51 = vmax.f32 %v756_v43, %v764_v47  ;;  %v774_v52 = vmax.f32 %v758_v44, %v766_v48 }
 0x11f   : > { %v975_v53 = vpack.c.bf16 %v772_v51, %v771_v49  ;;  %v976_v54 = vpack.c.bf16 %v774_v52, %v773_v50 }
 0x121   : > { %801 = vst [vmem:[%s235_s12 + $0x10] sm:$0xff] %v975_v53  ;;  %802 = vst [vmem:[%s235_s12 + $0x18] sm:$0xff] %v976_v54 }
 0x122 PF: > { %s14_s17 = sadd.s32 1, %s1125_s17   ;;  %s1279_s15 = smov %s1121_s16 }
 0x123   : > { %p11_p5 = scmp.ge.s32.totalorder %s14_s17, 4   ;;  %s1280_s16 = smov %s1282_s18 }
 0x125   :  { %13 = sbr.rel (!%p11_p5) target bundleno = 2 (0x2), region = 66 }

// kernel: forward.17
= control target key start
LH: loop header
LB: loop body
LE: loop exit
PB: predicated region body
PF: predicated region fallthrough
CT: control target
= control target key end

     0   :  { %s1053_s15 = smov 0   ;;  %s1055_s16 = smov 0   ;;  %s1190_s0 = inlined_call_operand.vmem [shape: bf16[2,144,512], index: 0, kind: input, shape index: {}]   ;;  %s1191_s1 = inlined_call_operand.vmem [shape: bf16[32,144], index: 1, kind: input, shape index: {}]   ;;  %s1192_s2 = inlined_call_operand.vmem [shape: f32[32,1], index: 2, kind: input, shape index: {}]   ;;  %s1193_s3 = inlined_call_operand.vmem [shape: f32[32,1], index: 3, kind: input, shape index: {}]   ;;  %s1194_s4 = inlined_call_operand.vmem [shape: bf16[2,32,512], index: 4, kind: output, shape index: {}]  }
   0x1   :  { %s1057_s17 = smov 0  }
   0x2 LB: > { %s26_s18 = sadd.s32 1, %s1021_s16  ;;  %p848_p0 = scmp.ge.s32.totalorder %s1025_s17, 1  ;;  %s1025_s17 = sphi %s1057_s17, %s14_s17   ;;  %s1021_s16 = sphi %s1055_s16, %s1196_s16   ;;  %s1017_s15 = sphi %s1053_s15, %s1195_s15  }
   0x3   : > { %p28_p1 = scmp.ge.s32.totalorder %s26_s18, 2  ;;  %p183_p2 = scmp.lt.s32.totalorder %s1025_s17, 3 }
   0x5   : > { %s1198_s18 = smov (%p28_p1, %s26_s18), 0  ;;  %p184_p3 = pnand %p848_p0, %p183_p2 }
   0x6   : > { %p218_p4 = scmp.lt.s32.totalorder (!%p184_p3), %s1017_s15, 1 }
   0x7   : > { %187 = sbr.rel (%p184_p3) target bundleno = 272 (0x110), region = 36 }
   0xc   : > { %vm476_vm0 = vcmask 130048   ;;  %v999_v0 = vld [vmem:[%s1191_s1 + $0x4] ss:$8 sps:$4 sm:$0xff]   ;;  %s1200_s15 = smov (!%p218_p4, %s1017_s15), 1  ;;  %v1027_v1 = vmov 0   ;;  %v591_v2 = vld [vmem:[%s1192_s2 + $0x10] sm:$0xff] }
   0xd   : > { %942 = vset.pattern.permute.xlu1 %v1027_v1  ;;  %941 = vset.pattern.permute.xlu0 %v1027_v1  ;;  %v589_v3 = vld [vmem:[%s1192_s2] sm:$0xff]  ;;  %s915_s25 = smul.u32 288, %s1200_s15  ;;  %v592_v4 = vld [vmem:[%s1192_s2 + $0x18] sm:$0xff]  ;;  %v590_v5 = vld [vmem:[%s1192_s2 + $0x8] sm:$0xff] }
   0xe   : > { %892 = vmatprep.mubr.msk.bf16.mxu0 %vm476_vm0, %v999_v0  ;;  %894 = vmatprep.mubr.msk.bf16.mxu1 %vm476_vm0, %v999_v0  ;;  %v630_v7 = vld [vmem:[%s1193_s3 + $0x8] sm:$0xff]  ;;  %v629_v9 = vld [vmem:[%s1193_s3] sm:$0xff]  ;;  %v632_v16 = vld [vmem:[%s1193_s3 + $0x18] sm:$0xff] }
   0xf   : > { %605 = vperm.xlu1 %942, %v591_v2   ;;  %595 = vperm.xlu0 %941, %v589_v3   ;;  %s1094_s6 = scalar_lea.vmem %s1190_s0, %s915_s25  ;;  %v631_v17 = vld [vmem:[%s1193_s3 + $0x10] sm:$0xff]  ;;  %v997_v46 = vld [vmem:[%s1191_s1] ss:$8 sps:$4 sm:$0xff]   ;;  %s906_s25 = sshll.u32 %s1200_s15, 6 }
  0x10   : > { %v943_v6 = vld [vmem:[%s1094_s6 + $0xe4] ss:$16 sps:$4 sm:$0xff]   ;;  %v945_v8 = vld [vmem:[%s1094_s6 + $0xec] ss:$16 sps:$4 sm:$0xff]   ;;  %v947_v10 = vld [vmem:[%s1094_s6 + $0xe0] ss:$16 sps:$4 sm:$0xff]   ;;  %s1165_s28 = scalar_lea.vmem %s1194_s4, %s906_s25 }
  0x11   : > { %483 = vmatprep.subr.bf16.mxu0 %v943_v6  ;;  %v948_v11 = vld [vmem:[%s1094_s6 + $0xe8] ss:$16 sps:$4 sm:$0xff]   ;;  %536 = vmatprep.subr.bf16.mxu1 %v945_v8  ;;  %v949_v12 = vld [vmem:[%s1094_s6 + $0xc4] ss:$16 sps:$4 sm:$0xff]   ;;  %v951_v13 = vld [vmem:[%s1094_s6 + $0xcc] ss:$16 sps:$4 sm:$0xff]  }
  0x12   : > { %484 = vmatpush1.bf16.msra.mxu0 %v947_v10  ;;  %537 = vmatpush1.bf16.msra.mxu1 %v948_v11  ;;  %v953_v14 = vld [vmem:[%s1094_s6 + $0xc0] ss:$16 sps:$4 sm:$0xff]   ;;  %v954_v15 = vld [vmem:[%s1094_s6 + $0xc8] ss:$16 sps:$4 sm:$0xff]   ;;  %v955_v18 = vld [vmem:[%s1094_s6 + $0xa4] ss:$16 sps:$4 sm:$0xff]  }
  0x13   : > { %610 = vperm.xlu1 %942, %v592_v4   ;;  %600 = vperm.xlu0 %941, %v590_v5   ;;  %v957_v19 = vld [vmem:[%s1094_s6 + $0xac] ss:$16 sps:$4 sm:$0xff]   ;;  %v959_v20 = vld [vmem:[%s1094_s6 + $0xa0] ss:$16 sps:$4 sm:$0xff]   ;;  %v960_v21 = vld [vmem:[%s1094_s6 + $0xa8] ss:$16 sps:$4 sm:$0xff]  }
  0x14   : > { %485 = vmatprep.subr.bf16.mxu0 %v949_v12  ;;  %538 = vmatprep.subr.bf16.mxu1 %v951_v13  ;;  %v961_v22 = vld [vmem:[%s1094_s6 + $0x84] ss:$16 sps:$4 sm:$0xff]   ;;  %v963_v23 = vld [vmem:[%s1094_s6 + $0x8c] ss:$16 sps:$4 sm:$0xff]   ;;  %v965_v24 = vld [vmem:[%s1094_s6 + $0x80] ss:$16 sps:$4 sm:$0xff]  }
  0x15   : > { %v966_v25 = vld [vmem:[%s1094_s6 + $0x88] ss:$16 sps:$4 sm:$0xff]   ;;  %v967_v26 = vld [vmem:[%s1094_s6 + $0x64] ss:$16 sps:$4 sm:$0xff]   ;;  %v969_v27 = vld [vmem:[%s1094_s6 + $0x6c] ss:$16 sps:$4 sm:$0xff]  }
  0x16   : > { %486 = vmatpush1.bf16.msra.mxu0 %v953_v14  ;;  %539 = vmatpush1.bf16.msra.mxu1 %v954_v15  ;;  %v971_v28 = vld [vmem:[%s1094_s6 + $0x60] ss:$16 sps:$4 sm:$0xff]   ;;  %v972_v29 = vld [vmem:[%s1094_s6 + $0x68] ss:$16 sps:$4 sm:$0xff]   ;;  %v973_v30 = vld [vmem:[%s1094_s6 + $0x44] ss:$16 sps:$4 sm:$0xff]  }
  0x17   : > { %640 = vperm.xlu1 %942, %v630_v7   ;;  %635 = vperm.xlu0 %941, %v629_v9   ;;  %v975_v31 = vld [vmem:[%s1094_s6 + $0x4c] ss:$16 sps:$4 sm:$0xff]   ;;  %v977_v32 = vld [vmem:[%s1094_s6 + $0x40] ss:$16 sps:$4 sm:$0xff]   ;;  %v978_v33 = vld [vmem:[%s1094_s6 + $0x48] ss:$16 sps:$4 sm:$0xff]  }
  0x18   : > { %487 = vmatprep.subr.bf16.mxu0 %v955_v18  ;;  %540 = vmatprep.subr.bf16.mxu1 %v957_v19  ;;  %v979_v34 = vld [vmem:[%s1094_s6 + $0x24] ss:$16 sps:$4 sm:$0xff]   ;;  %v981_v35 = vld [vmem:[%s1094_s6 + $0x2c] ss:$16 sps:$4 sm:$0xff]   ;;  %v983_v36 = vld [vmem:[%s1094_s6 + $0x20] ss:$16 sps:$4 sm:$0xff]  }
  0x19   : > { %v984_v37 = vld [vmem:[%s1094_s6 + $0x28] ss:$16 sps:$4 sm:$0xff]   ;;  %v985_v38 = vld [vmem:[%s1094_s6 + $0x4] ss:$16 sps:$4 sm:$0xff]   ;;  %v987_v39 = vld [vmem:[%s1094_s6 + $0xc] ss:$16 sps:$4 sm:$0xff]  }
  0x1a   : > { %488 = vmatpush1.bf16.msra.mxu0 %v959_v20  ;;  %541 = vmatpush1.bf16.msra.mxu1 %v960_v21  ;;  %v989_v40 = vld [vmem:[%s1094_s6] ss:$16 sps:$4 sm:$0xff]   ;;  %v990_v41 = vld [vmem:[%s1094_s6 + $0x8] ss:$16 sps:$4 sm:$0xff]   ;;  %v991_v42 = vld [vmem:[%s1094_s6 + $0x104] ss:$16 sps:$4 sm:$0xff]  }
  0x1b   : > { %650 = vperm.xlu1 %942, %v632_v16   ;;  %645 = vperm.xlu0 %941, %v631_v17   ;;  %v993_v43 = vld [vmem:[%s1094_s6 + $0x10c] ss:$16 sps:$4 sm:$0xff]   ;;  %v995_v44 = vld [vmem:[%s1094_s6 + $0x100] ss:$16 sps:$4 sm:$0xff]   ;;  %v996_v45 = vld [vmem:[%s1094_s6 + $0x108] ss:$16 sps:$4 sm:$0xff]  }
  0x1c   : > { %489 = vmatprep.subr.bf16.mxu0 %v961_v22  ;;  %542 = vmatprep.subr.bf16.mxu1 %v963_v23  ;;  %v1000_v47 = vld [vmem:[%s1191_s1 + $0x14] ss:$8 sps:$4 sm:$0xff]   ;;  %v1002_v48 = vld [vmem:[%s1191_s1 + $0x10] ss:$8 sps:$4 sm:$0xff]  }
  0x1e   : > { %490 = vmatpush1.bf16.msra.mxu0 %v965_v24  ;;  %543 = vmatpush1.bf16.msra.mxu1 %v966_v25 }
  0x1f   : > { %491 = vmatprep.subr.bf16.mxu0 %v967_v26  ;;  %544 = vmatprep.subr.bf16.mxu1 %v969_v27 }
  0x22   : > { %492 = vmatpush1.bf16.msra.mxu0 %v971_v28  ;;  %545 = vmatpush1.bf16.msra.mxu1 %v972_v29 }
  0x23   : > { %493 = vmatprep.subr.bf16.mxu0 %v973_v30  ;;  %546 = vmatprep.subr.bf16.mxu1 %v975_v31 }
  0x26   : > { %494 = vmatpush1.bf16.msra.mxu0 %v977_v32  ;;  %547 = vmatpush1.bf16.msra.mxu1 %v978_v33 }
  0x27   : > { %495 = vmatprep.subr.bf16.mxu0 %v979_v34  ;;  %548 = vmatprep.subr.bf16.mxu1 %v981_v35 }
  0x2a   : > { %496 = vmatpush1.bf16.msra.mxu0 %v983_v36  ;;  %549 = vmatpush1.bf16.msra.mxu1 %v984_v37 }
  0x2b   : > { %497 = vmatprep.subr.bf16.mxu0 %v985_v38  ;;  %550 = vmatprep.subr.bf16.mxu1 %v987_v39 }
  0x2e   : > { %498 = vmatpush1.bf16.msra.mxu0 %v989_v40  ;;  %551 = vmatpush1.bf16.msra.mxu1 %v990_v41 }
  0x2f   : > { %513 = vmatprep.subr.bf16.mxu0 %v991_v42  ;;  %566 = vmatprep.subr.bf16.mxu1 %v993_v43 }
  0x32   : > { %514 = vmatpush2.bf16.msra.mxu0 %v995_v44  ;;  %567 = vmatpush2.bf16.msra.mxu1 %v996_v45 }
  0x35   : > { %516 = vmatmul.mubr.bf16.vlgmr.msra.gmra.mxu0 %v997_v46  ;;  %569 = vmatmul.mubr.bf16.vlgmr.msra.gmra.mxu1 %v997_v46 }
  0x36   : > { %893 = vmatprep.mubr.msk.bf16.mxu0 %vm476_vm0, %v1000_v47  ;;  %895 = vmatprep.mubr.msk.bf16.mxu1 %vm476_vm0, %v1000_v47 }
  0x3d   : > { %526 = vmatmul.mubr.bf16.gmra.mxu0 %v1002_v48  ;;  %579 = vmatmul.mubr.bf16.gmra.mxu1 %v1002_v48 }
  0x8a   : > { %v596_v49 = vpop.permute.xlu0 %595  ;;  %v1155_v50 = vpop.permute.xlu1 %605 }
  0x8e   : > { %v601_v51 = vpop.permute.xlu0 %600  ;;  %v1157_v54 = vpop.permute.xlu1 %610 }
  0x92   : > { %v636_v55 = vpop.permute.xlu0 %635  ;;  %v641_v10 = vpop.permute.xlu1 %640 }
  0x96   : > { %v646_v23 = vpop.permute.xlu0 %645 }
  0xf5   : > { %v517_v52 = vpop.f32.mrf.mxu0  ;;  %v570_v53 = vpop.f32.mrf.mxu1 }
  0xf6   : > { %v613_v56 = vmul.f32 %v596_v49, %v517_v52  ;;  %v615_v57 = vmul.f32 %v596_v49, %v570_v53  ;;  %v651_v53 = vpop.permute.xlu1 %650 }
  0xf7   : > { %v519_v58 = vpop.f32.mrf.mxu0  ;;  %v572_v59 = vpop.f32.mrf.mxu1 }
  0xf8   : > { %v653_v60 = vadd.f32 %v636_v55, %v613_v56  ;;  %v655_v61 = vadd.f32 %v636_v55, %v615_v57  ;;  %v614_v62 = vmul.f32 %v596_v49, %v519_v58  ;;  %v616_v63 = vmul.f32 %v596_v49, %v572_v59 }
  0xf9   : > { %v521_v0 = vpop.f32.mrf.mxu0  ;;  %v574_v1 = vpop.f32.mrf.mxu1 }
  0xfa   : > { %v669_v2 = vmul.f32 0.2, %v653_v60  ;;  %v671_v3 = vmul.f32 0.2, %v655_v61  ;;  %v654_v4 = vadd.f32 %v636_v55, %v614_v62  ;;  %v656_v5 = vadd.f32 %v636_v55, %v616_v63 }
  0xfb   : > { %v617_v6 = vmul.f32 %v601_v51, %v521_v0  ;;  %v619_v7 = vmul.f32 %v601_v51, %v574_v1  ;;  %v523_v8 = vpop.f32.mrf.mxu0  ;;  %v576_v9 = vpop.f32.mrf.mxu1 }
  0xfc   : > { %v685_v11 = vmax.f32 %v653_v60, %v669_v2  ;;  %v687_v12 = vmax.f32 %v655_v61, %v671_v3  ;;  %v670_v13 = vmul.f32 0.2, %v654_v4  ;;  %v672_v14 = vmul.f32 0.2, %v656_v5 }
  0xfd   : > { %v657_v15 = vadd.f32 %v641_v10, %v617_v6  ;;  %v659_v16 = vadd.f32 %v641_v10, %v619_v7  ;;  %v618_v17 = vmul.f32 %v601_v51, %v523_v8  ;;  %v620_v18 = vmul.f32 %v601_v51, %v576_v9  ;;  %v527_v19 = vpop.f32.mrf.mxu0  ;;  %v580_v20 = vpop.f32.mrf.mxu1 }
  0xfe   : > { %v686_v21 = vmax.f32 %v654_v4, %v670_v13  ;;  %v688_v22 = vmax.f32 %v656_v5, %v672_v14  ;;  %v621_v24 = vmul.f32 %v1155_v50, %v527_v19  ;;  %v623_v25 = vmul.f32 %v1155_v50, %v580_v20 }
  0xff   : > { %v673_v26 = vmul.f32 0.2, %v657_v15  ;;  %v675_v27 = vmul.f32 0.2, %v659_v16  ;;  %v658_v28 = vadd.f32 %v641_v10, %v618_v17  ;;  %v660_v29 = vadd.f32 %v641_v10, %v620_v18  ;;  %v529_v30 = vpop.f32.mrf.mxu0  ;;  %v582_v31 = vpop.f32.mrf.mxu1 }
 0x100   : > { %v907_v32 = vpack.c.bf16 %v686_v21, %v685_v11  ;;  %v908_v33 = vpack.c.bf16 %v688_v22, %v687_v12  ;;  %v661_v34 = vadd.f32 %v646_v23, %v621_v24  ;;  %v663_v35 = vadd.f32 %v646_v23, %v623_v25 }
 0x101   : > { %v689_v36 = vmax.f32 %v657_v15, %v673_v26  ;;  %v691_v37 = vmax.f32 %v659_v16, %v675_v27  ;;  %v674_v38 = vmul.f32 0.2, %v658_v28  ;;  %v676_v39 = vmul.f32 0.2, %v660_v29  ;;  %v531_v40 = vpop.f32.mrf.mxu0  ;;  %v584_v41 = vpop.f32.mrf.mxu1 }
 0x102   : > { %749 = vst [vmem:[%s1165_s28] sm:$0xff] %v907_v32  ;;  %750 = vst [vmem:[%s1165_s28 + $0x8] sm:$0xff] %v908_v33  ;;  %v677_v42 = vmul.f32 0.2, %v661_v34  ;;  %v679_v43 = vmul.f32 0.2, %v663_v35  ;;  %v622_v44 = vmul.f32 %v1155_v50, %v529_v30  ;;  %v624_v45 = vmul.f32 %v1155_v50, %v582_v31 }
 0x103   : > { %v690_v46 = vmax.f32 %v658_v28, %v674_v38  ;;  %v692_v47 = vmax.f32 %v660_v29, %v676_v39  ;;  %v625_v48 = vmul.f32 %v1157_v54, %v531_v40  ;;  %v627_v49 = vmul.f32 %v1157_v54, %v584_v41  ;;  %v533_v51 = vpop.f32.mrf.mxu0  ;;  %v586_v52 = vpop.f32.mrf.mxu1 }
 0x104   : > { %v662_v55 = vadd.f32 %v646_v23, %v622_v44  ;;  %v664_v56 = vadd.f32 %v646_v23, %v624_v45  ;;  %v626_v50 = vmul.f32 %v1157_v54, %v533_v51  ;;  %v628_v63 = vmul.f32 %v1157_v54, %v586_v52 }
 0x105   : > { %v909_v57 = vpack.c.bf16 %v690_v46, %v689_v36  ;;  %v910_v58 = vpack.c.bf16 %v692_v47, %v691_v37  ;;  %v665_v59 = vadd.f32 %v651_v53, %v625_v48  ;;  %v667_v60 = vadd.f32 %v651_v53, %v627_v49 }
 0x106   : > { %v678_v61 = vmul.f32 0.2, %v662_v55  ;;  %v680_v62 = vmul.f32 0.2, %v664_v56  ;;  %v693_v0 = vmax.f32 %v661_v34, %v677_v42  ;;  %v695_v1 = vmax.f32 %v663_v35, %v679_v43 }
 0x107   : > { %751 = vst [vmem:[%s1165_s28 + $0x10] sm:$0xff] %v909_v57  ;;  %752 = vst [vmem:[%s1165_s28 + $0x18] sm:$0xff] %v910_v58  ;;  %v681_v2 = vmul.f32 0.2, %v665_v59  ;;  %v683_v3 = vmul.f32 0.2, %v667_v60  ;;  %v666_v6 = vadd.f32 %v651_v53, %v626_v50  ;;  %v668_v7 = vadd.f32 %v651_v53, %v628_v63 }
 0x108   : > { %v694_v4 = vmax.f32 %v662_v55, %v678_v61  ;;  %v696_v5 = vmax.f32 %v664_v56, %v680_v62 }
 0x109   : > { %v682_v10 = vmul.f32 0.2, %v666_v6  ;;  %v684_v11 = vmul.f32 0.2, %v668_v7  ;;  %v697_v54 = vmax.f32 %v665_v59, %v681_v2  ;;  %v699_v12 = vmax.f32 %v667_v60, %v683_v3 }
 0x10a   : > { %v911_v8 = vpack.c.bf16 %v694_v4, %v693_v0  ;;  %v912_v9 = vpack.c.bf16 %v696_v5, %v695_v1 }
 0x10b   : > { %v698_v13 = vmax.f32 %v666_v6, %v682_v10  ;;  %v700_v14 = vmax.f32 %v668_v7, %v684_v11 }
 0x10c   : > { %753 = vst [vmem:[%s1165_s28 + $0x20] sm:$0xff] %v911_v8  ;;  %754 = vst [vmem:[%s1165_s28 + $0x28] sm:$0xff] %v912_v9 }
 0x10d   : > { %v913_v15 = vpack.c.bf16 %v698_v13, %v697_v54  ;;  %v914_v16 = vpack.c.bf16 %v700_v14, %v699_v12 }
 0x10f   : > { %755 = vst [vmem:[%s1165_s28 + $0x30] sm:$0xff] %v913_v15  ;;  %756 = vst [vmem:[%s1165_s28 + $0x38] sm:$0xff] %v914_v16 }
 0x110 PF: > { %s14_s17 = sadd.s32 1, %s1025_s17   ;;  %s1195_s15 = smov %s1021_s16 }
 0x111   : > { %p11_p5 = scmp.ge.s32.totalorder %s14_s17, 4   ;;  %s1196_s16 = smov %s1198_s18 }
 0x113   :  { %13 = sbr.rel (!%p11_p5) target bundleno = 2 (0x2), region = 66 }

// kernel: forward.18
= control target key start
LH: loop header
LB: loop body
LE: loop exit
PB: predicated region body
PF: predicated region fallthrough
CT: control target
= control target key end

     0   :  { %s1048_s15 = smov 0   ;;  %s1050_s16 = smov 0   ;;  %s1167_s0 = inlined_call_operand.vmem [shape: bf16[2,512,128], index: 0, kind: input, shape index: {}]   ;;  %s1168_s1 = inlined_call_operand.vmem [shape: bf16[32,512], index: 1, kind: input, shape index: {}]   ;;  %s1169_s2 = inlined_call_operand.vmem [shape: f32[32,1], index: 2, kind: input, shape index: {}]   ;;  %s1170_s3 = inlined_call_operand.vmem [shape: f32[32,1], index: 3, kind: input, shape index: {}]   ;;  %s1171_s4 = inlined_call_operand.vmem [shape: bf16[2,32,128], index: 4, kind: output, shape index: {}]  }
   0x1   :  { %s1052_s17 = smov 0  }
   0x2 LB: > { %s26_s18 = sadd.s32 1, %s1016_s16  ;;  %p803_p0 = scmp.ge.s32.totalorder %s1020_s17, 1  ;;  %s1020_s17 = sphi %s1052_s17, %s14_s17   ;;  %s1016_s16 = sphi %s1050_s16, %s1173_s16   ;;  %s1012_s15 = sphi %s1048_s15, %s1172_s15  }
   0x3   : > { %p28_p1 = scmp.ge.s32.totalorder %s26_s18, 2  ;;  %p181_p2 = scmp.lt.s32.totalorder %s1020_s17, 3 }
   0x5   : > { %s1175_s18 = smov (%p28_p1, %s26_s18), 0  ;;  %p182_p3 = pnand %p803_p0, %p181_p2 }
   0x6   : > { %p213_p4 = scmp.lt.s32.totalorder (!%p182_p3), %s1012_s15, 1 }
   0x7   : > { %185 = sbr.rel (%p182_p3) target bundleno = 272 (0x110), region = 36 }
   0xc   : > { %v988_v0 = vld [vmem:[%s1168_s1 + $0x4] ss:$16 sps:$4 sm:$0xff]   ;;  %v1022_v1 = vmov 0   ;;  %s1177_s15 = smov (!%p213_p4, %s1012_s15), 1  ;;  %v991_v2 = vld [vmem:[%s1168_s1 + $0xc] ss:$16 sps:$4 sm:$0xff]  }
   0xd   : > { %953 = vset.pattern.permute.xlu1 %v1022_v1  ;;  %952 = vset.pattern.permute.xlu0 %v1022_v1  ;;  %s854_s23 = sshll.u32 %s1177_s15, 8  ;;  %v634_v3 = vld [vmem:[%s1169_s2 + $0x10] sm:$0xff]  ;;  %v632_v4 = vld [vmem:[%s1169_s2] sm:$0xff]  ;;  %v989_v37 = vld [vmem:[%s1168_s1 + $0x8] ss:$16 sps:$4 sm:$0xff]   ;;  %s855_s7 = sshll.u32 %s1177_s15, 4 }
   0xe   : > { %566 = vmatprep.mubr.bf16.mxu0 %v988_v0  ;;  %615 = vmatprep.mubr.bf16.mxu1 %v991_v2  ;;  %s1078_s26 = scalar_lea.vmem %s1167_s0, %s854_s23  ;;  %v986_v35 = vld [vmem:[%s1168_s1] ss:$16 sps:$4 sm:$0xff]   ;;  %v992_v39 = vld [vmem:[%s1168_s1 + $0x24] ss:$16 sps:$4 sm:$0xff]   ;;  %v635_v40 = vld [vmem:[%s1169_s2 + $0x18] sm:$0xff]  ;;  %s228_s10 = scalar_lea.vmem %s1171_s4, %s855_s7 }
   0xf   : > { %v954_v5 = vld [vmem:[%s1078_s26 + $0x78] sm:$0xff]   ;;  %648 = vperm.xlu1 %953, %v634_v3   ;;  %638 = vperm.xlu0 %952, %v632_v4   ;;  %v958_v9 = vld [vmem:[%s1078_s26 + $0x70] sm:$0xff]   ;;  %v962_v13 = vld [vmem:[%s1078_s26 + $0x68] sm:$0xff]  }
  0x10   : > { %v955_v6 = vld [vmem:[%s1078_s26 + $0xf8] sm:$0xff]   ;;  %871 = vmatprep.subr.bf16.mxu0 %v954_v5  ;;  %v959_v10 = vld [vmem:[%s1078_s26 + $0xf0] sm:$0xff]   ;;  %v963_v14 = vld [vmem:[%s1078_s26 + $0xe8] sm:$0xff]  }
  0x11   : > { %v956_v7 = vld [vmem:[%s1078_s26 + $0x38] sm:$0xff]   ;;  %899 = vmatprep.subr.bf16.mxu1 %v955_v6  ;;  %v960_v11 = vld [vmem:[%s1078_s26 + $0x30] sm:$0xff]   ;;  %v964_v15 = vld [vmem:[%s1078_s26 + $0x28] sm:$0xff]  }
  0x12   : > { %v957_v8 = vld [vmem:[%s1078_s26 + $0xb8] sm:$0xff]   ;;  %872 = vmatpush3.bf16.msra.mxu0 %v956_v7  ;;  %v961_v12 = vld [vmem:[%s1078_s26 + $0xb0] sm:$0xff]   ;;  %v965_v16 = vld [vmem:[%s1078_s26 + $0xa8] sm:$0xff]  }
  0x13   : > { %900 = vmatpush3.bf16.msra.mxu1 %v957_v8  ;;  %873 = vmatprep.subr.bf16.mxu0 %v958_v9  ;;  %v966_v17 = vld [vmem:[%s1078_s26 + $0x60] sm:$0xff]   ;;  %v970_v21 = vld [vmem:[%s1078_s26 + $0x58] sm:$0xff]   ;;  %v974_v25 = vld [vmem:[%s1078_s26 + $0x50] sm:$0xff]  }
  0x14   : > { %901 = vmatprep.subr.bf16.mxu1 %v959_v10  ;;  %v967_v18 = vld [vmem:[%s1078_s26 + $0xe0] sm:$0xff]   ;;  %v971_v22 = vld [vmem:[%s1078_s26 + $0xd8] sm:$0xff]   ;;  %v975_v26 = vld [vmem:[%s1078_s26 + $0xd0] sm:$0xff]   ;;  %653 = vperm.xlu1 %953, %v635_v40  }
  0x15   : > { %v968_v19 = vld [vmem:[%s1078_s26 + $0x20] sm:$0xff]   ;;  %v972_v23 = vld [vmem:[%s1078_s26 + $0x18] sm:$0xff]   ;;  %v976_v27 = vld [vmem:[%s1078_s26 + $0x10] sm:$0xff]  }
  0x16   : > { %874 = vmatpush3.bf16.msra.mxu0 %v960_v11  ;;  %v969_v20 = vld [vmem:[%s1078_s26 + $0xa0] sm:$0xff]   ;;  %v973_v24 = vld [vmem:[%s1078_s26 + $0x98] sm:$0xff]   ;;  %v977_v28 = vld [vmem:[%s1078_s26 + $0x90] sm:$0xff]  }
  0x17   : > { %902 = vmatpush3.bf16.msra.mxu1 %v961_v12  ;;  %875 = vmatprep.subr.bf16.mxu0 %v962_v13  ;;  %v978_v29 = vld [vmem:[%s1078_s26 + $0x48] sm:$0xff]   ;;  %v982_v33 = vld [vmem:[%s1078_s26 + $0x40] sm:$0xff]   ;;  %v663_v45 = vld [vmem:[%s1170_s3 + $0x18] sm:$0xff] }
  0x18   : > { %903 = vmatprep.subr.bf16.mxu1 %v963_v14  ;;  %v979_v30 = vld [vmem:[%s1078_s26 + $0xc8] sm:$0xff]   ;;  %v983_v34 = vld [vmem:[%s1078_s26 + $0xc0] sm:$0xff]   ;;  %v662_v47 = vld [vmem:[%s1170_s3 + $0x10] sm:$0xff] }
  0x19   : > { %v980_v31 = vld [vmem:[%s1078_s26 + $0x8] sm:$0xff]   ;;  %v984_v36 = vld [vmem:[%s1078_s26] sm:$0xff]  }
  0x1a   : > { %876 = vmatpush3.bf16.msra.mxu0 %v964_v15  ;;  %v981_v32 = vld [vmem:[%s1078_s26 + $0x88] sm:$0xff]   ;;  %v985_v38 = vld [vmem:[%s1078_s26 + $0x80] sm:$0xff]  }
  0x1b   : > { %904 = vmatpush3.bf16.msra.mxu1 %v965_v16  ;;  %877 = vmatprep.subr.bf16.mxu0 %v966_v17  ;;  %v633_v41 = vld [vmem:[%s1169_s2 + $0x8] sm:$0xff]  ;;  %v660_v44 = vld [vmem:[%s1170_s3] sm:$0xff] }
  0x1c   : > { %905 = vmatprep.subr.bf16.mxu1 %v967_v18  ;;  %v994_v42 = vld [vmem:[%s1168_s1 + $0x2c] ss:$16 sps:$4 sm:$0xff]   ;;  %643 = vperm.xlu0 %952, %v633_v41   ;;  %v996_v46 = vld [vmem:[%s1168_s1 + $0x20] ss:$16 sps:$4 sm:$0xff]   ;;  %v997_v48 = vld [vmem:[%s1168_s1 + $0x28] ss:$16 sps:$4 sm:$0xff]  }
  0x1d   : > { %v661_v43 = vld [vmem:[%s1170_s3 + $0x8] sm:$0xff] }
  0x1e   : > { %878 = vmatpush3.bf16.msra.mxu0 %v968_v19  ;;  %671 = vperm.xlu1 %953, %v661_v43  }
  0x1f   : > { %906 = vmatpush3.bf16.msra.mxu1 %v969_v20  ;;  %879 = vmatprep.subr.bf16.mxu0 %v970_v21 }
  0x20   : > { %907 = vmatprep.subr.bf16.mxu1 %v971_v22  ;;  %666 = vperm.xlu0 %952, %v660_v44  }
  0x22   : > { %880 = vmatpush3.bf16.msra.mxu0 %v972_v23  ;;  %681 = vperm.xlu1 %953, %v663_v45  }
  0x23   : > { %908 = vmatpush3.bf16.msra.mxu1 %v973_v24  ;;  %881 = vmatprep.subr.bf16.mxu0 %v974_v25 }
  0x24   : > { %909 = vmatprep.subr.bf16.mxu1 %v975_v26  ;;  %676 = vperm.xlu0 %952, %v662_v47  }
  0x26   : > { %882 = vmatpush3.bf16.msra.mxu0 %v976_v27 }
  0x27   : > { %910 = vmatpush3.bf16.msra.mxu1 %v977_v28  ;;  %883 = vmatprep.subr.bf16.mxu0 %v978_v29 }
  0x28   : > { %911 = vmatprep.subr.bf16.mxu1 %v979_v30 }
  0x2a   : > { %884 = vmatpush3.bf16.msra.mxu0 %v980_v31 }
  0x2b   : > { %912 = vmatpush3.bf16.msra.mxu1 %v981_v32  ;;  %885 = vmatprep.subr.bf16.mxu0 %v982_v33 }
  0x2c   : > { %913 = vmatprep.subr.bf16.mxu1 %v983_v34 }
  0x2e   : > { %886 = vmatpush3.bf16.msra.mxu0 %v984_v36 }
  0x2f   : > { %914 = vmatpush3.bf16.msra.mxu1 %v985_v38 }
  0x31   : > { %567 = vmatmul.mubr.bf16.vlgmr.msra.gmra.mxu0 %v986_v35 }
  0x32   : > { %616 = vmatmul.mubr.bf16.vlgmr.msra.gmra.mxu1 %v989_v37  ;;  %574 = vmatprep.mubr.bf16.mxu0 %v992_v39 }
  0x33   : > { %623 = vmatprep.mubr.bf16.mxu1 %v994_v42 }
  0x39   : > { %575 = vmatmul.mubr.bf16.gmra.mxu0 %v996_v46 }
  0x3a   : > { %624 = vmatmul.mubr.bf16.gmra.mxu1 %v997_v48 }
  0x8a   : > { %v639_v49 = vpop.permute.xlu0 %638  ;;  %v649_v51 = vpop.permute.xlu1 %648 }
  0x8f   : > { %v654_v62 = vpop.permute.xlu1 %653 }
  0x97   : > { %v644_v54 = vpop.permute.xlu0 %643 }
  0x99   : > { %v672_v14 = vpop.permute.xlu1 %671 }
  0x9b   : > { %v667_v4 = vpop.permute.xlu0 %666 }
  0x9d   : > { %v682_v32 = vpop.permute.xlu1 %681 }
  0x9f   : > { %v677_v25 = vpop.permute.xlu0 %676 }
  0xf1   : > { %v887_v50 = vpop.f32.mrf.mxu0 }
  0xf2   : > { %v915_v52 = vpop.f32.mrf.mxu1 }
  0xf3   : > { %v888_v53 = vpop.f32.mrf.mxu0 }
  0xf4   : > { %v889_v55 = vadd.f32 %v888_v53, %v887_v50  ;;  %v916_v56 = vpop.f32.mrf.mxu1 }
  0xf5   : > { %v917_v57 = vadd.f32 %v916_v56, %v915_v52  ;;  %v890_v58 = vpop.f32.mrf.mxu0 }
  0xf6   : > { %v918_v59 = vpop.f32.mrf.mxu1 }
  0xf7   : > { %v618_v60 = vadd.f32 %v917_v57, %v889_v55  ;;  %v891_v61 = vpop.f32.mrf.mxu0 }
  0xf8   : > { %v892_v63 = vadd.f32 %v891_v61, %v890_v58  ;;  %v919_v0 = vpop.f32.mrf.mxu1 }
  0xf9   : > { %v656_v1 = vmul.f32 %v639_v49, %v618_v60  ;;  %v920_v2 = vadd.f32 %v919_v0, %v918_v59  ;;  %v893_v3 = vpop.f32.mrf.mxu0 }
  0xfa   : > { %v921_v5 = vpop.f32.mrf.mxu1 }
  0xfb   : > { %v684_v6 = vadd.f32 %v667_v4, %v656_v1  ;;  %v621_v7 = vadd.f32 %v920_v2, %v892_v63  ;;  %v894_v8 = vpop.f32.mrf.mxu0 }
  0xfc   : > { %v895_v9 = vadd.f32 %v894_v8, %v893_v3  ;;  %v922_v10 = vpop.f32.mrf.mxu1 }
  0xfd   : > { %v657_v11 = vmul.f32 %v644_v54, %v621_v7  ;;  %v923_v12 = vadd.f32 %v922_v10, %v921_v5  ;;  %v896_v13 = vpop.f32.mrf.mxu0  ;;  %v688_v16 = vmul.f32 0.2, %v684_v6 }
  0xfe   : > { %v924_v15 = vpop.f32.mrf.mxu1 }
  0xff   : > { %v685_v17 = vadd.f32 %v672_v14, %v657_v11  ;;  %v626_v18 = vadd.f32 %v923_v12, %v895_v9  ;;  %v897_v19 = vpop.f32.mrf.mxu0  ;;  %v692_v26 = vmax.f32 %v684_v6, %v688_v16 }
 0x100   : > { %v898_v20 = vadd.f32 %v897_v19, %v896_v13  ;;  %v925_v21 = vpop.f32.mrf.mxu1 }
 0x101   : > { %v689_v22 = vmul.f32 0.2, %v685_v17  ;;  %v658_v23 = vmul.f32 %v649_v51, %v626_v18  ;;  %v926_v24 = vadd.f32 %v925_v21, %v924_v15 }
 0x103   : > { %v693_v27 = vmax.f32 %v685_v17, %v689_v22  ;;  %v686_v28 = vadd.f32 %v677_v25, %v658_v23  ;;  %v629_v29 = vadd.f32 %v926_v24, %v898_v20 }
 0x105   : > { %v863_v30 = vpack.c.bf16 %v693_v27, %v692_v26  ;;  %v659_v31 = vmul.f32 %v654_v62, %v629_v29  ;;  %v690_v33 = vmul.f32 0.2, %v686_v28 }
 0x107   : > { %864 = vst [vmem:[%s228_s10] sm:$0xff] %v863_v30   ;;  %v687_v34 = vadd.f32 %v682_v32, %v659_v31  ;;  %v694_v36 = vmax.f32 %v686_v28, %v690_v33 }
 0x109   : > { %v691_v35 = vmul.f32 0.2, %v687_v34 }
 0x10b   : > { %v695_v37 = vmax.f32 %v687_v34, %v691_v35 }
 0x10d   : > { %v868_v38 = vpack.c.bf16 %v695_v37, %v694_v36 }
 0x10f   : > { %870 = vst [vmem:[%s228_s10 + $0x8] sm:$0xff] %v868_v38  }
 0x110 PF: > { %s14_s17 = sadd.s32 1, %s1020_s17   ;;  %s1172_s15 = smov %s1016_s16 }
 0x111   : > { %p11_p5 = scmp.ge.s32.totalorder %s14_s17, 4   ;;  %s1173_s16 = smov %s1175_s18 }
 0x113   :  { %13 = sbr.rel (!%p11_p5) target bundleno = 2 (0x2), region = 66 }

// kernel: forward.19
= control target key start
LH: loop header
LB: loop body
LE: loop exit
PB: predicated region body
PF: predicated region fallthrough
CT: control target
= control target key end

     0   :  { %s884_s15 = smov 0   ;;  %s886_s16 = smov 0   ;;  %s985_s0 = inlined_call_operand.vmem [shape: bf16[2,288,128], index: 0, kind: input, shape index: {}]   ;;  %s986_s1 = inlined_call_operand.vmem [shape: bf16[32,288], index: 1, kind: input, shape index: {}]   ;;  %s987_s2 = inlined_call_operand.vmem [shape: f32[32,1], index: 2, kind: input, shape index: {}]   ;;  %s988_s3 = inlined_call_operand.vmem [shape: f32[32,1], index: 3, kind: input, shape index: {}]   ;;  %s989_s4 = inlined_call_operand.vmem [shape: bf16[2,32,128], index: 4, kind: output, shape index: {}]  }
   0x1   :  { %s888_s17 = smov 0  }
   0x2 LB: > { %s26_s18 = sadd.s32 1, %s852_s16  ;;  %p688_p0 = scmp.ge.s32.totalorder %s856_s17, 1  ;;  %s856_s17 = sphi %s888_s17, %s14_s17   ;;  %s852_s16 = sphi %s886_s16, %s991_s16   ;;  %s848_s15 = sphi %s884_s15, %s990_s15  }
   0x3   : > { %p28_p1 = scmp.ge.s32.totalorder %s26_s18, 2  ;;  %p181_p2 = scmp.lt.s32.totalorder %s856_s17, 3 }
   0x5   : > { %s993_s18 = smov (%p28_p1, %s26_s18), 0  ;;  %p182_p3 = pnand %p688_p0, %p181_p2 }
   0x6   : > { %p213_p4 = scmp.lt.s32.totalorder (!%p182_p3), %s848_s15, 1 }
   0x7   : > { %185 = sbr.rel (%p182_p3) target bundleno = 271 (0x10f), region = 36 }
   0xc   : > { %vm412_vm0 = vcmask 261120   ;;  %v828_v0 = vld [vmem:[%s986_s1 + $0x4] ss:$12 sps:$4 sm:$0xff]   ;;  %s995_s15 = smov (!%p213_p4, %s848_s15), 1  ;;  %v829_v1 = vld [vmem:[%s986_s1 + $0x8] ss:$12 sps:$4 sm:$0xff]  }
   0xd   : > { %451 = vmatprep.mubr.bf16.mxu0 %v828_v0  ;;  %s780_s23 = smul.u32 144, %s995_s15  ;;  %776 = vmatprep.mubr.msk.bf16.mxu1 %vm412_vm0, %v829_v1  ;;  %v858_v2 = vmov 0   ;;  %v519_v3 = vld [vmem:[%s987_s2 + $0x10] sm:$0xff]  ;;  %v517_v4 = vld [vmem:[%s987_s2] sm:$0xff]  ;;  %v520_v5 = vld [vmem:[%s987_s2 + $0x18] sm:$0xff]  ;;  %s724_s29 = sshll.u32 %s995_s15, 4 }
   0xe   : > { %807 = vset.pattern.permute.xlu1 %v858_v2  ;;  %806 = vset.pattern.permute.xlu0 %v858_v2  ;;  %v518_v6 = vld [vmem:[%s987_s2 + $0x8] sm:$0xff]  ;;  %v545_v11 = vld [vmem:[%s988_s3] sm:$0xff]  ;;  %v548_v14 = vld [vmem:[%s988_s3 + $0x18] sm:$0xff]  ;;  %s228_s6 = scalar_lea.vmem %s989_s4, %s724_s29 }
   0xf   : > { %533 = vperm.xlu1 %807, %v519_v3   ;;  %s921_s30 = scalar_lea.vmem %s985_s0, %s780_s23  ;;  %523 = vperm.xlu0 %806, %v517_v4   ;;  %v546_v9 = vld [vmem:[%s988_s3 + $0x8] sm:$0xff]  ;;  %v547_v23 = vld [vmem:[%s988_s3 + $0x10] sm:$0xff]  ;;  %v833_v32 = vld [vmem:[%s986_s1 + $0x18] ss:$12 sps:$4 sm:$0xff]  }
  0x10   : > { %v808_v7 = vld [vmem:[%s921_s30 + $0x78] sm:$0xff]   ;;  %v810_v10 = vld [vmem:[%s921_s30 + $0x70] sm:$0xff]   ;;  %v812_v13 = vld [vmem:[%s921_s30 + $0x68] sm:$0xff]  }
  0x11   : > { %v809_v8 = vld [vmem:[%s921_s30 + $0x38] sm:$0xff]   ;;  %740 = vmatprep.subr.bf16.mxu0 %v808_v7  ;;  %v811_v12 = vld [vmem:[%s921_s30 + $0x30] sm:$0xff]   ;;  %v813_v15 = vld [vmem:[%s921_s30 + $0x28] sm:$0xff]  }
  0x12   : > { %741 = vmatpush3.bf16.msra.mxu0 %v809_v8  ;;  %v814_v16 = vld [vmem:[%s921_s30 + $0x60] sm:$0xff]   ;;  %v816_v18 = vld [vmem:[%s921_s30 + $0x58] sm:$0xff]   ;;  %v822_v19 = vld [vmem:[%s921_s30 + $0x88] sm:$0xff]  }
  0x13   : > { %538 = vperm.xlu1 %807, %v520_v5   ;;  %528 = vperm.xlu0 %806, %v518_v6   ;;  %v815_v17 = vld [vmem:[%s921_s30 + $0x20] sm:$0xff]   ;;  %v817_v20 = vld [vmem:[%s921_s30 + $0x18] sm:$0xff]   ;;  %v818_v21 = vld [vmem:[%s921_s30 + $0x50] sm:$0xff]  }
  0x14   : > { %742 = vmatprep.subr.bf16.mxu0 %v810_v10  ;;  %772 = vmatprep.subr.bf16.mxu1 %v822_v19  ;;  %v825_v22 = vld [vmem:[%s921_s30 + $0x80] sm:$0xff]   ;;  %v819_v24 = vld [vmem:[%s921_s30 + $0x10] sm:$0xff]   ;;  %v820_v25 = vld [vmem:[%s921_s30 + $0x48] sm:$0xff]  }
  0x15   : > { %773 = vmatpush3.bf16.msra.mxu1 %v822_v19  ;;  %v830_v26 = vld [vmem:[%s986_s1 + $0x20] ss:$12 sps:$4 sm:$0xff]   ;;  %v831_v31 = vld [vmem:[%s986_s1 + $0x1c] ss:$12 sps:$4 sm:$0xff]  }
  0x16   : > { %743 = vmatpush3.bf16.msra.mxu0 %v811_v12  ;;  %774 = vmatprep.subr.bf16.mxu1 %v825_v22  ;;  %v821_v27 = vld [vmem:[%s921_s30 + $0x8] sm:$0xff]   ;;  %v823_v28 = vld [vmem:[%s921_s30 + $0x40] sm:$0xff]  }
  0x17   : > { %556 = vperm.xlu1 %807, %v546_v9   ;;  %551 = vperm.xlu0 %806, %v545_v11   ;;  %v824_v29 = vld [vmem:[%s921_s30] sm:$0xff]  }
  0x18   : > { %744 = vmatprep.subr.bf16.mxu0 %v812_v13  ;;  %v826_v30 = vld [vmem:[%s986_s1] ss:$12 sps:$4 sm:$0xff]  }
  0x19   : > { %775 = vmatpush3.bf16.msra.mxu1 %v825_v22 }
  0x1a   : > { %745 = vmatpush3.bf16.msra.mxu0 %v813_v15 }
  0x1b   : > { %566 = vperm.xlu1 %807, %v548_v14   ;;  %746 = vmatprep.subr.bf16.mxu0 %v814_v16 }
  0x1c   : > { %561 = vperm.xlu0 %806, %v547_v23   ;;  %777 = vmatmul.mubr.msk.bf16.vlgmr.msra.gmra.mxu1 %vm412_vm0, %v830_v26 }
  0x1e   : > { %747 = vmatpush3.bf16.msra.mxu0 %v815_v17 }
  0x1f   : > { %748 = vmatprep.subr.bf16.mxu0 %v816_v18 }
  0x22   : > { %749 = vmatpush3.bf16.msra.mxu0 %v817_v20 }
  0x23   : > { %750 = vmatprep.subr.bf16.mxu0 %v818_v21 }
  0x26   : > { %751 = vmatpush3.bf16.msra.mxu0 %v819_v24 }
  0x27   : > { %752 = vmatprep.subr.bf16.mxu0 %v820_v25 }
  0x2a   : > { %753 = vmatpush3.bf16.msra.mxu0 %v821_v27 }
  0x2b   : > { %754 = vmatprep.subr.bf16.mxu0 %v823_v28 }
  0x2e   : > { %755 = vmatpush3.bf16.msra.mxu0 %v824_v29 }
  0x31   : > { %452 = vmatmul.mubr.bf16.vlgmr.msra.gmra.mxu0 %v826_v30 }
  0x32   : > { %459 = vmatprep.mubr.bf16.mxu0 %v831_v31 }
  0x39   : > { %460 = vmatmul.mubr.bf16.gmra.mxu0 %v833_v32 }
  0x8a   : > { %v524_v34 = vpop.permute.xlu0 %523  ;;  %v534_v36 = vpop.permute.xlu1 %533 }
  0x8e   : > { %v529_v38 = vpop.permute.xlu0 %528  ;;  %v539_v43 = vpop.permute.xlu1 %538 }
  0x92   : > { %v552_v49 = vpop.permute.xlu0 %551  ;;  %v557_v56 = vpop.permute.xlu1 %556 }
  0x96   : > { %v567_v8 = vpop.permute.xlu1 %566 }
  0x97   : > { %v562_v1 = vpop.permute.xlu0 %561 }
  0xdc   : > { %v778_v33 = vpop.f32.mrf.mxu1 }
  0xde   : > { %v502_v35 = vpop.f32.mrf.mxu1 }
  0xe0   : > { %v779_v40 = vpop.f32.mrf.mxu1 }
  0xe2   : > { %v505_v46 = vpop.f32.mrf.mxu1 }
  0xf1   : > { %v756_v37 = vpop.f32.mrf.mxu0 }
  0xf3   : > { %v757_v39 = vpop.f32.mrf.mxu0 }
  0xf4   : > { %v758_v41 = vadd.f32 %v757_v39, %v756_v37 }
  0xf5   : > { %v759_v42 = vpop.f32.mrf.mxu0 }
  0xf6   : > { %v503_v44 = vadd.f32 %v758_v41, %v502_v35 }
  0xf7   : > { %v760_v45 = vpop.f32.mrf.mxu0 }
  0xf8   : > { %v541_v47 = vmul.f32 %v524_v34, %v503_v44  ;;  %v761_v48 = vadd.f32 %v760_v45, %v759_v42 }
  0xf9   : > { %v762_v50 = vpop.f32.mrf.mxu0 }
  0xfa   : > { %v569_v51 = vadd.f32 %v552_v49, %v541_v47  ;;  %v506_v52 = vadd.f32 %v761_v48, %v505_v46 }
  0xfb   : > { %v763_v53 = vpop.f32.mrf.mxu0 }
  0xfc   : > { %v542_v54 = vmul.f32 %v529_v38, %v506_v52  ;;  %v764_v55 = vadd.f32 %v763_v53, %v762_v50  ;;  %v573_v58 = vmul.f32 0.2, %v569_v51 }
  0xfd   : > { %v765_v57 = vpop.f32.mrf.mxu0 }
  0xfe   : > { %v570_v59 = vadd.f32 %v557_v56, %v542_v54  ;;  %v511_v60 = vadd.f32 %v778_v33, %v764_v55  ;;  %v577_v2 = vmax.f32 %v569_v51, %v573_v58 }
  0xff   : > { %v766_v61 = vpop.f32.mrf.mxu0 }
 0x100   : > { %v574_v62 = vmul.f32 0.2, %v570_v59  ;;  %v543_v63 = vmul.f32 %v534_v36, %v511_v60  ;;  %v767_v0 = vadd.f32 %v766_v61, %v765_v57 }
 0x102   : > { %v578_v3 = vmax.f32 %v570_v59, %v574_v62  ;;  %v571_v4 = vadd.f32 %v562_v1, %v543_v63  ;;  %v514_v5 = vadd.f32 %v779_v40, %v767_v0 }
 0x104   : > { %v732_v6 = vpack.c.bf16 %v578_v3, %v577_v2  ;;  %v544_v7 = vmul.f32 %v539_v43, %v514_v5  ;;  %v575_v9 = vmul.f32 0.2, %v571_v4 }
 0x106   : > { %733 = vst [vmem:[%s228_s6] sm:$0xff] %v732_v6   ;;  %v572_v10 = vadd.f32 %v567_v8, %v544_v7  ;;  %v579_v12 = vmax.f32 %v571_v4, %v575_v9 }
 0x108   : > { %v576_v11 = vmul.f32 0.2, %v572_v10 }
 0x10a   : > { %v580_v13 = vmax.f32 %v572_v10, %v576_v11 }
 0x10c   : > { %v737_v14 = vpack.c.bf16 %v580_v13, %v579_v12 }
 0x10e   : > { %739 = vst [vmem:[%s228_s6 + $0x8] sm:$0xff] %v737_v14  }
 0x10f PF: > { %s14_s17 = sadd.s32 1, %s856_s17   ;;  %s990_s15 = smov %s852_s16 }
 0x110   : > { %p11_p5 = scmp.ge.s32.totalorder %s14_s17, 4   ;;  %s991_s16 = smov %s993_s18 }
 0x112   :  { %13 = sbr.rel (!%p11_p5) target bundleno = 2 (0x2), region = 66 }

// kernel: forward.21
= control target key start
LH: loop header
LB: loop body
LE: loop exit
PB: predicated region body
PF: predicated region fallthrough
CT: control target
= control target key end

     0   :  { %v991_v21 = vmov 1966171168   ;;  %v136_v23 = vlaneseq  ;;  %v992_v45 = vmov 0.0   ;;  %vm993_vm0 = vmmov 0   ;;  %s1220_s1 = inlined_call_operand.vmem [shape: bf16[800,100], index: 1, kind: input, shape index: {}]   ;;  %s1221_s0 = inlined_call_operand.vmem [shape: bf16[2,800], index: 0, kind: input, shape index: {}]   ;;  %s1222_s3 = inlined_call_operand.vmem [shape: bf16[100,1], index: 3, kind: input, shape index: {}]   ;;  %s1223_s4 = inlined_call_operand.<no memory space> [shape: f32[1,1], index: 4, kind: input, shape index: {}]   ;;  %s1224_s2 = inlined_call_operand.vmem [shape: f32[1,100], index: 2, kind: input, shape index: {}]   ;;  %s1225_s5 = inlined_call_operand.vmem [shape: f32[2,1], index: 5, kind: output, shape index: {}]  }
   0x1   :  { %v933_v0 = vld [vmem:[%s1220_s1 + $0x78] sm:$0xff]   ;;  %v937_v4 = vld [vmem:[%s1220_s1 + $0x70] sm:$0xff]   ;;  %v941_v8 = vld [vmem:[%s1220_s1 + $0x68] sm:$0xff]   ;;  %v134_v22 = vunpack.c.l.s4 %v991_v21  ;;  %vm486_vm1 = vcmask 261120   ;;  %vm716_vm2 = vcmask 1041408   ;;  %vm712_vm3 = vcmask 818176  }
   0x2   :  { %v934_v1 = vld [vmem:[%s1220_s1 + $0x38] sm:$0xff]   ;;  %827 = vmatprep.subr.bf16.mxu0 %v933_v0  ;;  %v938_v5 = vld [vmem:[%s1220_s1 + $0x30] sm:$0xff]   ;;  %v942_v9 = vld [vmem:[%s1220_s1 + $0x28] sm:$0xff]   ;;  %v137_v29 = vshrl.u32 %v136_v23, 7  ;;  %vm760_vm4 = vcmask 1024  }
   0x3   :  { %v935_v2 = vld [vmem:[%s1220_s1 + $0xf8] sm:$0xff]   ;;  %828 = vmatpush3.bf16.msra.mxu0 %v934_v1  ;;  %v939_v6 = vld [vmem:[%s1220_s1 + $0xf0] sm:$0xff]   ;;  %v943_v10 = vld [vmem:[%s1220_s1 + $0xe8] sm:$0xff]   ;;  %v135_v28 = vunpack.c.0.s8 %v134_v22 }
   0x4   :  { %v936_v3 = vld [vmem:[%s1220_s1 + $0xb8] sm:$0xff]   ;;  %849 = vmatprep.subr.bf16.mxu1 %v935_v2  ;;  %829 = vmatprep.subr.bf16.mxu0 %v937_v4  ;;  %v940_v7 = vld [vmem:[%s1220_s1 + $0xb0] sm:$0xff]   ;;  %v944_v11 = vld [vmem:[%s1220_s1 + $0xa8] sm:$0xff]  }
   0x5   :  { %850 = vmatpush3.bf16.msra.mxu1 %v936_v3  ;;  %v945_v12 = vld [vmem:[%s1220_s1 + $0x60] sm:$0xff]   ;;  %v949_v16 = vld [vmem:[%s1220_s1 + $0x58] sm:$0xff]   ;;  %v953_v20 = vld [vmem:[%s1220_s1 + $0x50] sm:$0xff]   ;;  %v138_v34 = vsub.s32 %v135_v28, %v137_v29 }
   0x6   :  { %851 = vmatprep.subr.bf16.mxu1 %v939_v6  ;;  %v946_v13 = vld [vmem:[%s1220_s1 + $0x20] sm:$0xff]   ;;  %v950_v17 = vld [vmem:[%s1220_s1 + $0x18] sm:$0xff]   ;;  %v954_v24 = vld [vmem:[%s1220_s1 + $0x10] sm:$0xff]  }
   0x7   :  { %830 = vmatpush3.bf16.msra.mxu0 %v938_v5  ;;  %v947_v14 = vld [vmem:[%s1220_s1 + $0xe0] sm:$0xff]   ;;  %v951_v18 = vld [vmem:[%s1220_s1 + $0xd8] sm:$0xff]   ;;  %v955_v25 = vld [vmem:[%s1220_s1 + $0xd0] sm:$0xff]  }
   0x8   :  { %831 = vmatprep.subr.bf16.mxu0 %v941_v8  ;;  %v948_v15 = vld [vmem:[%s1220_s1 + $0xa0] sm:$0xff]   ;;  %v952_v19 = vld [vmem:[%s1220_s1 + $0x98] sm:$0xff]   ;;  %v956_v26 = vld [vmem:[%s1220_s1 + $0x90] sm:$0xff]  }
   0x9   :  { %852 = vmatpush3.bf16.msra.mxu1 %v940_v7  ;;  %v957_v27 = vld [vmem:[%s1220_s1 + $0x48] sm:$0xff]   ;;  %v961_v33 = vld [vmem:[%s1220_s1 + $0x40] sm:$0xff]   ;;  %v966_v41 = vld [vmem:[%s1220_s1 + $0x178] sm:$0xff]  }
   0xa   :  { %853 = vmatprep.subr.bf16.mxu1 %v943_v10  ;;  %v958_v30 = vld [vmem:[%s1220_s1 + $0x8] sm:$0xff]   ;;  %v962_v35 = vld [vmem:[%s1220_s1] sm:$0xff]   ;;  %v967_v47 = vld [vmem:[%s1220_s1 + $0x138] sm:$0xff]  }
   0xb   :  { %832 = vmatpush3.bf16.msra.mxu0 %v942_v9  ;;  %v959_v31 = vld [vmem:[%s1220_s1 + $0xc8] sm:$0xff]   ;;  %v963_v36 = vld [vmem:[%s1220_s1 + $0xc0] sm:$0xff]   ;;  %v968_v50 = vld [vmem:[%s1220_s1 + $0x170] sm:$0xff]  }
   0xc   :  { %833 = vmatprep.subr.bf16.mxu0 %v945_v12  ;;  %v960_v32 = vld [vmem:[%s1220_s1 + $0x88] sm:$0xff]   ;;  %v23_v37 = vld [vmem:[%s1221_s0] sm:$0x7f]  ;;  %v969_v53 = vld [vmem:[%s1220_s1 + $0x130] sm:$0xff]  }
   0xd   :  { %854 = vmatpush3.bf16.msra.mxu1 %v944_v11  ;;  %v132_v38 = vcombine.high %v23_v37, %v23_v37  ;;  %v139_v39 = vrot.slane %v23_v37, %v138_v34  ;;  %v965_v40 = vld [vmem:[%s1220_s1 + $0x80] sm:$0xff]   ;;  %v970_v54 = vld [vmem:[%s1220_s1 + $0x168] sm:$0xff]   ;;  %v974_v60 = vld [vmem:[%s1220_s1 + $0x158] sm:$0xff]  }
   0xe   :  { %855 = vmatprep.subr.bf16.mxu1 %v947_v14  ;;  %v971_v55 = vld [vmem:[%s1220_s1 + $0x128] sm:$0xff]   ;;  %v972_v56 = vld [vmem:[%s1220_s1 + $0x160] sm:$0xff]   ;;  %v975_v62 = vld [vmem:[%s1220_s1 + $0x118] sm:$0xff]   ;;  %v10_v14 = vstv %s1223_s4 }
   0xf   :  { %834 = vmatpush3.bf16.msra.mxu0 %v946_v13  ;;  %v147_v42 = vcombine.high %v139_v39, %v139_v39  ;;  %v155_v43 = vrot.slane %v139_v39, %v138_v34  ;;  %v146_v44 = vrot.slane %v132_v38, %v138_v34  ;;  %v980_v57 = vld [vmem:[%s1220_s1 + $0x188] sm:$0xff]   ;;  %v973_v58 = vld [vmem:[%s1220_s1 + $0x120] sm:$0xff]   ;;  %v976_v0 = vld [vmem:[%s1220_s1 + $0x150] sm:$0xff]   ;;  %11 = vst [vmem:[#allocation2] sm:$0x1] %v10_v14 }
  0x10   :  { %835 = vmatprep.subr.bf16.mxu0 %v949_v16  ;;  %v983_v61 = vld [vmem:[%s1220_s1 + $0x180] sm:$0xff]   ;;  %v977_v1 = vld [vmem:[%s1220_s1 + $0x110] sm:$0xff]   ;;  %v978_v2 = vld [vmem:[%s1220_s1 + $0x148] sm:$0xff]  }
  0x11   :  { %856 = vmatpush3.bf16.msra.mxu1 %v948_v15  ;;  %v169_v46 = vrot.slane %v147_v42, %v138_v34  ;;  %v148_v48 = vcombine.high %v146_v44, %v146_v44  ;;  %v177_v49 = vcombine.high %v155_v43, %v155_v43  ;;  %v162_v59 = vrot.slane %v146_v44, %v138_v34  ;;  %v979_v3 = vld [vmem:[%s1220_s1 + $0x108] sm:$0xff]   ;;  %v981_v4 = vld [vmem:[%s1220_s1 + $0x140] sm:$0xff]   ;;  %v984_v6 = vld [vmem:[%s1222_s3 + $0x30] ss:$0 sps:$4 sm:$0x33]  }
  0x12   :  { %857 = vmatprep.subr.bf16.mxu1 %v951_v18  ;;  %v982_v5 = vld [vmem:[%s1220_s1 + $0x100] sm:$0xff]   ;;  %v718_v7 = vsel %vm716_vm2, %v984_v6, 0  ;;  %v985_v8 = vld [vmem:[%s1222_s3 + $0x28] sm:$0xff]   ;;  %v987_v10 = vld [vmem:[%s1222_s3 + $0x18] sm:$0xff]  }
  0x13   :  { %836 = vmatpush3.bf16.msra.mxu0 %v950_v17  ;;  %522 = vmatprep.mubr.bf16.mxu0 %v169_v46  ;;  %v179_v51 = vcombine.high %v169_v46, %v169_v46  ;;  %v176_v52 = vrot.slane %v148_v48, %v138_v34  ;;  %v178_v63 = vcombine.high %v162_v59, %v162_v59  ;;  %v986_v9 = vld [vmem:[%s1222_s3 + $0x20] sm:$0xff]   ;;  %v988_v11 = vld [vmem:[%s1222_s3 + $0x10] sm:$0xff]   ;;  %v989_v12 = vld [vmem:[%s1222_s3 + $0x8] sm:$0xff]  }
  0x14   :  { %837 = vmatprep.subr.bf16.mxu0 %v953_v20  ;;  %v990_v13 = vld [vmem:[%s1222_s3] sm:$0xff]  }
  0x15   :  { %858 = vmatpush3.bf16.msra.mxu1 %v952_v19  ;;  %562 = vmatprep.mubr.bf16.mxu1 %v179_v51  ;;  %v766_v28 = vld [vmem:[%s1224_s2] ss:$0 sm:$0xff] }
  0x16   :  { %859 = vmatprep.subr.bf16.mxu1 %v955_v25  ;;  %v818_v42 = vld [vmem:[#allocation2] ss:$0 sm:$0xff] }
  0x17   :  { %838 = vmatpush3.bf16.msra.mxu0 %v954_v24 }
  0x18   :  { %839 = vmatprep.subr.bf16.mxu0 %v957_v27 }
  0x19   :  { %860 = vmatpush3.bf16.msra.mxu1 %v956_v26 }
  0x1a   :  { %861 = vmatprep.subr.bf16.mxu1 %v959_v31 }
  0x1b   :  { %840 = vmatpush3.bf16.msra.mxu0 %v958_v30 }
  0x1c   :  { %841 = vmatprep.subr.bf16.mxu0 %v961_v33 }
  0x1d   :  { %862 = vmatpush3.bf16.msra.mxu1 %v960_v32 }
  0x1e   :  { %863 = vmatprep.subr.bf16.mxu1 %v963_v36 }
  0x1f   :  { %842 = vmatpush3.bf16.msra.mxu0 %v962_v35 }
  0x20   :  { %871 = vmatprep.subr.bf16.mxu0 %v966_v41 }
  0x21   :  { %864 = vmatpush3.bf16.msra.mxu1 %v965_v40 }
  0x22   :  { %904 = vmatprep.subr.bf16.mxu1 %v992_v45  ;;  %523 = vmatmul.mubr.bf16.vlgmr.msra.gmra.mxu0 %v155_v43 }
  0x23   :  { %872 = vmatpush3.bf16.msra.mxu0 %v967_v47  ;;  %602 = vmatprep.mubr.bf16.mxu0 %v176_v52 }
  0x24   :  { %563 = vmatmul.mubr.bf16.vlgmr.msra.gmra.mxu1 %v177_v49  ;;  %873 = vmatprep.subr.bf16.mxu0 %v968_v50 }
  0x25   :  { %908 = vmatprep.mubr.msk.bf16.mxu1 %vm993_vm0, %v992_v45  ;;  %905 = vmatpush3.bf16.msra.mxu1 %v980_v57 }
  0x26   :  { %906 = vmatprep.subr.bf16.mxu1 %v992_v45 }
  0x27   :  { %874 = vmatpush3.bf16.msra.mxu0 %v969_v53 }
  0x28   :  { %875 = vmatprep.subr.bf16.mxu0 %v970_v54 }
  0x29   :  { %907 = vmatpush3.bf16.msra.mxu1 %v983_v61 }
  0x2a   :  { %912 = vmatprep.subr.bf16.mxu1 %v992_v45 }
  0x2b   :  { %876 = vmatpush3.bf16.msra.mxu0 %v971_v55 }
  0x2c   :  { %877 = vmatprep.subr.bf16.mxu0 %v972_v56  ;;  %909 = vmatmul.mubr.msk.bf16.vlgmr.msra.gmra.mxu1 %vm486_vm1, %v178_v63 }
  0x2d   :  { %926 = vmatprep.mubr.msk.bf16.mxu1 %vm993_vm0, %v992_v45  ;;  %913 = vmatpush3.bf16.msra.mxu1 %v718_v7 }
  0x2e   :  { %914 = vmatprep.subr.bf16.mxu1 %v992_v45 }
  0x2f   :  { %878 = vmatpush3.bf16.msra.mxu0 %v973_v58 }
  0x30   :  { %879 = vmatprep.subr.bf16.mxu0 %v974_v60 }
  0x31   :  { %915 = vmatpush3.bf16.msra.mxu1 %v985_v8 }
  0x32   :  { %916 = vmatprep.subr.bf16.mxu1 %v992_v45 }
  0x33   :  { %880 = vmatpush3.bf16.msra.mxu0 %v975_v62 }
  0x34   :  { %881 = vmatprep.subr.bf16.mxu0 %v976_v0 }
  0x35   :  { %917 = vmatpush3.bf16.msra.mxu1 %v986_v9 }
  0x36   :  { %918 = vmatprep.subr.bf16.mxu1 %v992_v45 }
  0x37   :  { %882 = vmatpush3.bf16.msra.mxu0 %v977_v1 }
  0x38   :  { %883 = vmatprep.subr.bf16.mxu0 %v978_v2 }
  0x39   :  { %919 = vmatpush3.bf16.msra.mxu1 %v987_v10 }
  0x3a   :  { %920 = vmatprep.subr.bf16.mxu1 %v992_v45 }
  0x3b   :  { %884 = vmatpush3.bf16.msra.mxu0 %v979_v3 }
  0x3c   :  { %885 = vmatprep.subr.bf16.mxu0 %v981_v4 }
  0x3d   :  { %921 = vmatpush3.bf16.msra.mxu1 %v988_v11 }
  0x3e   :  { %922 = vmatprep.subr.bf16.mxu1 %v992_v45 }
  0x3f   :  { %886 = vmatpush3.bf16.msra.mxu0 %v982_v5 }
  0x41   :  { %923 = vmatpush3.bf16.msra.mxu1 %v989_v12 }
  0x42   :  { %603 = vmatmul.mubr.bf16.vlgmr.msra.gmra.mxu0 %v162_v59  ;;  %924 = vmatprep.subr.bf16.mxu1 %v992_v45 }
  0x45   :  { %925 = vmatpush3.bf16.msra.mxu1 %v990_v13 }
  0xe2   :  { %v843_v15 = vpop.f32.mrf.mxu0 }
  0xe4   :  { %v844_v16 = vpop.f32.mrf.mxu0  ;;  %v865_v17 = vpop.f32.mrf.mxu1 }
  0xe5   :  { %v845_v27 = vadd.f32 %v844_v16, %v843_v15 }
  0xe6   :  { %v846_v18 = vpop.f32.mrf.mxu0  ;;  %v866_v19 = vpop.f32.mrf.mxu1 }
  0xe7   :  { %v525_v29 = vadd.f32 %v845_v27, %v766_v28  ;;  %v867_v30 = vadd.f32 %v866_v19, %v865_v17 }
  0xe8   :  { %v847_v20 = vpop.f32.mrf.mxu0  ;;  %v868_v21 = vpop.f32.mrf.mxu1 }
  0xe9   :  { %v565_v33 = vadd.f32 %v867_v30, %v525_v29 }
  0xea   :  { %v869_v22 = vpop.f32.mrf.mxu1 }
  0xec   :  { %v644_v23 = vpop.f32.mrf.mxu1 }
  0xee   :  { %v910_v24 = vpop.f32.mrf.mxu1 }
  0xf0   :  { %v647_v25 = vpop.f32.mrf.mxu1 }
  0xf2   :  { %v911_v26 = vpop.f32.mrf.mxu1 }
 0x102   :  { %v887_v31 = vpop.f32.mrf.mxu0 }
 0x104   :  { %v888_v32 = vpop.f32.mrf.mxu0 }
 0x105   :  { %v889_v34 = vadd.f32 %v888_v32, %v887_v31 }
 0x106   :  { %v890_v35 = vpop.f32.mrf.mxu0 }
 0x107   :  { %v605_v36 = vadd.f32 %v889_v34, %v565_v33 }
 0x108   :  { %v891_v37 = vpop.f32.mrf.mxu0 }
 0x109   :  { %v645_v38 = vadd.f32 %v644_v23, %v605_v36 }
 0x10b   :  { %v650_v39 = vmul.f32 0.2, %v645_v38 }
 0x10d   :  { %v651_v40 = vmax.f32 %v645_v38, %v650_v39 }
 0x10f   :  { %v652_v41 = vpack.c.bf16 %v651_v40, %v651_v40 }
 0x111   :  { %927 = vmatmul.mubr.msk.bf16.vlgmr.msra.gmra.mxu1 %vm712_vm3, %v652_v41 }
 0x1d1   :  { %v754_v43 = vpop.f32.mrf.mxu1 }
 0x1d2   :  { %v755_v44 = vadd.f32 %v818_v42, %v754_v43 }
 0x1d3   :  { %v928_v45 = vpop.f32.mrf.mxu1 }
 0x1d4   :  { %761 = vst.msk [vmem:[%s1225_s5] sm:$0x3] %vm760_vm4, %v755_v44 }
 0x1d5   :  { %v757_v46 = vpop.f32.mrf.mxu1 }
 0x1d7   :  { %v929_v47 = vpop.f32.mrf.mxu1 }

</bundles_post_ra>
